<compile_context>
chip_gen: v5e
topology: v5e:2x2
jax: 0.10.0
libtpu: 0.0.40
codegen_flags: <defaults>
</compile_context>

<pallas_src>
import functools
import math

import jax
import jax.numpy as jnp
from jax.experimental import pallas as pl
from jax.experimental.pallas import tpu as pltpu


# ----------------------------------------------------------------------------
# Small helpers
# ----------------------------------------------------------------------------
def _round_up(x, m):
    return ((x + m - 1) // m) * m


def _num_tensorcores():
    """Best-effort count of TensorCores one pallas_call can shard over."""
    try:
        info = pltpu.get_tpu_info()
        for attr in ("num_cores", "core_count", "num_tensorcores", "tensorcore_count"):
            v = getattr(info, attr, None)
            if isinstance(v, int) and v > 0:
                return v
    except Exception:
        pass
    try:
        kind = str(getattr(jax.devices()[0], "device_kind", "")).lower()
        # megacore / dual-TC chips; v5e/v6e expose a single TensorCore
        if any(s in kind for s in ("v4", "v5p", "v7", "7x")):
            return 2
    except Exception:
        pass
    return 1


# ----------------------------------------------------------------------------
# Kernel
# ----------------------------------------------------------------------------
def _make_siren_kernel(num_layers, dim_hidden, dim_out, use_bf16):
    """Full SIREN MLP on one batch tile (features on sublanes, batch on lanes).

    Refs:
      x_ref     (din_pad, TM)  f32   rows = [t | xy | 1 | 0-pad]
      w0_ref    (dh, din_pad)  f32   layer-0 weights, w0_initial and bias folded
      wrest_ref (dh, L*dh)     bf16/f32  layers 1..L packed column-wise, w0 folded
      b_ref     (dh, L)        f32   biases of layers 1..L (final bias row-padded)
      out_ref   (dim_out, TM)  f32
    """
    total_layers = num_layers + 1
    compute_dtype = jnp.bfloat16 if use_bf16 else jnp.float32

    def kernel(x_ref, w0_ref, wrest_ref, b_ref, out_ref):
        # ---- layer 0 on the MXU (K = din_pad = 8): bias rides the constant-1
        #      feature row, so z0 is a single dot, no separate add.
        z = jnp.dot(w0_ref[...], x_ref[...], preferred_element_type=jnp.float32)
        h = jnp.sin(z)  # (dh, TM) f32
        # TODO(synk): jnp.sin lowers to a VPU polynomial (no EUP sin); if the
        # bundle dump shows VALU as the saturating slot, swap in a cheaper
        # fixed-degree sine approximation here.

        wall = wrest_ref[...]  # tiny, stays in vregs
        ball = b_ref[...]
        for li in range(1, total_layers):
            c0 = (li - 1) * dim_hidden
            W = wall[:, c0:c0 + dim_hidden]              # (dh, dh) static slice
            b = ball[:, li - 1:li]                       # (dh, 1)  f32
            z = jnp.dot(W, h.astype(compute_dtype),
                        preferred_element_type=jnp.float32) + b
            if li < total_layers - 1:
                h = jnp.sin(z)                            # w0 already folded in
            else:
                h = z                                     # final_activation = Identity
        out_ref[...] = h[:dim_out, :].astype(out_ref.dtype)

    return kernel


# ----------------------------------------------------------------------------
# Parameter prep: transpose to (d_out, d_in), fold w0 scales, pack into slabs
# ----------------------------------------------------------------------------
def _prepare_kernel_params(params, num_layers, dim_in, din_pad, w0, w0_initial,
                           use_bf16):
    """params: list of (W [d_in, d_out], b [1, d_out]) as in init_siren_params.

    sin(w0 * (x @ W + b)) == sin(x @ (w0*W) + (w0*b)), so w0 is folded once here.
    Returns (w0_slab f32, weight_slab, bias_slab f32).
    """
    total = num_layers + 1
    dim_hidden = params[0][0].shape[1]
    dim_out = params[-1][0].shape[1]
    assert dim_out <= dim_hidden, "slab packing assumes dim_out <= dim_hidden"
    compute_dtype = jnp.bfloat16 if use_bf16 else jnp.float32

    # Layer 0 stays f32 (w0_initial amplifies rounding noise); bias goes into
    # the column matching the constant-1 input row.
    W0 = jnp.asarray(params[0][0], jnp.float32).T * w0_initial       # (dh, dim_in)
    b0 = jnp.asarray(params[0][1], jnp.float32).reshape(-1, 1) * w0_initial
    w0_slab = jnp.zeros((dim_hidden, din_pad), jnp.float32)
    w0_slab = w0_slab.at[:, :dim_in].set(W0)
    w0_slab = w0_slab.at[:, dim_in:dim_in + 1].set(b0)

    # Layers 1..num_layers packed column-wise into one weight + one bias slab.
    w_cols, b_cols = [], []
    for li in range(1, total):
        W, b = params[li]
        Wt = jnp.asarray(W, jnp.float32).T                # (d_out, dh)
        bt = jnp.asarray(b, jnp.float32).reshape(-1, 1)   # (d_out, 1)
        if li < total - 1:                                # hidden siren: fold w0
            Wt = Wt * w0
            bt = bt * w0
        if Wt.shape[0] < dim_hidden:                      # final layer: pad rows
            Wt = jnp.pad(Wt, ((0, dim_hidden - Wt.shape[0]), (0, 0)))
            bt = jnp.pad(bt, ((0, dim_hidden - bt.shape[0]), (0, 0)))
        w_cols.append(Wt)
        b_cols.append(bt)
    w_slab = jnp.concatenate(w_cols, axis=1).astype(compute_dtype)   # (dh, L*dh)
    b_slab = jnp.concatenate(b_cols, axis=1)                         # (dh, L) f32
    return w0_slab, w_slab, b_slab


# ----------------------------------------------------------------------------
# Wrapper (call under jax.jit so the pad/transpose/param prep fuse with the call)
# ----------------------------------------------------------------------------
def mlp_siren_forward(t, xy, params, *, num_layers, w0, w0_initial,
                      tile_m=8192, use_bf16=True):
    """t: [N, dim_t], xy: [N, dim_xy].  params: list of (W [din,dout], b [1,dout])."""
    n, dim_t = t.shape
    dim_xy = xy.shape[1]
    dim_in = dim_t + dim_xy
    dim_hidden = params[0][0].shape[1]
    dim_out = params[-1][0].shape[1]
    din_pad = _round_up(dim_in + 1, 8)        # features + constant-1 row, 8-sublane

    # --- generation-aware, lane-dense batch tiling ---------------------------
    n128 = _round_up(n, 128)
    tile_m = max(128, (int(tile_m) // 128) * 128)
    n_cores = _num_tensorcores()
    if n_cores >= 2 and n128 >= 256:
        # split into >= 2 tiles so the "parallel" axis can shard across both TCs
        tile_m = min(tile_m, _round_up(n128 // 2, 128))
    tile_m = min(tile_m, n128)
    n_tiles = -(-n128 // tile_m)
    if n_cores >= 2 and n_tiles > 1 and n_tiles % 2 == 1:
        n_tiles += 1                          # even tile count -> balanced megacore
    n_padded = n_tiles * tile_m

    # --- one feature-major input slab: rows = [t | xy | 1 | 0-pad] -----------
    feat = jnp.concatenate(
        [t.astype(jnp.float32), xy.astype(jnp.float32),
         jnp.ones((n, 1), jnp.float32)], axis=-1)              # (n, dim_in+1)
    x = jnp.pad(feat.T, ((0, din_pad - (dim_in + 1)), (0, n_padded - n)))

    w0_slab, w_slab, b_slab = _prepare_kernel_params(
        params, num_layers, dim_in, din_pad, w0, w0_initial, use_bf16)

    kernel = _make_siren_kernel(num_layers, dim_hidden, dim_out, use_bf16)

    in_specs = [
        pl.BlockSpec((din_pad, tile_m), lambda i: (0, i)),     # activations tile
        pl.BlockSpec(w0_slab.shape, lambda i: (0, 0)),         # resident params
        pl.BlockSpec(w_slab.shape, lambda i: (0, 0)),
        pl.BlockSpec(b_slab.shape, lambda i: (0, 0)),
    ]
    out_specs = pl.BlockSpec((dim_out, tile_m), lambda i: (0, i))  # lane-dense

    # VMEM per step is a few MiB at tile_m=8192 / dh=32 -> no vmem_limit needed
    # on any generation (v5e 16 MiB scoped default is the tightest).
    out_T = pl.pallas_call(
        kernel,
        out_shape=jax.ShapeDtypeStruct((dim_out, n_padded), jnp.float32),
        grid_spec=pltpu.PrefetchScalarGridSpec(
            num_scalar_prefetch=0,
            grid=(n_tiles,),
            in_specs=in_specs,
            out_specs=out_specs,
        ),
        compiler_params=pltpu.CompilerParams(
            dimension_semantics=("parallel",),
        ),
    )(x, w0_slab, w_slab, b_slab)

    return out_T[:, :n].T                     # back to (N, dim_out)


# ----------------------------------------------------------------------------
# Deterministic parameter init (SIREN init, same scheme as siren-pytorch)
# ----------------------------------------------------------------------------
def init_siren_params(key, num_layers, dim_hidden, dim_in, dim_out, w0, w0_initial):
    """Returns list of (W [din,dout], b [1,dout]) for num_layers hidden + 1 final."""
    params = []
    layer_dims = []
    for i in range(num_layers):
        d_in = dim_in if i == 0 else dim_hidden
        layer_dims.append((d_in, dim_hidden, w0_initial if i == 0 else w0, i == 0))
    layer_dims.append((dim_hidden, dim_out, w0, False))

    for (d_in, d_out, layer_w0, is_first) in layer_dims:
        key, kw, kb = jax.random.split(key, 3)
        w_std = (1.0 / d_in) if is_first else (math.sqrt(6.0 / d_in) / layer_w0)
        W = jax.random.uniform(kw, (d_in, d_out), jnp.float32, -w_std, w_std)
        b = jax.random.uniform(kb, (1, d_out), jnp.float32, -w_std, w_std)
        params.append((W, b))
    return params


# ----------------------------------------------------------------------------
# Pure-JAX reference for correctness checking
# ----------------------------------------------------------------------------
def mlp_siren_ref(t, xy, params, *, num_layers, w0, w0_initial):
    h = jnp.concatenate([t, xy], axis=-1).astype(jnp.float32)
    total = num_layers + 1
    for li, (W, b) in enumerate(params):
        z = h @ W + b
        if li < total - 1:
            layer_w0 = w0_initial if li == 0 else w0
            h = jnp.sin(layer_w0 * z)
        else:
            h = z
    return h


# ----------------------------------------------------------------------------
if __name__ == "__main__":
    # Small config consistent with the module's forward(t, xy):
    #   t: [N, 1], xy: [N, 2]  ->  dim_in = 3
    num_layers = 3
    dim_hidden = 32
    dim_in = 3
    dim_out = 1
    w0 = 1.0
    w0_initial = 30.0
    N = 300  # deliberately not a multiple of 128 to exercise the padding path

    key = jax.random.PRNGKey(0)
    key, kt, kxy = jax.random.split(key, 3)
    t = jax.random.uniform(kt, (N, 1), jnp.float32)
    xy = jax.random.uniform(kxy, (N, 2), jnp.float32, -1.0, 1.0)

    params = init_siren_params(
        key, num_layers, dim_hidden, dim_in, dim_out, w0, w0_initial
    )

    ref = mlp_siren_ref(
        t, xy, params, num_layers=num_layers, w0=w0, w0_initial=w0_initial
    )

    # f32 path: strict correctness check against the pure-JAX reference.
    fwd_f32 = jax.jit(functools.partial(
        mlp_siren_forward, num_layers=num_layers, w0=w0, w0_initial=w0_initial,
        tile_m=8192, use_bf16=False))
    out_f32 = jax.block_until_ready(fwd_f32(t, xy, params))
    assert out_f32.shape == (N, dim_out)
    assert jnp.allclose(out_f32, ref, atol=1e-4, rtol=1e-4), "f32 mismatch vs reference"

    # bf16-MXU path (performance default): inherently looser tolerance.
    fwd_bf16 = jax.jit(functools.partial(
        mlp_siren_forward, num_layers=num_layers, w0=w0, w0_initial=w0_initial,
        tile_m=8192, use_bf16=True))
    out_bf16 = jax.block_until_ready(fwd_bf16(t, xy, params))
    assert out_bf16.shape == (N, dim_out)
    assert float(jnp.max(jnp.abs(out_bf16 - ref))) < 0.25, "bf16 path diverged"

    print("KERNEL_OK")
</pallas_src>

<mosaic_0001>
module attributes {stable_mosaic.version = 11 : i64} {
  func.func @kernel(%arg0: i32, %arg1: memref<8x384xf32, #tpu.memory_space<vmem>>, %arg2: memref<32x8xf32, #tpu.memory_space<vmem>>, %arg3: memref<32x96xf32, #tpu.memory_space<vmem>>, %arg4: memref<32x3xf32, #tpu.memory_space<vmem>>, %arg5: memref<1x384xf32, #tpu.memory_space<vmem>>) attributes {dimension_semantics = [#tpu.dimension_semantics<parallel>], iteration_bounds = array<i64: 1>, scalar_prefetch = 0 : i64, scratch_operands = 0 : i64, tpu.core_type = #tpu.core_type<tc>, window_params = [{transform_indices = @transform_0, window_bounds = array<i64: 8, 384>}, {pipeline_mode = #tpu.pipeline_mode<synchronous>, transform_indices = @transform_1, window_bounds = array<i64: 32, 8>}, {pipeline_mode = #tpu.pipeline_mode<synchronous>, transform_indices = @transform_2, window_bounds = array<i64: 32, 96>}, {pipeline_mode = #tpu.pipeline_mode<synchronous>, transform_indices = @transform_3, window_bounds = array<i64: 32, 3>}, {transform_indices = @transform_4, window_bounds = array<i64: 1, 384>}]} {
    %c0 = arith.constant 0 : index
    %c0_0 = arith.constant 0 : index
    %0 = vector.load %arg2[%c0, %c0_0] : memref<32x8xf32, #tpu.memory_space<vmem>>, vector<32x8xf32>
    %c0_1 = arith.constant 0 : index
    %c0_2 = arith.constant 0 : index
    %1 = vector.load %arg1[%c0_1, %c0_2] : memref<8x384xf32, #tpu.memory_space<vmem>>, vector<8x384xf32>
    %cst = arith.constant dense<0.000000e+00> : vector<32x384xf32>
    %2 = tpu.matmul %0, %1, %cst {dimension_numbers = #tpu.dot_dimension_numbers<[1], [0], [0], [1], [0, 0, 1, 1], [], []>} : vector<32x8xf32>, vector<8x384xf32>, vector<32x384xf32> -> vector<32x384xf32>
    %3 = math.sin %2 : vector<32x384xf32>
    %c0_3 = arith.constant 0 : index
    %c0_4 = arith.constant 0 : index
    %4 = vector.load %arg3[%c0_3, %c0_4] : memref<32x96xf32, #tpu.memory_space<vmem>>, vector<32x96xf32>
    %c0_5 = arith.constant 0 : index
    %c0_6 = arith.constant 0 : index
    %5 = vector.load %arg4[%c0_5, %c0_6] : memref<32x3xf32, #tpu.memory_space<vmem>>, vector<32x3xf32>
    %6 = vector.extract_strided_slice %4 {offsets = [0, 0], sizes = [32, 32], strides = [1, 1]} : vector<32x96xf32> to vector<32x32xf32>
    %7 = vector.extract_strided_slice %5 {offsets = [0, 0], sizes = [32, 1], strides = [1, 1]} : vector<32x3xf32> to vector<32x1xf32>
    %cst_7 = arith.constant dense<0.000000e+00> : vector<32x384xf32>
    %8 = tpu.matmul %6, %3, %cst_7 {dimension_numbers = #tpu.dot_dimension_numbers<[1], [0], [0], [1], [0, 0, 1, 1], [], []>} : vector<32x32xf32>, vector<32x384xf32>, vector<32x384xf32> -> vector<32x384xf32>
    %9 = vector.broadcast %7 : vector<32x1xf32> to vector<32x384xf32>
    %10 = arith.addf %8, %9 : vector<32x384xf32>
    %11 = math.sin %10 : vector<32x384xf32>
    %12 = vector.extract_strided_slice %4 {offsets = [0, 32], sizes = [32, 32], strides = [1, 1]} : vector<32x96xf32> to vector<32x32xf32>
    %13 = vector.extract_strided_slice %5 {offsets = [0, 1], sizes = [32, 1], strides = [1, 1]} : vector<32x3xf32> to vector<32x1xf32>
    %cst_8 = arith.constant dense<0.000000e+00> : vector<32x384xf32>
    %14 = tpu.matmul %12, %11, %cst_8 {dimension_numbers = #tpu.dot_dimension_numbers<[1], [0], [0], [1], [0, 0, 1, 1], [], []>} : vector<32x32xf32>, vector<32x384xf32>, vector<32x384xf32> -> vector<32x384xf32>
    %15 = vector.broadcast %13 : vector<32x1xf32> to vector<32x384xf32>
    %16 = arith.addf %14, %15 : vector<32x384xf32>
    %17 = math.sin %16 : vector<32x384xf32>
    %18 = vector.extract_strided_slice %4 {offsets = [0, 64], sizes = [32, 32], strides = [1, 1]} : vector<32x96xf32> to vector<32x32xf32>
    %19 = vector.extract_strided_slice %5 {offsets = [0, 2], sizes = [32, 1], strides = [1, 1]} : vector<32x3xf32> to vector<32x1xf32>
    %cst_9 = arith.constant dense<0.000000e+00> : vector<32x384xf32>
    %20 = tpu.matmul %18, %17, %cst_9 {dimension_numbers = #tpu.dot_dimension_numbers<[1], [0], [0], [1], [0, 0, 1, 1], [], []>} : vector<32x32xf32>, vector<32x384xf32>, vector<32x384xf32> -> vector<32x384xf32>
    %21 = vector.broadcast %19 : vector<32x1xf32> to vector<32x384xf32>
    %22 = arith.addf %20, %21 : vector<32x384xf32>
    %23 = vector.extract_strided_slice %22 {offsets = [0, 0], sizes = [1, 384], strides = [1, 1]} : vector<32x384xf32> to vector<1x384xf32>
    %c0_10 = arith.constant 0 : index
    %c0_11 = arith.constant 0 : index
    %24 = vector.load %arg5[%c0_10, %c0_11] : memref<1x384xf32, #tpu.memory_space<vmem>>, vector<1x384xf32>
    tpu.vector_store %arg5[%c0_10, %c0_11], %23 {strides = array<i32>} : memref<1x384xf32, #tpu.memory_space<vmem>>, vector<1x384xf32>,
    return
  }
  func.func @transform_0(%arg0: i32) -> (i32, i32) {
    %c0_i32 = arith.constant 0 : i32
    %c0_i32_0 = arith.constant 0 : i32
    return %c0_i32, %arg0 : i32, i32
  }
  func.func @transform_1(%arg0: i32) -> (i32, i32) {
    %c0_i32 = arith.constant 0 : i32
    %c0_i32_0 = arith.constant 0 : i32
    %c0_i32_1 = arith.constant 0 : i32
    return %c0_i32, %c0_i32_0 : i32, i32
  }
  func.func @transform_2(%arg0: i32) -> (i32, i32) {
    %c0_i32 = arith.constant 0 : i32
    %c0_i32_0 = arith.constant 0 : i32
    %c0_i32_1 = arith.constant 0 : i32
    return %c0_i32, %c0_i32_0 : i32, i32
  }
  func.func @transform_3(%arg0: i32) -> (i32, i32) {
    %c0_i32 = arith.constant 0 : i32
    %c0_i32_0 = arith.constant 0 : i32
    %c0_i32_1 = arith.constant 0 : i32
    return %c0_i32, %c0_i32_0 : i32, i32
  }
  func.func @transform_4(%arg0: i32) -> (i32, i32) {
    %c0_i32 = arith.constant 0 : i32
    %c0_i32_0 = arith.constant 0 : i32
    return %c0_i32, %arg0 : i32, i32
  }
}

</mosaic_0001>

<bundles_post_ra>
// kernel: mlp_siren_forward.1
= control target key start
LH: loop header
LB: loop body
LE: loop exit
PB: predicated region body
PF: predicated region fallthrough
CT: control target
= control target key end

     0   :  { %vm24_vm0 = vcmask 64512   ;;  %v11921_v7 = vmov 0   ;;  %v11919_v35 = vmov 683565275   ;;  %v11917_v37 = vmov 2475754826   ;;  %s11898_s0 = inlined_call_operand.vmem [shape: f32[8,384], index: 0, kind: input, shape index: {}]   ;;  %s11899_s1 = inlined_call_operand.vmem [shape: f32[32,8], index: 1, kind: input, shape index: {}]   ;;  %s11900_s3 = inlined_call_operand.vmem [shape: f32[32,3], index: 3, kind: input, shape index: {}]   ;;  %s11901_s2 = inlined_call_operand.vmem [shape: f32[32,96], index: 2, kind: input, shape index: {}]   ;;  %s11902_s4 = inlined_call_operand.vmem [shape: f32[1,384], index: 4, kind: output, shape index: {}]  }
   0x1   :  { %v21_v0 = vld [vmem:[%s11898_s0] sm:$0xff]  ;;  %v22_v1 = vld [vmem:[%s11898_s0 + $0x8] sm:$0xff]  ;;  %v23_v2 = vld [vmem:[%s11898_s0 + $0x10] sm:$0xff]  ;;  %6245 = vset.pattern.permute.xlu1 %v11921_v7  ;;  %6244 = vset.pattern.permute.xlu0 %v11921_v7  ;;  %v11915_v41 = vmov 2131351028   ;;  %s6267_s17 = smov 96  }
   0x2   :  { %52 = vmatpush.msra.mxu0 %v21_v0  ;;  %81 = vmatpush.msra.mxu1 %v22_v1  ;;  %v17_v3 = vld [vmem:[%s11899_s1] sm:$0xff]  ;;  %v18_v4 = vld [vmem:[%s11899_s1 + $0x8] sm:$0xff]  ;;  %v19_v5 = vld [vmem:[%s11899_s1 + $0x10] sm:$0xff]  ;;  %v11913_v44 = vmov 2102212464   ;;  %s6269_s27 = smov 64  }
   0x3   :  { %110 = vmatpush.msra.mxu2 %v23_v2  ;;  %6077 = vmatmul.msk.f32.vlgmr.msra.gmra.mxu0 %vm24_vm0, %v17_v3  ;;  %v20_v6 = vld [vmem:[%s11899_s1 + $0x18] sm:$0xff]  ;;  %v11911_v47 = vmov 920167782   ;;  %v11909_v50 = vmov 1326507024  }
   0x4   :  { %6081 = vmatmul.msk.f32.vlgmr.msra.gmra.mxu1 %vm24_vm0, %v17_v3  ;;  %6085 = vmatmul.msk.f32.vlgmr.msra.gmra.mxu2 %vm24_vm0, %v17_v3 }
   0xb   :  { %6078 = vmatmul.msk.f32.gmra.mxu0 %vm24_vm0, %v18_v4 }
   0xc   :  { %6082 = vmatmul.msk.f32.gmra.mxu1 %vm24_vm0, %v18_v4  ;;  %6086 = vmatmul.msk.f32.gmra.mxu2 %vm24_vm0, %v18_v4 }
  0x13   :  { %6079 = vmatmul.msk.f32.gmra.mxu0 %vm24_vm0, %v19_v5 }
  0x14   :  { %6083 = vmatmul.msk.f32.gmra.mxu1 %vm24_vm0, %v19_v5  ;;  %6087 = vmatmul.msk.f32.gmra.mxu2 %vm24_vm0, %v19_v5 }
  0x1b   :  { %6080 = vmatmul.msk.f32.gmra.mxu0 %vm24_vm0, %v20_v6 }
  0x1c   :  { %6084 = vmatmul.msk.f32.gmra.mxu1 %vm24_vm0, %v20_v6  ;;  %6088 = vmatmul.msk.f32.gmra.mxu2 %vm24_vm0, %v20_v6 }
  0x80   :  { %v6331_v8 = vpop.f32.mrf.mxu0 }
  0x81   :  { %12188 = vst [vmem:[#allocation2_spill] sm:$0xff] %v6331_v8  ;;  %v124_v9 = vand.u32 2147483647, %v6331_v8  ;;  %v127_v10 = vand.u32 2139095040, %v6331_v8  ;;  %v6335_v11 = vpop.f32.mrf.mxu1 }
  0x82   :  { %12189 = vst [vmem:[#allocation3_spill] sm:$0xff] %v6335_v11  ;;  %v11907_v12 = vand.u32 2147483647, %v6335_v11  ;;  %v282_v13 = vand.u32 2139095040, %v6335_v11 }
  0x83   :  { %v128_v14 = vshrl.u32 %v127_v10, 23  ;;  %v131_v15 = vand.u32 8388607, %v124_v9 }
  0x84   :  { %v283_v16 = vshrl.u32 %v282_v13, 23  ;;  %v286_v17 = vand.u32 8388607, %v11907_v12 }
  0x85   :  { %v6089_v18 = vadd.s32 4294967169, %v128_v14  ;;  %v132_v19 = vor.u32 8388608, %v131_v15 }
  0x86   :  { %v6092_v20 = vadd.s32 4294967169, %v283_v16  ;;  %v287_v22 = vor.u32 8388608, %v286_v17 }
  0x87   :  { %v134_v21 = vadd.s32 1, %v6089_v18  ;;  %v6343_v24 = vshll.u32 %v132_v19, 8  ;;  %v6345_v28 = vpop.f32.mrf.mxu2 }
  0x88   :  { %v289_v23 = vadd.s32 1, %v6092_v20  ;;  %12190 = vst [vmem:[#allocation4_spill] sm:$0xff] %v6345_v28  ;;  %v6347_v29 = vshll.u32 %v287_v22, 8  ;;  %v437_v39 = vand.u32 2139095040, %v6345_v28 }
  0x89   :  { %vm135_vm1 = vcmp.gt.s32.totalorder %v134_v21, 0  ;;  %v6350_v31 = vand.u32 65535, %v6343_v24  ;;  %v6353_v32 = vshrl.u32 %v6343_v24, 16 }
  0x8a   :  { %v136_v25 = vsel %vm135_vm1, %v134_v21, 0  ;;  %vm290_vm2 = vcmp.gt.s32.totalorder %v289_v23, 0 }
  0x8b   :  { %v138_v26 = vand.u32 31, %v136_v25  ;;  %v291_v27 = vsel %vm290_vm2, %v289_v23, 0  ;;  %v6357_v34 = vshrl.u32 %v136_v25, 5 }
  0x8c   :  { %v6355_v33 = vand.u32 31, %v291_v27  ;;  %v6406_v19 = vshrl.u32 %v291_v27, 5 }
  0x8d   :  { %v139_v30 = vsub.s32 32, %v138_v26  ;;  %v141_v36 = vshll.u32 %v11919_v35, %v138_v26  ;;  %v144_v38 = vshll.u32 %v11917_v37, %v138_v26  ;;  %v147_v43 = vshll.u32 %v11915_v41, %v138_v26 }
  0x8e   :  { %v150_v46 = vshll.u32 %v11913_v44, %v138_v26  ;;  %v153_v49 = vshll.u32 %v11911_v47, %v138_v26  ;;  %v6371_v55 = vsub.s32 32, %v6355_v33  ;;  %vm156_vm3 = vcmp.lt.s32.totalorder %v6357_v34, 1 }
  0x8f   :  { %v142_v40 = vshrl.u32 %v11917_v37, %v139_v30  ;;  %v145_v42 = vshrl.u32 %v11915_v41, %v139_v30  ;;  %v148_v45 = vshrl.u32 %v11913_v44, %v139_v30  ;;  %v151_v48 = vshrl.u32 %v11911_v47, %v139_v30 }
  0x90   :  { %v154_v51 = vshrl.u32 %v11909_v50, %v139_v30  ;;  %vm157_vm4 = vcmp.lt.s32.totalorder %v6357_v34, 2  ;;  %v140_v58 = vshrl.u32 %v11919_v35, %v139_v30  ;;  %vm159_vm5 = vcmp.lt.s32.totalorder %v6357_v34, 4 }
  0x91   :  { %v143_v52 = vor.u32 %v142_v40, %v141_v36  ;;  %v146_v53 = vor.u32 %v145_v42, %v144_v38  ;;  %v149_v54 = vor.u32 %v148_v45, %v147_v43  ;;  %v152_v56 = vor.u32 %v151_v48, %v150_v46 }
  0x92   :  { %v155_v57 = vor.u32 %v154_v51, %v153_v49  ;;  %vm158_vm6 = vcmp.lt.s32.totalorder %v6357_v34, 3  ;;  %v296_v63 = vshll.u32 %v11919_v35, %v6355_v33  ;;  %v297_v3 = vshrl.u32 %v11917_v37, %v6371_v55 }
  0x93   :  { %v164_v59 = vsel %vm156_vm3, %v143_v52, %v146_v53  ;;  %v168_v60 = vsel %vm156_vm3, %v146_v53, %v149_v54  ;;  %v165_v61 = vsel %vm159_vm5, %v152_v56, 920167782  ;;  %v161_v0 = vsel %vm159_vm5, %v149_v54, 2102212464 }
  0x94   :  { %v169_v62 = vsel %vm159_vm5, %v155_v57, 1326507024  ;;  %v166_v1 = vsel %vm158_vm6, %v149_v54, %v165_v61  ;;  %v299_v6 = vshll.u32 %v11917_v37, %v6355_v33  ;;  %v300_v10 = vshrl.u32 %v11915_v41, %v6371_v55 }
  0x95   :  { %v170_v2 = vsel %vm158_vm6, %v152_v56, %v169_v62  ;;  %v167_v4 = vsel %vm157_vm4, %v164_v59, %v166_v1  ;;  %v6400_v17 = vsel %vm156_vm3, %v140_v58, %v143_v52  ;;  %v6404_v18 = vsel %vm158_vm6, %v146_v53, %v161_v0 }
  0x96   :  { %v171_v5 = vsel %vm157_vm4, %v168_v60, %v170_v2  ;;  %v197_v15 = vand.u32 65535, %v167_v4  ;;  %v198_v16 = vshrl.u32 %v167_v4, 16  ;;  %v6408_v20 = vor.u32 %v297_v3, %v296_v63 }
  0x97   :  { %v175_v13 = vand.u32 65535, %v171_v5  ;;  %v176_v14 = vshrl.u32 %v171_v5, 16  ;;  %v6412_v23 = vor.u32 %v300_v10, %v299_v6  ;;  %v303_v25 = vshrl.u32 %v11913_v44, %v6371_v55 }
  0x98   :  { %v200_v30 = vmul.u32 %v198_v16, %v6350_v31  ;;  %v201_v36 = vmul.u32 %v197_v15, %v6353_v32  ;;  %v302_v27 = vshll.u32 %v11915_v41, %v6355_v33  ;;  %v199_v42 = vmul.u32 %v197_v15, %v6350_v31 }
  0x99   :  { %v178_v21 = vmul.u32 %v176_v14, %v6350_v31  ;;  %v179_v22 = vmul.u32 %v175_v13, %v6353_v32  ;;  %v177_v26 = vmul.u32 %v175_v13, %v6350_v31  ;;  %v180_v38 = vmul.u32 %v176_v14, %v6353_v32 }
  0x9a   :  { %v202_v43 = vmul.u32 %v198_v16, %v6353_v32  ;;  %v203_v49 = vshll.u32 %v200_v30, 16  ;;  %v205_v52 = vshll.u32 %v201_v36, 16  ;;  %v6424_v53 = vor.u32 %v303_v25, %v302_v27 }
  0x9b   :  { %v181_v40 = vshll.u32 %v178_v21, 16  ;;  %v182_v45 = vshrl.u32 %v178_v21, 16  ;;  %v183_v46 = vshll.u32 %v179_v22, 16  ;;  %v184_v48 = vshrl.u32 %v179_v22, 16 }
  0x9c   :  { %vm207_vm8 = vc.u32 %v199_v42, %v203_v49  ;;  %v209_v56 = vadd.s32 %v203_v49, %v199_v42  ;;  %v306_v57 = vshrl.u32 %v11911_v47, %v6371_v55  ;;  %v305_v32 = vshll.u32 %v11913_v44, %v6355_v33 }
  0x9d   :  { %vm185_vm7 = vc.u32 %v177_v26, %v181_v40  ;;  %v187_v51 = vadd.s32 %v181_v40, %v177_v26  ;;  %v208_v31 = vsel %vm207_vm8, 1, %v11921_v7  ;;  %v308_v61 = vshll.u32 %v11911_v47, %v6355_v33 }
  0x9e   :  { %v186_v54 = vsel %vm185_vm7, 1, %v11921_v7  ;;  %v210_v60 = vadd.s32 %v208_v31, %v202_v43  ;;  %vm211_vm10 = vc.u32 %v209_v56, %v205_v52  ;;  %v307_v0 = vor.u32 %v306_v57, %v305_v32 }
  0x9f   :  { %v188_v58 = vadd.s32 %v186_v54, %v180_v38  ;;  %vm189_vm9 = vc.u32 %v187_v51, %v183_v46  ;;  %v212_v63 = vsel %vm211_vm10, 1, %v11921_v7  ;;  %v309_v1 = vshrl.u32 %v11909_v50, %v6371_v55 }
  0xa0   :  { %v190_v59 = vsel %vm189_vm9, 1, %v11921_v7  ;;  %v204_v2 = vshrl.u32 %v200_v30, 16  ;;  %v206_v3 = vshrl.u32 %v201_v36, 16  ;;  %v6438_v4 = vadd.s32 %v209_v56, %v205_v52 }
  0xa1   :  { %v192_v62 = vadd.s32 %v190_v59, %v188_v58  ;;  %v214_v5 = vadd.s32 %v212_v63, %v210_v60  ;;  %v310_v10 = vor.u32 %v309_v1, %v308_v61  ;;  %vm311_vm11 = vcmp.lt.s32.totalorder %v6406_v19, 1 }
  0xa2   :  { %vm314_vm12 = vcmp.lt.s32.totalorder %v6406_v19, 4  ;;  %vm313_vm13 = vcmp.lt.s32.totalorder %v6406_v19, 3  ;;  %v319_v33 = vsel %vm311_vm11, %v6408_v20, %v6412_v23  ;;  %vm312_vm14 = vcmp.lt.s32.totalorder %v6406_v19, 2 }
  0xa3   :  { %v193_v6 = vadd.s32 %v192_v62, %v182_v45  ;;  %v215_v13 = vadd.s32 %v214_v5, %v204_v2  ;;  %v320_v14 = vsel %vm314_vm12, %v307_v0, 920167782  ;;  %v323_v21 = vsel %vm311_vm11, %v6412_v23, %v6424_v53 }
  0xa4   :  { %v321_v16 = vsel %vm313_vm13, %v6424_v53, %v320_v14  ;;  %v324_v26 = vsel %vm314_vm12, %v310_v10, 1326507024  ;;  %v328_v30 = vand.u32 65535, %v6347_v29  ;;  %v329_v27 = vshrl.u32 %v6347_v29, 16 }
  0xa5   :  { %v6449_v15 = vadd.s32 %v193_v6, %v184_v48  ;;  %v216_v22 = vadd.s32 %v215_v13, %v206_v3  ;;  %v322_v25 = vsel %vm312_vm14, %v319_v33, %v321_v16  ;;  %v325_v36 = vsel %vm313_vm13, %v307_v0, %v324_v26 }
  0xa6   :  { %v352_v38 = vand.u32 65535, %v322_v25  ;;  %v163_v40 = vsel %vm157_vm4, %v6400_v17, %v6404_v18  ;;  %v326_v43 = vsel %vm312_vm14, %v323_v21, %v325_v36  ;;  %v353_v45 = vshrl.u32 %v322_v25, 16 }
  0xa7   :  { %vm219_vm15 = vc.u32 %v6449_v15, %v6438_v4  ;;  %v220_v42 = vadd.s32 1, %v216_v22  ;;  %v330_v46 = vand.u32 65535, %v326_v43  ;;  %v331_v48 = vshrl.u32 %v326_v43, 16 }
  0xa8   :  { %v355_v51 = vmul.u32 %v353_v45, %v328_v30  ;;  %v6475_v52 = vmul.u32 %v352_v38, %v329_v27  ;;  %v438_v54 = vshrl.u32 %v437_v39, 23  ;;  %v217_v56 = vmul.u32 %v6343_v24, %v163_v40 }
  0xa9   :  { %v221_v49 = vsel %vm219_vm15, %v220_v42, %v216_v22  ;;  %v333_v57 = vmul.u32 %v331_v48, %v328_v30  ;;  %v6480_v58 = vmul.u32 %v330_v46, %v329_v27  ;;  %v354_v34 = vmul.u32 %v352_v38, %v328_v30 }
  0xaa   :  { %v358_v17 = vshll.u32 %v355_v51, 16  ;;  %v222_v18 = vadd.s32 %v221_v49, %v217_v56  ;;  %v332_v31 = vmul.u32 %v330_v46, %v328_v30  ;;  %v360_v59 = vshll.u32 %v6475_v52, 16 }
  0xab   :  { %v336_v32 = vshll.u32 %v333_v57, 16  ;;  %v6095_v61 = vadd.s32 4294967169, %v438_v54  ;;  %v338_v39 = vshll.u32 %v6480_v58, 16  ;;  %v357_v24 = vmul.u32 %v353_v45, %v329_v27 }
  0xac   :  { %vm362_vm0 = vc.u32 %v354_v34, %v358_v17  ;;  %v364_v60 = vadd.s32 %v358_v17, %v354_v34  ;;  %v223_v0 = vadd.s32 536870912, %v222_v18  ;;  %v335_v2 = vmul.u32 %v331_v48, %v329_v27 }
  0xad   :  { %vm340_vm1 = vc.u32 %v332_v31, %v336_v32  ;;  %v342_v62 = vadd.s32 %v336_v32, %v332_v31  ;;  %v363_v63 = vsel %vm362_vm0, 1, %v11921_v7  ;;  %v444_v5 = vadd.s32 1, %v6095_v61 }
  0xae   :  { %vm366_vm2 = vc.u32 %v364_v60, %v360_v59  ;;  %v341_v1 = vsel %vm340_vm1, 1, %v11921_v7  ;;  %v365_v3 = vadd.s32 %v363_v63, %v357_v24  ;;  %v6487_v13 = vshrl.u32 %v223_v0, 30 }
  0xaf   :  { %vm344_vm3 = vc.u32 %v342_v62, %v338_v39  ;;  %v367_v6 = vsel %vm366_vm2, 1, %v11921_v7  ;;  %v343_v10 = vadd.s32 %v341_v1, %v335_v2  ;;  %vm445_vm4 = vcmp.gt.s32.totalorder %v444_v5, 0 }
  0xb0   :  { %12191 = vst [vmem:[#allocation5_spill] sm:$0xff] %v6487_v13  ;;  %v345_v33 = vsel %vm344_vm3, 1, %v11921_v7  ;;  %v11906_v14 = vand.u32 2147483647, %v6345_v28  ;;  %v446_v16 = vsel %vm445_vm4, %v444_v5, 0  ;;  %v369_v21 = vadd.s32 %v367_v6, %v365_v3 }
  0xb1   :  { %v448_v22 = vand.u32 31, %v446_v16  ;;  %v347_v25 = vadd.s32 %v345_v33, %v343_v10  ;;  %v359_v26 = vshrl.u32 %v355_v51, 16  ;;  %v225_v36 = vshll.u32 %v6487_v13, 30 }
  0xb2   :  { %v295_v27 = vshrl.u32 %v11919_v35, %v6371_v55  ;;  %v441_v38 = vand.u32 8388607, %v11906_v14  ;;  %v316_v40 = vsel %vm314_vm12, %v6424_v53, 2102212464  ;;  %v337_v42 = vshrl.u32 %v333_v57, 16 }
  0xb3   :  { %v6491_v30 = vsub.s32 32, %v448_v22  ;;  %v370_v43 = vadd.s32 %v369_v21, %v359_v26  ;;  %v339_v46 = vshrl.u32 %v6480_v58, 16  ;;  %v361_v48 = vshrl.u32 %v6475_v52, 16 }
  0xb4   :  { %v348_v51 = vadd.s32 %v347_v25, %v337_v42  ;;  %v451_v54 = vshll.u32 %v11919_v35, %v448_v22  ;;  %v454_v53 = vshll.u32 %v11917_v37, %v448_v22  ;;  %v6513_v57 = vsub.s32 %v222_v18, %v225_v36 }
  0xb5   :  { %v452_v45 = vshrl.u32 %v11917_v37, %v6491_v30  ;;  %v455_v49 = vshrl.u32 %v11915_v41, %v6491_v30  ;;  %v458_v55 = vshrl.u32 %v11913_v44, %v6491_v30  ;;  %v461_v56 = vshrl.u32 %v11911_v47, %v6491_v30 }
  0xb6   :  { %v6515_v34 = vshrl.u32 %v446_v16, 5  ;;  %v457_v52 = vshll.u32 %v11915_v41, %v448_v22  ;;  %v460_v58 = vshll.u32 %v11913_v44, %v448_v22  ;;  %v371_v17 = vadd.s32 %v370_v43, %v361_v48 }
  0xb7   :  { %v442_v31 = vor.u32 8388608, %v441_v38  ;;  %v6519_v32 = vor.u32 %v452_v45, %v451_v54  ;;  %v6521_v61 = vor.u32 %v455_v49, %v454_v53  ;;  %v463_v39 = vshll.u32 %v11911_v47, %v448_v22 }
  0xb8   :  { %v6523_v62 = vor.u32 %v458_v55, %v457_v52  ;;  %v462_v63 = vor.u32 %v461_v56, %v460_v58  ;;  %v464_v18 = vshrl.u32 %v11909_v50, %v6491_v30  ;;  %v315_v24 = vsel %vm311_vm11, %v295_v27, %v6408_v20 }
  0xb9   :  { %v317_v0 = vsel %vm313_vm13, %v6412_v23, %v316_v40  ;;  %v6534_v1 = vadd.s32 %v348_v51, %v339_v46  ;;  %v228_v2 = vsub.s32 0, %v6513_v57  ;;  %v6537_v3 = vadd.s32 %v364_v60, %v360_v59  ;;  %v6575_v51 = vpop.f32.mrf.mxu0 }
  0xba   :  { %v465_v5 = vor.u32 %v464_v18, %v463_v39  ;;  %vm466_vm5 = vcmp.lt.s32.totalorder %v6515_v34, 1  ;;  %vm227_vm6 = vcmp.lt.s32.totalorder %v6513_v57, 0  ;;  %vm469_vm7 = vcmp.lt.s32.totalorder %v6515_v34, 4 }
  0xbb   :  { %v474_v20 = vsel %vm466_vm5, %v6519_v32, %v6521_v61  ;;  %v6546_v6 = vshll.u32 %v442_v31, 8  ;;  %v375_v23 = vadd.s32 1, %v371_v17  ;;  %vm468_vm8 = vcmp.lt.s32.totalorder %v6515_v34, 3 }
  0xbc   :  { %v475_v59 = vsel %vm469_vm7, %v462_v63, 920167782  ;;  %v478_v60 = vsel %vm466_vm5, %v6521_v61, %v6523_v62  ;;  %vm374_vm9 = vc.u32 %v6534_v1, %v6537_v3  ;;  %vm467_vm10 = vcmp.lt.s32.totalorder %v6515_v34, 2 }
  0xbd   :  { %v476_v10 = vsel %vm468_vm8, %v6523_v62, %v475_v59  ;;  %v479_v33 = vsel %vm469_vm7, %v465_v5, 1326507024  ;;  %v229_v16 = vsel %vm227_vm6, %v228_v2, %v6513_v57  ;;  %v318_v21 = vsel %vm312_vm14, %v315_v24, %v317_v0 }
  0xbe   :  { %v477_v22 = vsel %vm467_vm10, %v474_v20, %v476_v10  ;;  %v480_v25 = vsel %vm468_vm8, %v462_v63, %v479_v33  ;;  %v483_v36 = vand.u32 65535, %v6546_v6  ;;  %v376_v38 = vsel %vm374_vm9, %v375_v23, %v371_v17 }
  0xbf   :  { %v481_v26 = vsel %vm467_vm10, %v478_v60, %v480_v25  ;;  %v508_v27 = vshrl.u32 %v477_v22, 16  ;;  %v484_v40 = vshrl.u32 %v6546_v6, 16  ;;  %v230_v45 = vclz %v229_v16 }
  0xc0   :  { %v485_v42 = vand.u32 65535, %v481_v26  ;;  %v486_v43 = vshrl.u32 %v481_v26, 16  ;;  %v372_v19 = vmul.u32 %v6347_v29, %v318_v21  ;;  %v507_v46 = vand.u32 65535, %v477_v22 }
  0xc1   :  { %v510_v55 = vmul.u32 %v508_v27, %v483_v36  ;;  %v6090_v52 = vadd.s32 4294967294, %v230_v45  ;;  %v592_v17 = vand.u32 2139095040, %v6575_v51  ;;  %v512_v20 = vmul.u32 %v508_v27, %v484_v40 }
  0xc2   :  { %v488_v48 = vmul.u32 %v486_v43, %v483_v36  ;;  %v489_v49 = vmul.u32 %v485_v42, %v484_v40  ;;  %v377_v54 = vadd.s32 %v376_v38, %v372_v19  ;;  %v487_v53 = vmul.u32 %v485_v42, %v483_v36 }
  0xc3   :  { %v511_v58 = vmul.u32 %v507_v46, %v484_v40  ;;  %v513_v39 = vshll.u32 %v510_v55, 16  ;;  %v490_v24 = vmul.u32 %v486_v43, %v484_v40  ;;  %v509_v0 = vmul.u32 %v507_v46, %v483_v36 }
  0xc4   :  { %v491_v56 = vshll.u32 %v488_v48, 16  ;;  %v493_v31 = vshll.u32 %v489_v49, 16  ;;  %v378_v18 = vadd.s32 536870912, %v377_v54  ;;  %vm6091_vm13 = vcmp.lt.s32.totalorder %v6090_v52, 0 }
  0xc5   :  { %v515_v23 = vshll.u32 %v511_v58, 16  ;;  %vm517_vm14 = vc.u32 %v509_v0, %v513_v39  ;;  %v519_v59 = vadd.s32 %v513_v39, %v509_v0  ;;  %v593_v60 = vshrl.u32 %v592_v17, 23  ;;  %v6608_v39 = vpop.f32.mrf.mxu1 }
  0xc6   :  { %vm495_vm11 = vc.u32 %v487_v53, %v491_v56  ;;  %v497_v63 = vadd.s32 %v491_v56, %v487_v53  ;;  %v6580_v10 = vshrl.u32 %v378_v18, 30  ;;  %v492_v33 = vshrl.u32 %v488_v48, 16 }
  0xc7   :  { %v496_v29 = vsel %vm495_vm11, 1, %v11921_v7  ;;  %v518_v21 = vsel %vm517_vm14, 1, %v11921_v7  ;;  %v471_v22 = vsel %vm469_vm7, %v6523_v62, 2102212464  ;;  %vm521_vm15 = vc.u32 %v519_v59, %v515_v23 }
  0xc8   :  { %vm499_vm12 = vc.u32 %v497_v63, %v493_v31  ;;  %v498_v2 = vadd.s32 %v496_v29, %v490_v24  ;;  %12192 = vst [vmem:[#allocation6_spill] sm:$0xff] %v6580_v10  ;;  %v520_v25 = vadd.s32 %v518_v21, %v512_v20  ;;  %v6098_v26 = vadd.s32 4294967169, %v593_v60 }
  0xc9   :  { %v500_v5 = vsel %vm499_vm12, 1, %v11921_v7  ;;  %v450_v36 = vshrl.u32 %v11919_v35, %v6491_v30  ;;  %v522_v38 = vsel %vm521_vm15, 1, %v11921_v7  ;;  %v11904_v40 = vand.u32 2147483647, %v6575_v51 }
  0xca   :  { %v502_v16 = vadd.s32 %v500_v5, %v498_v2  ;;  %v494_v42 = vshrl.u32 %v489_v49, 16  ;;  %v514_v43 = vshrl.u32 %v510_v55, 16  ;;  %v524_v45 = vadd.s32 %v522_v38, %v520_v25 }
  0xcb   :  { %v599_v19 = vadd.s32 1, %v6098_v26  ;;  %v6591_v46 = vsel %vm6091_vm13, 0, %v6090_v52  ;;  %v380_v62 = vshll.u32 %v6580_v10, 30  ;;  %v470_v48 = vsel %vm466_vm5, %v450_v36, %v6519_v32 }
  0xcc   :  { %v503_v27 = vadd.s32 %v502_v16, %v492_v33  ;;  %v472_v30 = vsel %vm468_vm8, %v6521_v61, %v471_v22  ;;  %v516_v56 = vshrl.u32 %v511_v58, 16  ;;  %v525_v49 = vadd.s32 %v524_v45, %v514_v43 }
  0xcd   :  { %vm600_vm0 = vcmp.gt.s32.totalorder %v599_v19, 0  ;;  %v596_v55 = vand.u32 8388607, %v11904_v40  ;;  %v473_v17 = vsel %vm467_vm10, %v470_v48, %v472_v30  ;;  %v6606_v31 = vadd.s32 %v519_v59, %v515_v23  ;;  %v6783_v40 = vpop.f32.mrf.mxu2 }
  0xce   :  { %v6600_v53 = vadd.s32 %v503_v27, %v494_v42  ;;  %v601_v52 = vsel %vm600_vm0, %v599_v19, 0  ;;  %v526_v63 = vadd.s32 %v525_v49, %v516_v56  ;;  %v218_v61 = vadd.s32 %v6438_v4, %v6449_v15 }
  0xcf   :  { %v603_v32 = vand.u32 31, %v601_v52  ;;  %v234_v58 = vsub.s32 32, %v6591_v46  ;;  %v235_v18 = vshll.u32 %v6513_v57, %v6591_v46  ;;  %v238_v24 = vsub.s32 4294967266, %v6591_v46 }
  0xd0   :  { %v6616_v29 = vsub.s32 %v377_v54, %v380_v62  ;;  %vm529_vm1 = vc.u32 %v6600_v53, %v6606_v31  ;;  %v530_v34 = vadd.s32 1, %v526_v63  ;;  %v527_v2 = vmul.u32 %v6546_v6, %v473_v17 }
  0xd1   :  { %v604_v0 = vsub.s32 32, %v603_v32  ;;  %v597_v5 = vor.u32 8388608, %v596_v55  ;;  %v6621_v20 = vshrl.u32 %v601_v52, 5  ;;  %v747_v4 = vand.u32 2139095040, %v6608_v39 }
  0xd2   :  { %v606_v15 = vshll.u32 %v11919_v35, %v603_v32  ;;  %v609_v59 = vshll.u32 %v11917_v37, %v603_v32  ;;  %v612_v54 = vshll.u32 %v11915_v41, %v603_v32  ;;  %v531_v60 = vsel %vm529_vm1, %v530_v34, %v526_v63 }
  0xd3   :  { %v607_v23 = vshrl.u32 %v11917_v37, %v604_v0  ;;  %v610_v33 = vshrl.u32 %v11915_v41, %v604_v0  ;;  %v613_v16 = vshrl.u32 %v11913_v44, %v604_v0  ;;  %v615_v6 = vshll.u32 %v11913_v44, %v603_v32 }
  0xd4   :  { %v616_v22 = vshrl.u32 %v11911_v47, %v604_v0  ;;  %v618_v25 = vshll.u32 %v11911_v47, %v603_v32  ;;  %v619_v26 = vshrl.u32 %v11909_v50, %v604_v0  ;;  %vm382_vm2 = vcmp.lt.s32.totalorder %v6616_v29, 0 }
  0xd5   :  { %v608_v21 = vor.u32 %v607_v23, %v606_v15  ;;  %v383_v36 = vsub.s32 0, %v6616_v29  ;;  %v611_v27 = vor.u32 %v610_v33, %v609_v59  ;;  %v614_v38 = vor.u32 %v613_v16, %v612_v54 }
  0xd6   :  { %v6636_v42 = vadd.s32 %v531_v60, %v527_v2  ;;  %v617_v43 = vor.u32 %v616_v22, %v615_v6  ;;  %v620_v45 = vor.u32 %v619_v26, %v618_v25  ;;  %vm621_vm3 = vcmp.lt.s32.totalorder %v6621_v20, 1 }
  0xd7   :  { %vm624_vm4 = vcmp.lt.s32.totalorder %v6621_v20, 4  ;;  %v629_v19 = vsel %vm621_vm3, %v608_v21, %v611_v27  ;;  %v6642_v62 = vshll.u32 %v597_v5, 8  ;;  %v748_v48 = vshrl.u32 %v747_v4, 23 }
  0xd8   :  { %vm623_vm5 = vcmp.lt.s32.totalorder %v6621_v20, 3  ;;  %v630_v30 = vsel %vm624_vm4, %v617_v43, 920167782  ;;  %v633_v56 = vsel %vm621_vm3, %v611_v27, %v614_v38  ;;  %v634_v49 = vsel %vm624_vm4, %v620_v45, 1326507024 }
  0xd9   :  { %v6651_v55 = vadd.s32 127, %v238_v24  ;;  %vm622_vm6 = vcmp.lt.s32.totalorder %v6621_v20, 2  ;;  %v631_v52 = vsel %vm623_vm5, %v614_v38, %v630_v30  ;;  %v635_v17 = vsel %vm623_vm5, %v617_v43, %v634_v49 }
  0xda   :  { %v6661_v63 = vsel %vm382_vm2, %v383_v36, %v6616_v29  ;;  %v533_v32 = vadd.s32 536870912, %v6636_v42  ;;  %v632_v34 = vsel %vm622_vm6, %v629_v19, %v631_v52  ;;  %v636_v24 = vsel %vm622_vm6, %v633_v56, %v635_v17 }
  0xdb   :  { %v638_v2 = vand.u32 65535, %v6642_v62  ;;  %v640_v5 = vand.u32 65535, %v636_v24  ;;  %v641_v4 = vshrl.u32 %v636_v24, 16  ;;  %v662_v15 = vand.u32 65535, %v632_v34 }
  0xdc   :  { %v236_v23 = vshrl.u32 %v218_v61, %v234_v58  ;;  %v639_v59 = vshrl.u32 %v6642_v62, 16  ;;  %v663_v54 = vshrl.u32 %v632_v34, 16  ;;  %v6101_v60 = vadd.s32 4294967169, %v748_v48 }
  0xdd   :  { %v240_v33 = vshll.u32 %v6651_v55, 23  ;;  %v385_v16 = vclz %v6661_v63  ;;  %v605_v6 = vshrl.u32 %v11919_v35, %v604_v0  ;;  %v643_v22 = vmul.u32 %v641_v4, %v638_v2 }
  0xde   :  { %v6673_v25 = vshrl.u32 %v533_v32, 30  ;;  %v644_v26 = vmul.u32 %v640_v5, %v639_v59  ;;  %v665_v36 = vmul.u32 %v663_v54, %v638_v2  ;;  %v11903_v43 = vand.u32 2147483647, %v6608_v39 }
  0xdf   :  { %v625_v61 = vsel %vm621_vm3, %v605_v6, %v608_v21  ;;  %v642_v58 = vmul.u32 %v640_v5, %v638_v2  ;;  %v646_v45 = vshll.u32 %v643_v22, 16  ;;  %v666_v19 = vmul.u32 %v662_v15, %v639_v59 }
  0xe0   :  { %12193 = vst [vmem:[#allocation7_spill] sm:$0xff] %v6673_v25  ;;  %v626_v48 = vsel %vm624_vm4, %v614_v38, 2102212464  ;;  %v645_v30 = vmul.u32 %v641_v4, %v639_v59  ;;  %v664_v56 = vmul.u32 %v662_v15, %v638_v2  ;;  %v754_v49 = vadd.s32 1, %v6101_v60 }
  0xe1   :  { %v648_v0 = vshll.u32 %v644_v26, 16  ;;  %vm650_vm7 = vc.u32 %v642_v58, %v646_v45  ;;  %v652_v55 = vadd.s32 %v646_v45, %v642_v58  ;;  %v668_v52 = vshll.u32 %v665_v36, 16 }
  0xe2   :  { %v535_v17 = vshll.u32 %v6673_v25, 30  ;;  %v651_v63 = vsel %vm650_vm7, 1, %v11921_v7  ;;  %v667_v32 = vmul.u32 %v663_v54, %v639_v59  ;;  %v670_v34 = vshll.u32 %v666_v19, 16 }
  0xe3   :  { %v653_v21 = vadd.s32 %v651_v63, %v645_v30  ;;  %vm654_vm8 = vc.u32 %v652_v55, %v648_v0  ;;  %vm672_vm9 = vc.u32 %v664_v56, %v668_v52  ;;  %v674_v24 = vadd.s32 %v668_v52, %v664_v56 }
  0xe4   :  { %v627_v38 = vsel %vm623_vm5, %v611_v27, %v626_v48  ;;  %v655_v2 = vsel %vm654_vm8, 1, %v11921_v7  ;;  %v673_v5 = vsel %vm672_vm9, 1, %v11921_v7  ;;  %vm755_vm10 = vcmp.gt.s32.totalorder %v754_v49, 0 }
  0xe5   :  { %v647_v4 = vshrl.u32 %v643_v22, 16  ;;  %v657_v15 = vadd.s32 %v655_v2, %v653_v21  ;;  %v675_v60 = vadd.s32 %v673_v5, %v667_v32  ;;  %vm676_vm11 = vc.u32 %v674_v24, %v670_v34 }
  0xe6   :  { %v6687_v6 = vsub.s32 %v6636_v42, %v535_v17  ;;  %v649_v59 = vshrl.u32 %v644_v26, 16  ;;  %v677_v54 = vsel %vm676_vm11, 1, %v11921_v7  ;;  %v751_v58 = vand.u32 8388607, %v11903_v43 }
  0xe7   :  { %v658_v45 = vadd.s32 %v657_v15, %v647_v4  ;;  %v669_v27 = vshrl.u32 %v665_v36, 16  ;;  %v679_v48 = vadd.s32 %v677_v54, %v675_v60  ;;  %v756_v30 = vsel %vm755_vm10, %v754_v49, 0 }
  0xe8   :  { %v237_v22 = vor.u32 %v236_v23, %v235_v18  ;;  %v628_v56 = vsel %vm622_vm6, %v625_v61, %v627_v38  ;;  %v758_v0 = vand.u32 31, %v756_v30  ;;  %v241_v42 = vor.u32 4788187, %v240_v33 }
  0xe9   :  { %v6697_v55 = vadd.s32 %v658_v45, %v649_v59  ;;  %v671_v26 = vshrl.u32 %v666_v19, 16  ;;  %v680_v52 = vadd.s32 %v679_v48, %v669_v27  ;;  %v6093_v17 = vadd.s32 4294967294, %v385_v16 }
  0xea   :  { %v538_v63 = vsub.s32 0, %v6687_v6  ;;  %v6700_v32 = vadd.s32 %v674_v24, %v670_v34  ;;  %v6702_v36 = vsub.s32 32, %v758_v0  ;;  %vm537_vm12 = vcmp.lt.s32.totalorder %v6687_v6, 0 }
  0xeb   :  { %v681_v57 = vadd.s32 %v680_v52, %v671_v26  ;;  %v682_v46 = vmul.u32 %v6642_v62, %v628_v56  ;;  %v752_v18 = vor.u32 8388608, %v751_v58  ;;  %v761_v20 = vshll.u32 %v11919_v35, %v758_v0 }
  0xec   :  { %vm684_vm13 = vc.u32 %v6697_v55, %v6700_v32  ;;  %v762_v23 = vshrl.u32 %v11917_v37, %v6702_v36  ;;  %v764_v33 = vshll.u32 %v11917_v37, %v758_v0  ;;  %v765_v61 = vshrl.u32 %v11915_v41, %v6702_v36 }
  0xed   :  { %v685_v16 = vadd.s32 1, %v681_v57  ;;  %v767_v19 = vshll.u32 %v11915_v41, %v758_v0  ;;  %v768_v62 = vshrl.u32 %v11913_v44, %v6702_v36  ;;  %v539_v49 = vsel %vm537_vm12, %v538_v63, %v6687_v6 }
  0xee   :  { %v6718_v34 = vshrl.u32 %v756_v30, 5  ;;  %v770_v21 = vshll.u32 %v11913_v44, %v758_v0  ;;  %v771_v24 = vshrl.u32 %v11911_v47, %v6702_v36  ;;  %v6723_v2 = vor.u32 %v762_v23, %v761_v20 }
  0xef   :  { %v686_v38 = vsel %vm684_vm13, %v685_v16, %v681_v57  ;;  %v6725_v5 = vor.u32 %v765_v61, %v764_v33  ;;  %v6727_v4 = vor.u32 %v768_v62, %v767_v19  ;;  %v773_v59 = vshll.u32 %v11911_v47, %v758_v0 }
  0xf0   :  { %v687_v15 = vadd.s32 %v686_v38, %v682_v46  ;;  %v772_v60 = vor.u32 %v771_v24, %v770_v21  ;;  %v774_v54 = vshrl.u32 %v11909_v50, %v6702_v36  ;;  %v242_v58 = vand.u32 2147483647, %v241_v42 }
  0xf1   :  { %v244_v45 = vcvt.s32.f32 %v237_v22  ;;  %v540_v27 = vclz %v539_v49  ;;  %v6732_v48 = vshll.u32 %v752_v18, 8  ;;  %vm776_vm14 = vcmp.lt.s32.totalorder %v6718_v34, 1 }
  0xf2   :  { %v688_v30 = vadd.s32 536870912, %v687_v15  ;;  %v775_v56 = vor.u32 %v774_v54, %v773_v59  ;;  %vm779_vm15 = vcmp.lt.s32.totalorder %v6718_v34, 4  ;;  %vm6094_vm0 = vcmp.lt.s32.totalorder %v6093_v17, 0 }
  0xf3   :  { %vm778_vm1 = vcmp.lt.s32.totalorder %v6718_v34, 3  ;;  %v784_v0 = vsel %vm776_vm14, %v6723_v2, %v6725_v5  ;;  %v785_v22 = vsel %vm779_vm15, %v772_v60, 920167782  ;;  %vm777_vm2 = vcmp.lt.s32.totalorder %v6718_v34, 2  ;;  %v6829_v34 = vpop.f32.mrf.mxu0 }
  0xf4   :  { %v786_v42 = vsel %vm778_vm1, %v6727_v4, %v785_v22  ;;  %v788_v26 = vsel %vm776_vm14, %v6725_v5, %v6727_v4  ;;  %v6751_v52 = vmul.f32 %v244_v45, %v242_v58  ;;  %v6096_v63 = vadd.s32 4294967294, %v540_v27 }
  0xf5   :  { %v787_v57 = vsel %vm777_vm2, %v784_v0, %v786_v42  ;;  %v789_v46 = vsel %vm779_vm15, %v775_v56, 1326507024  ;;  %v6757_v18 = vsel %vm6094_vm0, 0, %v6093_v17  ;;  %v6759_v20 = vshrl.u32 %v688_v30, 30 }
  0xf6   :  { %v790_v23 = vsel %vm778_vm1, %v772_v60, %v789_v46  ;;  %v793_v33 = vand.u32 65535, %v6732_v48  ;;  %v794_v61 = vshrl.u32 %v6732_v48, 16  ;;  %v817_v19 = vand.u32 65535, %v787_v57 }
  0xf7   :  { %12194 = vst [vmem:[#allocation8_spill] sm:$0xff] %v6759_v20  ;;  %v791_v16 = vsel %vm777_vm2, %v788_v26, %v790_v23  ;;  %v818_v62 = vshrl.u32 %v787_v57, 16  ;;  %vm6097_vm3 = vcmp.lt.s32.totalorder %v6096_v63, 0  ;;  %v246_v38 = vxor.u32 2147483648, %v6751_v52 }
  0xf8   :  { %v795_v49 = vand.u32 65535, %v791_v16  ;;  %v796_v21 = vshrl.u32 %v791_v16, 16  ;;  %v6767_v17 = vmul.u32 %v817_v19, %v794_v61  ;;  %v373_v60 = vadd.s32 %v6537_v3, %v6534_v1 }
  0xf9   :  { %v820_v24 = vmul.u32 %v818_v62, %v793_v33  ;;  %v389_v59 = vsub.s32 32, %v6757_v18  ;;  %v393_v58 = vsub.s32 4294967266, %v6757_v18  ;;  %v690_v45 = vshll.u32 %v6759_v20, 30 }
  0xfa   :  { %v798_v54 = vmul.u32 %v796_v21, %v793_v33  ;;  %v799_v27 = vmul.u32 %v795_v49, %v794_v61  ;;  %v6775_v56 = vsel %vm6097_vm3, 0, %v6096_v63  ;;  %v797_v0 = vmul.u32 %v795_v49, %v793_v33 }
  0xfb   :  { %v823_v30 = vshll.u32 %v820_v24, 16  ;;  %v819_v42 = vmul.u32 %v817_v19, %v793_v33  ;;  %v800_v26 = vmul.u32 %v796_v21, %v794_v61  ;;  %v822_v46 = vmul.u32 %v818_v62, %v794_v61 }
  0xfc   :  { %v801_v22 = vshll.u32 %v798_v54, 16  ;;  %v803_v57 = vshll.u32 %v799_v27, 16  ;;  %v825_v23 = vshll.u32 %v6767_v17, 16  ;;  %vm11977_vm4 = vcmp.lt.s32.totalorder %v6331_v8, 0 }
  0xfd   :  { %vm827_vm6 = vc.u32 %v819_v42, %v823_v30  ;;  %v829_v3 = vadd.s32 %v823_v30, %v819_v42  ;;  %v394_v16 = vadd.s32 127, %v393_v58  ;;  %v6779_v43 = vsub.s32 %v687_v15, %v690_v45 }
  0xfe   :  { %vm805_vm5 = vc.u32 %v797_v0, %v801_v22  ;;  %v807_v1 = vadd.s32 %v801_v22, %v797_v0  ;;  %v828_v49 = vsel %vm827_vm6, 1, %v11921_v7  ;;  %v548_v19 = vsub.s32 4294967266, %v6775_v56 }
  0xff   :  { %v806_v63 = vsel %vm805_vm5, 1, %v11921_v7  ;;  %v830_v61 = vadd.s32 %v828_v49, %v822_v46  ;;  %vm831_vm8 = vc.u32 %v829_v3, %v825_v23  ;;  %v824_v21 = vshrl.u32 %v820_v24, 16 }
 0x100   :  { %v808_v33 = vadd.s32 %v806_v63, %v800_v26  ;;  %vm809_vm7 = vc.u32 %v807_v1, %v803_v57  ;;  %v832_v30 = vsel %vm831_vm8, 1, %v11921_v7  ;;  %v802_v58 = vshrl.u32 %v798_v54, 16 }
 0x101   :  { %v810_v62 = vsel %vm809_vm7, 1, %v11921_v7  ;;  %v834_v45 = vadd.s32 %v832_v30, %v830_v61  ;;  %v902_v0 = vand.u32 2139095040, %v6783_v40  ;;  %v395_v22 = vshll.u32 %v394_v16, 23 }
 0x102   :  { %v812_v15 = vadd.s32 %v810_v62, %v808_v33  ;;  %v693_v42 = vsub.s32 0, %v6779_v43  ;;  %v760_v26 = vshrl.u32 %v11919_v35, %v6702_v36  ;;  %v781_v57 = vsel %vm779_vm15, %v6727_v4, 2102212464 }
 0x103   :  { %vm692_vm9 = vcmp.lt.s32.totalorder %v6779_v43, 0  ;;  %v835_v46 = vadd.s32 %v834_v45, %v824_v21  ;;  %v903_v1 = vshrl.u32 %v902_v0, 23  ;;  %v544_v54 = vsub.s32 32, %v6775_v56 }
 0x104   :  { %v813_v24 = vadd.s32 %v812_v15, %v802_v58  ;;  %v549_v63 = vadd.s32 127, %v548_v19  ;;  %v826_v49 = vshrl.u32 %v6767_v17, 16  ;;  %v11905_v16 = vand.u32 2147483647, %v6783_v40 }
 0x105   :  { %v780_v36 = vsel %vm776_vm14, %v760_v26, %v6723_v2  ;;  %v782_v4 = vsel %vm778_vm1, %v6725_v5, %v781_v57  ;;  %v804_v33 = vshrl.u32 %v799_v27, 16  ;;  %v6104_v61 = vadd.s32 4294967169, %v903_v1 }
 0x106   :  { %v247_v62 = vsel %vm11977_vm4, %v246_v38, %v6751_v52  ;;  %v528_v19 = vadd.s32 %v6606_v31, %v6600_v53  ;;  %v694_v17 = vsel %vm692_vm9, %v693_v42, %v6779_v43  ;;  %v836_v21 = vadd.s32 %v835_v46, %v826_v49 }
 0x107   :  { %v390_v30 = vshll.u32 %v6616_v29, %v6757_v18  ;;  %v391_v2 = vshrl.u32 %v373_v60, %v389_v59  ;;  %v6813_v58 = vadd.s32 %v813_v24, %v804_v33  ;;  %v909_v15 = vadd.s32 1, %v6104_v61 }
 0x108   :  { %v396_v5 = vor.u32 4788187, %v395_v22  ;;  %v546_v27 = vshrl.u32 %v528_v19, %v544_v54  ;;  %v550_v45 = vshll.u32 %v549_v63, 23  ;;  %v783_v0 = vsel %vm777_vm2, %v780_v36, %v782_v4 }
 0x109   :  { %v695_v52 = vclz %v694_v17  ;;  %v6817_v38 = vadd.s32 %v829_v3, %v825_v23  ;;  %v906_v53 = vand.u32 8388607, %v11905_v16  ;;  %vm910_vm10 = vcmp.gt.s32.totalorder %v909_v15, 0 }
 0x10a   :  { %vm6823_vm11 = vcmp.le.f32.partialorder %v124_v9, 0.7853982  ;;  %v12195_v31 = vmov 0  ;;  %v545_v29 = vshll.u32 %v6687_v6, %v6775_v56  ;;  %v840_v18 = vadd.s32 1, %v836_v21 }
 0x10b   :  { %v12196_v31 = vsel %vm6823_vm11, 4294967295, %v12195_v31  ;;  %v911_v60 = vsel %vm910_vm10, %v909_v15, 0  ;;  %v6834_v59 = vsel %vm6823_vm11, %v6331_v8, %v247_v62  ;;  %v392_v23 = vor.u32 %v391_v2, %v390_v30 }
 0x10c   :  { %12197 = vst [vmem:[#allocation9_spill] sm:$0xff] %v12196_v31  ;;  %vm839_vm12 = vc.u32 %v6813_v58, %v6817_v38  ;;  %v913_v9 = vand.u32 31, %v911_v60  ;;  %v397_v3 = vand.u32 2147483647, %v396_v5  ;;  %v547_v22 = vor.u32 %v546_v27, %v545_v29 }
 0x10d   :  { %12198 = vst [vmem:[#allocation10_spill] sm:$0xff] %v6834_v59  ;;  %v551_v42 = vor.u32 4788187, %v550_v45  ;;  %v837_v26 = vmul.u32 %v6732_v48, %v783_v0  ;;  %v6099_v6 = vadd.s32 4294967294, %v695_v52  ;;  %v907_v56 = vor.u32 8388608, %v906_v53 }
 0x10e   :  { %v6839_v57 = vsub.s32 32, %v913_v9  ;;  %v1057_v24 = vand.u32 2139095040, %v6829_v34  ;;  %v841_v46 = vsel %vm839_vm12, %v840_v18, %v836_v21  ;;  %v6842_v1 = vshrl.u32 %v911_v60, 5 }
 0x10f   :  { %v916_v54 = vshll.u32 %v11919_v35, %v913_v9  ;;  %v919_v63 = vshll.u32 %v11917_v37, %v913_v9  ;;  %v922_v48 = vshll.u32 %v11915_v41, %v913_v9  ;;  %v925_v33 = vshll.u32 %v11913_v44, %v913_v9 }
 0x110   :  { %v917_v49 = vshrl.u32 %v11917_v37, %v6839_v57  ;;  %v920_v36 = vshrl.u32 %v11915_v41, %v6839_v57  ;;  %v923_v4 = vshrl.u32 %v11913_v44, %v6839_v57  ;;  %v926_v61 = vshrl.u32 %v11911_v47, %v6839_v57 }
 0x111   :  { %v928_v62 = vshll.u32 %v11911_v47, %v913_v9  ;;  %v929_v19 = vshrl.u32 %v11909_v50, %v6839_v57  ;;  %v399_v17 = vcvt.s32.f32 %v392_v23  ;;  %v6865_v15 = vmul.f32 %v6834_v59, %v6834_v59 }
 0x112   :  { %v6859_v21 = vor.u32 %v917_v49, %v916_v54  ;;  %v6861_v30 = vor.u32 %v920_v36, %v919_v63  ;;  %v924_v2 = vor.u32 %v923_v4, %v922_v48  ;;  %v6867_v5 = vadd.s32 %v841_v46, %v837_v26 }
 0x113   :  { %12199 = vst [vmem:[#allocation11_spill] sm:$0xff] %v6865_v15  ;;  %v927_v27 = vor.u32 %v926_v61, %v925_v33  ;;  %v930_v45 = vor.u32 %v929_v19, %v928_v62  ;;  %v6869_v0 = vmul.f32 %v399_v17, %v397_v3  ;;  %v552_v52 = vand.u32 2147483647, %v551_v42 }
 0x114   :  { %v554_v53 = vcvt.s32.f32 %v547_v22  ;;  %vm6100_vm13 = vcmp.lt.s32.totalorder %v6099_v6, 0  ;;  %vm931_vm14 = vcmp.lt.s32.totalorder %v6842_v1, 1  ;;  %vm934_vm15 = vcmp.lt.s32.totalorder %v6842_v1, 4 }
 0x115   :  { %v6873_v29 = vshll.u32 %v907_v56, 8  ;;  %v1058_v18 = vshrl.u32 %v1057_v24, 23  ;;  %vm933_vm0 = vcmp.lt.s32.totalorder %v6842_v1, 3  ;;  %v939_v60 = vsel %vm931_vm14, %v6859_v21, %v6861_v30 }
 0x116   :  { %v940_v23 = vsel %vm934_vm15, %v927_v27, 920167782  ;;  %v943_v9 = vsel %vm931_vm14, %v6861_v30, %v924_v2  ;;  %v843_v3 = vadd.s32 536870912, %v6867_v5  ;;  %vm932_vm1 = vcmp.lt.s32.totalorder %v6842_v1, 2 }
 0x117   :  { %v941_v22 = vsel %vm933_vm0, %v924_v2, %v940_v23  ;;  %v944_v42 = vsel %vm934_vm15, %v930_v45, 1326507024  ;;  %v6891_v26 = vmul.f32 %v554_v53, %v552_v52  ;;  %v6893_v56 = vsel %vm6100_vm13, 0, %v6099_v6 }
 0x118   :  { %v942_v24 = vsel %vm932_vm1, %v939_v60, %v941_v22  ;;  %v945_v46 = vsel %vm933_vm0, %v927_v27, %v944_v42  ;;  %v948_v63 = vand.u32 65535, %v6873_v29  ;;  %v949_v48 = vshrl.u32 %v6873_v29, 16 }
 0x119   :  { %v946_v54 = vsel %vm932_vm1, %v943_v9, %v945_v46  ;;  %v972_v49 = vand.u32 65535, %v942_v24  ;;  %v973_v36 = vshrl.u32 %v942_v24, 16  ;;  %v11908_v6 = vand.u32 2147483647, %v6829_v34 }
 0x11a   :  { %v950_v4 = vand.u32 65535, %v946_v54  ;;  %v951_v33 = vshrl.u32 %v946_v54, 16  ;;  %v6905_v62 = vshrl.u32 %v843_v3, 30  ;;  %v6107_v17 = vadd.s32 4294967169, %v1058_v18 }
 0x11b   :  { %v975_v19 = vmul.u32 %v973_v36, %v948_v63  ;;  %v683_v45 = vadd.s32 %v6700_v32, %v6697_v55  ;;  %v699_v60 = vsub.s32 32, %v6893_v56  ;;  %v976_v9 = vmul.u32 %v972_v49, %v949_v48 }
 0x11c   :  { %12200 = vst [vmem:[#allocation12_spill] sm:$0xff] %v6905_v62  ;;  %v953_v52 = vmul.u32 %v951_v33, %v948_v63  ;;  %v954_v53 = vmul.u32 %v950_v4, %v949_v48  ;;  %v703_v42 = vsub.s32 4294967266, %v6893_v56  ;;  %v952_v3 = vmul.u32 %v950_v4, %v948_v63 }
 0x11d   :  { %v978_v22 = vshll.u32 %v975_v19, 16  ;;  %v6916_v18 = vand.u32 8388607, %v11908_v6  ;;  %v845_v46 = vshll.u32 %v6905_v62, 30  ;;  %v915_v55 = vshrl.u32 %v11919_v35, %v6839_v57 }
 0x11e   :  { %v956_v24 = vshll.u32 %v953_v52, 16  ;;  %v974_v32 = vmul.u32 %v972_v49, %v948_v63  ;;  %v1064_v54 = vadd.s32 1, %v6107_v17  ;;  %v955_v16 = vmul.u32 %v951_v33, %v949_v48 }
 0x11f   :  { %v958_v14 = vshll.u32 %v954_v53, 16  ;;  %v980_v27 = vshll.u32 %v976_v9, 16  ;;  %v936_v6 = vsel %vm934_vm15, %v924_v2, 2102212464  ;;  %v977_v50 = vmul.u32 %v973_v36, %v949_v48 }
 0x120   :  { %vm960_vm2 = vc.u32 %v952_v3, %v956_v24  ;;  %v962_v12 = vadd.s32 %v956_v24, %v952_v3  ;;  %vm982_vm3 = vc.u32 %v974_v32, %v978_v22  ;;  %v984_v4 = vadd.s32 %v978_v22, %v974_v32 }
 0x121   :  { %v961_v23 = vsel %vm960_vm2, 1, %v11921_v7  ;;  %v6925_v47 = vsub.s32 %v6867_v5, %v845_v46  ;;  %v983_v63 = vsel %vm982_vm3, 1, %v11921_v7  ;;  %v935_v49 = vsel %vm931_vm14, %v915_v55, %v6859_v21  ;;  %v6963_v46 = vpop.f32.mrf.mxu1 }
 0x122   :  { %v963_v61 = vadd.s32 %v961_v23, %v955_v16  ;;  %vm964_vm5 = vc.u32 %v962_v12, %v958_v14  ;;  %vm986_vm6 = vc.u32 %v984_v4, %v980_v27  ;;  %v957_v33 = vshrl.u32 %v953_v52, 16  ;;  %12201 = vst [vmem:[#allocation13_spill] sm:$0xff] %v6963_v46 }
 0x123   :  { %v965_v57 = vsel %vm964_vm5, 1, %v11921_v7  ;;  %v985_v22 = vadd.s32 %v983_v63, %v977_v50  ;;  %v937_v12 = vsel %vm933_vm0, %v6861_v30, %v936_v6  ;;  %v979_v14 = vshrl.u32 %v975_v19, 16 }
 0x124   :  { %v967_v17 = vadd.s32 %v965_v57, %v963_v61  ;;  %v987_v16 = vsel %vm986_vm6, 1, %v11921_v7  ;;  %vm1065_vm7 = vcmp.gt.s32.totalorder %v1064_v54, 0  ;;  %v959_v2 = vshrl.u32 %v954_v53, 16 }
 0x125   :  { %v989_v36 = vadd.s32 %v987_v16, %v985_v22  ;;  %v1066_v48 = vsel %vm1065_vm7, %v1064_v54, 0  ;;  %v6936_v23 = vshrl.u32 %v683_v45, %v699_v60  ;;  %v6938_v3 = vadd.s32 127, %v703_v42 }
 0x126   :  { %v968_v5 = vadd.s32 %v967_v17, %v957_v33  ;;  %v1062_v21 = vor.u32 8388608, %v6916_v18  ;;  %v1068_v61 = vand.u32 31, %v1066_v48  ;;  %vm847_vm8 = vcmp.lt.s32.totalorder %v6925_v47, 0 }
 0x127   :  { %v981_v30 = vshrl.u32 %v976_v9, 16  ;;  %v990_v6 = vadd.s32 %v989_v36, %v979_v14  ;;  %v848_v19 = vsub.s32 0, %v6925_v47  ;;  %v938_v52 = vsel %vm932_vm1, %v935_v49, %v937_v12 }
 0x128   :  { %v6942_v50 = vadd.s32 %v968_v5, %v959_v2  ;;  %v6947_v53 = vadd.s32 %v984_v4, %v980_v27  ;;  %v6949_v45 = vsub.s32 32, %v1068_v61  ;;  %v6951_v42 = vshrl.u32 %v1066_v48, 5 }
 0x129   :  { %v991_v60 = vadd.s32 %v990_v6, %v981_v30  ;;  %v1071_v24 = vshll.u32 %v11919_v35, %v1068_v61  ;;  %v1074_v18 = vshll.u32 %v11917_v37, %v1068_v61  ;;  %v1077_v32 = vshll.u32 %v11915_v41, %v1068_v61 }
 0x12a   :  { %vm994_vm9 = vc.u32 %v6942_v50, %v6947_v53  ;;  %v1072_v9 = vshrl.u32 %v11917_v37, %v6949_v45  ;;  %v1075_v1 = vshrl.u32 %v11915_v41, %v6949_v45  ;;  %v1078_v27 = vshrl.u32 %v11913_v44, %v6949_v45 }
 0x12b   :  { %v995_v55 = vadd.s32 1, %v991_v60  ;;  %v1080_v54 = vshll.u32 %v11913_v44, %v1068_v61  ;;  %v12202_v4 = vmov 920167782   ;;  %v849_v63 = vsel %vm847_vm8, %v848_v19, %v6925_v47 }
 0x12c   :  { %v1081_v57 = vshrl.u32 %v12202_v4, %v6949_v45  ;;  %v992_v49 = vmul.u32 %v6873_v29, %v938_v52  ;;  %v6973_v33 = vor.u32 %v1072_v9, %v1071_v24  ;;  %v6975_v17 = vor.u32 %v1075_v1, %v1074_v18 }
 0x12d   :  { %vm11975_vm10 = vcmp.lt.s32.totalorder %v6335_v11, 0  ;;  %vm11973_vm12 = vcmp.lt.s32.totalorder %v6345_v28, 0  ;;  %v996_v22 = vsel %vm994_vm9, %v995_v55, %v991_v60  ;;  %v6979_v12 = vor.u32 %v1078_v27, %v1077_v32 }
 0x12e   :  { %v1082_v14 = vor.u32 %v1081_v57, %v1080_v54  ;;  %v1212_v16 = vand.u32 2139095040, %v6963_v46  ;;  %v997_v2 = vadd.s32 %v996_v22, %v992_v49  ;;  %v1083_v5 = vshll.u32 %v12202_v4, %v1068_v61 }
 0x12f   :  { %v12203_v36 = vmov 1326507024   ;;  %vm1086_vm13 = vcmp.lt.s32.totalorder %v6951_v42, 1  ;;  %v850_v48 = vclz %v849_v63  ;;  %vm1089_vm14 = vcmp.lt.s32.totalorder %v6951_v42, 4 }
 0x130   :  { %v1084_v29 = vshrl.u32 %v12203_v36, %v6949_v45  ;;  %v1094_v30 = vsel %vm1086_vm13, %v6973_v33, %v6975_v17  ;;  %v6991_v6 = vshll.u32 %v1062_v21, 8  ;;  %v998_v19 = vadd.s32 536870912, %v997_v2 }
 0x131   :  { %vm1088_vm15 = vcmp.lt.s32.totalorder %v6951_v42, 3  ;;  %v1095_v61 = vsel %vm1089_vm14, %v1082_v14, 920167782  ;;  %vm1087_vm0 = vcmp.lt.s32.totalorder %v6951_v42, 2  ;;  %v1098_v24 = vsel %vm1086_vm13, %v6975_v17, %v6979_v12 }
 0x132   :  { %v1085_v52 = vor.u32 %v1084_v29, %v1083_v5  ;;  %v1096_v60 = vsel %vm1088_vm15, %v6979_v12, %v1095_v61  ;;  %v1213_v21 = vshrl.u32 %v1212_v16, 23  ;;  %v705_v18 = vshll.u32 %v6938_v3, 23 }
 0x133   :  { %v7005_v9 = vshrl.u32 %v998_v19, 30  ;;  %v1097_v1 = vsel %vm1087_vm0, %v1094_v30, %v1096_v60  ;;  %v1103_v32 = vand.u32 65535, %v6991_v6  ;;  %v6102_v63 = vadd.s32 4294967294, %v850_v48 }
 0x134   :  { %v1099_v27 = vsel %vm1089_vm14, %v1085_v52, 1326507024  ;;  %v1127_v54 = vand.u32 65535, %v1097_v1  ;;  %v1128_v57 = vshrl.u32 %v1097_v1, 16  ;;  %v1104_v3 = vshrl.u32 %v6991_v6, 16 }
 0x135   :  { %12204 = vst [vmem:[#allocation14_spill] sm:$0xff] %v7005_v9  ;;  %v1100_v55 = vsel %vm1088_vm15, %v1082_v14, %v1099_v27  ;;  %v6110_v22 = vadd.s32 4294967169, %v1213_v21  ;;  %v1000_v16 = vshll.u32 %v7005_v9, 30  ;;  %v12205_v19 = vxor.u32 2147483648, %v6869_v0 }
 0x136   :  { %v1101_v49 = vsel %vm1087_vm0, %v1098_v24, %v1100_v55  ;;  %v1130_v30 = vmul.u32 %v1128_v57, %v1103_v32  ;;  %v12206_v48 = vxor.u32 2147483648, %v6891_v26  ;;  %v12207_v61 = vshll.u32 %v6779_v43, %v6893_v56 }
 0x137   :  { %v1105_v5 = vand.u32 65535, %v1101_v49  ;;  %v1106_v29 = vshrl.u32 %v1101_v49, 16  ;;  %v7023_v14 = vsel %vm11975_vm10, %v12205_v19, %v6869_v0  ;;  %v7038_v24 = vor.u32 4788187, %v705_v18 }
 0x138   :  { %v7030_v52 = vsel %vm11973_vm12, %v12206_v48, %v6891_v26  ;;  %v7036_v60 = vor.u32 %v6936_v23, %v12207_v61  ;;  %v1131_v27 = vmul.u32 %v1127_v54, %v1104_v3  ;;  %vm6103_vm1 = vcmp.lt.s32.totalorder %v6102_v63, 0 }
 0x139   :  { %v1108_v21 = vmul.u32 %v1106_v29, %v1103_v32  ;;  %v1109_v1 = vmul.u32 %v1105_v5, %v1104_v3  ;;  %v1129_v55 = vmul.u32 %v1127_v54, %v1103_v32  ;;  %v1133_v49 = vshll.u32 %v1130_v30, 16 }
 0x13a   :  { %v1219_v19 = vadd.s32 1, %v6110_v22  ;;  %v7041_v44 = vsub.s32 %v997_v2, %v1000_v16  ;;  %v1070_v26 = vshrl.u32 %v11919_v35, %v6949_v45  ;;  %v1107_v43 = vmul.u32 %v1105_v5, %v1103_v32 }
 0x13b   :  { %v1111_v56 = vshll.u32 %v1108_v21, 16  ;;  %v1110_v23 = vmul.u32 %v1106_v29, %v1104_v3  ;;  %v1113_v48 = vshll.u32 %v1109_v1, 16  ;;  %v1132_v18 = vmul.u32 %v1128_v57, %v1104_v3 }
 0x13c   :  { %vm1137_vm2 = vc.u32 %v1129_v55, %v1133_v49  ;;  %v1135_v41 = vshll.u32 %v1131_v27, 16  ;;  %v1139_v0 = vadd.s32 %v1133_v49, %v1129_v55  ;;  %vm1220_vm5 = vcmp.gt.s32.totalorder %v1219_v19, 0 }
 0x13d   :  { %vm1115_vm3 = vc.u32 %v1107_v43, %v1111_v56  ;;  %v1117_v61 = vadd.s32 %v1111_v56, %v1107_v43  ;;  %v1138_v37 = vsel %vm1137_vm2, 1, %v11921_v7  ;;  %v1091_v45 = vsel %vm1089_vm14, %v6979_v12, 2102212464 }
 0x13e   :  { %v1116_v54 = vsel %vm1115_vm3, 1, %v11921_v7  ;;  %v1140_v22 = vadd.s32 %v1138_v37, %v1132_v18  ;;  %v1221_v32 = vsel %vm1220_vm5, %v1219_v19, 0  ;;  %vm1002_vm7 = vcmp.lt.s32.totalorder %v7041_v44, 0 }
 0x13f   :  { %v1118_v2 = vadd.s32 %v1116_v54, %v1110_v23  ;;  %vm1119_vm6 = vc.u32 %v1117_v61, %v1113_v48  ;;  %v1003_v57 = vsub.s32 0, %v7041_v44  ;;  %vm1141_vm8 = vc.u32 %v1139_v0, %v1135_v41 }
 0x140   :  { %v1120_v3 = vsel %vm1119_vm6, 1, %v11921_v7  ;;  %v1112_v16 = vshrl.u32 %v1108_v21, 16  ;;  %v1142_v29 = vsel %vm1141_vm8, 1, %v11921_v7  ;;  %v1223_v37 = vand.u32 31, %v1221_v32 }
 0x141   :  { %v1122_v5 = vadd.s32 %v1120_v3, %v1118_v2  ;;  %v1090_v55 = vsel %vm1086_vm13, %v1070_v26, %v6973_v33  ;;  %v1092_v12 = vsel %vm1088_vm15, %v6975_v17, %v1091_v45  ;;  %v1134_v49 = vshrl.u32 %v1130_v30, 16 }
 0x142   :  { %v1144_v19 = vadd.s32 %v1142_v29, %v1140_v22  ;;  %v7061_v43 = vsel %vm6103_vm1, 0, %v6102_v63  ;;  %v1114_v56 = vshrl.u32 %v1109_v1, 16  ;;  %v12208_v21 = vand.u32 2147483647, %v6963_v46 }
 0x143   :  { %v1123_v23 = vadd.s32 %v1122_v5, %v1112_v16  ;;  %v1004_v18 = vsel %vm1002_vm7, %v1003_v57, %v7041_v44  ;;  %v1136_v61 = vshrl.u32 %v1131_v27, 16  ;;  %v7068_v26 = vsub.s32 32, %v1223_v37 }
 0x144   :  { %v1216_v48 = vand.u32 8388607, %v12208_v21  ;;  %v1145_v33 = vadd.s32 %v1144_v19, %v1134_v49  ;;  %v1093_v17 = vsel %vm1087_vm0, %v1090_v55, %v1092_v12  ;;  %v7074_v63 = vadd.s32 %v1139_v0, %v1135_v41 }
 0x145   :  { %v7072_v30 = vadd.s32 %v1123_v23, %v1114_v56  ;;  %v1226_v1 = vshll.u32 %v11919_v35, %v1223_v37  ;;  %v12209_v22 = vmov 2475754826   ;;  %v12210_v27 = vmov 2131351028  }
 0x146   :  { %v1146_v54 = vadd.s32 %v1145_v33, %v1136_v61  ;;  %v1227_v45 = vshrl.u32 %v12209_v22, %v7068_v26  ;;  %v1229_v2 = vshll.u32 %v12209_v22, %v1223_v37  ;;  %v1230_v57 = vshrl.u32 %v12210_v27, %v7068_v26 }
 0x147   :  { %v1005_v3 = vclz %v1004_v18  ;;  %vm1149_vm9 = vc.u32 %v7072_v30, %v7074_v63  ;;  %v7084_v42 = vshrl.u32 %v1221_v32, 5  ;;  %v1232_v41 = vshll.u32 %v12210_v27, %v1223_v37 }
 0x148   :  { %v1150_v0 = vadd.s32 1, %v1146_v54  ;;  %v7087_v16 = vor.u32 %v1227_v45, %v1226_v1  ;;  %v7089_v5 = vor.u32 %v1230_v57, %v1229_v2  ;;  %v12211_v29 = vmov 2102212464  }
 0x149   :  { %v1233_v55 = vshrl.u32 %v12211_v29, %v7068_v26  ;;  %v858_v12 = vsub.s32 4294967266, %v7061_v43  ;;  %v1147_v49 = vmul.u32 %v6991_v6, %v1093_v17  ;;  %v1235_v19 = vshll.u32 %v12211_v29, %v1223_v37 }
 0x14a   :  { %v1236_v32 = vshrl.u32 %v12202_v4, %v7068_v26  ;;  %v1151_v56 = vsel %vm1149_vm9, %v1150_v0, %v1146_v54  ;;  %v1238_v21 = vshll.u32 %v12202_v4, %v1223_v37  ;;  %v1239_v18 = vshrl.u32 %v12203_v36, %v7068_v26 }
 0x14b   :  { %v7098_v23 = vor.u32 %v1233_v55, %v1232_v41  ;;  %v1152_v61 = vadd.s32 %v1151_v56, %v1147_v49  ;;  %v1217_v33 = vor.u32 8388608, %v1216_v48  ;;  %vm1241_vm13 = vcmp.lt.s32.totalorder %v7084_v42, 1 }
 0x14c   :  { %v1237_v1 = vor.u32 %v1236_v32, %v1235_v19  ;;  %v6105_v45 = vadd.s32 4294967294, %v1005_v3  ;;  %v1240_v6 = vor.u32 %v1239_v18, %v1238_v21  ;;  %vm1244_vm14 = vcmp.lt.s32.totalorder %v7084_v42, 4 }
 0x14d   :  { %v1249_v17 = vsel %vm1241_vm13, %v7087_v16, %v7089_v5  ;;  %v859_v54 = vadd.s32 127, %v858_v12  ;;  %v1153_v2 = vadd.s32 536870912, %v1152_v61  ;;  %vm1243_vm15 = vcmp.lt.s32.totalorder %v7084_v42, 3 }
 0x14e   :  { %v1250_v37 = vsel %vm1244_vm14, %v1237_v1, 920167782  ;;  %vm1242_vm0 = vcmp.lt.s32.totalorder %v7084_v42, 2  ;;  %v1253_v57 = vsel %vm1241_vm13, %v7089_v5, %v7098_v23  ;;  %v1254_v3 = vsel %vm1244_vm14, %v1240_v6, 1326507024 }
 0x14f   :  { %v1251_v48 = vsel %vm1243_vm15, %v7098_v23, %v1250_v37  ;;  %v707_v41 = vand.u32 2147483647, %v7038_v24  ;;  %v709_v0 = vcvt.s32.f32 %v7036_v60  ;;  %v7124_v55 = vshrl.u32 %v1153_v2, 30 }
 0x150   :  { %v1252_v12 = vsel %vm1242_vm0, %v1249_v17, %v1251_v48  ;;  %vm6106_vm1 = vcmp.lt.s32.totalorder %v6105_v45, 0  ;;  %v1255_v49 = vsel %vm1243_vm15, %v1237_v1, %v1254_v3  ;;  %v7130_v19 = vshll.u32 %v1217_v33, 8 }
 0x151   :  { %12212 = vst [vmem:[#allocation15_spill] sm:$0xff] %v7124_v55  ;;  %v1283_v32 = vshrl.u32 %v1252_v12, 16  ;;  %v854_v56 = vsub.s32 32, %v7061_v43  ;;  %v860_v21 = vshll.u32 %v859_v54, 23  ;;  %v1155_v18 = vshll.u32 %v7124_v55, 30 }
 0x152   :  { %v1256_v60 = vsel %vm1242_vm0, %v1253_v57, %v1255_v49  ;;  %v1258_v24 = vand.u32 65535, %v7130_v19  ;;  %v1259_v6 = vshrl.u32 %v7130_v19, 16  ;;  %v1282_v2 = vand.u32 65535, %v1252_v12 }
 0x153   :  { %v1260_v17 = vand.u32 65535, %v1256_v60  ;;  %v838_v1 = vadd.s32 %v6817_v38, %v6813_v58  ;;  %v7140_v33 = vsel %vm6106_vm1, 0, %v6105_v45  ;;  %v7142_v37 = vsub.s32 %v1152_v61, %v1155_v18 }
 0x154   :  { %v1261_v48 = vshrl.u32 %v1256_v60, 16  ;;  %v7144_v54 = vmul.f32 %v709_v0, %v707_v41  ;;  %v855_v3 = vshll.u32 %v6925_v47, %v7061_v43  ;;  %v1285_v49 = vmul.u32 %v1283_v32, %v1258_v24 }
 0x155   :  { %v1264_v57 = vmul.u32 %v1260_v17, %v1259_v6  ;;  %v856_v35 = vshrl.u32 %v838_v1, %v854_v56  ;;  %vm1157_vm2 = vcmp.lt.s32.totalorder %v7142_v37, 0  ;;  %v1158_v12 = vsub.s32 0, %v7142_v37 }
 0x156   :  { %v1263_v7 = vmul.u32 %v1261_v48, %v1258_v24  ;;  %v7150_v25 = vor.u32 4788187, %v860_v21  ;;  %v1009_v58 = vsub.s32 32, %v7140_v33  ;;  %v1262_v38 = vmul.u32 %v1260_v17, %v1258_v24 }
 0x157   :  { %v1286_v61 = vmul.u32 %v1282_v2, %v1259_v6  ;;  %v1265_v45 = vmul.u32 %v1261_v48, %v1259_v6  ;;  %v1284_v0 = vmul.u32 %v1282_v2, %v1258_v24  ;;  %v1288_v18 = vshll.u32 %v1285_v49, 16 }
 0x158   :  { %v1266_v41 = vshll.u32 %v1263_v7, 16  ;;  %v1159_v47 = vsel %vm1157_vm2, %v1158_v12, %v7142_v37  ;;  %v1268_v43 = vshll.u32 %v1264_v57, 16  ;;  %v1287_v60 = vmul.u32 %v1283_v32, %v1259_v6 }
 0x159   :  { %v1290_v56 = vshll.u32 %v1286_v61, 16  ;;  %v12213_v1 = vand.u32 2147483647, %v6335_v11  ;;  %v12214_v9 = vmov 0  ;;  %vm1292_vm6 = vc.u32 %v1284_v0, %v1288_v18 }
 0x15a   :  { %vm1270_vm5 = vc.u32 %v1262_v38, %v1266_v41  ;;  %v1272_v21 = vadd.s32 %v1266_v41, %v1262_v38  ;;  %v1294_v17 = vadd.s32 %v1288_v18, %v1284_v0  ;;  %v12217_v48 = vand.u32 2147483647, %v6345_v28  ;;  %v7172_v41 = vpop.f32.mrf.mxu2 }
 0x15b   :  { %vm7156_vm3 = vcmp.le.f32.partialorder %v12213_v1, 0.7853982  ;;  %v12218_v24 = vmov 0  ;;  %v1013_v2 = vsub.s32 4294967266, %v7140_v33  ;;  %v1246_v32 = vsel %vm1244_vm14, %v7098_v23, 2102212464 }
 0x15c   :  { %v12215_v9 = vsel %vm7156_vm3, 4294967295, %v12214_v9  ;;  %vm7162_vm7 = vcmp.le.f32.partialorder %v12217_v48, 0.7853982  ;;  %v12221_v6 = vmov 0   ;;  %vm1274_vm8 = vc.u32 %v1272_v21, %v1268_v43  ;;  %12222 = vst [vmem:[#allocation18_spill] sm:$0xff] %v7172_v41 }
 0x15d   :  { %12216 = vst [vmem:[#allocation16_spill] sm:$0xff] %v12215_v9  ;;  %v12219_v24 = vsel %vm7162_vm7, 4294967295, %v12218_v24  ;;  %v1271_v12 = vsel %vm1270_vm5, 1, %v12221_v6  ;;  %v1293_v1 = vsel %vm1292_vm6, 1, %v12221_v6  ;;  %vm1296_vm9 = vc.u32 %v1294_v17, %v1290_v56 }
 0x15e   :  { %12220 = vst [vmem:[#allocation17_spill] sm:$0xff] %v12219_v24  ;;  %v1273_v59 = vadd.s32 %v1271_v12, %v1265_v45  ;;  %v1295_v38 = vadd.s32 %v1293_v1, %v1287_v60  ;;  %v1160_v0 = vclz %v1159_v47  ;;  %v12223_v18 = vmov 683565275  }
 0x15f   :  { %v1225_v48 = vshrl.u32 %v12223_v18, %v7068_v26  ;;  %v1275_v15 = vsel %vm1274_vm8, 1, %v12221_v6  ;;  %v1297_v10 = vsel %vm1296_vm9, 1, %v12221_v6  ;;  %v1267_v31 = vshrl.u32 %v1263_v7, 16 }
 0x160   :  { %v1277_v23 = vadd.s32 %v1275_v15, %v1273_v59  ;;  %v1289_v8 = vshrl.u32 %v1285_v49, 16  ;;  %v1299_v62 = vadd.s32 %v1297_v10, %v1295_v38  ;;  %v1247_v43 = vsel %vm1243_vm15, %v7089_v5, %v1246_v32 }
 0x161   :  { %v1245_v45 = vsel %vm1241_vm13, %v1225_v48, %v7087_v16  ;;  %v11937_v47 = vand.u32 2147483647, %v7172_v41  ;;  %v1367_v26 = vand.u32 2139095040, %v7172_v41  ;;  %v1269_v60 = vshrl.u32 %v1264_v57, 16 }
 0x162   :  { %v1278_v21 = vadd.s32 %v1277_v23, %v1267_v31  ;;  %v1291_v12 = vshrl.u32 %v1286_v61, 16  ;;  %v1300_v1 = vadd.s32 %v1299_v62, %v1289_v8  ;;  %vm11980_vm14 = vcmp.lt.s32.totalorder %v6575_v51, 0 }
 0x163   :  { %v993_v7 = vadd.s32 %v6947_v53, %v6942_v50  ;;  %v1014_v10 = vadd.s32 127, %v1013_v2  ;;  %v6108_v59 = vadd.s32 4294967294, %v1160_v0  ;;  %v1368_v15 = vshrl.u32 %v1367_v26, 23 }
 0x164   :  { %v1248_v16 = vsel %vm1242_vm0, %v1245_v45, %v1247_v43  ;;  %v7191_v5 = vadd.s32 %v1278_v21, %v1269_v60  ;;  %v7193_v49 = vadd.s32 %v1294_v17, %v1290_v56  ;;  %v1301_v32 = vadd.s32 %v1300_v1, %v1291_v12 }
 0x165   :  { %v7199_v8 = vsel %vm7156_vm3, %v6335_v11, %v7023_v14  ;;  %v857_v31 = vor.u32 %v856_v35, %v855_v3  ;;  %v1011_v62 = vshrl.u32 %v993_v7, %v1009_v58  ;;  %v6113_v50 = vadd.s32 4294967169, %v1368_v15  ;;  %v7214_v58 = vpop.f32.mrf.mxu0 }
 0x166   :  { %12224 = vst [vmem:[#allocation19_spill] sm:$0xff] %v7199_v8  ;;  %v7205_v53 = vsel %vm7162_vm7, %v6345_v28, %v7030_v52  ;;  %vm1304_vm13 = vc.u32 %v7191_v5, %v7193_v49  ;;  %v1305_v42 = vadd.s32 1, %v1301_v32  ;;  %v1371_v57 = vand.u32 8388607, %v11937_v47 }
 0x167   :  { %12225 = vst [vmem:[#allocation20_spill] sm:$0xff] %v7205_v53  ;;  %v1010_v14 = vshll.u32 %v7041_v44, %v7140_v33  ;;  %vm6109_vm15 = vcmp.lt.s32.totalorder %v6108_v59, 0  ;;  %v1302_v35 = vmul.u32 %v7130_v19, %v1248_v16  ;;  %v1374_v3 = vadd.s32 1, %v6113_v50 }
 0x168   :  { %12226 = vst [vmem:[#allocation21_spill] sm:$0xff] %v7214_v58  ;;  %v711_v61 = vxor.u32 2147483648, %v7144_v54  ;;  %v862_v52 = vand.u32 2147483647, %v7150_v25  ;;  %v1015_v56 = vshll.u32 %v1014_v10, 23  ;;  %v1306_v17 = vsel %vm1304_vm13, %v1305_v42, %v1301_v32 }
 0x169   :  { %v864_v2 = vcvt.s32.f32 %v857_v31  ;;  %v7218_v38 = vor.u32 %v1011_v62, %v1010_v14  ;;  %v1307_v0 = vadd.s32 %v1306_v17, %v1302_v35  ;;  %vm1375_vm0 = vcmp.gt.s32.totalorder %v1374_v3, 0 }
 0x16a   :  { %v7220_v48 = vsel %vm6109_vm15, 0, %v6108_v59  ;;  %v1372_v44 = vor.u32 8388608, %v1371_v57  ;;  %v1376_v33 = vsel %vm1375_vm0, %v1374_v3, 0  ;;  %v1522_v19 = vand.u32 2139095040, %v7214_v58 }
 0x16b   :  { %v7225_v23 = vmul.f32 %v7199_v8, %v7199_v8  ;;  %v7229_v25 = vmul.f32 %v7205_v53, %v7205_v53  ;;  %v1308_v45 = vadd.s32 536870912, %v1307_v0  ;;  %v1378_v43 = vand.u32 31, %v1376_v33 }
 0x16c   :  { %v7234_v26 = vsel %vm11980_vm14, %v711_v61, %v7144_v54  ;;  %v7236_v60 = vmul.f32 %v864_v2, %v862_v52  ;;  %v1016_v21 = vor.u32 4788187, %v1015_v56  ;;  %v1148_v12 = vadd.s32 %v7074_v63, %v7072_v30 }
 0x16d   :  { %12227 = vst [vmem:[#allocation22_spill] sm:$0xff] %v7225_v23  ;;  %v1019_v1 = vcvt.s32.f32 %v7218_v38  ;;  %v1164_v7 = vsub.s32 32, %v7220_v48  ;;  %v7242_v10 = vshrl.u32 %v1308_v45, 30  ;;  %v1379_v59 = vsub.s32 32, %v1378_v43 }
 0x16e   :  { %12228 = vst [vmem:[#allocation23_spill] sm:$0xff] %v7229_v25  ;;  %v7244_v15 = vshrl.u32 %v1376_v33, 5  ;;  %v1381_v16 = vshll.u32 %v12223_v18, %v1378_v43  ;;  %v7247_v32 = vshll.u32 %v1372_v44, 8  ;;  %v1523_v54 = vshrl.u32 %v1522_v19, 23 }
 0x16f   :  { %12229 = vst [vmem:[#allocation24_spill] sm:$0xff] %v7242_v10  ;;  %v1310_v31 = vshll.u32 %v7242_v10, 30  ;;  %v1382_v62 = vshrl.u32 %v12209_v22, %v1379_v59  ;;  %v1384_v30 = vshll.u32 %v12209_v22, %v1378_v43  ;;  %v1387_v63 = vshll.u32 %v12210_v27, %v1378_v43 }
 0x170   :  { %v1385_v50 = vshrl.u32 %v12210_v27, %v1379_v59  ;;  %v1388_v42 = vshrl.u32 %v12211_v29, %v1379_v59  ;;  %v1390_v57 = vshll.u32 %v12211_v29, %v1378_v43  ;;  %v1391_v14 = vshrl.u32 %v12202_v4, %v1379_v59 }
 0x171   :  { %v7257_v35 = vsub.s32 %v1307_v0, %v1310_v31  ;;  %v1383_v3 = vor.u32 %v1382_v62, %v1381_v16  ;;  %v1393_v61 = vshll.u32 %v12202_v4, %v1378_v43  ;;  %v1394_v52 = vshrl.u32 %v12203_v36, %v1379_v59 }
 0x172   :  { %v1386_v56 = vor.u32 %v1385_v50, %v1384_v30  ;;  %v1389_v17 = vor.u32 %v1388_v42, %v1387_v63  ;;  %v1392_v2 = vor.u32 %v1391_v14, %v1390_v57  ;;  %v6116_v38 = vadd.s32 4294967169, %v1523_v54 }
 0x173   :  { %vm1312_vm1 = vcmp.lt.s32.totalorder %v7257_v35, 0  ;;  %v1313_v44 = vsub.s32 0, %v7257_v35  ;;  %v1395_v33 = vor.u32 %v1394_v52, %v1393_v61  ;;  %vm1396_vm2 = vcmp.lt.s32.totalorder %v7244_v15, 1 }
 0x174   :  { %v1017_v19 = vand.u32 2147483647, %v1016_v21  ;;  %v1168_v0 = vsub.s32 4294967266, %v7220_v48  ;;  %vm1399_vm5 = vcmp.lt.s32.totalorder %v7244_v15, 4  ;;  %v1404_v45 = vsel %vm1396_vm2, %v1383_v3, %v1386_v56 }
 0x175   :  { %v1314_v43 = vsel %vm1312_vm1, %v1313_v44, %v7257_v35  ;;  %vm1398_vm6 = vcmp.lt.s32.totalorder %v7244_v15, 3  ;;  %v1405_v16 = vsel %vm1399_vm5, %v1392_v2, 920167782  ;;  %v1408_v54 = vsel %vm1396_vm2, %v1386_v56, %v1389_v17 }
 0x176   :  { %v1166_v31 = vshrl.u32 %v1148_v12, %v1164_v7  ;;  %vm1397_vm8 = vcmp.lt.s32.totalorder %v7244_v15, 2  ;;  %v1406_v21 = vsel %vm1398_vm6, %v1389_v17, %v1405_v16  ;;  %v1409_v62 = vsel %vm1399_vm5, %v1395_v33, 1326507024 }
 0x177   :  { %v1407_v30 = vsel %vm1397_vm8, %v1404_v45, %v1406_v21  ;;  %v1410_v63 = vsel %vm1398_vm6, %v1392_v2, %v1409_v62  ;;  %v1413_v50 = vand.u32 65535, %v7247_v32  ;;  %v1529_v42 = vadd.s32 1, %v6116_v38 }
 0x178   :  { %v1315_v57 = vclz %v1314_v43  ;;  %v1411_v12 = vsel %vm1397_vm8, %v1408_v54, %v1410_v63  ;;  %v1437_v7 = vand.u32 65535, %v1407_v30  ;;  %v1438_v14 = vshrl.u32 %v1407_v30, 16 }
 0x179   :  { %v1169_v61 = vadd.s32 127, %v1168_v0  ;;  %v1414_v52 = vshrl.u32 %v7247_v32, 16  ;;  %v1415_v44 = vand.u32 65535, %v1411_v12  ;;  %v1416_v33 = vshrl.u32 %v1411_v12, 16 }
 0x17a   :  { %v7287_v16 = vmul.f32 %v1019_v1, %v1017_v19  ;;  %v1165_v45 = vshll.u32 %v7142_v37, %v7220_v48  ;;  %v1380_v2 = vshrl.u32 %v12223_v18, %v1379_v59  ;;  %v1440_v21 = vmul.u32 %v1438_v14, %v1413_v50 }
 0x17b   :  { %v1401_v38 = vsel %vm1399_vm5, %v1389_v17, 2102212464  ;;  %v1418_v43 = vmul.u32 %v1416_v33, %v1413_v50  ;;  %v1419_v54 = vmul.u32 %v1415_v44, %v1414_v52  ;;  %vm1530_vm9 = vcmp.gt.s32.totalorder %v1529_v42, 0 }
 0x17c   :  { %v7294_v62 = vor.u32 %v1166_v31, %v1165_v45  ;;  %v6111_v0 = vadd.s32 4294967294, %v1315_v57  ;;  %v1441_v30 = vmul.u32 %v1437_v7, %v1414_v52  ;;  %v1170_v1 = vshll.u32 %v1169_v61, 23 }
 0x17d   :  { %v1400_v19 = vsel %vm1396_vm2, %v1380_v2, %v1383_v3  ;;  %v1417_v37 = vmul.u32 %v1415_v44, %v1413_v50  ;;  %v1421_v48 = vshll.u32 %v1418_v43, 16  ;;  %v1402_v59 = vsel %vm1398_vm6, %v1386_v56, %v1401_v38 }
 0x17e   :  { %v1439_v12 = vmul.u32 %v1437_v7, %v1413_v50  ;;  %v1443_v17 = vshll.u32 %v1440_v21, 16  ;;  %v1531_v47 = vsel %vm1530_vm9, %v1529_v42, 0  ;;  %v1420_v53 = vmul.u32 %v1416_v33, %v1414_v52 }
 0x17f   :  { %v1423_v24 = vshll.u32 %v1419_v54, 16  ;;  %vm1425_vm13 = vc.u32 %v1417_v37, %v1421_v48  ;;  %v1427_v31 = vadd.s32 %v1421_v48, %v1417_v37  ;;  %vm6112_vm15 = vcmp.lt.s32.totalorder %v6111_v0, 0 }
 0x180   :  { %v1426_v57 = vsel %vm1425_vm13, 1, %v12221_v6  ;;  %v1442_v45 = vmul.u32 %v1438_v14, %v1414_v52  ;;  %v1445_v61 = vshll.u32 %v1441_v30, 16  ;;  %vm1447_vm1 = vc.u32 %v1439_v12, %v1443_v17 }
 0x181   :  { %v1428_v63 = vadd.s32 %v1426_v57, %v1420_v53  ;;  %vm1429_vm0 = vc.u32 %v1427_v31, %v1423_v24  ;;  %v1449_v3 = vadd.s32 %v1443_v17, %v1439_v12  ;;  %v1403_v44 = vsel %vm1397_vm8, %v1400_v19, %v1402_v59 }
 0x182   :  { %v1430_v56 = vsel %vm1429_vm0, 1, %v12221_v6  ;;  %v1448_v50 = vsel %vm1447_vm1, 1, %v12221_v6  ;;  %v12230_v42 = vand.u32 2147483647, %v7214_v58  ;;  %v1422_v33 = vshrl.u32 %v1418_v43, 16 }
 0x183   :  { %v1432_v2 = vadd.s32 %v1430_v56, %v1428_v63  ;;  %v1450_v38 = vadd.s32 %v1448_v50, %v1442_v45  ;;  %vm1451_vm2 = vc.u32 %v1449_v3, %v1445_v61  ;;  %v1303_v53 = vadd.s32 %v7193_v49, %v7191_v5  ;;  %v7338_v56 = vpop.f32.mrf.mxu1 }
 0x184   :  { %v1526_v7 = vand.u32 8388607, %v12230_v42  ;;  %v7311_v24 = vsel %vm6112_vm15, 0, %v6111_v0  ;;  %v1452_v15 = vsel %vm1451_vm2, 1, %v12221_v6  ;;  %v1533_v14 = vand.u32 31, %v1531_v47  ;;  %12231 = vst [vmem:[#allocation25_spill] sm:$0xff] %v7338_v56 }
 0x185   :  { %v1424_v52 = vshrl.u32 %v1419_v54, 16  ;;  %v1433_v19 = vadd.s32 %v1432_v2, %v1422_v33  ;;  %v1444_v37 = vshrl.u32 %v1440_v21, 16  ;;  %v1454_v48 = vadd.s32 %v1452_v15, %v1450_v38 }
 0x186   :  { %v1171_v59 = vor.u32 4788187, %v1170_v1  ;;  %v1457_v12 = vmul.u32 %v7247_v32, %v1403_v44  ;;  %v1527_v43 = vor.u32 8388608, %v1526_v7  ;;  %v7315_v63 = vsub.s32 32, %v1533_v14 }
 0x187   :  { %v1323_v17 = vsub.s32 4294967266, %v7311_v24  ;;  %v7318_v31 = vadd.s32 %v1433_v19, %v1424_v52  ;;  %v1446_v5 = vshrl.u32 %v1441_v30, 16  ;;  %v1455_v49 = vadd.s32 %v1454_v48, %v1444_v37 }
 0x188   :  { %v1319_v0 = vsub.s32 32, %v7311_v24  ;;  %v7321_v57 = vadd.s32 %v1449_v3, %v1445_v61  ;;  %v1537_v21 = vshrl.u32 %v12209_v22, %v7315_v63  ;;  %v1540_v54 = vshrl.u32 %v12210_v27, %v7315_v63 }
 0x189   :  { %v1456_v32 = vadd.s32 %v1455_v49, %v1446_v5  ;;  %v7327_v1 = vshrl.u32 %v1531_v47, 5  ;;  %v1536_v45 = vshll.u32 %v12223_v18, %v1533_v14  ;;  %v1543_v44 = vshrl.u32 %v12211_v29, %v7315_v63 }
 0x18a   :  { %vm1459_vm5 = vc.u32 %v7318_v31, %v7321_v57  ;;  %v1539_v30 = vshll.u32 %v12209_v22, %v1533_v14  ;;  %v1545_v61 = vshll.u32 %v12211_v29, %v1533_v14  ;;  %v1546_v3 = vshrl.u32 %v12202_v4, %v7315_v63 }
 0x18b   :  { %v1324_v50 = vadd.s32 127, %v1323_v17  ;;  %v1460_v47 = vadd.s32 1, %v1456_v32  ;;  %v1538_v42 = vor.u32 %v1537_v21, %v1536_v45  ;;  %v1542_v7 = vshll.u32 %v12210_v27, %v1533_v14 }
 0x18c   :  { %v1541_v33 = vor.u32 %v1540_v54, %v1539_v30  ;;  %v1547_v2 = vor.u32 %v1546_v3, %v1545_v61  ;;  %v1548_v38 = vshll.u32 %v12202_v4, %v1533_v14  ;;  %v1549_v15 = vshrl.u32 %v12203_v36, %v7315_v63 }
 0x18d   :  { %v1172_v52 = vand.u32 2147483647, %v1171_v59  ;;  %v1461_v19 = vsel %vm1459_vm5, %v1460_v47, %v1456_v32  ;;  %v1544_v37 = vor.u32 %v1543_v44, %v1542_v7  ;;  %v1677_v48 = vand.u32 2139095040, %v7338_v56 }
 0x18e   :  { %v1462_v5 = vadd.s32 %v1461_v19, %v1457_v12  ;;  %v1550_v49 = vor.u32 %v1549_v15, %v1548_v38  ;;  %vm1554_vm6 = vcmp.lt.s32.totalorder %v7327_v1, 4  ;;  %v7346_v17 = vshll.u32 %v1527_v43, 8 }
 0x18f   :  { %v1321_v21 = vshrl.u32 %v1303_v53, %v1319_v0  ;;  %v1325_v45 = vshll.u32 %v1324_v50, 23  ;;  %vm1551_vm8 = vcmp.lt.s32.totalorder %v7327_v1, 1  ;;  %v1560_v14 = vsel %vm1554_vm6, %v1547_v2, 920167782 }
 0x190   :  { %12232 = vst [vmem:[#allocation26_spill] sm:$0xff] %v7346_v17  ;;  %v1463_v54 = vadd.s32 536870912, %v1462_v5  ;;  %vm1553_vm9 = vcmp.lt.s32.totalorder %v7327_v1, 3  ;;  %v1559_v59 = vsel %vm1551_vm8, %v1538_v42, %v1541_v33  ;;  %v1564_v12 = vsel %vm1554_vm6, %v1550_v49, 1326507024 }
 0x191   :  { %v1561_v43 = vsel %vm1553_vm9, %v1544_v37, %v1560_v14  ;;  %v1563_v53 = vsel %vm1551_vm8, %v1541_v33, %v1544_v37  ;;  %v1565_v0 = vsel %vm1553_vm9, %v1547_v2, %v1564_v12  ;;  %v1678_v32 = vshrl.u32 %v1677_v48, 23 }
 0x192   :  { %v1174_v30 = vcvt.s32.f32 %v7294_v62  ;;  %v7364_v61 = vshrl.u32 %v1463_v54, 30  ;;  %v11940_v3 = vand.u32 2147483647, %v7338_v56  ;;  %v1320_v47 = vshll.u32 %v7257_v35, %v7311_v24 }
 0x193   :  { %vm1552_vm13 = vcmp.lt.s32.totalorder %v7327_v1, 2  ;;  %v6119_v7 = vadd.s32 4294967169, %v1678_v32  ;;  %v7380_v48 = vor.u32 4788187, %v1325_v45  ;;  %v1568_v49 = vand.u32 65535, %v7346_v17 }
 0x194   :  { %12233 = vst [vmem:[#allocation27_spill] sm:$0xff] %v7364_v61  ;;  %v7371_v38 = vmul.f32 %v1174_v30, %v1172_v52  ;;  %v1465_v2 = vshll.u32 %v7364_v61, 30  ;;  %v1562_v15 = vsel %vm1552_vm13, %v1559_v59, %v1561_v43  ;;  %v1566_v62 = vsel %vm1552_vm13, %v1563_v53, %v1565_v0 }
 0x195   :  { %v7378_v19 = vor.u32 %v1321_v21, %v1320_v47  ;;  %v1569_v35 = vshrl.u32 %v7346_v17, 16  ;;  %v1535_v52 = vshrl.u32 %v12223_v18, %v7315_v63  ;;  %v1681_v14 = vand.u32 8388607, %v11940_v3 }
 0x196   :  { %12234 = vst [vmem:[#allocation28_spill] sm:$0xff] %v7371_v38  ;;  %v7384_v24 = vsub.s32 %v1462_v5, %v1465_v2  ;;  %v1684_v54 = vadd.s32 1, %v6119_v7  ;;  %v1556_v59 = vsel %vm1554_vm6, %v1544_v37, 2102212464  ;;  %v1571_v21 = vshrl.u32 %v1566_v62, 16  ;;  %v7429_v5 = vpop.f32.mrf.mxu2 }
 0x197   :  { %v1592_v12 = vand.u32 65535, %v1562_v15  ;;  %v1593_v45 = vshrl.u32 %v1562_v15, 16  ;;  %v1570_v53 = vand.u32 65535, %v1566_v62  ;;  %v7398_v0 = vadd.s32 %v7321_v57, %v7318_v31 }
 0x198   :  { %vm1467_vm15 = vcmp.lt.s32.totalorder %v7384_v24, 0  ;;  %v1468_v43 = vsub.s32 0, %v7384_v24  ;;  %vm1685_vm0 = vcmp.gt.s32.totalorder %v1684_v54, 0  ;;  %v7403_v30 = vsel %vm1551_vm8, %v1535_v52, %v1538_v42 }
 0x199   :  { %v1686_v32 = vsel %vm1685_vm0, %v1684_v54, 0  ;;  %v7407_v47 = vsel %vm1553_vm9, %v1541_v33, %v1556_v59  ;;  %v7409_v15 = vmul.u32 %v1571_v21, %v1568_v49  ;;  %v7411_v62 = vmul.u32 %v1592_v12, %v1568_v49 }
 0x19a   :  { %v1469_v37 = vsel %vm1467_vm15, %v1468_v43, %v7384_v24  ;;  %v1688_v7 = vand.u32 31, %v1686_v32  ;;  %v1682_v3 = vor.u32 8388608, %v1681_v14  ;;  %v1572_v31 = vmul.u32 %v1570_v53, %v1568_v49 }
 0x19b   :  { %v1470_v2 = vclz %v1469_v37  ;;  %v7413_v57 = vmul.u32 %v1593_v45, %v1568_v49  ;;  %v7415_v54 = vmul.u32 %v1592_v12, %v1569_v35  ;;  %v7417_v50 = vshrl.u32 %v1686_v32, 5 }
 0x19c   :  { %v1689_v43 = vsub.s32 32, %v1688_v7  ;;  %v1691_v42 = vshll.u32 %v12223_v18, %v1688_v7  ;;  %v1694_v33 = vshll.u32 %v12209_v22, %v1688_v7  ;;  %v1697_v52 = vshll.u32 %v12210_v27, %v1688_v7 }
 0x19d   :  { %v6114_v59 = vadd.s32 4294967294, %v1470_v2  ;;  %v1576_v49 = vshll.u32 %v7409_v15, 16  ;;  %v1700_v12 = vshll.u32 %v12211_v29, %v1688_v7  ;;  %v1703_v2 = vshll.u32 %v12202_v4, %v1688_v7 }
 0x19e   :  { %v1692_v37 = vshrl.u32 %v12209_v22, %v1689_v43  ;;  %v1695_v44 = vshrl.u32 %v12210_v27, %v1689_v43  ;;  %v1698_v14 = vshrl.u32 %v12211_v29, %v1689_v43  ;;  %v1701_v32 = vshrl.u32 %v12202_v4, %v1689_v43 }
 0x19f   :  { %v1704_v63 = vshrl.u32 %v12203_v36, %v1689_v43  ;;  %v7432_v61 = vmul.u32 %v1570_v53, %v1569_v35  ;;  %v1575_v23 = vmul.u32 %v1571_v21, %v1569_v35  ;;  %v7434_v11 = vshll.u32 %v1682_v3, 8 }
 0x1a0   :  { %v1693_v28 = vor.u32 %v1692_v37, %v1691_v42  ;;  %v1696_v25 = vor.u32 %v1695_v44, %v1694_v33  ;;  %v1699_v8 = vor.u32 %v1698_v14, %v1697_v52  ;;  %v1702_v9 = vor.u32 %v1701_v32, %v1700_v12 }
 0x1a1   :  { %vm6115_vm1 = vcmp.lt.s32.totalorder %v6114_v59, 0  ;;  %v1705_v13 = vor.u32 %v1704_v63, %v1703_v2  ;;  %vm1706_vm2 = vcmp.lt.s32.totalorder %v7417_v50, 1  ;;  %v1832_v10 = vand.u32 2139095040, %v7429_v5 }
 0x1a2   :  { %vm7438_vm5 = vc.u32 %v1572_v31, %v1576_v49  ;;  %v7442_v44 = vmul.u32 %v1593_v45, %v1569_v35  ;;  %vm1709_vm6 = vcmp.lt.s32.totalorder %v7417_v50, 4  ;;  %v1714_v21 = vsel %vm1706_vm2, %v1693_v28, %v1696_v25 }
 0x1a3   :  { %vm1708_vm8 = vcmp.lt.s32.totalorder %v7417_v50, 3  ;;  %v1715_v3 = vsel %vm1709_vm6, %v1702_v9, 920167782  ;;  %v1718_v53 = vsel %vm1706_vm2, %v1696_v25, %v1699_v8  ;;  %v1719_v63 = vsel %vm1709_vm6, %v1705_v13, 1326507024 }
 0x1a4   :  { %v7454_v7 = vsel %vm6115_vm1, 0, %v6114_v59  ;;  %vm1707_vm9 = vcmp.lt.s32.totalorder %v7417_v50, 2  ;;  %v1716_v45 = vsel %vm1708_vm8, %v1699_v8, %v1715_v3  ;;  %v1720_v33 = vsel %vm1708_vm8, %v1702_v9, %v1719_v63 }
 0x1a5   :  { %v1717_v42 = vsel %vm1707_vm9, %v1714_v21, %v1716_v45  ;;  %v1723_v52 = vand.u32 65535, %v7434_v11  ;;  %v1833_v37 = vshrl.u32 %v1832_v10, 23  ;;  %v1581_v13 = vsel %vm7438_vm5, 1, %v12221_v6 }
 0x1a6   :  { %v1721_v59 = vsel %vm1707_vm9, %v1718_v53, %v1720_v33  ;;  %v1724_v14 = vshrl.u32 %v7434_v11, 16  ;;  %v1747_v12 = vand.u32 65535, %v1717_v42  ;;  %v1478_v32 = vsub.s32 4294967266, %v7454_v7 }
 0x1a7   :  { %v1725_v2 = vand.u32 65535, %v1721_v59  ;;  %v1726_v21 = vshrl.u32 %v1721_v59, 16  ;;  %v1748_v3 = vshrl.u32 %v1717_v42, 16  ;;  %v7472_v45 = vadd.s32 %v1576_v49, %v1572_v31 }
 0x1a8   :  { %v1690_v9 = vshrl.u32 %v12223_v18, %v1689_v43  ;;  %v1711_v10 = vsel %vm1709_vm6, %v1699_v8, 2102212464  ;;  %v7478_v63 = vadd.s32 %v1581_v13, %v1575_v23  ;;  %v6122_v35 = vadd.s32 4294967169, %v1833_v37 }
 0x1a9   :  { %v1728_v53 = vmul.u32 %v1726_v21, %v1723_v52  ;;  %v1729_v33 = vmul.u32 %v1725_v2, %v1724_v14  ;;  %v1474_v55 = vsub.s32 32, %v7454_v7  ;;  %v1750_v42 = vmul.u32 %v1748_v3, %v1723_v52 }
 0x1aa   :  { %v1710_v59 = vsel %vm1706_vm2, %v1690_v9, %v1693_v28  ;;  %v1751_v31 = vmul.u32 %v1747_v12, %v1724_v14  ;;  %v7483_v49 = vadd.s32 127, %v1478_v32  ;;  %v1712_v43 = vsel %vm1708_vm8, %v1696_v25, %v1711_v10 }
 0x1ab   :  { %v1727_v8 = vmul.u32 %v1725_v2, %v1723_v52  ;;  %v1731_v56 = vshll.u32 %v1728_v53, 16  ;;  %v1730_v20 = vmul.u32 %v1726_v21, %v1724_v14  ;;  %v1749_v23 = vmul.u32 %v1747_v12, %v1723_v52 }
 0x1ac   :  { %v1752_v13 = vmul.u32 %v1748_v3, %v1724_v14  ;;  %v1753_v58 = vshll.u32 %v1750_v42, 16  ;;  %v1733_v41 = vshll.u32 %v1729_v33, 16  ;;  %v1839_v46 = vadd.s32 1, %v6122_v35 }
 0x1ad   :  { %vm1735_vm15 = vc.u32 %v1727_v8, %v1731_v56  ;;  %v1737_v37 = vadd.s32 %v1731_v56, %v1727_v8  ;;  %v1755_v28 = vshll.u32 %v1751_v31, 16  ;;  %v1713_v32 = vsel %vm1707_vm9, %v1710_v59, %v1712_v43 }
 0x1ae   :  { %v1736_v17 = vsel %vm1735_vm15, 1, %v12221_v6  ;;  %vm1757_vm0 = vc.u32 %v1749_v23, %v1753_v58  ;;  %v1759_v9 = vadd.s32 %v1753_v58, %v1749_v23  ;;  %v12237_v12 = vand.u32 2147483647, %v7429_v5 }
 0x1af   :  { %v1738_v38 = vadd.s32 %v1736_v17, %v1730_v20  ;;  %vm1739_vm1 = vc.u32 %v1737_v37, %v1733_v41  ;;  %v1758_v25 = vsel %vm1757_vm0, 1, %v12221_v6  ;;  %v1732_v35 = vshrl.u32 %v1728_v53, 16 }
 0x1b0   :  { %v1740_v52 = vsel %vm1739_vm1, 1, %v12221_v6  ;;  %v1760_v14 = vadd.s32 %v1758_v25, %v1752_v13  ;;  %vm1761_vm2 = vc.u32 %v1759_v9, %v1755_v28  ;;  %v1836_v56 = vand.u32 8388607, %v12237_v12 }
 0x1b1   :  { %v1742_v2 = vadd.s32 %v1740_v52, %v1738_v38  ;;  %v1762_v21 = vsel %vm1761_vm2, 1, %v12221_v6  ;;  %vm1840_vm5 = vcmp.gt.s32.totalorder %v1839_v46, 0  ;;  %v1754_v50 = vshrl.u32 %v1750_v42, 16 }
 0x1b2   :  { %v1764_v17 = vadd.s32 %v1762_v21, %v1760_v14  ;;  %v1841_v41 = vsel %vm1840_vm5, %v1839_v46, 0  ;;  %v7498_v3 = vshrl.u32 %v7398_v0, %v1474_v55  ;;  %v1734_v10 = vshrl.u32 %v1729_v33, 16 }
 0x1b3   :  { %v1743_v20 = vadd.s32 %v1742_v2, %v1732_v35  ;;  %v1843_v59 = vand.u32 31, %v1841_v41  ;;  %v1480_v43 = vshll.u32 %v7483_v49, 23  ;;  %v1756_v8 = vshrl.u32 %v1751_v31, 16 }
 0x1b4   :  { %v1765_v53 = vadd.s32 %v1764_v17, %v1754_v50  ;;  %v1767_v38 = vmul.u32 %v7434_v11, %v1713_v32  ;;  %v7504_v13 = vadd.s32 %v1759_v9, %v1755_v28  ;;  %v1837_v37 = vor.u32 8388608, %v1836_v56 }
 0x1b5   :  { %v7502_v23 = vadd.s32 %v1743_v20, %v1734_v10  ;;  %v1844_v42 = vsub.s32 32, %v1843_v59  ;;  %v7506_v46 = vshrl.u32 %v1841_v41, 5  ;;  %v1846_v55 = vshll.u32 %v12223_v18, %v1843_v59 }
 0x1b6   :  { %v1766_v25 = vadd.s32 %v1765_v53, %v1756_v8  ;;  %v1849_v0 = vshll.u32 %v12209_v22, %v1843_v59  ;;  %v1852_v11 = vshll.u32 %v12210_v27, %v1843_v59  ;;  %v1855_v31 = vshll.u32 %v12211_v29, %v1843_v59 }
 0x1b7   :  { %vm1769_vm6 = vc.u32 %v7502_v23, %v7504_v13  ;;  %v1847_v33 = vshrl.u32 %v12209_v22, %v1844_v42  ;;  %v1850_v28 = vshrl.u32 %v12210_v27, %v1844_v42  ;;  %v1853_v9 = vshrl.u32 %v12211_v29, %v1844_v42 }
 0x1b8   :  { %v1770_v49 = vadd.s32 1, %v1766_v25  ;;  %v1856_v32 = vshrl.u32 %v12202_v4, %v1844_v42  ;;  %v1858_v14 = vshll.u32 %v12202_v4, %v1843_v59  ;;  %v1859_v12 = vshrl.u32 %v12203_v36, %v1844_v42 }
 0x1b9   :  { %v1848_v52 = vor.u32 %v1847_v33, %v1846_v55  ;;  %v7520_v56 = vshll.u32 %v1837_v37, 8  ;;  %v1851_v2 = vor.u32 %v1850_v28, %v1849_v0  ;;  %v1854_v21 = vor.u32 %v1853_v9, %v1852_v11 }
 0x1ba   :  { %v1771_v35 = vsel %vm1769_vm6, %v1770_v49, %v1766_v25  ;;  %v1857_v50 = vor.u32 %v1856_v32, %v1855_v31  ;;  %v1860_v41 = vor.u32 %v1859_v12, %v1858_v14  ;;  %vm1861_vm8 = vcmp.lt.s32.totalorder %v7506_v46, 1 }
 0x1bb   :  { %v1772_v17 = vadd.s32 %v1771_v35, %v1767_v38  ;;  %vm1864_vm9 = vcmp.lt.s32.totalorder %v7506_v46, 4  ;;  %v7524_v10 = vor.u32 4788187, %v1480_v43  ;;  %vm1863_vm15 = vcmp.lt.s32.totalorder %v7506_v46, 3 }
 0x1bc   :  { %v1869_v20 = vsel %vm1861_vm8, %v1848_v52, %v1851_v2  ;;  %v1870_v59 = vsel %vm1864_vm9, %v1857_v50, 920167782  ;;  %vm1862_vm0 = vcmp.lt.s32.totalorder %v7506_v46, 2  ;;  %v1873_v38 = vsel %vm1861_vm8, %v1851_v2, %v1854_v21 }
 0x1bd   :  { %v1773_v8 = vadd.s32 536870912, %v1772_v17  ;;  %v1871_v53 = vsel %vm1863_vm15, %v1854_v21, %v1870_v59  ;;  %v1874_v37 = vsel %vm1864_vm9, %v1860_v41, 1326507024  ;;  %v1878_v25 = vand.u32 65535, %v7520_v56 }
 0x1be   :  { %v1872_v43 = vsel %vm1862_vm0, %v1869_v20, %v1871_v53  ;;  %v1875_v33 = vsel %vm1863_vm15, %v1857_v50, %v1874_v37  ;;  %v1845_v49 = vshrl.u32 %v12223_v18, %v1844_v42  ;;  %v1879_v9 = vshrl.u32 %v7520_v56, 16 }
 0x1bf   :  { %v7542_v0 = vshrl.u32 %v1773_v8, 30  ;;  %v1902_v11 = vand.u32 65535, %v1872_v43  ;;  %v1903_v31 = vshrl.u32 %v1872_v43, 16  ;;  %v1876_v28 = vsel %vm1862_vm0, %v1873_v38, %v1875_v33 }
 0x1c0   :  { %v12238_v32 = vshll.u32 %v7432_v61, 16  ;;  %v1880_v12 = vand.u32 65535, %v1876_v28  ;;  %v1881_v35 = vshrl.u32 %v1876_v28, 16  ;;  %v1865_v50 = vsel %vm1861_vm8, %v1845_v49, %v1848_v52 }
 0x1c1   :  { %v1775_v14 = vshll.u32 %v7542_v0, 30  ;;  %v1866_v42 = vsel %vm1864_vm9, %v1854_v21, 2102212464  ;;  %v1905_v20 = vmul.u32 %v1903_v31, %v1878_v25  ;;  %v1906_v59 = vmul.u32 %v1902_v11, %v1879_v9 }
 0x1c2   :  { %vm1584_vm1 = vc.u32 %v7472_v45, %v12238_v32  ;;  %v1883_v53 = vmul.u32 %v1881_v35, %v1878_v25  ;;  %v1884_v38 = vmul.u32 %v1880_v12, %v1879_v9  ;;  %v1904_v43 = vmul.u32 %v1902_v11, %v1878_v25 }
 0x1c3   :  { %v7559_v8 = vsub.s32 %v1772_v17, %v1775_v14  ;;  %v1585_v45 = vsel %vm1584_vm1, 1, %v12221_v6  ;;  %v1907_v37 = vmul.u32 %v1903_v31, %v1879_v9  ;;  %v1908_v33 = vshll.u32 %v1905_v20, 16 }
 0x1c4   :  { %v1598_v28 = vshll.u32 %v7413_v57, 16  ;;  %v1882_v49 = vmul.u32 %v1880_v12, %v1878_v25  ;;  %v1886_v32 = vshll.u32 %v1883_v53, 16  ;;  %v1885_v21 = vmul.u32 %v1881_v35, %v1879_v9 }
 0x1c5   :  { %vm1777_vm2 = vcmp.lt.s32.totalorder %v7559_v8, 0  ;;  %v1778_v52 = vsub.s32 0, %v7559_v8  ;;  %v1888_v41 = vshll.u32 %v1884_v38, 16  ;;  %v1910_v58 = vshll.u32 %v1906_v59, 16 }
 0x1c6   :  { %vm1912_vm5 = vc.u32 %v1904_v43, %v1908_v33  ;;  %vm1890_vm6 = vc.u32 %v1882_v49, %v1886_v32  ;;  %v1892_v14 = vadd.s32 %v1886_v32, %v1882_v49  ;;  %v1914_v27 = vadd.s32 %v1908_v33, %v1904_v43 }
 0x1c7   :  { %v1779_v17 = vsel %vm1777_vm2, %v1778_v52, %v7559_v8  ;;  %v1913_v11 = vsel %vm1912_vm5, 1, %v12221_v6  ;;  %v1891_v55 = vsel %vm1890_vm6, 1, %v12221_v6  ;;  %v1867_v18 = vsel %vm1863_vm15, %v1851_v2, %v1866_v42 }
 0x1c8   :  { %v1780_v31 = vclz %v1779_v17  ;;  %v1915_v22 = vadd.s32 %v1913_v11, %v1907_v37  ;;  %v1893_v25 = vadd.s32 %v1891_v55, %v1885_v21  ;;  %vm1894_vm8 = vc.u32 %v1892_v14, %v1888_v41 }
 0x1c9   :  { %v1587_v9 = vadd.s32 %v1585_v45, %v7478_v63  ;;  %v1895_v35 = vsel %vm1894_vm8, 1, %v12221_v6  ;;  %v1909_v52 = vshrl.u32 %v1905_v20, 16  ;;  %vm1916_vm9 = vc.u32 %v1914_v27, %v1910_v58 }
 0x1ca   :  { %v6120_v12 = vadd.s32 4294967294, %v1780_v31  ;;  %v1887_v49 = vshrl.u32 %v1883_v53, 16  ;;  %v1889_v32 = vshrl.u32 %v1884_v38, 16  ;;  %v1897_v29 = vadd.s32 %v1895_v35, %v1893_v25 }
 0x1cb   :  { %v1917_v17 = vsel %vm1916_vm9, 1, %v12221_v6  ;;  %v1600_v37 = vshll.u32 %v7415_v54, 16  ;;  %vm1602_vm15 = vc.u32 %v7411_v62, %v1598_v28  ;;  %v12239_v2 = vand.u32 2147483647, %v6575_v51 }
 0x1cc   :  { %vm6121_vm1 = vcmp.lt.s32.totalorder %v6120_v12, 0  ;;  %v1919_v43 = vadd.s32 %v1917_v17, %v1915_v22  ;;  %vm11976_vm5 = vcmp.lt.s32.totalorder %v6608_v39, 0  ;;  %v1898_v41 = vadd.s32 %v1897_v29, %v1887_v49 }
 0x1cd   :  { %vm7577_vm2 = vcmp.le.f32.partialorder %v12239_v2, 0.7853982  ;;  %v1783_v55 = vsel %vm6121_vm1, 0, %v6120_v12  ;;  %v1603_v42 = vsel %vm1602_vm15, 1, %v12221_v6  ;;  %v1604_v20 = vadd.s32 %v1598_v28, %v7411_v62 }
 0x1ce   :  { %v1788_v53 = vsub.s32 4294967266, %v1783_v55  ;;  %v1911_v22 = vshrl.u32 %v1906_v59, 16  ;;  %v1920_v38 = vadd.s32 %v1919_v43, %v1909_v52  ;;  %v12242_v45 = vshrl.u32 %v7409_v15, 16 }
 0x1cf   :  { %vm11974_vm6 = vcmp.lt.s32.totalorder %v6783_v40, 0  ;;  %v7587_v21 = vadd.s32 %v1898_v41, %v1889_v32  ;;  %v7589_v14 = vadd.s32 %v1914_v27, %v1910_v58  ;;  %v1605_v11 = vadd.s32 %v1603_v42, %v7442_v44 }
 0x1d0   :  { %v1588_v33 = vadd.s32 %v1587_v9, %v12242_v45  ;;  %vm1606_vm8 = vc.u32 %v1604_v20, %v1600_v37  ;;  %v1789_v29 = vadd.s32 127, %v1788_v53  ;;  %v1868_v31 = vsel %vm1862_vm0, %v1865_v50, %v1867_v18  ;;  %v12303_v18 = vld [vmem:[#allocation7_spill] sm:$0xff] }
 0x1d1   :  { %v1921_v62 = vadd.s32 %v1920_v38, %v1911_v22  ;;  %v1607_v59 = vsel %vm1606_vm8, 1, %v12221_v6  ;;  %v12243_v28 = vand.u32 2147483647, %v6608_v39  ;;  %v1784_v25 = vsub.s32 32, %v1783_v55  ;;  %v12256_v38 = vld [vmem:[#allocation26_spill] sm:$0xff] }
 0x1d2   :  { %vm1924_vm1 = vc.u32 %v7587_v21, %v7589_v14  ;;  %v1599_v27 = vshrl.u32 %v7413_v57, 16  ;;  %v1609_v44 = vadd.s32 %v1607_v59, %v1605_v11  ;;  %v12246_v58 = vand.u32 2147483647, %v6783_v40 }
 0x1d3   :  { %vm7597_vm9 = vcmp.le.f32.partialorder %v12243_v28, 0.7853982  ;;  %v12249_v46 = vshll.u32 %v7384_v24, %v7454_v7  ;;  %v1768_v9 = vadd.s32 %v7504_v13, %v7502_v23  ;;  %v1925_v12 = vadd.s32 1, %v1921_v62 }
 0x1d4   :  { %vm7606_vm15 = vcmp.le.f32.partialorder %v12246_v58, 0.7853982  ;;  %v12250_v35 = vshrl.u32 %v7432_v61, 16  ;;  %vm1056_vm0 = vcmp.lt.s32.totalorder %v6829_v34, 0  ;;  %v1790_v57 = vshll.u32 %v1789_v29, 23 }
 0x1d5   :  { %v1477_v50 = vor.u32 %v7498_v3, %v12249_v46  ;;  %v1922_v49 = vmul.u32 %v7520_v56, %v1868_v31  ;;  %v1601_v32 = vshrl.u32 %v7415_v54, 16  ;;  %v1610_v17 = vadd.s32 %v1609_v44, %v1599_v27 }
 0x1d6   :  { %v7618_v52 = vadd.s32 %v1588_v33, %v12250_v35  ;;  %v12251_v24 = vand.u32 2147483647, %v7380_v48  ;;  %v12252_v7 = vcvt.s32.f32 %v7378_v19  ;;  %v1482_v23 = vand.u32 2147483647, %v7524_v10 }
 0x1d7   :  { %v1926_v13 = vsel %vm1924_vm1, %v1925_v12, %v1921_v62  ;;  %v7628_v43 = vadd.s32 %v1604_v20, %v1600_v37  ;;  %v1558_v61 = vsel %vm1552_vm13, %v7403_v30, %v7407_v47  ;;  %v1786_v2 = vshrl.u32 %v1768_v9, %v1784_v25  ;;  %v12255_v20 = vld [vmem:[#allocation28_spill] sm:$0xff] }
 0x1d8   :  { %v1330_v3 = vmul.f32 %v12252_v7, %v12251_v24  ;;  %v1927_v56 = vadd.s32 %v1926_v13, %v1922_v49  ;;  %v1611_v41 = vadd.s32 %v1610_v17, %v1601_v32  ;;  %v7638_v48 = vsel %vm7577_vm2, %v6575_v51, %v7234_v26  ;;  %v12264_v17 = vld [vmem:[#allocation18_spill] sm:$0xff] }
 0x1d9   :  { %v12253_v19 = vxor.u32 2147483648, %v7236_v60  ;;  %v1484_v10 = vcvt.s32.f32 %v1477_v50  ;;  %vm1614_vm8 = vc.u32 %v7618_v52, %v7628_v43  ;;  %v1785_v1 = vshll.u32 %v7559_v8, %v1783_v55  ;;  %v12301_v7 = vld [vmem:[#allocation14_spill] sm:$0xff] }
 0x1da   :  { %v1791_v30 = vor.u32 4788187, %v1790_v57  ;;  %v1928_v47 = vadd.s32 536870912, %v1927_v56  ;;  %v1615_v37 = vadd.s32 1, %v1611_v41  ;;  %v12254_v42 = vxor.u32 2147483648, %v7287_v16 }
 0x1db   :  { %v867_v54 = vsel %vm11976_vm5, %v12253_v19, %v7236_v60  ;;  %v1176_v53 = vxor.u32 2147483648, %v12255_v20  ;;  %v1485_v22 = vmul.f32 %v1484_v10, %v1482_v23  ;;  %v1612_v60 = vmul.u32 %v12256_v38, %v1558_v61 }
 0x1dc   :  { %v1022_v26 = vsel %vm11974_vm6, %v12254_v42, %v7287_v16  ;;  %v1331_v45 = vxor.u32 2147483648, %v1330_v3  ;;  %v1787_v33 = vor.u32 %v1786_v2, %v1785_v1  ;;  %v7655_v11 = vshrl.u32 %v1928_v47, 30  ;;  %v12260_v16 = vld [vmem:[#allocation13_spill] sm:$0xff]  ;;  %v12283_v1 = vld [vmem:[#allocation2_spill] sm:$0xff] }
 0x1dd   :  { %v1616_v29 = vsel %vm1614_vm8, %v1615_v37, %v1611_v41  ;;  %v7660_v8 = vsel %vm7597_vm9, %v6608_v39, %v867_v54  ;;  %v12257_v55 = vand.u32 2147483647, %v6829_v34  ;;  %v12261_v62 = vand.u32 2147483647, %v12260_v16  ;;  %v12268_v41 = vld [vmem:[#allocation21_spill] sm:$0xff] }
 0x1de   :  { %v1617_v28 = vadd.s32 %v1616_v29, %v1612_v60  ;;  %v7677_v25 = vsel %vm7606_vm15, %v6783_v40, %v1022_v26  ;;  %vm11978_vm8 = vcmp.lt.s32.totalorder %v12260_v16, 0  ;;  %v1792_v27 = vand.u32 2147483647, %v1791_v30  ;;  %v12269_v54 = vld [vmem:[#allocation25_spill] sm:$0xff] }
 0x1df   :  { %vm7664_vm13 = vcmp.le.f32.partialorder %v12257_v55, 0.7853982  ;;  %vm7670_vm1 = vcmp.le.f32.partialorder %v12261_v62, 0.7853982  ;;  %v1930_v44 = vshll.u32 %v7655_v11, 30  ;;  %v7683_v58 = vmul.f32 %v7638_v48, %v7638_v48  ;;  %v12274_v55 = vld [vmem:[#allocation8_spill] sm:$0xff] }
 0x1e0   :  { %v1177_v46 = vsel %vm1056_vm0, %v1176_v53, %v12255_v20  ;;  %v1486_v50 = vxor.u32 2147483648, %v1485_v22  ;;  %v1618_v9 = vadd.s32 536870912, %v1617_v28  ;;  %v7690_v12 = vmul.f32 %v7660_v8, %v7660_v8  ;;  %v12273_v20 = vld [vmem:[#allocation15_spill] sm:$0xff] }
 0x1e1   :  { %v1332_v35 = vsel %vm11978_vm8, %v1331_v45, %v1330_v3  ;;  %v1794_v57 = vcvt.s32.f32 %v1787_v33  ;;  %v7694_v49 = vsub.s32 %v1927_v56, %v1930_v44  ;;  %v7698_v32 = vmul.f32 %v7677_v25, %v7677_v25 }
 0x1e2   :  { %v12265_v24 = vand.u32 2147483647, %v12264_v17  ;;  %vm11979_vm6 = vcmp.lt.s32.totalorder %v12264_v17, 0  ;;  %v1619_v23 = vshrl.u32 %v1618_v9, 30  ;;  %v7710_v3 = vsel %vm7664_vm13, %v6829_v34, %v1177_v46 }
 0x1e3   :  { %v1795_v13 = vmul.f32 %v1794_v57, %v1792_v27  ;;  %vm1932_vm10 = vcmp.lt.s32.totalorder %v7694_v49, 0  ;;  %v1933_v61 = vsub.s32 0, %v7694_v49  ;;  %v7717_v2 = vsel %vm7670_vm1, %v12260_v16, %v1332_v35 }
 0x1e4   :  { %vm7702_vm12 = vcmp.le.f32.partialorder %v12265_v24, 0.7853982  ;;  %v1487_v56 = vsel %vm11979_vm6, %v1486_v50, %v1485_v22  ;;  %vm1521_vm5 = vcmp.lt.s32.totalorder %v12268_v41, 0  ;;  %v1620_v19 = vshll.u32 %v1619_v23, 30  ;;  %v12278_v50 = vld [vmem:[#allocation24_spill] sm:$0xff] }
 0x1e5   :  { %v12270_v10 = vand.u32 2147483647, %v12269_v54  ;;  %vm1676_vm8 = vcmp.lt.s32.totalorder %v12269_v54, 0  ;;  %v1934_v30 = vsel %vm1932_vm10, %v1933_v61, %v7694_v49  ;;  %v1643_v47 = vsub.s32 4, %v1619_v23 }
 0x1e6   :  { %v7732_v37 = vmul.f32 %v7710_v3, %v7710_v3  ;;  %v1935_v42 = vclz %v1934_v30  ;;  %v1621_v26 = vsub.s32 %v1617_v28, %v1620_v19  ;;  %v1178_v53 = vsub.s32 4, %v12273_v20 }
 0x1e7   :  { %vm7724_vm4 = vcmp.le.f32.partialorder %v12270_v10, 0.7853982  ;;  %v7737_v22 = vmul.f32 %v7717_v2, %v7717_v2  ;;  %v7742_v38 = vsel %vm7702_vm12, %v12264_v17, %v1487_v56  ;;  %v1796_v60 = vxor.u32 2147483648, %v1795_v13 }
 0x1e8   :  { %v1798_v45 = vsub.s32 4, %v7542_v0  ;;  %v6123_v33 = vadd.s32 4294967294, %v1935_v42  ;;  %vm1622_vm10 = vcmp.lt.s32.totalorder %v1621_v26, 0  ;;  %v1623_v29 = vsub.s32 0, %v1621_v26 }
 0x1e9   :  { %v713_v62 = vsub.s32 4, %v12274_v55  ;;  %v1923_v28 = vadd.s32 %v7589_v14, %v7587_v21  ;;  %v12275_v27 = vand.u32 2147483647, %v12268_v41  ;;  %v1644_v46 = vsel %vm1521_vm5, %v1643_v47, %v1619_v23  ;;  %v12281_v47 = vld [vmem:[#allocation5_spill] sm:$0xff] }
 0x1ea   :  { %v1333_v9 = vsub.s32 4, %v12278_v50  ;;  %vm6124_vm14 = vcmp.lt.s32.totalorder %v6123_v33, 0  ;;  %v1613_v35 = vadd.s32 %v7628_v43, %v7618_v52  ;;  %v1624_v57 = vsel %vm1622_vm10, %v1623_v29, %v1621_v26 }
 0x1eb   :  { %vm7750_vm6 = vcmp.le.f32.partialorder %v12275_v27, 0.7853982  ;;  %v1179_v21 = vsel %vm1056_vm0, %v1178_v53, %v12273_v20  ;;  %v1797_v14 = vsel %vm1676_vm8, %v1796_v60, %v1795_v13  ;;  %v1938_v24 = vsel %vm6124_vm14, 0, %v6123_v33  ;;  %v12282_v33 = vld [vmem:[#allocation12_spill] sm:$0xff] }
 0x1ec   :  { %v1625_v61 = vclz %v1624_v57  ;;  %v1799_v23 = vsel %vm1676_vm8, %v1798_v45, %v7542_v0  ;;  %v1939_v56 = vsub.s32 32, %v1938_v24  ;;  %v1943_v19 = vsub.s32 4294967266, %v1938_v24 }
 0x1ed   :  { %v1646_v10 = vsel %vm7750_vm6, 0, %v1644_v46  ;;  %vm12279_vm10 = vcmp.lt.s32.totalorder %v6575_v51, 0  ;;  %v1181_v30 = vsel %vm7664_vm13, 0, %v1179_v21  ;;  %vm12280_vm14 = vcmp.lt.s32.totalorder %v12260_v16, 0 }
 0x1ee   :  { %v714_v52 = vsel %vm12279_vm10, %v713_v62, %v12274_v55  ;;  %v6117_v43 = vadd.s32 4294967294, %v1625_v61  ;;  %v1334_v13 = vsel %vm12280_vm14, %v1333_v9, %v12278_v50  ;;  %v248_v42 = vsub.s32 4, %v12281_v47 }
 0x1ef   :  { %v7781_v0 = vsel %vm7724_vm4, %v12269_v54, %v1797_v14  ;;  %v1941_v20 = vshrl.u32 %v1923_v28, %v1939_v56  ;;  %v1944_v53 = vadd.s32 127, %v1943_v19  ;;  %v1801_v60 = vsel %vm7724_vm4, 0, %v1799_v23 }
 0x1f0   :  { %vm6118_vm0 = vcmp.lt.s32.totalorder %v6117_v43, 0  ;;  %v1663_v45 = vadd.s32 3, %v1646_v10  ;;  %v716_v31 = vsel %vm7577_vm2, 0, %v714_v52  ;;  %v868_v29 = vsub.s32 4, %v12282_v33 }
 0x1f1   :  { %v1940_v55 = vshll.u32 %v7694_v49, %v1938_v24  ;;  %v1945_v62 = vshll.u32 %v1944_v53, 23  ;;  %v1628_v27 = vsel %vm6118_vm0, 0, %v6117_v43  ;;  %v1336_v46 = vsel %vm7670_vm1, 0, %v1334_v13 }
 0x1f2   :  { %v1629_v50 = vsub.s32 32, %v1628_v27  ;;  %v1633_v28 = vsub.s32 4294967266, %v1628_v27  ;;  %v1818_v9 = vadd.s32 3, %v1801_v60  ;;  %vm12284_vm4 = vcmp.lt.s32.totalorder %v12283_v1, 0 }
 0x1f3   :  { %v7794_v57 = vsel %vm12284_vm4, %v248_v42, %v12281_v47  ;;  %v1802_v63 = vmul.f32 %v7781_v0, %v7781_v0  ;;  %v1942_v21 = vor.u32 %v1941_v20, %v1940_v55  ;;  %v1946_v14 = vor.u32 4788187, %v1945_v62 }
 0x1f4   :  { %v1198_v61 = vadd.s32 3, %v1181_v30  ;;  %v1630_v49 = vshll.u32 %v1621_v26, %v1628_v27  ;;  %v1631_v24 = vshrl.u32 %v1613_v35, %v1629_v50  ;;  %v1634_v23 = vadd.s32 127, %v1633_v28 }
 0x1f5   :  { %v1353_v56 = vadd.s32 3, %v1336_v46  ;;  %v1947_v59 = vand.u32 2147483647, %v1946_v14  ;;  %v7798_v19 = vand.u32 3, %v1663_v45  ;;  %vm12285_vm2 = vcmp.lt.s32.totalorder %v6608_v39, 0 }
 0x1f6   :  { %v869_v10 = vsel %vm12285_vm2, %v868_v29, %v12282_v33  ;;  %v251_v43 = vsel %vm6823_vm11, 0, %v7794_v57  ;;  %v1632_v13 = vor.u32 %v1631_v24, %v1630_v49  ;;  %v1635_v47 = vshll.u32 %v1634_v23, 23 }
 0x1f7   :  { %v7806_v42 = vand.u32 3, %v1818_v9  ;;  %v733_v30 = vadd.s32 3, %v716_v31  ;;  %v1949_v26 = vcvt.s32.f32 %v1942_v21  ;;  %v1803_v35 = vmul.f32 -0.001358992, %v1802_v63 }
 0x1f8   :  { %v1810_v20 = vmul.f32 -0.00019511016, %v1802_v63  ;;  %v1183_v53 = vmul.f32 -0.001358992, %v7732_v37  ;;  %v1636_v60 = vor.u32 4788187, %v1635_v47  ;;  %v1639_v31 = vcvt.s32.f32 %v1632_v13 }
 0x1f9   :  { %v1190_v45 = vmul.f32 -0.00019511016, %v7732_v37  ;;  %v7810_v55 = vand.u32 3, %v1198_v61  ;;  %v7812_v33 = vand.u32 3, %v1353_v56  ;;  %v1950_v29 = vmul.f32 %v1949_v26, %v1947_v59 }
 0x1fa   :  { %v1804_v62 = vadd.f32 0.041655596, %v1803_v35  ;;  %v1811_v27 = vadd.f32 0.008332121, %v1810_v20  ;;  %v871_v46 = vsel %vm7597_vm9, 0, %v869_v10  ;;  %v7817_v24 = vand.u32 3, %v733_v30 }
 0x1fb   :  { %v1637_v50 = vand.u32 2147483647, %v1636_v60  ;;  %v1184_v28 = vadd.f32 0.041655596, %v1183_v53  ;;  %v1191_v9 = vadd.f32 0.008332121, %v1190_v45  ;;  %v7826_v15 = vmul.f32 %v7742_v38, %v7742_v38 }
 0x1fc   :  { %v1805_v21 = vmul.f32 %v1804_v62, %v1802_v63  ;;  %v1812_v14 = vmul.f32 %v1811_v27, %v1802_v63  ;;  %v1338_v49 = vmul.f32 -0.001358992, %v7737_v22  ;;  %vm11981_vm13 = vcmp.lt.s32.totalorder %v7429_v5, 0 }
 0x1fd   :  { %v1640_v61 = vmul.f32 %v1639_v31, %v1637_v50  ;;  %v1185_v23 = vmul.f32 %v1184_v28, %v7732_v37  ;;  %v1192_v56 = vmul.f32 %v1191_v9, %v7732_v37  ;;  %v7822_v59 = vadd.s32 3, %v871_v46 }
 0x1fe   :  { %v1806_v10 = vadd.f32 -0.4999988, %v1805_v21  ;;  %v1813_v13 = vadd.f32 -0.16666654, %v1812_v14  ;;  %v1339_v47 = vadd.f32 0.041655596, %v1338_v49  ;;  %vm1817_vm10 = vweird.f32 %v12269_v54 }
 0x1ff   :  { %v1951_v26 = vxor.u32 2147483648, %v1950_v29  ;;  %v1641_v35 = vxor.u32 2147483648, %v1640_v61  ;;  %vm1821_vm9 = vcmp.eq.s32.totalorder %v7806_v42, 0  ;;  %vm1824_vm1 = vcmp.eq.s32.totalorder %v7806_v42, 2 }
 0x200   :  { %v1186_v30 = vadd.f32 -0.4999988, %v1185_v23  ;;  %v1193_v20 = vadd.f32 -0.16666654, %v1192_v56  ;;  %v1807_v53 = vmul.f32 %v1806_v10, %v1802_v63  ;;  %v1814_v60 = vmul.f32 %v1813_v13, %v1802_v63 }
 0x201   :  { %vm1820_vm8 = vcmp.lt.s32.totalorder %v7806_v42, 2  ;;  %v1340_v45 = vmul.f32 %v1339_v47, %v7737_v22  ;;  %v1345_v62 = vmul.f32 -0.00019511016, %v7737_v22  ;;  %v1642_v27 = vsel %vm1521_vm5, %v1641_v35, %v1640_v61 }
 0x202   :  { %v1187_v46 = vmul.f32 %v1186_v30, %v7732_v37  ;;  %v1194_v50 = vmul.f32 %v1193_v20, %v7732_v37  ;;  %vm1201_vm14 = vcmp.eq.s32.totalorder %v7810_v55, 0  ;;  %v718_v31 = vmul.f32 -0.001358992, %v7683_v58 }
 0x203   :  { %v12287_v63 = vand.u32 2147483647, %v7429_v5  ;;  %v7849_v9 = vsel %vm7750_vm6, %v12268_v41, %v1642_v27  ;;  %v1808_v21 = vadd.f32 1.0, %v1807_v53  ;;  %v1815_v14 = vadd.f32 1.0, %v1814_v60  ;;  %v12290_v53 = vld [vmem:[#allocation6_spill] sm:$0xff] }
 0x204   :  { %v1341_v49 = vadd.f32 -0.4999988, %v1340_v45  ;;  %v1647_v37 = vmul.f32 %v7849_v9, %v7849_v9  ;;  %v1188_v61 = vadd.f32 1.0, %v1187_v46  ;;  %v1195_v23 = vadd.f32 1.0, %v1194_v50 }
 0x205   :  { %vm7842_vm0 = vcmp.le.f32.partialorder %v12287_v63, 0.7853982  ;;  %vm1204_vm5 = vcmp.eq.s32.totalorder %v7810_v55, 2  ;;  %v1346_v56 = vadd.f32 0.008332121, %v1345_v62  ;;  %v1816_v10 = vmul.f32 %v1815_v14, %v7781_v0 }
 0x206   :  { %v1825_v13 = vxor.u32 2147483648, %v1808_v21  ;;  %vm1200_vm4 = vcmp.lt.s32.totalorder %v7810_v55, 2  ;;  %v719_v47 = vadd.f32 0.041655596, %v718_v31  ;;  %v7860_v44 = vadd.s32 3, %v251_v43 }
 0x207   :  { %v1648_v35 = vmul.f32 -0.001358992, %v1647_v37  ;;  %v1655_v30 = vmul.f32 -0.00019511016, %v1647_v37  ;;  %v1196_v20 = vmul.f32 %v1195_v23, %v7710_v3  ;;  %v403_v60 = vsub.s32 4, %v12290_v53 }
 0x208   :  { %v1952_v45 = vsel %vm11981_vm13, %v1951_v26, %v1950_v29  ;;  %v1822_v0 = vxor.u32 2147483648, %v1816_v10  ;;  %v1342_v62 = vmul.f32 %v1341_v49, %v7737_v22  ;;  %v1347_v27 = vmul.f32 %v1346_v56, %v7737_v22  ;;  %v12291_v49 = vld [vmem:[#allocation3_spill] sm:$0xff] }
 0x209   :  { %v1649_v46 = vadd.f32 0.041655596, %v1648_v35  ;;  %v1656_v52 = vadd.f32 0.008332121, %v1655_v30  ;;  %vm1197_vm11 = vweird.f32 %v6829_v34  ;;  %v1202_v57 = vxor.u32 2147483648, %v1196_v20 }
 0x20a   :  { %v1205_v43 = vxor.u32 2147483648, %v1188_v61  ;;  %v1823_v50 = vsel %vm1821_vm9, %v1808_v21, %v1822_v0  ;;  %v1826_v3 = vsel %vm1824_vm1, %v1825_v13, %v1816_v10  ;;  %v1348_v31 = vadd.f32 -0.16666654, %v1347_v27 }
 0x20b   :  { %v720_v29 = vmul.f32 %v719_v47, %v7683_v58  ;;  %v1650_v26 = vmul.f32 %v1649_v46, %v1647_v37  ;;  %v1657_v63 = vmul.f32 %v1656_v52, %v1647_v37  ;;  %v1827_v14 = vsel %vm1820_vm8, %v1823_v50, %v1826_v3 }
 0x20c   :  { %vm1356_vm6 = vcmp.eq.s32.totalorder %v7812_v33, 0  ;;  %vm1359_vm2 = vcmp.eq.s32.totalorder %v7812_v33, 2  ;;  %vm12292_vm13 = vcmp.lt.s32.totalorder %v12291_v49, 0  ;;  %v1828_v21 = vsel %vm1817_vm10, nan, %v1827_v14 }
 0x20d   :  { %v7881_v23 = vsel %vm12292_vm13, %v403_v60, %v12290_v53  ;;  %v1203_v56 = vsel %vm1201_vm14, %v1188_v61, %v1202_v57  ;;  %v1343_v10 = vadd.f32 1.0, %v1342_v62  ;;  %v1349_v13 = vmul.f32 %v1348_v31, %v7737_v22  ;;  %2066 = vmatpush.msrb.mxu0 %v1828_v21 }
 0x20e   :  { %vm1355_vm9 = vcmp.lt.s32.totalorder %v7812_v33, 2  ;;  %v7892_v42 = vsel %vm7842_vm0, %v7429_v5, %v1952_v45  ;;  %v1651_v47 = vadd.f32 -0.4999988, %v1650_v26  ;;  %v1658_v35 = vadd.f32 -0.16666654, %v1657_v63 }
 0x20f   :  { %vm1352_vm13 = vweird.f32 %v12260_v16  ;;  %v721_v54 = vadd.f32 -0.4999988, %v720_v29  ;;  %vm1666_vm1 = vcmp.eq.s32.totalorder %v7798_v19, 0  ;;  %vm1669_vm8 = vcmp.eq.s32.totalorder %v7798_v19, 2 }
 0x210   :  { %v1206_v22 = vsel %vm1204_vm5, %v1205_v43, %v1196_v20  ;;  %v1350_v61 = vadd.f32 1.0, %v1349_v13  ;;  %v725_v30 = vmul.f32 -0.00019511016, %v7683_v58  ;;  %v873_v53 = vmul.f32 -0.001358992, %v7690_v12  ;;  %v12293_v13 = vld [vmem:[#allocation11_spill] sm:$0xff] }
 0x211   :  { %v1652_v60 = vmul.f32 %v1651_v47, %v1647_v37  ;;  %v1659_v45 = vmul.f32 %v1658_v35, %v1647_v37  ;;  %vm1665_vm10 = vcmp.lt.s32.totalorder %v7798_v19, 2  ;;  %v1207_v0 = vsel %vm1200_vm4, %v1203_v56, %v1206_v22 }
 0x212   :  { %v880_v62 = vmul.f32 -0.00019511016, %v7690_v12  ;;  %vm1662_vm14 = vweird.f32 %v12268_v41  ;;  %v1351_v27 = vmul.f32 %v1350_v61, %v7717_v2  ;;  %v1360_v46 = vxor.u32 2147483648, %v1343_v10 }
 0x213   :  { %v726_v20 = vadd.f32 0.008332121, %v725_v30  ;;  %v874_v52 = vadd.f32 0.041655596, %v873_v53  ;;  %v1653_v57 = vadd.f32 1.0, %v1652_v60  ;;  %v1660_v43 = vadd.f32 1.0, %v1659_v45 }
 0x214   :  { %v722_v50 = vmul.f32 %v721_v54, %v7683_v58  ;;  %v881_v3 = vadd.f32 0.008332121, %v880_v62  ;;  %v1208_v37 = vsel %vm1197_vm11, nan, %v1207_v0  ;;  %v1357_v31 = vxor.u32 2147483648, %v1351_v27 }
 0x215   :  { %v727_v55 = vmul.f32 %v726_v20, %v7683_v58  ;;  %v7912_v29 = vand.u32 3, %v7822_v59  ;;  %v1661_v26 = vmul.f32 %v1660_v43, %v7849_v9  ;;  %v1670_v2 = vxor.u32 2147483648, %v1653_v57 }
 0x216   :  { %v875_v63 = vmul.f32 %v874_v52, %v7690_v12  ;;  %v882_v14 = vmul.f32 %v881_v3, %v7690_v12  ;;  %v1358_v21 = vsel %vm1356_vm6, %v1343_v10, %v1357_v31  ;;  %v1361_v34 = vsel %vm1359_vm2, %v1360_v46, %v1351_v27 }
 0x217   :  { %v728_v56 = vadd.f32 -0.16666654, %v727_v55  ;;  %v253_v47 = vmul.f32 -0.001358992, %v12293_v13  ;;  %v1667_v35 = vxor.u32 2147483648, %v1661_v26  ;;  %v1362_v59 = vsel %vm1355_vm9, %v1358_v21, %v1361_v34 }
 0x218   :  { %v723_v54 = vadd.f32 1.0, %v722_v50  ;;  %vm736_vm5 = vcmp.eq.s32.totalorder %v7817_v24, 0  ;;  %vm739_vm4 = vcmp.eq.s32.totalorder %v7817_v24, 2  ;;  %v876_v9 = vadd.f32 -0.4999988, %v875_v63 }
 0x219   :  { %v1363_v22 = vsel %vm1352_vm13, nan, %v1362_v59  ;;  %v729_v10 = vmul.f32 %v728_v56, %v7683_v58  ;;  %vm735_vm11 = vcmp.lt.s32.totalorder %v7817_v24, 2  ;;  %v883_v61 = vadd.f32 -0.16666654, %v882_v14  ;;  %v12295_v14 = vld [vmem:[#allocation22_spill] sm:$0xff]  ;;  %v1989_v24 = vld [vmem:[%s11900_s3 + $0x8] sm:$0xff] }
 0x21a   :  { %v254_v30 = vadd.f32 0.041655596, %v253_v47  ;;  %v1668_v53 = vsel %vm1666_vm1, %v1653_v57, %v1667_v35  ;;  %v1671_v33 = vsel %vm1669_vm8, %v1670_v2, %v1661_v26  ;;  %2067 = vmatpush.msrb.mxu0 %v1363_v22  ;;  %vm732_vm6 = vweird.f32 %v6575_v51  ;;  %1999 = vperm.xlu1 %6245, %v1989_v24   ;;  %v1988_v24 = vld [vmem:[%s11900_s3] sm:$0xff] }
 0x21b   :  { %v877_v60 = vmul.f32 %v876_v9, %v7690_v12  ;;  %v260_v16 = vmul.f32 -0.00019511016, %v12293_v13  ;;  %v1672_v58 = vsel %vm1665_vm10, %v1668_v53, %v1671_v33  ;;  %v730_v45 = vadd.f32 1.0, %v729_v10 }
 0x21c   :  { %v884_v0 = vmul.f32 %v883_v61, %v7690_v12  ;;  %vm890_vm2 = vcmp.lt.s32.totalorder %v7912_v29, 2  ;;  %v255_v62 = vmul.f32 %v254_v30, %v12293_v13  ;;  %v1673_v27 = vsel %vm1662_vm14, nan, %v1672_v58  ;;  %v12296_v58 = vld [vmem:[#allocation10_spill] sm:$0xff] }
 0x21d   :  { %v878_v46 = vadd.f32 1.0, %v877_v60  ;;  %vm887_vm9 = vweird.f32 %v6608_v39  ;;  %vm891_vm13 = vcmp.eq.s32.totalorder %v7912_v29, 0  ;;  %v261_v20 = vadd.f32 0.008332121, %v260_v16  ;;  %2037 = vmatpush.msra.mxu3 %v1673_v27 }
 0x21e   :  { %v731_v19 = vmul.f32 %v730_v45, %v7638_v48  ;;  %v740_v52 = vxor.u32 2147483648, %v723_v54  ;;  %v885_v57 = vadd.f32 1.0, %v884_v0  ;;  %v256_v43 = vadd.f32 -0.4999988, %v255_v62 }
 0x21f   :  { %vm894_vm1 = vcmp.eq.s32.totalorder %v7912_v29, 2  ;;  %v895_v12 = vxor.u32 2147483648, %v878_v46  ;;  %v262_v50 = vmul.f32 %v261_v20, %v12293_v13  ;;  %v269_v41 = vand.u32 3, %v7860_v44  ;;  %2038 = vmatpush.msra.mxu3 %v1208_v37 }
 0x220   :  { %v737_v3 = vxor.u32 2147483648, %v731_v19  ;;  %v886_v31 = vmul.f32 %v885_v57, %v7660_v8  ;;  %v257_v55 = vmul.f32 %v256_v43, %v12293_v13  ;;  %v406_v48 = vsel %vm7156_vm3, 0, %v7881_v23 }
 0x221   :  { %v7957_v2 = vmul.f32 %v7892_v42, %v7892_v42  ;;  %v263_v63 = vadd.f32 -0.16666654, %v262_v50  ;;  %v408_v21 = vmul.f32 -0.001358992, %v12295_v14  ;;  %v415_v34 = vmul.f32 -0.00019511016, %v12295_v14 }
 0x222   :  { %v738_v44 = vsel %vm736_vm5, %v723_v54, %v737_v3  ;;  %v741_v8 = vsel %vm739_vm4, %v740_v52, %v731_v19  ;;  %v892_v37 = vxor.u32 2147483648, %v886_v31  ;;  %v258_v56 = vadd.f32 1.0, %v257_v55  ;;  %1994 = vperm.xlu1 %6245, %v1988_v24  }
 0x223   :  { %v742_v23 = vsel %vm735_vm11, %v738_v44, %v741_v8  ;;  %v264_v47 = vmul.f32 %v263_v63, %v12293_v13  ;;  %v409_v35 = vadd.f32 0.041655596, %v408_v21  ;;  %v416_v59 = vadd.f32 0.008332121, %v415_v34  ;;  %v12298_v63 = vld [vmem:[#allocation27_spill] sm:$0xff] }
 0x224   :  { %v743_v9 = vsel %vm732_vm6, nan, %v742_v23  ;;  %v893_v22 = vsel %vm891_vm13, %v878_v46, %v892_v37  ;;  %v896_v54 = vsel %vm894_vm1, %v895_v12, %v886_v31  ;;  %vm267_vm3 = vweird.f32 %v12283_v1  ;;  %v12299_v21 = vld [vmem:[#allocation19_spill] sm:$0xff] }
 0x225   :  { %v423_v10 = vadd.s32 3, %v406_v48  ;;  %2039 = vmatpush.msra.mxu3 %v743_v9  ;;  %v897_v13 = vsel %vm890_vm2, %v893_v22, %v896_v54  ;;  %v265_v61 = vadd.f32 1.0, %v264_v47  ;;  %v410_v51 = vmul.f32 %v409_v35, %v12295_v14  ;;  %v8001_v48 = vld [vmem:[%s11901_s2] sm:$0xff] }
 0x226   :  { %v417_v30 = vmul.f32 %v416_v59, %v12295_v14  ;;  %v898_v53 = vsel %vm887_vm9, nan, %v897_v13  ;;  %v275_v33 = vxor.u32 2147483648, %v258_v56  ;;  %v1953_v60 = vsub.s32 4, %v7655_v11  ;;  %3988 = vrot.lane.b32.xlu2 %v8001_v48, %s6267_s17 }
 0x227   :  { %v1958_v16 = vmul.f32 -0.001358992, %v7957_v2  ;;  %2068 = vmatpush.msrb.mxu0 %v898_v53  ;;  %v266_v45 = vmul.f32 %v265_v61, %v12296_v58  ;;  %v411_v0 = vadd.f32 -0.4999988, %v410_v51  ;;  %v1965_v62 = vmul.f32 -0.00019511016, %v7957_v2 }
 0x228   :  { %v418_v29 = vadd.f32 -0.16666654, %v417_v30  ;;  %vm270_vm8 = vcmp.lt.s32.totalorder %v269_v41, 2  ;;  %vm271_vm10 = vcmp.eq.s32.totalorder %v269_v41, 0  ;;  %vm274_vm14 = vcmp.eq.s32.totalorder %v269_v41, 2 }
 0x229   :  { %vm12297_vm5 = vcmp.lt.s32.totalorder %v7429_v5, 0  ;;  %v272_v27 = vxor.u32 2147483648, %v266_v45  ;;  %v412_v46 = vmul.f32 %v411_v0, %v12295_v14  ;;  %v424_v19 = vand.u32 3, %v423_v10 }
 0x22a   :  { %v1954_v39 = vsel %vm12297_vm5, %v1953_v60, %v7655_v11  ;;  %v419_v20 = vmul.f32 %v418_v29, %v12295_v14  ;;  %v276_v52 = vsel %vm274_vm14, %v275_v33, %v266_v45  ;;  %v1959_v43 = vadd.f32 0.041655596, %v1958_v16  ;;  %v8031_v29 = vld [vmem:[%s11901_s2 + $0x8] sm:$0xff] }
 0x22b   :  { %v1956_v57 = vsel %vm7842_vm0, 0, %v1954_v39  ;;  %v1966_v12 = vadd.f32 0.008332121, %v1965_v62  ;;  %v273_v50 = vsel %vm271_vm10, %v258_v56, %v272_v27  ;;  %v413_v3 = vadd.f32 1.0, %v412_v46 }
 0x22c   :  { %v420_v31 = vadd.f32 1.0, %v419_v20  ;;  %vm12073_vm4 = vcmask 261120   ;;  %v277_v55 = vsel %vm270_vm8, %v273_v50, %v276_v52  ;;  %v1960_v11 = vmul.f32 %v1959_v43, %v7957_v2 }
 0x22d   :  { %v1967_v26 = vmul.f32 %v1966_v12, %v7957_v2  ;;  %v1488_v28 = vsub.s32 4, %v12298_v63  ;;  %v278_v14 = vsel %vm267_vm3, nan, %v277_v55  ;;  %v430_v44 = vxor.u32 2147483648, %v413_v3 }
 0x22e   :  { %v421_v34 = vmul.f32 %v420_v31, %v12299_v21  ;;  %v1973_v8 = vadd.s32 3, %v1956_v57  ;;  %2040 = vmatpush.msra.mxu3 %v278_v14  ;;  %v1961_v41 = vadd.f32 -0.4999988, %v1960_v11  ;;  %vm12300_vm0 = vcmp.lt.s32.totalorder %v12264_v17, 0  ;;  %v1991_v11 = vld [vmem:[%s11900_s3 + $0x18] sm:$0xff]  ;;  %3990 = vrot.lane.b32.xlu2 %v8031_v29, %s6267_s17 }
 0x22f   :  { %v1968_v37 = vadd.f32 -0.16666654, %v1967_v26  ;;  %v1489_v56 = vsel %vm12300_vm0, %v1488_v28, %v12298_v63  ;;  %v1493_v23 = vmul.f32 -0.001358992, %v7826_v15  ;;  %vm422_vm11 = vweird.f32 %v12291_v49  ;;  %6125 = vmatmul.msk.f32.vlgmr.msra.gmra.mxu3 %vm12073_vm4, %v8001_v48  ;;  %2009 = vperm.xlu0 %6244, %v1991_v11  }
 0x230   :  { %vm425_vm6 = vcmp.lt.s32.totalorder %v424_v19, 2  ;;  %v427_v47 = vxor.u32 2147483648, %v421_v34  ;;  %vm429_vm2 = vcmp.eq.s32.totalorder %v424_v19, 2  ;;  %vm426_vm9 = vcmp.eq.s32.totalorder %v424_v19, 0 }
 0x231   :  { %v431_v1 = vsel %vm429_vm2, %v430_v44, %v421_v34  ;;  %v1962_v35 = vmul.f32 %v1961_v41, %v7957_v2  ;;  %v1969_v59 = vmul.f32 %v1968_v37, %v7957_v2  ;;  %v1491_v22 = vsel %vm7702_vm12, 0, %v1489_v56  ;;  %v12304_v44 = vld [vmem:[#allocation23_spill] sm:$0xff] }
 0x232   :  { %v428_v9 = vsel %vm426_vm9, %v413_v3, %v427_v47  ;;  %v1494_v54 = vadd.f32 0.041655596, %v1493_v23  ;;  %v1500_v10 = vmul.f32 -0.00019511016, %v7826_v15  ;;  %v1974_v30 = vand.u32 3, %v1973_v8  ;;  %v8059_v8 = vld [vmem:[%s11901_s2 + $0x10] sm:$0xff] }
 0x233   :  { %v432_v13 = vsel %vm425_vm6, %v428_v9, %v431_v1  ;;  %v1963_v61 = vadd.f32 1.0, %v1962_v35  ;;  %v1970_v51 = vadd.f32 1.0, %v1969_v59  ;;  %v1023_v60 = vsub.s32 4, %v12301_v7  ;;  %v12305_v35 = vld [vmem:[#allocation4_spill] sm:$0xff] }
 0x234   :  { %v433_v53 = vsel %vm422_vm11, nan, %v432_v13  ;;  %v1495_v2 = vmul.f32 %v1494_v54, %v7826_v15  ;;  %v1501_v33 = vadd.f32 0.008332121, %v1500_v10  ;;  %v1508_v45 = vadd.s32 3, %v1491_v22 }
 0x235   :  { %2069 = vmatpush.msrb.mxu0 %v433_v53  ;;  %v1971_v16 = vmul.f32 %v1970_v51, %v7892_v42  ;;  %v1980_v58 = vxor.u32 2147483648, %v1963_v61  ;;  %v1028_v0 = vmul.f32 -0.001358992, %v7698_v32  ;;  %vm12302_vm12 = vcmp.lt.s32.totalorder %v6783_v40, 0 }
 0x236   :  { %6129 = vmatmul.msk.f32.vlgmr.msrb.gmra.mxu0 %vm12073_vm4, %v8001_v48  ;;  %v1496_v49 = vadd.f32 -0.4999988, %v1495_v2  ;;  %v1502_v62 = vmul.f32 %v1501_v33, %v7826_v15  ;;  %v1024_v39 = vsel %vm12302_vm12, %v1023_v60, %v12301_v7  ;;  %v1035_v42 = vmul.f32 -0.00019511016, %v7698_v32  ;;  %v1990_v2 = vld [vmem:[%s11900_s3 + $0x10] sm:$0xff] }
 0x237   :  { %vm1972_vm13 = vweird.f32 %v7429_v5  ;;  %vm1975_vm1 = vcmp.lt.s32.totalorder %v1974_v30, 2  ;;  %v1977_v27 = vxor.u32 2147483648, %v1971_v16  ;;  %vm1979_vm3 = vcmp.eq.s32.totalorder %v1974_v30, 2  ;;  %6126 = vmatmul.msk.f32.gmra.mxu3 %vm12073_vm4, %v8031_v29  ;;  %2004 = vperm.xlu0 %6244, %v1990_v2  }
 0x238   :  { %vm1976_vm8 = vcmp.eq.s32.totalorder %v1974_v30, 0  ;;  %v1981_v46 = vsel %vm1979_vm3, %v1980_v58, %v1971_v16  ;;  %v1497_v20 = vmul.f32 %v1496_v49, %v7826_v15  ;;  %v1503_v19 = vadd.f32 -0.16666654, %v1502_v62 }
 0x239   :  { %v1978_v52 = vsel %vm1976_vm8, %v1963_v61, %v1977_v27  ;;  %v1026_v57 = vsel %vm7606_vm15, 0, %v1024_v39  ;;  %v1029_v43 = vadd.f32 0.041655596, %v1028_v0  ;;  %v1036_v12 = vadd.f32 0.008332121, %v1035_v42  ;;  %v1987_v39 = vld [vmem:[%s11901_s2 + $0x18] sm:$0xff] }
 0x23a   :  { %v1982_v50 = vsel %vm1975_vm1, %v1978_v52, %v1981_v46  ;;  %v1498_v3 = vadd.f32 1.0, %v1497_v20  ;;  %v1504_v31 = vmul.f32 %v1503_v19, %v7826_v15  ;;  %v1509_v55 = vand.u32 3, %v1508_v45  ;;  %3994 = vrot.lane.b32.xlu1 %v1987_v39, %s6267_s17 }
 0x23b   :  { %v1983_v26 = vsel %vm1972_vm13, nan, %v1982_v50  ;;  %v1030_v63 = vmul.f32 %v1029_v43, %v7698_v32  ;;  %v1037_v28 = vmul.f32 %v1036_v12, %v7698_v32  ;;  %v558_v14 = vsub.s32 4, %v12303_v18 }
 0x23c   :  { %2095 = vmatpush.msrb.mxu1 %v1983_v26  ;;  %v1505_v21 = vadd.f32 1.0, %v1504_v31  ;;  %v1043_v34 = vadd.s32 3, %v1026_v57  ;;  %v563_v15 = vmul.f32 -0.001358992, %v12304_v44  ;;  %v570_v37 = vmul.f32 -0.00019511016, %v12304_v44 }
 0x23d   :  { %v1031_v41 = vadd.f32 -0.4999988, %v1030_v63  ;;  %v1038_v5 = vadd.f32 -0.16666654, %v1037_v28  ;;  %vm1507_vm15 = vweird.f32 %v12264_v17  ;;  %vm1510_vm10 = vcmp.lt.s32.totalorder %v1509_v55, 2  ;;  %v12308_v57 = vld [vmem:[#allocation20_spill] sm:$0xff] }
 0x23e   :  { %v1506_v56 = vmul.f32 %v1505_v21, %v7742_v38  ;;  %v1515_v23 = vxor.u32 2147483648, %v1498_v3  ;;  %6130 = vmatmul.msk.f32.gmra.mxu0 %vm12073_vm4, %v8031_v29  ;;  %vm12306_vm14 = vcmp.lt.s32.totalorder %v12305_v35, 0  ;;  %v564_v9 = vadd.f32 0.041655596, %v563_v15 }
 0x23f   :  { %v1032_v47 = vmul.f32 %v1031_v41, %v7698_v32  ;;  %v1039_v1 = vmul.f32 %v1038_v5, %v7698_v32  ;;  %v559_v59 = vsel %vm12306_vm14, %v558_v14, %v12303_v18  ;;  %vm1511_vm5 = vcmp.eq.s32.totalorder %v1509_v55, 0  ;;  %6127 = vmatmul.msk.f32.gmra.mxu3 %vm12073_vm4, %v8059_v8  ;;  %3992 = vrot.lane.b32.xlu0 %v8059_v8, %s6267_s17 }
 0x240   :  { %v1512_v22 = vxor.u32 2147483648, %v1506_v56  ;;  %vm1514_vm0 = vcmp.eq.s32.totalorder %v1509_v55, 2  ;;  %v571_v38 = vadd.f32 0.008332121, %v570_v37  ;;  %v1044_v24 = vand.u32 3, %v1043_v34 }
 0x241   :  { %v1033_v54 = vadd.f32 1.0, %v1032_v47  ;;  %v1040_v10 = vadd.f32 1.0, %v1039_v1  ;;  %v565_v13 = vmul.f32 %v564_v9, %v12304_v44  ;;  %v1516_v51 = vsel %vm1514_vm0, %v1515_v23, %v1506_v56 }
 0x242   :  { %v1513_v61 = vsel %vm1511_vm5, %v1498_v3, %v1512_v22  ;;  %v561_v30 = vsel %vm7162_vm7, 0, %v559_v59  ;;  %v572_v53 = vmul.f32 %v571_v38, %v12304_v44  ;;  %vm1046_vm7 = vcmp.eq.s32.totalorder %v1044_v24, 0 }
 0x243   :  { %v1517_v33 = vsel %vm1510_vm10, %v1513_v61, %v1516_v51  ;;  %v1041_v7 = vmul.f32 %v1040_v10, %v7677_v25  ;;  %v1050_v60 = vxor.u32 2147483648, %v1033_v54  ;;  %v566_v16 = vadd.f32 -0.4999988, %v565_v13 }
 0x244   :  { %v1518_v58 = vsel %vm1507_vm15, nan, %v1517_v33  ;;  %v573_v45 = vadd.f32 -0.16666654, %v572_v53  ;;  %v578_v62 = vadd.s32 3, %v561_v30  ;;  %vm1049_vm11 = vcmp.eq.s32.totalorder %v1044_v24, 2 }
 0x245   :  { %2096 = vmatpush.msrb.mxu1 %v1518_v58  ;;  %v1047_v0 = vxor.u32 2147483648, %v1041_v7  ;;  %v567_v49 = vmul.f32 %v566_v16, %v12304_v44  ;;  %vm1045_vm6 = vcmp.lt.s32.totalorder %v1044_v24, 2  ;;  %v1051_v42 = vsel %vm1049_vm11, %v1050_v60, %v1041_v7 }
 0x246   :  { %v574_v25 = vmul.f32 %v573_v45, %v12304_v44  ;;  %6131 = vmatmul.msk.f32.gmra.mxu0 %vm12073_vm4, %v8059_v8  ;;  %vm1042_vm2 = vweird.f32 %v6783_v40  ;;  %v579_v52 = vand.u32 3, %v578_v62  ;;  %vm577_vm1 = vweird.f32 %v12305_v35 }
 0x247   :  { %v1048_v17 = vsel %vm1046_vm7, %v1033_v54, %v1047_v0  ;;  %v568_v27 = vadd.f32 1.0, %v567_v49  ;;  %6128 = vmatmul.msk.f32.gmra.mxu3 %vm12073_vm4, %v1987_v39 }
 0x248   :  { %v1052_v46 = vsel %vm1045_vm6, %v1048_v17, %v1051_v42  ;;  %v575_v20 = vadd.f32 1.0, %v574_v25  ;;  %vm581_vm9 = vcmp.eq.s32.totalorder %v579_v52, 0  ;;  %vm584_vm12 = vcmp.eq.s32.totalorder %v579_v52, 2 }
 0x249   :  { %v1053_v19 = vsel %vm1042_vm2, nan, %v1052_v46  ;;  %v585_v12 = vxor.u32 2147483648, %v568_v27  ;;  %vm580_vm13 = vcmp.lt.s32.totalorder %v579_v52, 2 }
 0x24a   :  { %2097 = vmatpush.msrb.mxu1 %v1053_v19  ;;  %v576_v43 = vmul.f32 %v575_v20, %v12308_v57  ;;  %v12320_v19 = vmov 2102212464  }
 0x24c   :  { %v582_v50 = vxor.u32 2147483648, %v576_v43  ;;  %v586_v31 = vsel %vm584_vm12, %v585_v12, %v576_v43 }
 0x24e   :  { %v583_v3 = vsel %vm581_vm9, %v568_v27, %v582_v50  ;;  %6132 = vmatmul.msk.f32.gmra.mxu0 %vm12073_vm4, %v1987_v39 }
 0x24f   :  { %v587_v40 = vsel %vm580_vm13, %v583_v3, %v586_v31 }
 0x250   :  { %v588_v55 = vsel %vm577_vm1, nan, %v587_v40 }
 0x251   :  { %2098 = vmatpush.msrb.mxu1 %v588_v55 }
 0x252   :  { %6133 = vmatmul.msk.f32.vlgmr.msrb.gmra.mxu1 %vm12073_vm4, %v8001_v48 }
 0x25a   :  { %6134 = vmatmul.msk.f32.gmra.mxu1 %vm12073_vm4, %v8031_v29 }
 0x262   :  { %6135 = vmatmul.msk.f32.gmra.mxu1 %vm12073_vm4, %v8059_v8 }
 0x26a   :  { %6136 = vmatmul.msk.f32.gmra.mxu1 %vm12073_vm4, %v1987_v39 }
 0x28c   :  { %v2000_v11 = vpop.permute.xlu1 %1999 }
 0x294   :  { %v1995_v63 = vpop.permute.xlu1 %1994 }
 0x2a1   :  { %v8118_v9 = vpop.permute.xlu0 %2009 }
 0x2a9   :  { %v2005_v16 = vpop.permute.xlu0 %2004 }
 0x2b2   :  { %v2042_v28 = vpop.f32.mrf.mxu3 }
 0x2b3   :  { %v2071_v26 = vpop.f32.mrf.mxu0  ;;  %v8108_v14 = vadd.f32 %v2042_v28, %v1995_v63 }
 0x2b4   :  { %v8106_v18 = vadd.f32 %v2071_v26, %v1995_v63 }
 0x2b5   :  { %12310 = vst [vmem:[#allocation26_spill] sm:$0xff] %v8108_v14  ;;  %v2115_v34 = vand.u32 2139095040, %v8108_v14 }
 0x2b6   :  { %12309 = vst [vmem:[#allocation28_spill] sm:$0xff] %v8106_v18  ;;  %v2270_v21 = vand.u32 2139095040, %v8106_v18 }
 0x2b7   :  { %v2116_v29 = vshrl.u32 %v2115_v34, 23 }
 0x2b8   :  { %v2271_v8 = vshrl.u32 %v2270_v21, 23 }
 0x2b9   :  { %v6137_v56 = vadd.s32 4294967169, %v2116_v29 }
 0x2ba   :  { %v2045_v15 = vpop.f32.mrf.mxu3  ;;  %v6140_v5 = vadd.s32 4294967169, %v2271_v8 }
 0x2bb   :  { %v2074_v44 = vpop.f32.mrf.mxu0  ;;  %v8114_v48 = vadd.f32 %v2045_v15, %v2000_v11  ;;  %v2122_v35 = vadd.s32 1, %v6137_v56 }
 0x2bc   :  { %v8112_v41 = vadd.f32 %v2074_v44, %v2000_v11  ;;  %v2277_v47 = vadd.s32 1, %v6140_v5 }
 0x2bd   :  { %12311 = vst [vmem:[#allocation13_spill] sm:$0xff] %v8114_v48  ;;  %v2580_v59 = vand.u32 2139095040, %v8114_v48  ;;  %vm2123_vm8 = vcmp.gt.s32.totalorder %v2122_v35, 0 }
 0x2be   :  { %v2735_v37 = vand.u32 2139095040, %v8112_v41  ;;  %vm2278_vm3 = vcmp.gt.s32.totalorder %v2277_v47, 0  ;;  %v2124_v24 = vsel %vm2123_vm8, %v2122_v35, 0 }
 0x2bf   :  { %v2581_v54 = vshrl.u32 %v2580_v59, 23  ;;  %v2279_v10 = vsel %vm2278_vm3, %v2277_v47, 0  ;;  %v8125_v53 = vand.u32 31, %v2124_v24  ;;  %v8138_v39 = vshrl.u32 %v2124_v24, 5 }
 0x2c0   :  { %v2736_v1 = vshrl.u32 %v2735_v37, 23  ;;  %v8123_v32 = vand.u32 31, %v2279_v10  ;;  %v8136_v62 = vshrl.u32 %v2279_v10, 5 }
 0x2c1   :  { %v6146_v30 = vadd.s32 4294967169, %v2581_v54  ;;  %12314 = vst [vmem:[#allocation25_spill] sm:$0xff] %v8125_v53  ;;  %v8133_v45 = vsub.s32 32, %v8125_v53  ;;  %v2138_v50 = vshll.u32 %v12320_v19, %v8125_v53  ;;  %v2141_v3 = vshll.u32 %v12202_v4, %v8125_v53 }
 0x2c2   :  { %v6149_v22 = vadd.s32 4294967169, %v2736_v1  ;;  %12313 = vst [vmem:[#allocation21_spill] sm:$0xff] %v8123_v32  ;;  %v8130_v7 = vsub.s32 32, %v8123_v32  ;;  %v2048_v20 = vpop.f32.mrf.mxu3  ;;  %v2293_v52 = vshll.u32 %v12320_v19, %v8123_v32  ;;  %v2296_v57 = vshll.u32 %v12202_v4, %v8123_v32 }
 0x2c3   :  { %v2587_v60 = vadd.s32 1, %v6146_v30  ;;  %v2077_v58 = vpop.f32.mrf.mxu0  ;;  %12317 = vst [vmem:[#allocation24_spill] sm:$0xff] %v8133_v45  ;;  %v2139_v43 = vshrl.u32 %v12202_v4, %v8133_v45  ;;  %v2142_v31 = vshrl.u32 %v12203_v36, %v8133_v45  ;;  %vm2302_vm14 = vcmp.lt.s32.totalorder %v8136_v62, 4 }
 0x2c4   :  { %v2742_v13 = vadd.s32 1, %v6149_v22  ;;  %12316 = vst [vmem:[#allocation8_spill] sm:$0xff] %v8130_v7  ;;  %v8140_v17 = vadd.f32 %v2077_v58, %v2005_v16  ;;  %v2294_v42 = vshrl.u32 %v12202_v4, %v8130_v7  ;;  %v2297_v27 = vshrl.u32 %v12203_v36, %v8130_v7 }
 0x2c5   :  { %12318 = vst [vmem:[#allocation5_spill] sm:$0xff] %v8136_v62  ;;  %vm2588_vm10 = vcmp.gt.s32.totalorder %v2587_v60, 0  ;;  %v8171_v15 = vor.u32 %v2139_v43, %v2138_v50  ;;  %v2143_v8 = vor.u32 %v2142_v31, %v2141_v3  ;;  %vm12054_vm5 = vcmp.lt.s32.totalorder %v8138_v39, 4 }
 0x2c6   :  { %vm2743_vm15 = vcmp.gt.s32.totalorder %v2742_v13, 0  ;;  %12319 = vst [vmem:[#allocation12_spill] sm:$0xff] %v8138_v39  ;;  %v3200_v26 = vand.u32 2139095040, %v8140_v17  ;;  %v8166_v28 = vor.u32 %v2294_v42, %v2293_v52  ;;  %v2298_v21 = vor.u32 %v2297_v27, %v2296_v57 }
 0x2c7   :  { %v2744_v0 = vsel %vm2743_vm15, %v2742_v13, 0  ;;  %12323 = vst [vmem:[#allocation6_spill] sm:$0xff] %v8171_v15  ;;  %v8192_v22 = vsel %vm12054_vm5, %v8171_v15, 920167782  ;;  %v8213_v42 = vsel %vm12054_vm5, %v2143_v8, 1326507024 }
 0x2c8   :  { %v8146_v46 = vand.u32 31, %v2744_v0  ;;  %12322 = vst [vmem:[#allocation9_spill] sm:$0xff] %v8166_v28  ;;  %v3201_v37 = vshrl.u32 %v3200_v26, 23  ;;  %v8185_v47 = vsel %vm2302_vm14, %v2298_v21, 1326507024  ;;  %v8194_v54 = vshrl.u32 %v2744_v0, 5 }
 0x2c9   :  { %12326 = vst [vmem:[#allocation16_spill] sm:$0xff] %v8185_v47 }
 0x2ca   :  { %v8169_v34 = vsub.s32 32, %v8146_v46  ;;  %12327 = vst [vmem:[#allocation22_spill] sm:$0xff] %v8192_v22  ;;  %v2758_v10 = vshll.u32 %v12320_v19, %v8146_v46  ;;  %vm2767_vm7 = vcmp.lt.s32.totalorder %v8194_v54, 4 }
 0x2cb   :  { %12332 = vst [vmem:[#allocation7_spill] sm:$0xff] %v8213_v42 }
 0x2cc   :  { %v2759_v1 = vshrl.u32 %v12202_v4, %v8169_v34  ;;  %v2762_v24 = vshrl.u32 %v12203_v36, %v8169_v34 }
 0x2ce   :  { %v8215_v27 = vor.u32 %v2759_v1, %v2758_v10 }
 0x2cf   :  { %v2100_v23 = vpop.f32.mrf.mxu1 }
 0x2d0   :  { %v8120_v38 = vadd.f32 %v2100_v23, %v1995_v63  ;;  %v8164_v63 = vadd.f32 %v2048_v20, %v2005_v16  ;;  %v8181_v23 = vsel %vm2302_vm14, %v8166_v28, 920167782 }
 0x2d1   :  { %12325 = vst [vmem:[#allocation11_spill] sm:$0xff] %v8181_v23 }
 0x2d2   :  { %12312 = vst [vmem:[#allocation18_spill] sm:$0xff] %v8120_v38  ;;  %v2425_v61 = vand.u32 2139095040, %v8120_v38  ;;  %v11982_v49 = vand.u32 2147483647, %v8120_v38  ;;  %v3045_v56 = vand.u32 2139095040, %v8164_v63 }
 0x2d3   :  { %12321 = vst [vmem:[#allocation2_spill] sm:$0xff] %v8164_v63 }
 0x2d4   :  { %v2426_v33 = vshrl.u32 %v2425_v61, 23  ;;  %v2429_v40 = vand.u32 8388607, %v11982_v49  ;;  %v2761_v61 = vshll.u32 %v12202_v4, %v8146_v46  ;;  %v3046_v58 = vshrl.u32 %v3045_v56, 23 }
 0x2d6   :  { %v6143_v25 = vadd.s32 4294967169, %v2426_v33  ;;  %v2430_v5 = vor.u32 8388608, %v2429_v40  ;;  %v2763_v43 = vor.u32 %v2762_v24, %v2761_v61 }
 0x2d7   :  { %v2103_v51 = vpop.f32.mrf.mxu1 }
 0x2d8   :  { %v8127_v2 = vadd.f32 %v2103_v51, %v2000_v11  ;;  %v2432_v55 = vadd.s32 1, %v6143_v25  ;;  %v2589_v11 = vsel %vm2588_vm10, %v2587_v60, 0  ;;  %v8207_v33 = vshll.u32 %v2430_v5, 8  ;;  %v2080_v25 = vpop.f32.mrf.mxu0 }
 0x2d9   :  { %v8175_v29 = vand.u32 31, %v2589_v11  ;;  %v8202_v51 = vshrl.u32 %v2589_v11, 5  ;;  %v6158_v60 = vadd.s32 4294967169, %v3201_v37  ;;  %v8228_v31 = vadd.f32 %v2080_v25, %v8118_v9 }
 0x2da   :  { %12315 = vst [vmem:[#allocation15_spill] sm:$0xff] %v8127_v2  ;;  %v2890_v12 = vand.u32 2139095040, %v8127_v2  ;;  %vm2433_vm0 = vcmp.gt.s32.totalorder %v2432_v55, 0  ;;  %v11983_v20 = vand.u32 2147483647, %v8127_v2  ;;  %v8231_v40 = vand.u32 65535, %v8207_v33 }
 0x2db   :  { %12324 = vst [vmem:[#allocation3_spill] sm:$0xff] %v8175_v29  ;;  %v2434_v13 = vsel %vm2433_vm0, %v2432_v55, 0  ;;  %v8205_v30 = vsub.s32 32, %v8175_v29  ;;  %v2606_v50 = vshll.u32 %v12202_v4, %v8175_v29  ;;  %vm12055_vm11 = vcmp.lt.s32.totalorder %v8202_v51, 4 }
 0x2dc   :  { %v2891_v44 = vshrl.u32 %v2890_v12, 23  ;;  %12328 = vst [vmem:[#allocation10_spill] sm:$0xff] %v8202_v51  ;;  %v2436_v57 = vand.u32 31, %v2434_v13  ;;  %v2603_v12 = vshll.u32 %v12320_v19, %v8175_v29  ;;  %v3207_v55 = vadd.s32 1, %v6158_v60 }
 0x2dd   :  { %12329 = vst [vmem:[#allocation27_spill] sm:$0xff] %v8205_v30  ;;  %v2607_v3 = vshrl.u32 %v12203_v36, %v8205_v30  ;;  %v6155_v11 = vadd.s32 4294967169, %v3046_v58  ;;  %v8236_v21 = vshrl.u32 %v8207_v33, 16  ;;  %v2894_v8 = vand.u32 8388607, %v11983_v20 }
 0x2de   :  { %v6152_v35 = vadd.s32 4294967169, %v2891_v44  ;;  %12330 = vst [vmem:[#allocation19_spill] sm:$0xff] %v8207_v33  ;;  %v8241_v44 = vsel %vm2767_vm7, %v8215_v27, 920167782  ;;  %v8245_v5 = vshrl.u32 %v2434_v13, 5  ;;  %v8247_v37 = vsub.s32 32, %v2436_v57 }
 0x2df   :  { %v2106_v59 = vpop.f32.mrf.mxu1  ;;  %12333 = vst [vmem:[#allocation23_spill] sm:$0xff] %v8231_v40  ;;  %v8251_v56 = vsel %vm2767_vm7, %v2763_v43, 1326507024  ;;  %v2608_v24 = vor.u32 %v2607_v3, %v2606_v50  ;;  %v3665_v61 = vand.u32 2139095040, %v8228_v31  ;;  %vm3208_vm2 = vcmp.gt.s32.totalorder %v3207_v55, 0 }
 0x2e0   :  { %v8209_v0 = vadd.f32 %v2106_v59, %v2005_v16  ;;  %v2897_v52 = vadd.s32 1, %v6152_v35  ;;  %v2604_v16 = vshrl.u32 %v12202_v4, %v8205_v30  ;;  %12334 = vst [vmem:[#allocation4_spill] sm:$0xff] %v8236_v21  ;;  %v12337_v35 = vmov 683565275   ;;  %v2051_v21 = vpop.f32.mrf.mxu3 }
 0x2e1   :  { %12335 = vst [vmem:[#allocation17_spill] sm:$0xff] %v8245_v5  ;;  %v2439_v59 = vshll.u32 %v12337_v35, %v2436_v57  ;;  %v3052_v58 = vadd.s32 1, %v6155_v11  ;;  %v12339_v25 = vmov 2475754826   ;;  %v12340_v20 = vmov 2131351028  }
 0x2e2   :  { %12331 = vst [vmem:[#allocation14_spill] sm:$0xff] %v8209_v0  ;;  %v3355_v26 = vand.u32 2139095040, %v8209_v0  ;;  %vm2898_vm6 = vcmp.gt.s32.totalorder %v2897_v52, 0  ;;  %v8255_v10 = vor.u32 %v2604_v16, %v2603_v12  ;;  %v2442_v49 = vshll.u32 %v12339_v25, %v2436_v57 }
 0x2e3   :  { %12336 = vst [vmem:[#allocation20_spill] sm:$0xff] %v8247_v37  ;;  %v2899_v60 = vsel %vm2898_vm6, %v2897_v52, 0  ;;  %v2445_v38 = vshll.u32 %v12340_v20, %v2436_v57  ;;  %v2448_v43 = vshll.u32 %v12320_v19, %v2436_v57  ;;  %v2895_v33 = vor.u32 8388608, %v2894_v8 }
 0x2e4   :  { %12338 = vst [vmem:[#allocation29_spill] sm:$0xff] %v8255_v10  ;;  %v3356_v13 = vshrl.u32 %v3355_v26, 23  ;;  %v2440_v1 = vshrl.u32 %v12339_v25, %v8247_v37  ;;  %v2443_v12 = vshrl.u32 %v12340_v20, %v8247_v37  ;;  %v2446_v52 = vshrl.u32 %v12320_v19, %v8247_v37 }
 0x2e5   :  { %v12341_v16 = vand.u32 2147483647, %v8209_v0  ;;  %v2449_v3 = vshrl.u32 %v12202_v4, %v8247_v37  ;;  %v8273_v11 = vshrl.u32 %v12203_v36, %v8247_v37  ;;  %v2901_v26 = vand.u32 31, %v2899_v60 }
 0x2e6   :  { %v3209_v8 = vsel %vm3208_vm2, %v3207_v55, 0  ;;  %vm3053_vm9 = vcmp.gt.s32.totalorder %v3052_v58, 0  ;;  %v6161_v40 = vadd.s32 4294967169, %v3356_v13  ;;  %v3666_v2 = vshrl.u32 %v3665_v61, 23 }
 0x2e7   :  { %v3359_v50 = vand.u32 8388607, %v12341_v16  ;;  %12342 = vst [vmem:[#allocation30_spill] sm:$0xff] %v8273_v11  ;;  %v8276_v22 = vadd.f32 %v2051_v21, %v8118_v9  ;;  %v8279_v15 = vshll.u32 %v12202_v4, %v2436_v57  ;;  %v8284_v16 = vsel %vm12055_vm11, %v8255_v10, 920167782 }
 0x2e8   :  { %12344 = vst [vmem:[#allocation32_spill] sm:$0xff] %v8284_v16  ;;  %v8288_v37 = vsel %vm12055_vm11, %v2608_v24, 1326507024  ;;  %v8290_v42 = vshll.u32 %v2895_v33, 8  ;;  %v8292_v55 = vor.u32 %v2440_v1, %v2439_v59  ;;  %v8294_v61 = vor.u32 %v2443_v12, %v2442_v49  ;;  %v2109_v59 = vpop.f32.mrf.mxu1 }
 0x2e9   :  { %12343 = vst [vmem:[#allocation31_spill] sm:$0xff] %v8279_v15  ;;  %v8296_v21 = vand.u32 31, %v3209_v8  ;;  %v3360_v13 = vor.u32 8388608, %v3359_v50  ;;  %v8298_v57 = vor.u32 %v2446_v52, %v2445_v38  ;;  %v3054_v39 = vsel %vm3053_vm9, %v3052_v58, 0 }
 0x2ea   :  { %12345 = vst [vmem:[#allocation33_spill] sm:$0xff] %v8288_v37  ;;  %v6167_v53 = vadd.s32 4294967169, %v3666_v2  ;;  %v3510_v45 = vand.u32 2139095040, %v8276_v22  ;;  %v8301_v14 = vor.u32 %v2449_v3, %v2448_v43  ;;  %v8305_v33 = vsub.s32 32, %v2901_v26 }
 0x2eb   :  { %12346 = vst [vmem:[#allocation34_spill] sm:$0xff] %v8290_v42  ;;  %v3362_v1 = vadd.s32 1, %v6161_v40  ;;  %v8307_v49 = vshrl.u32 %v2899_v60, 5  ;;  %v8310_v12 = vand.u32 65535, %v8290_v42  ;;  %v8313_v38 = vshrl.u32 %v8290_v42, 16 }
 0x2ec   :  { %12347 = vst [vmem:[#allocation35_spill] sm:$0xff] %v8292_v55  ;;  %v8315_v2 = vshrl.u32 %v3209_v8, 5  ;;  %v2904_v58 = vshll.u32 %v12337_v35, %v2901_v26  ;;  %v8319_v43 = vsub.s32 32, %v8296_v21  ;;  %v8321_v52 = vand.u32 31, %v3054_v39 }
 0x2ed   :  { %12348 = vst [vmem:[#allocation36_spill] sm:$0xff] %v8294_v61  ;;  %v8323_v50 = vshll.u32 %v3360_v13, 8  ;;  %v2907_v40 = vshll.u32 %v12339_v25, %v2901_v26  ;;  %v3672_v60 = vadd.s32 1, %v6167_v53  ;;  %v3511_v3 = vshrl.u32 %v3510_v45, 23 }
 0x2ee   :  { %12349 = vst [vmem:[#allocation37_spill] sm:$0xff] %v8298_v57  ;;  %v8327_v24 = vadd.f32 %v2109_v59, %v8118_v9  ;;  %v2905_v8 = vshrl.u32 %v12339_v25, %v8305_v33  ;;  %v2908_v15 = vshrl.u32 %v12340_v20, %v8305_v33  ;;  %v2910_v11 = vshll.u32 %v12340_v20, %v2901_v26 }
 0x2ef   :  { %12350 = vst [vmem:[#allocation38_spill] sm:$0xff] %v8301_v14  ;;  %vm3363_vm12 = vcmp.gt.s32.totalorder %v3362_v1, 0  ;;  %v2911_v13 = vshrl.u32 %v12320_v19, %v8305_v33  ;;  %v2913_v57 = vshll.u32 %v12320_v19, %v2901_v26  ;;  %v2914_v53 = vshrl.u32 %v12202_v4, %v8305_v33 }
 0x2f0   :  { %12351 = vst [vmem:[#allocation39_spill] sm:$0xff] %v8305_v33  ;;  %v8340_v9 = vshll.u32 %v12202_v4, %v2901_v26  ;;  %v8344_v45 = vshrl.u32 %v12203_v36, %v8305_v33  ;;  %v3224_v59 = vshrl.u32 %v12202_v4, %v8319_v43  ;;  %v3227_v14 = vshrl.u32 %v12203_v36, %v8319_v43 }
 0x2f1   :  { %12352 = vst [vmem:[#allocation40_spill] sm:$0xff] %v8307_v49  ;;  %v8351_v42 = vsub.s32 32, %v8321_v52  ;;  %vm3673_vm13 = vcmp.gt.s32.totalorder %v3672_v60, 0  ;;  %v6164_v55 = vadd.s32 4294967169, %v3511_v3  ;;  %v3820_v61 = vand.u32 2139095040, %v8327_v24 }
 0x2f2   :  { %12353 = vst [vmem:[#allocation41_spill] sm:$0xff] %v8310_v12  ;;  %v3364_v12 = vsel %vm3363_vm12, %v3362_v1, 0  ;;  %v8354_v26 = vor.u32 %v2905_v8, %v2904_v58  ;;  %vm12072_vm1 = vcmp.lt.s32.totalorder %v8307_v49, 1  ;;  %vm12066_vm3 = vcmp.lt.s32.totalorder %v8307_v49, 4 }
 0x2f3   :  { %12354 = vst [vmem:[#allocation42_spill] sm:$0xff] %v8313_v38  ;;  %v8356_v38 = vor.u32 %v2908_v15, %v2907_v40  ;;  %v8360_v33 = vor.u32 %v2911_v13, %v2910_v11  ;;  %v3223_v5 = vshll.u32 %v12320_v19, %v8296_v21  ;;  %v3226_v1 = vshll.u32 %v12202_v4, %v8296_v21 }
 0x2f4   :  { %12355 = vst [vmem:[#allocation43_spill] sm:$0xff] %v8321_v52  ;;  %v3517_v0 = vadd.s32 1, %v6164_v55  ;;  %v8366_v3 = vor.u32 %v2914_v53, %v2913_v57  ;;  %v3366_v16 = vand.u32 31, %v3364_v12  ;;  %v3674_v58 = vsel %vm3673_vm13, %v3672_v60, 0 }
 0x2f5   :  { %12356 = vst [vmem:[#allocation44_spill] sm:$0xff] %v8323_v50  ;;  %v3821_v8 = vshrl.u32 %v3820_v61, 23  ;;  %v8370_v40 = vor.u32 %v3224_v59, %v3223_v5  ;;  %v3228_v10 = vor.u32 %v3227_v14, %v3226_v1  ;;  %v3069_v11 = vshrl.u32 %v12202_v4, %v8351_v42 }
 0x2f6   :  { %12357 = vst [vmem:[#allocation45_spill] sm:$0xff] %v8327_v24  ;;  %v8378_v13 = vsel %vm12072_vm1, %v8354_v26, %v8356_v38  ;;  %v8380_v55 = vshrl.u32 %v3054_v39, 5  ;;  %v3068_v60 = vshll.u32 %v12320_v19, %v8321_v52  ;;  %v3072_v14 = vshrl.u32 %v12203_v36, %v8351_v42 }
 0x2f7   :  { %12358 = vst [vmem:[#allocation46_spill] sm:$0xff] %v8340_v9  ;;  %v6170_v61 = vadd.s32 4294967169, %v3821_v8  ;;  %v8387_v5 = vand.u32 31, %v3674_v58  ;;  %vm3518_vm8 = vcmp.gt.s32.totalorder %v3517_v0, 0  ;;  %v8392_v53 = vsel %vm12066_vm3, %v8366_v3, 920167782 }
 0x2f8   :  { %12359 = vst [vmem:[#allocation47_spill] sm:$0xff] %v8344_v45  ;;  %vm3232_vm15 = vcmp.lt.s32.totalorder %v8315_v2, 4  ;;  %v8395_v39 = vsub.s32 32, %v3366_v16  ;;  %v8406_v15 = vor.u32 %v3069_v11, %v3068_v60  ;;  %v3071_v57 = vshll.u32 %v12202_v4, %v8321_v52 }
 0x2f9   :  { %12360 = vst [vmem:[#allocation48_spill] sm:$0xff] %v8351_v42  ;;  %v3827_v59 = vadd.s32 1, %v6170_v61  ;;  %v8400_v1 = vsel %vm3232_vm15, %v8370_v40, 920167782  ;;  %v8404_v8 = vsel %vm3232_vm15, %v3228_v10, 1326507024  ;;  %v3369_v9 = vshll.u32 %v12337_v35, %v3366_v16 }
 0x2fa   :  { %12361 = vst [vmem:[#allocation49_spill] sm:$0xff] %v8354_v26  ;;  %vm3077_vm10 = vcmp.lt.s32.totalorder %v8380_v55, 4  ;;  %v8411_v26 = vshrl.u32 %v3364_v12, 5  ;;  %v12371_v61 = vand.u32 2147483647, %v8327_v24  ;;  %v3677_v45 = vsub.s32 32, %v8387_v5 }
 0x2fb   :  { %12362 = vst [vmem:[#allocation50_spill] sm:$0xff] %v8356_v38  ;;  %vm3828_vm0 = vcmp.gt.s32.totalorder %v3827_v59, 0  ;;  %v3372_v10 = vshll.u32 %v12339_v25, %v3366_v16  ;;  %v3375_v11 = vshll.u32 %v12340_v20, %v3366_v16  ;;  %v3379_v60 = vshrl.u32 %v12202_v4, %v8395_v39 }
 0x2fc   :  { %12363 = vst [vmem:[#allocation51_spill] sm:$0xff] %v8360_v33  ;;  %v3382_v12 = vshrl.u32 %v12203_v36, %v8395_v39  ;;  %v3370_v37 = vshrl.u32 %v12339_v25, %v8395_v39  ;;  %v3373_v51 = vshrl.u32 %v12340_v20, %v8395_v39  ;;  %v3829_v30 = vsel %vm3828_vm0, %v3827_v59, 0 }
 0x2fd   :  { %12364 = vst [vmem:[#allocation52_spill] sm:$0xff] %v8366_v3  ;;  %v3824_v3 = vand.u32 8388607, %v12371_v61  ;;  %v3376_v49 = vshrl.u32 %v12320_v19, %v8395_v39  ;;  %v3689_v38 = vshrl.u32 %v12202_v4, %v3677_v45  ;;  %v3692_v33 = vshrl.u32 %v12203_v36, %v3677_v45 }
 0x2fe   :  { %12365 = vst [vmem:[#allocation53_spill] sm:$0xff] %v8378_v13  ;;  %v3519_v13 = vsel %vm3518_vm8, %v3517_v0, 0  ;;  %v8426_v0 = vsel %vm3077_vm10, %v8406_v15, 920167782  ;;  %v3691_v59 = vshll.u32 %v12202_v4, %v8387_v5  ;;  %v8456_v48 = vor.u32 %v3370_v37, %v3369_v9 }
 0x2ff   :  { %12366 = vst [vmem:[#allocation54_spill] sm:$0xff] %v8380_v55  ;;  %v8430_v61 = vand.u32 31, %v3519_v13  ;;  %v3825_v29 = vor.u32 8388608, %v3824_v3  ;;  %v3688_v3 = vshll.u32 %v12320_v19, %v8387_v5  ;;  %v8458_v55 = vor.u32 %v3373_v51, %v3372_v10 }
 0x300   :  { %12367 = vst [vmem:[#allocation55_spill] sm:$0xff] %v8392_v53  ;;  %v3073_v53 = vor.u32 %v3072_v14, %v3071_v57  ;;  %v3378_v57 = vshll.u32 %v12320_v19, %v3366_v16  ;;  %v3381_v14 = vshll.u32 %v12202_v4, %v3366_v16  ;;  %vm3387_vm6 = vcmp.lt.s32.totalorder %v8411_v26, 4 }
 0x301   :  { %12368 = vst [vmem:[#allocation56_spill] sm:$0xff] %v8395_v39  ;;  %v8454_v39 = vsub.s32 32, %v8430_v61  ;;  %v3533_v37 = vshll.u32 %v12320_v19, %v8430_v61  ;;  %v8489_v9 = vshll.u32 %v12202_v4, %v8430_v61  ;;  %v3683_v10 = vshrl.u32 %v12340_v20, %v3677_v45 }
 0x302   :  { %12369 = vst [vmem:[#allocation57_spill] sm:$0xff] %v8406_v15  ;;  %v8443_v16 = vsel %vm3077_vm10, %v3073_v53, 1326507024  ;;  %v8445_v24 = vor.u32 %v3379_v60, %v3378_v57  ;;  %v3383_v50 = vor.u32 %v3382_v12, %v3381_v14  ;;  %v3831_v15 = vand.u32 31, %v3829_v30 }
 0x303   :  { %12370 = vst [vmem:[#allocation58_spill] sm:$0xff] %v8411_v26  ;;  %v8461_v53 = vshll.u32 %v3825_v29, 8  ;;  %v3690_v60 = vor.u32 %v3689_v38, %v3688_v3  ;;  %v3693_v12 = vor.u32 %v3692_v33, %v3691_v59  ;;  %v12380_v57 = vand.u32 2147483647, %v8228_v31 }
 0x304   :  { %12372 = vst [vmem:[#allocation59_spill] sm:$0xff] %v8426_v0  ;;  %v8447_v0 = vshrl.u32 %v3674_v58, 5  ;;  %v8463_v58 = vor.u32 %v3376_v49, %v3375_v11  ;;  %v8474_v51 = vsel %vm3387_vm6, %v3383_v50, 1326507024  ;;  %v8477_v29 = vshrl.u32 %v3519_v13, 5 }
 0x305   :  { %12373 = vst [vmem:[#allocation60_spill] sm:$0xff] %v8430_v61  ;;  %v3669_v14 = vand.u32 8388607, %v12380_v57  ;;  %v3534_v33 = vshrl.u32 %v12202_v4, %v8454_v39  ;;  %v8485_v49 = vshrl.u32 %v12203_v36, %v8454_v39  ;;  %v3832_v38 = vsub.s32 32, %v3831_v15 }
 0x306   :  { %12374 = vst [vmem:[#allocation61_spill] sm:$0xff] %v8443_v16  ;;  %v8470_v16 = vsel %vm3387_vm6, %v8445_v24, 920167782  ;;  %vm3697_vm2 = vcmp.lt.s32.totalorder %v8447_v0, 4  ;;  %v8492_v50 = vand.u32 65535, %v8461_v53  ;;  %v3680_v13 = vshrl.u32 %v12339_v25, %v3677_v45 }
 0x307   :  { %12375 = vst [vmem:[#allocation62_spill] sm:$0xff] %v8445_v24  ;;  %v3703_v11 = vsel %vm3697_vm2, %v3690_v60, 920167782  ;;  %v3707_v3 = vsel %vm3697_vm2, %v3693_v12, 1326507024  ;;  %v8501_v59 = vshrl.u32 %v8461_v53, 16  ;;  %v3685_v24 = vshll.u32 %v12340_v20, %v8387_v5 }
 0x308   :  { %12376 = vst [vmem:[#allocation63_spill] sm:$0xff] %v8454_v39  ;;  %v3670_v57 = vor.u32 8388608, %v3669_v14  ;;  %v8516_v14 = vshrl.u32 %v12337_v35, %v3677_v45  ;;  %vm3542_vm9 = vcmp.lt.s32.totalorder %v8477_v29, 4  ;;  %v8519_v26 = vshrl.u32 %v3829_v30, 5 }
 0x309   :  { %12377 = vst [vmem:[#allocation64_spill] sm:$0xff] %v8456_v48  ;;  %v3682_v48 = vshll.u32 %v12339_v25, %v8387_v5  ;;  %v3838_v12 = vshrl.u32 %v12340_v20, %v3832_v38  ;;  %v3840_v63 = vshll.u32 %v12340_v20, %v3831_v15  ;;  %v3843_v23 = vshll.u32 %v12320_v19, %v3831_v15 }
 0x30a   :  { %12378 = vst [vmem:[#allocation65_spill] sm:$0xff] %v8458_v55  ;;  %v8510_v55 = vor.u32 %v3534_v33, %v3533_v37  ;;  %v3834_v37 = vshll.u32 %v12337_v35, %v3831_v15  ;;  %v3835_v33 = vshrl.u32 %v12339_v25, %v3832_v38  ;;  %v3844_v30 = vshrl.u32 %v12202_v4, %v3832_v38 }
 0x30b   :  { %12379 = vst [vmem:[#allocation66_spill] sm:$0xff] %v8463_v58  ;;  %v3841_v58 = vshrl.u32 %v12320_v19, %v3832_v38  ;;  %v8523_v42 = vor.u32 %v3683_v10, %v3682_v48  ;;  %v3833_v48 = vshrl.u32 %v12337_v35, %v3832_v38  ;;  %vm3694_vm12 = vcmp.lt.s32.totalorder %v8447_v0, 1 }
 0x30c   :  { %12381 = vst [vmem:[#allocation67_spill] sm:$0xff] %v8470_v16  ;;  %v3679_v16 = vshll.u32 %v12337_v35, %v8387_v5  ;;  %vm3696_vm13 = vcmp.lt.s32.totalorder %v8447_v0, 3  ;;  %vm3695_vm8 = vcmp.lt.s32.totalorder %v8447_v0, 2  ;;  %v3847_v10 = vshrl.u32 %v12203_v36, %v3832_v38 }
 0x30d   :  { %12382 = vst [vmem:[#allocation68_spill] sm:$0xff] %v8474_v51  ;;  %v3686_v51 = vshrl.u32 %v12320_v19, %v3677_v45  ;;  %v3837_v45 = vshll.u32 %v12339_v25, %v3831_v15  ;;  %v3845_v28 = vor.u32 %v3844_v30, %v3843_v23  ;;  %vm3852_vm0 = vcmp.lt.s32.totalorder %v8519_v26, 4 }
 0x30e   :  { %12383 = vst [vmem:[#allocation69_spill] sm:$0xff] %v8492_v50  ;;  %v8521_v52 = vor.u32 %v3680_v13, %v3679_v16  ;;  %v3846_v16 = vshll.u32 %v12202_v4, %v3831_v15  ;;  %v8534_v13 = vor.u32 %v3841_v58, %v3840_v63  ;;  %v3836_v63 = vor.u32 %v3835_v33, %v3834_v37 }
 0x30f   :  { %12384 = vst [vmem:[#allocation70_spill] sm:$0xff] %v8501_v59  ;;  %v3687_v5 = vor.u32 %v3686_v51, %v3685_v24  ;;  %v3839_v58 = vor.u32 %v3838_v12, %v3837_v45  ;;  %v3708_v47 = vsel %vm3696_vm13, %v3690_v60, %v3707_v3  ;;  %v8554_v59 = vshll.u32 %v3670_v57, 8 }
 0x310   :  { %12385 = vst [vmem:[#allocation71_spill] sm:$0xff] %v8510_v55  ;;  %v3702_v24 = vsel %vm3694_vm12, %v8521_v52, %v8523_v42  ;;  %v8566_v60 = vsel %vm3542_vm9, %v8510_v55, 920167782  ;;  %v3848_v3 = vor.u32 %v3847_v10, %v3846_v16  ;;  %vm3849_vm5 = vcmp.lt.s32.totalorder %v8519_v26, 1 }
 0x311   :  { %v3704_v51 = vsel %vm3696_vm13, %v3687_v5, %v3703_v11  ;;  %v3706_v15 = vsel %vm3694_vm12, %v8523_v42, %v3687_v5  ;;  %v3854_v11 = vsel %vm3852_vm0, %v8534_v13, 2102212464  ;;  %v3711_v33 = vand.u32 65535, %v8554_v59  ;;  %12386 = vst [vmem:[#allocation72_spill] sm:$0xff] %v8566_v60 }
 0x312   :  { %v3705_v4 = vsel %vm3695_vm8, %v3702_v24, %v3704_v51  ;;  %v3709_v12 = vsel %vm3695_vm8, %v3706_v15, %v3708_v47  ;;  %v3712_v23 = vshrl.u32 %v8554_v59, 16  ;;  %vm3851_vm11 = vcmp.lt.s32.totalorder %v8519_v26, 3 }
 0x313   :  { %v3735_v37 = vand.u32 65535, %v3705_v4  ;;  %v3736_v38 = vshrl.u32 %v3705_v4, 16  ;;  %v3713_v45 = vand.u32 65535, %v3709_v12  ;;  %v3714_v30 = vshrl.u32 %v3709_v12, 16 }
 0x314   :  { %v3853_v57 = vsel %vm3849_vm5, %v3833_v48, %v3836_v63  ;;  %v3857_v47 = vsel %vm3849_vm5, %v3836_v63, %v3839_v58  ;;  %v3855_v51 = vsel %vm3851_vm11, %v3839_v58, %v3854_v11  ;;  %v3861_v15 = vsel %vm3849_vm5, %v3839_v58, %v8534_v13 }
 0x315   :  { %v3716_v24 = vmul.u32 %v3714_v30, %v3711_v33  ;;  %v3717_v4 = vmul.u32 %v3713_v45, %v3712_v23  ;;  %v3738_v12 = vmul.u32 %v3736_v38, %v3711_v33  ;;  %v3739_v36 = vmul.u32 %v3735_v37, %v3712_v23 }
 0x316   :  { %v3858_v62 = vsel %vm3852_vm0, %v3845_v28, 920167782  ;;  %v3699_v16 = vsel %vm3697_vm2, %v3687_v5, 2102212464  ;;  %v3715_v10 = vmul.u32 %v3713_v45, %v3711_v33  ;;  %v3718_v7 = vmul.u32 %v3714_v30, %v3712_v23 }
 0x317   :  { %v3719_v32 = vshll.u32 %v3716_v24, 16  ;;  %v3737_v48 = vmul.u32 %v3735_v37, %v3711_v33  ;;  %v3740_v63 = vmul.u32 %v3736_v38, %v3712_v23  ;;  %v3741_v50 = vshll.u32 %v3738_v12, 16 }
 0x318   :  { %v3721_v18 = vshll.u32 %v3717_v4, 16  ;;  %v3743_v11 = vshll.u32 %v3739_v36, 16  ;;  %v3197_v61 = vand.u32 2147483647, %v8140_v17  ;;  %v3862_v39 = vsel %vm3852_vm0, %v3848_v3, 1326507024 }
 0x319   :  { %vm3723_vm3 = vc.u32 %v3715_v10, %v3719_v32  ;;  %v3725_v60 = vadd.s32 %v3719_v32, %v3715_v10  ;;  %vm3745_vm5 = vc.u32 %v3737_v48, %v3741_v50  ;;  %v3747_v55 = vadd.s32 %v3741_v50, %v3737_v48 }
 0x31a   :  { %v3724_v58 = vsel %vm3723_vm3, 1, %v12221_v6  ;;  %v3746_v45 = vsel %vm3745_vm5, 1, %v12221_v6  ;;  %v3698_v37 = vsel %vm3694_vm12, %v8516_v14, %v8521_v52  ;;  %v3700_v50 = vsel %vm3696_vm13, %v8523_v42, %v3699_v16 }
 0x31b   :  { %v3726_v5 = vadd.s32 %v3724_v58, %v3718_v7  ;;  %vm3727_vm2 = vc.u32 %v3725_v60, %v3721_v18  ;;  %v3748_v38 = vadd.s32 %v3746_v45, %v3740_v63  ;;  %vm3749_vm3 = vc.u32 %v3747_v55, %v3743_v11 }
 0x31c   :  { %v3728_v32 = vsel %vm3727_vm2, 1, %v12221_v6  ;;  %v3720_v33 = vshrl.u32 %v3716_v24, 16  ;;  %v3750_v7 = vsel %vm3749_vm3, 1, %v12221_v6  ;;  %v3859_v18 = vsel %vm3851_vm11, %v8534_v13, %v3858_v62 }
 0x31d   :  { %v3730_v23 = vadd.s32 %v3728_v32, %v3726_v5  ;;  %v3742_v30 = vshrl.u32 %v3738_v12, 16  ;;  %v3752_v60 = vadd.s32 %v3750_v7, %v3748_v38  ;;  %v3204_v52 = vand.u32 8388607, %v3197_v61 }
 0x31e   :  { %v3863_v14 = vsel %vm3851_vm11, %v3845_v28, %v3862_v39  ;;  %v3722_v3 = vshrl.u32 %v3717_v4, 16  ;;  %v2732_v42 = vand.u32 2147483647, %v8112_v41  ;;  %vm3850_vm12 = vcmp.lt.s32.totalorder %v8519_v26, 2 }
 0x31f   :  { %v3731_v10 = vadd.s32 %v3730_v23, %v3720_v33  ;;  %v3701_v24 = vsel %vm3695_vm8, %v3698_v37, %v3700_v50  ;;  %v3744_v16 = vshrl.u32 %v3739_v36, 16  ;;  %v3753_v48 = vadd.s32 %v3752_v60, %v3742_v30 }
 0x320   :  { %v12387_v62 = vor.u32 %v8485_v49, %v8489_v9  ;;  %v8609_v12 = vsel %vm3850_vm12, %v3853_v57, %v3855_v51  ;;  %v3751_v39 = vadd.s32 %v3747_v55, %v3743_v11  ;;  %v8611_v4 = vsel %vm3850_vm12, %v3857_v47, %v3859_v18 }
 0x321   :  { %v3732_v28 = vadd.s32 %v3731_v10, %v3722_v3  ;;  %v8613_v63 = vsel %vm3850_vm12, %v3861_v15, %v3863_v14  ;;  %v3754_v26 = vadd.s32 %v3753_v48, %v3744_v16  ;;  %v3205_v0 = vor.u32 8388608, %v3204_v52 }
 0x322   :  { %v8607_v13 = vsel %vm3542_vm9, %v12387_v62, 1326507024  ;;  %v3755_v36 = vmul.u32 %v8554_v59, %v3701_v24  ;;  %v8618_v49 = vand.u32 8388607, %v2732_v42  ;;  %v2750_v9 = vshrl.u32 %v12339_v25, %v8169_v34 }
 0x323   :  { %vm3757_vm11 = vc.u32 %v3732_v28, %v3751_v39  ;;  %v3758_v57 = vadd.s32 1, %v3754_v26  ;;  %v3214_v55 = vshll.u32 %v12337_v35, %v8296_v21  ;;  %v3217_v47 = vshll.u32 %v12339_v25, %v8296_v21 }
 0x324   :  { %v2753_v51 = vshrl.u32 %v12340_v20, %v8169_v34  ;;  %v3215_v59 = vshrl.u32 %v12339_v25, %v8319_v43  ;;  %v3218_v15 = vshrl.u32 %v12340_v20, %v8319_v43  ;;  %v3220_v11 = vshll.u32 %v12340_v20, %v8296_v21 }
 0x325   :  { %v3221_v58 = vshrl.u32 %v12320_v19, %v8319_v43  ;;  %v3759_v5 = vsel %vm3757_vm11, %v3758_v57, %v3754_v26  ;;  %v8636_v45 = vshll.u32 %v3205_v0, 8  ;;  %v2749_v37 = vshll.u32 %v12337_v35, %v8146_v46 }
 0x326   :  { %v2752_v32 = vshll.u32 %v12339_v25, %v8146_v46  ;;  %v3760_v38 = vadd.s32 %v3759_v5, %v3755_v36  ;;  %v8642_v50 = vor.u32 %v3215_v59, %v3214_v55  ;;  %v8644_v33 = vor.u32 %v3218_v15, %v3217_v47 }
 0x327   :  { %v3222_v23 = vor.u32 %v3221_v58, %v3220_v11  ;;  %vm3229_vm13 = vcmp.lt.s32.totalorder %v8315_v2, 1  ;;  %v2740_v21 = vor.u32 8388608, %v8618_v49  ;;  %v8648_v7 = vor.u32 %v2750_v9, %v2749_v37 }
 0x328   :  { %v2756_v18 = vshrl.u32 %v12320_v19, %v8169_v34  ;;  %v3761_v30 = vadd.s32 536870912, %v3760_v38  ;;  %vm3231_vm8 = vcmp.lt.s32.totalorder %v8315_v2, 3  ;;  %v3237_v60 = vsel %vm3229_vm13, %v8642_v50, %v8644_v33 }
 0x329   :  { %v8657_v52 = vor.u32 %v2753_v51, %v2752_v32  ;;  %vm3230_vm0 = vcmp.lt.s32.totalorder %v8315_v2, 2  ;;  %v3239_v14 = vsel %vm3231_vm8, %v3222_v23, %v8400_v1  ;;  %v3241_v3 = vsel %vm3229_vm13, %v8644_v33, %v3222_v23 }
 0x32a   :  { %v3243_v10 = vsel %vm3231_vm8, %v8370_v40, %v8404_v8  ;;  %v8670_v24 = vshrl.u32 %v3761_v30, 30  ;;  %v3240_v16 = vsel %vm3230_vm0, %v3237_v60, %v3239_v14  ;;  %v3246_v62 = vand.u32 65535, %v8636_v45 }
 0x32b   :  { %v3244_v48 = vsel %vm3230_vm0, %v3241_v3, %v3243_v10  ;;  %v3247_v1 = vshrl.u32 %v8636_v45, 16  ;;  %v3271_v36 = vshrl.u32 %v3240_v16, 16  ;;  %v3270_v57 = vand.u32 65535, %v3240_v16 }
 0x32c   :  { %v3248_v26 = vand.u32 65535, %v3244_v48  ;;  %v3249_v0 = vshrl.u32 %v3244_v48, 16  ;;  %v3763_v9 = vshll.u32 %v8670_v24, 30  ;;  %v2755_v40 = vshll.u32 %v12340_v20, %v8146_v46 }
 0x32d   :  { %vm2764_vm5 = vcmp.lt.s32.totalorder %v8194_v54, 1  ;;  %v3756_v8 = vadd.s32 %v3751_v39, %v3732_v28  ;;  %vm2766_vm2 = vcmp.lt.s32.totalorder %v8194_v54, 3  ;;  %v3213_v59 = vshrl.u32 %v12337_v35, %v8319_v43 }
 0x32e   :  { %v3251_v55 = vmul.u32 %v3249_v0, %v3246_v62  ;;  %v3252_v47 = vmul.u32 %v3248_v26, %v3247_v1  ;;  %v8683_v51 = vsub.s32 %v3760_v38, %v3763_v9  ;;  %v3273_v15 = vmul.u32 %v3271_v36, %v3246_v62 }
 0x32f   :  { %v8687_v11 = vor.u32 %v2756_v18, %v2755_v40  ;;  %v3250_v58 = vmul.u32 %v3248_v26, %v3246_v62  ;;  %v2772_v46 = vsel %vm2764_vm5, %v8648_v7, %v8657_v52  ;;  %v2778_v28 = vsel %vm2766_vm2, %v8215_v27, %v8251_v56 }
 0x330   :  { %v3254_v5 = vshll.u32 %v3251_v55, 16  ;;  %vm3765_vm3 = vcmp.lt.s32.totalorder %v8683_v51, 0  ;;  %v3766_v39 = vsub.s32 0, %v8683_v51  ;;  %v3253_v43 = vmul.u32 %v3249_v0, %v3247_v1 }
 0x331   :  { %v3274_v37 = vmul.u32 %v3270_v57, %v3247_v1  ;;  %v3256_v32 = vshll.u32 %v3252_v47, 16  ;;  %v3276_v18 = vshll.u32 %v3273_v15, 16  ;;  %v3234_v60 = vsel %vm3232_vm15, %v3222_v23, 2102212464 }
 0x332   :  { %vm3258_vm12 = vc.u32 %v3250_v58, %v3254_v5  ;;  %v3260_v38 = vadd.s32 %v3254_v5, %v3250_v58  ;;  %v3767_v30 = vsel %vm3765_vm3, %v3766_v39, %v8683_v51  ;;  %v3272_v3 = vmul.u32 %v3270_v57, %v3246_v62 }
 0x333   :  { %v3259_v14 = vsel %vm3258_vm12, 1, %v12221_v6  ;;  %vm2765_vm11 = vcmp.lt.s32.totalorder %v8194_v54, 2  ;;  %v3768_v27 = vclz %v3767_v30  ;;  %v3275_v10 = vmul.u32 %v3271_v36, %v3247_v1 }
 0x334   :  { %v3261_v56 = vadd.s32 %v3259_v14, %v3253_v43  ;;  %vm3262_vm1 = vc.u32 %v3260_v38, %v3256_v32  ;;  %v3278_v48 = vshll.u32 %v3274_v37, 16  ;;  %vm3280_vm4 = vc.u32 %v3272_v3, %v3276_v18 }
 0x335   :  { %v3263_v16 = vsel %vm3262_vm1, 1, %v12221_v6  ;;  %v3282_v26 = vadd.s32 %v3276_v18, %v3272_v3  ;;  %v6168_v0 = vadd.s32 4294967294, %v3768_v27  ;;  %v3255_v9 = vshrl.u32 %v3251_v55, 16 }
 0x336   :  { %v3265_v40 = vadd.s32 %v3263_v16, %v3261_v56  ;;  %v3281_v58 = vsel %vm3280_vm4, 1, %v12221_v6  ;;  %v3233_v23 = vsel %vm3229_vm13, %v3213_v59, %v8642_v50  ;;  %v3235_v62 = vsel %vm3231_vm8, %v8644_v33, %v3234_v60 }
 0x337   :  { %v3283_v57 = vadd.s32 %v3281_v58, %v3275_v10  ;;  %vm3284_vm15 = vc.u32 %v3282_v26, %v3278_v48  ;;  %vm3664_vm1 = vcmp.lt.s32.totalorder %v8228_v31, 0  ;;  %vm6169_vm3 = vcmp.lt.s32.totalorder %v6168_v0, 0 }
 0x338   :  { %v3257_v1 = vshrl.u32 %v3252_v47, 16  ;;  %v3266_v36 = vadd.s32 %v3265_v40, %v3255_v9  ;;  %v3285_v55 = vsel %vm3284_vm15, 1, %v12221_v6  ;;  %v3771_v5 = vsel %vm6169_vm3, 0, %v6168_v0 }
 0x339   :  { %v3277_v39 = vshrl.u32 %v3273_v15, 16  ;;  %v3287_v43 = vadd.s32 %v3285_v55, %v3283_v57  ;;  %v2776_v50 = vsel %vm2764_vm5, %v8657_v52, %v8687_v11  ;;  %v3772_v59 = vsub.s32 32, %v3771_v5 }
 0x33a   :  { %v3776_v32 = vsub.s32 4294967266, %v3771_v5  ;;  %v3279_v33 = vshrl.u32 %v3274_v37, 16  ;;  %v2774_v38 = vsel %vm2766_vm2, %v8687_v11, %v8241_v44  ;;  %v12388_v47 = vand.u32 2147483647, %v8228_v31 }
 0x33b   :  { %v8728_v15 = vadd.s32 %v3266_v36, %v3257_v1  ;;  %v8730_v30 = vadd.s32 %v3282_v26, %v3278_v48  ;;  %v3288_v60 = vadd.s32 %v3287_v43, %v3277_v39  ;;  %v8734_v14 = vshll.u32 %v2740_v21, 8 }
 0x33c   :  { %vm8724_vm4 = vcmp.le.f32.partialorder %v12388_v47, 0.7853982  ;;  %v3773_v37 = vshll.u32 %v8683_v51, %v3771_v5  ;;  %v3774_v3 = vshrl.u32 %v3756_v8, %v3772_v59  ;;  %v3777_v27 = vadd.s32 127, %v3776_v32 }
 0x33d   :  { %v2779_v44 = vsel %vm2765_vm11, %v2776_v50, %v2778_v28  ;;  %v3786_v56 = vsub.s32 4, %v8670_v24  ;;  %v3236_v10 = vsel %vm3230_vm0, %v3233_v23, %v3235_v62  ;;  %v3289_v16 = vadd.s32 %v3288_v60, %v3279_v33 }
 0x33e   :  { %v2775_v48 = vsel %vm2765_vm11, %v2772_v46, %v2774_v38  ;;  %v3775_v26 = vor.u32 %v3774_v3, %v3773_v37  ;;  %v3778_v49 = vshll.u32 %v3777_v27, 23  ;;  %vm3292_vm13 = vc.u32 %v8728_v15, %v8730_v30 }
 0x33f   :  { %v2781_v21 = vand.u32 65535, %v8734_v14  ;;  %v3293_v8 = vadd.s32 1, %v3289_v16  ;;  %v2782_v51 = vshrl.u32 %v8734_v14, 16  ;;  %v2783_v28 = vand.u32 65535, %v2779_v44 }
 0x340   :  { %v2784_v0 = vshrl.u32 %v2779_v44, 16  ;;  %v3910_v2 = vmul.u32 %v8461_v53, %v8609_v12  ;;  %v3779_v9 = vor.u32 4788187, %v3778_v49  ;;  %v3290_v40 = vmul.u32 %v8636_v45, %v3236_v10 }
 0x341   :  { %v2806_v58 = vshrl.u32 %v2775_v48, 16  ;;  %v3787_v46 = vsel %vm3664_vm1, %v3786_v56, %v8670_v24  ;;  %v3294_v23 = vsel %vm3292_vm13, %v3293_v8, %v3289_v16  ;;  %v8754_v57 = vmul.u32 %v2783_v28, %v2782_v51 }
 0x342   :  { %v2786_v62 = vmul.u32 %v2784_v0, %v2781_v21  ;;  %v3868_v1 = vand.u32 65535, %v8613_v63  ;;  %v3780_v36 = vand.u32 2147483647, %v3779_v9  ;;  %v3782_v55 = vcvt.s32.f32 %v3775_v26 }
 0x343   :  { %v3295_v5 = vadd.s32 %v3294_v23, %v3290_v40  ;;  %v2748_v39 = vshrl.u32 %v12337_v35, %v8169_v34  ;;  %v2785_v43 = vmul.u32 %v2783_v28, %v2781_v21  ;;  %v2805_v45 = vand.u32 65535, %v2775_v48 }
 0x344   :  { %v2789_v50 = vshll.u32 %v2786_v62, 16  ;;  %v3783_v59 = vmul.f32 %v3782_v55, %v3780_v36  ;;  %v3789_v32 = vsel %vm8724_vm4, 0, %v3787_v46  ;;  %v2808_v33 = vmul.u32 %v2806_v58, %v2781_v21 }
 0x345   :  { %v3296_v24 = vadd.s32 536870912, %v3295_v5  ;;  %v2788_v38 = vmul.u32 %v2784_v0, %v2782_v51  ;;  %v2791_v47 = vshll.u32 %v8754_v57, 16  ;;  %v2807_v56 = vmul.u32 %v2805_v45, %v2781_v21 }
 0x346   :  { %vm2793_vm8 = vc.u32 %v2785_v43, %v2789_v50  ;;  %v2795_v60 = vadd.s32 %v2789_v50, %v2785_v43  ;;  %v3784_v37 = vxor.u32 2147483648, %v3783_v59  ;;  %v2811_v34 = vshll.u32 %v2808_v33, 16 }
 0x347   :  { %v8762_v3 = vshrl.u32 %v3296_v24, 30  ;;  %v2794_v27 = vsel %vm2793_vm8, 1, %v12221_v6  ;;  %v2809_v10 = vmul.u32 %v2805_v45, %v2782_v51  ;;  %v2769_v26 = vsel %vm2767_vm7, %v8687_v11, 2102212464 }
 0x348   :  { %v2796_v44 = vadd.s32 %v2794_v27, %v2788_v38  ;;  %vm2797_vm0 = vc.u32 %v2795_v60, %v2791_v47  ;;  %v3785_v16 = vsel %vm3664_vm1, %v3784_v37, %v3783_v59  ;;  %v2810_v0 = vmul.u32 %v2806_v58, %v2782_v51 }
 0x349   :  { %v3298_v48 = vshll.u32 %v8762_v3, 30  ;;  %v2798_v49 = vsel %vm2797_vm0, 1, %v12221_v6  ;;  %v8775_v8 = vsel %vm8724_vm4, %v8228_v31, %v3785_v16  ;;  %vm2815_vm12 = vc.u32 %v2807_v56, %v2811_v34 }
 0x34a   :  { %v2800_v28 = vadd.s32 %v2798_v49, %v2796_v44  ;;  %v3790_v21 = vmul.f32 %v8775_v8, %v8775_v8  ;;  %v3806_v9 = vadd.s32 3, %v3789_v32  ;;  %v2816_v46 = vsel %vm2815_vm12, 1, %v12221_v6 }
 0x34b   :  { %v8779_v40 = vsub.s32 %v3295_v5, %v3298_v48  ;;  %v2790_v23 = vshrl.u32 %v2786_v62, 16  ;;  %v2813_v11 = vshll.u32 %v2809_v10, 16  ;;  %v2817_v36 = vadd.s32 %v2811_v34, %v2807_v56 }
 0x34c   :  { %v2818_v55 = vadd.s32 %v2816_v46, %v2810_v0  ;;  %v3791_v43 = vmul.f32 -0.001358992, %v3790_v21  ;;  %v3798_v50 = vmul.f32 -0.00019511016, %v3790_v21  ;;  %vm3199_vm7 = vcmp.lt.s32.totalorder %v8140_v17, 0 }
 0x34d   :  { %vm3300_vm15 = vcmp.lt.s32.totalorder %v8779_v40, 0  ;;  %v3301_v18 = vsub.s32 0, %v8779_v40  ;;  %v2768_v51 = vsel %vm2764_vm5, %v2748_v39, %v8648_v7  ;;  %v2770_v58 = vsel %vm2766_vm2, %v8657_v52, %v2769_v26 }
 0x34e   :  { %v2801_v62 = vadd.s32 %v2800_v28, %v2790_v23  ;;  %vm2819_vm1 = vc.u32 %v2817_v36, %v2813_v11  ;;  %v3792_v5 = vadd.f32 0.041655596, %v3791_v43  ;;  %v3799_v45 = vadd.f32 0.008332121, %v3798_v50 }
 0x34f   :  { %v3302_v59 = vsel %vm3300_vm15, %v3301_v18, %v8779_v40  ;;  %v2820_v32 = vsel %vm2819_vm1, 1, %v12221_v6  ;;  %v3807_v24 = vand.u32 3, %v3806_v9  ;;  %v2792_v47 = vshrl.u32 %v8754_v57, 16 }
 0x350   :  { %v3303_v38 = vclz %v3302_v59  ;;  %v2822_v60 = vadd.s32 %v2820_v32, %v2818_v55  ;;  %v3793_v37 = vmul.f32 %v3792_v5, %v3790_v21  ;;  %v3800_v27 = vmul.f32 %v3799_v45, %v3790_v21 }
 0x351   :  { %vm8796_vm5 = vcmp.le.f32.partialorder %v3197_v61, 0.7853982  ;;  %v2771_v52 = vsel %vm2765_vm11, %v2768_v51, %v2770_v58  ;;  %v2812_v39 = vshrl.u32 %v2808_v33, 16  ;;  %v3321_v44 = vsub.s32 4, %v8762_v3 }
 0x352   :  { %v6159_v34 = vadd.s32 4294967294, %v3303_v38  ;;  %v8803_v56 = vadd.s32 %v2801_v62, %v2792_v47  ;;  %v2814_v16 = vshrl.u32 %v2809_v10, 16  ;;  %v3794_v57 = vadd.f32 -0.4999988, %v3793_v37  ;;  %v12393_v62 = vld [vmem:[#allocation63_spill] sm:$0xff] }
 0x353   :  { %v3801_v48 = vadd.f32 -0.16666654, %v3800_v27  ;;  %v2823_v26 = vadd.s32 %v2822_v60, %v2812_v39  ;;  %v3507_v49 = vand.u32 2147483647, %v8276_v22  ;;  %vm3809_vm2 = vcmp.eq.s32.totalorder %v3807_v24, 0  ;;  %v12394_v60 = vld [vmem:[#allocation60_spill] sm:$0xff] }
 0x354   :  { %vm3812_vm3 = vcmp.eq.s32.totalorder %v3807_v24, 2  ;;  %v3291_v61 = vadd.s32 %v8730_v30, %v8728_v15  ;;  %vm6160_vm4 = vcmp.lt.s32.totalorder %v6159_v34, 0  ;;  %v2821_v54 = vadd.s32 %v2817_v36, %v2813_v11 }
 0x355   :  { %v3795_v28 = vmul.f32 %v3794_v57, %v3790_v21  ;;  %v3802_v33 = vmul.f32 %v3801_v48, %v3790_v21  ;;  %vm3808_vm11 = vcmp.lt.s32.totalorder %v3807_v24, 2  ;;  %v3306_v0 = vsel %vm6160_vm4, 0, %v6159_v34  ;;  %v12395_v24 = vld [vmem:[#allocation71_spill] sm:$0xff] }
 0x356   :  { %v2824_v9 = vadd.s32 %v2823_v26, %v2814_v16  ;;  %vm3805_vm13 = vweird.f32 %v8228_v31  ;;  %v3307_v10 = vsub.s32 32, %v3306_v0  ;;  %v3311_v46 = vsub.s32 4294967266, %v3306_v0 }
 0x357   :  { %v3322_v23 = vsel %vm3199_vm7, %v3321_v44, %v8762_v3  ;;  %vm2827_vm8 = vc.u32 %v8803_v56, %v2821_v54  ;;  %v3796_v55 = vadd.f32 1.0, %v3795_v28  ;;  %v3803_v43 = vadd.f32 1.0, %v3802_v33 }
 0x358   :  { %v2828_v15 = vadd.s32 1, %v2824_v9  ;;  %v3514_v30 = vand.u32 8388607, %v3507_v49  ;;  %v3308_v21 = vshll.u32 %v8779_v40, %v3306_v0  ;;  %v3309_v11 = vshrl.u32 %v3291_v61, %v3307_v10 }
 0x359   :  { %v3312_v36 = vadd.s32 127, %v3311_v46  ;;  %v2825_v50 = vmul.u32 %v8734_v14, %v2771_v52  ;;  %v3804_v18 = vmul.f32 %v3803_v43, %v8775_v8  ;;  %v3813_v51 = vxor.u32 2147483648, %v3796_v55 }
 0x35a   :  { %v2829_v58 = vsel %vm2827_vm8, %v2828_v15, %v2824_v9  ;;  %v3528_v3 = vshrl.u32 %v12340_v20, %v12393_v62  ;;  %v3310_v5 = vor.u32 %v3309_v11, %v3308_v21  ;;  %v3324_v59 = vsel %vm8796_vm5, 0, %v3322_v23 }
 0x35b   :  { %v3313_v45 = vshll.u32 %v3312_v36, 23  ;;  %v2830_v32 = vadd.s32 %v2829_v58, %v2825_v50  ;;  %v3810_v38 = vxor.u32 2147483648, %v3804_v18  ;;  %v3515_v47 = vor.u32 8388608, %v3514_v30 }
 0x35c   :  { %v3525_v40 = vshrl.u32 %v12339_v25, %v12393_v62  ;;  %v3527_v14 = vshll.u32 %v12339_v25, %v12394_v60  ;;  %v3530_v27 = vshll.u32 %v12340_v20, %v12394_v60  ;;  %v3531_v52 = vshrl.u32 %v12320_v19, %v12393_v62 }
 0x35d   :  { %v3314_v8 = vor.u32 4788187, %v3313_v45  ;;  %v2831_v37 = vadd.s32 536870912, %v2830_v32  ;;  %v3811_v39 = vsel %vm3809_vm2, %v3796_v55, %v3810_v38  ;;  %v3814_v34 = vsel %vm3812_vm3, %v3813_v51, %v3804_v18 }
 0x35e   :  { %v3317_v44 = vcvt.s32.f32 %v3310_v5  ;;  %v8832_v16 = vor.u32 %v3528_v3, %v3527_v14  ;;  %v3815_v57 = vsel %vm3808_vm11, %v3811_v39, %v3814_v34  ;;  %v3532_v61 = vor.u32 %v3531_v52, %v3530_v27 }
 0x35f   :  { %v3315_v48 = vand.u32 2147483647, %v3314_v8  ;;  %v8835_v26 = vshrl.u32 %v2831_v37, 30  ;;  %v3816_v28 = vsel %vm3805_vm13, nan, %v3815_v57  ;;  %v3341_v33 = vadd.s32 3, %v3324_v59 }
 0x360   :  { %v3524_v0 = vshll.u32 %v12337_v35, %v12394_v60  ;;  %vm3541_vm0 = vcmp.lt.s32.totalorder %v8477_v29, 3  ;;  %4045 = vmatpush.msrb.mxu3 %v3816_v28  ;;  %vm3539_vm12 = vcmp.lt.s32.totalorder %v8477_v29, 1  ;;  %v3869_v31 = vshrl.u32 %v8613_v63, 16 }
 0x361   :  { %v3318_v9 = vmul.f32 %v3317_v44, %v3315_v48  ;;  %v2833_v10 = vshll.u32 %v8835_v26, 30  ;;  %v3553_v46 = vsel %vm3541_vm0, %v12395_v24, %v8607_v13  ;;  %v3890_v23 = vand.u32 65535, %v8611_v4 }
 0x362   :  { %v3551_v55 = vsel %vm3539_vm12, %v8832_v16, %v3532_v61  ;;  %v8853_v43 = vshll.u32 %v3515_v47, 8  ;;  %v3526_v21 = vor.u32 %v3525_v40, %v3524_v0  ;;  %vm3540_vm15 = vcmp.lt.s32.totalorder %v8477_v29, 2  ;;  %v12396_v47 = vld [vmem:[#allocation72_spill] sm:$0xff] }
 0x363   :  { %v3319_v15 = vxor.u32 2147483648, %v3318_v9  ;;  %v8855_v30 = vsub.s32 %v2830_v32, %v2833_v10  ;;  %v3891_v11 = vshrl.u32 %v8611_v4, 16  ;;  %v8859_v36 = vand.u32 3, %v3341_v33 }
 0x364   :  { %v2826_v13 = vadd.s32 %v2821_v54, %v8803_v56  ;;  %v3554_v50 = vsel %vm3540_vm15, %v3551_v55, %v3553_v46  ;;  %v8869_v58 = vand.u32 65535, %v8853_v43  ;;  %v8877_v56 = vshrl.u32 %v8853_v43, 16 }
 0x365   :  { %v3320_v18 = vsel %vm3199_vm7, %v3319_v15, %v3318_v9  ;;  %vm2835_vm1 = vcmp.lt.s32.totalorder %v8855_v30, 0  ;;  %v2836_v51 = vsub.s32 0, %v8855_v30  ;;  %v3558_v54 = vand.u32 65535, %v3554_v50 }
 0x366   :  { %v8874_v3 = vsel %vm8796_vm5, %v8140_v17, %v3320_v18  ;;  %v3559_v5 = vshrl.u32 %v3554_v50, 16  ;;  %v3523_v32 = vshrl.u32 %v12337_v35, %v12393_v62  ;;  %v3547_v38 = vsel %vm3539_vm12, %v3526_v21, %v8832_v16 }
 0x367   :  { %v3325_v45 = vmul.f32 %v8874_v3, %v8874_v3  ;;  %v2837_v59 = vsel %vm2835_vm1, %v2836_v51, %v8855_v30  ;;  %v3549_v40 = vsel %vm3541_vm0, %v3532_v61, %v12396_v47  ;;  %v8892_v14 = vmul.u32 %v3558_v54, %v8877_v56 }
 0x368   :  { %v2838_v7 = vclz %v2837_v59  ;;  %v3561_v60 = vmul.u32 %v3559_v5, %v8869_v58  ;;  %v2856_v27 = vsub.s32 4, %v8835_v26  ;;  %v8897_v62 = vsel %vm3539_vm12, %v3523_v32, %v3526_v21 }
 0x369   :  { %v3326_v8 = vmul.f32 -0.001358992, %v3325_v45  ;;  %v3333_v37 = vmul.f32 -0.00019511016, %v3325_v45  ;;  %vm2734_vm7 = vcmp.lt.s32.totalorder %v8112_v41, 0  ;;  %v3560_v34 = vmul.u32 %v3558_v54, %v8869_v58 }
 0x36a   :  { %v6150_v52 = vadd.s32 4294967294, %v2838_v7  ;;  %v3544_v39 = vsel %vm3542_vm9, %v3532_v61, 2102212464  ;;  %v3564_v44 = vshll.u32 %v3561_v60, 16  ;;  %v3550_v28 = vsel %vm3540_vm15, %v3547_v38, %v3549_v40 }
 0x36b   :  { %v3327_v57 = vadd.f32 0.041655596, %v3326_v8  ;;  %v3334_v48 = vadd.f32 0.008332121, %v3333_v37  ;;  %v3563_v33 = vmul.u32 %v3559_v5, %v8877_v56  ;;  %v3566_v0 = vshll.u32 %v8892_v14, 16 }
 0x36c   :  { %vm6151_vm5 = vcmp.lt.s32.totalorder %v6150_v52, 0  ;;  %vm3568_vm2 = vc.u32 %v3560_v34, %v3564_v44  ;;  %v3570_v9 = vadd.s32 %v3564_v44, %v3560_v34  ;;  %vm8910_vm9 = vcmp.le.f32.partialorder %v2732_v42, 0.7853982 }
 0x36d   :  { %v3328_v10 = vmul.f32 %v3327_v57, %v3325_v45  ;;  %v3335_v24 = vmul.f32 %v3334_v48, %v3325_v45  ;;  %v2841_v46 = vsel %vm6151_vm5, 0, %v6150_v52  ;;  %v3569_v61 = vsel %vm3568_vm2, 1, %v12221_v6 }
 0x36e   :  { %v2842_v15 = vsub.s32 32, %v2841_v46  ;;  %v2846_v21 = vsub.s32 4294967266, %v2841_v46  ;;  %v3571_v50 = vadd.s32 %v3569_v61, %v3563_v33  ;;  %v3580_v18 = vand.u32 65535, %v3550_v28 }
 0x36f   :  { %v3329_v51 = vadd.f32 -0.4999988, %v3328_v10  ;;  %v3336_v54 = vadd.f32 -0.16666654, %v3335_v24  ;;  %vm3572_vm3 = vc.u32 %v3570_v9, %v3566_v0  ;;  %v3581_v5 = vshrl.u32 %v3550_v28, 16 }
 0x370   :  { %vm3344_vm4 = vcmp.eq.s32.totalorder %v8859_v36, 0  ;;  %vm3347_vm11 = vcmp.eq.s32.totalorder %v8859_v36, 2  ;;  %v2843_v59 = vshll.u32 %v8855_v30, %v2841_v46  ;;  %v2844_v32 = vshrl.u32 %v2826_v13, %v2842_v15 }
 0x371   :  { %v2847_v38 = vadd.s32 127, %v2846_v21  ;;  %v3573_v42 = vsel %vm3572_vm3, 1, %v12221_v6  ;;  %v3330_v7 = vmul.f32 %v3329_v51, %v3325_v45  ;;  %v3337_v47 = vmul.f32 %v3336_v54, %v3325_v45  ;;  %v12399_v54 = vld [vmem:[#allocation28_spill] sm:$0xff] }
 0x372   :  { %vm3343_vm13 = vcmp.lt.s32.totalorder %v8859_v36, 2  ;;  %v3575_v40 = vadd.s32 %v3573_v42, %v3571_v50  ;;  %v3583_v8 = vmul.u32 %v3581_v5, %v8869_v58  ;;  %vm3340_vm8 = vweird.f32 %v8140_v17 }
 0x373   :  { %v2845_v37 = vor.u32 %v2844_v32, %v2843_v59  ;;  %v2848_v52 = vshll.u32 %v2847_v38, 23  ;;  %v3565_v34 = vshrl.u32 %v3561_v60, 16  ;;  %v3584_v44 = vmul.u32 %v3580_v18, %v8877_v56  ;;  %v12400_v38 = vld [vmem:[#allocation69_spill] sm:$0xff] }
 0x374   :  { %v3331_v57 = vadd.f32 1.0, %v3330_v7  ;;  %v3338_v30 = vadd.f32 1.0, %v3337_v47  ;;  %v2857_v13 = vsel %vm2734_vm7, %v2856_v27, %v8835_v26  ;;  %v3586_v48 = vshll.u32 %v3583_v8, 16 }
 0x375   :  { %v2849_v45 = vor.u32 4788187, %v2848_v52  ;;  %v3567_v28 = vshrl.u32 %v8892_v14, 16  ;;  %v3576_v33 = vadd.s32 %v3575_v40, %v3565_v34  ;;  %v3582_v0 = vmul.u32 %v3580_v18, %v8869_v58 }
 0x376   :  { %v3339_v9 = vmul.f32 %v3338_v30, %v8874_v3  ;;  %v3348_v10 = vxor.u32 2147483648, %v3331_v57  ;;  %v2852_v24 = vcvt.s32.f32 %v2845_v37  ;;  %v3585_v60 = vmul.u32 %v3581_v5, %v8877_v56 }
 0x377   :  { %v2850_v46 = vand.u32 2147483647, %v2849_v45  ;;  %v3588_v61 = vshll.u32 %v3584_v44, 16  ;;  %vm3590_vm12 = vc.u32 %v3582_v0, %v3586_v48  ;;  %v3592_v15 = vadd.s32 %v3586_v48, %v3582_v0  ;;  %v12402_v45 = vld [vmem:[#allocation21_spill] sm:$0xff] }
 0x378   :  { %v3345_v21 = vxor.u32 2147483648, %v3339_v9  ;;  %v2859_v26 = vsel %vm8910_vm9, 0, %v2857_v13  ;;  %v3545_v14 = vsel %vm3541_vm0, %v8832_v16, %v3544_v39  ;;  %v3591_v58 = vsel %vm3590_vm12, 1, %v12221_v6 }
 0x379   :  { %v2853_v27 = vmul.f32 %v2852_v24, %v2850_v46  ;;  %v8935_v3 = vadd.s32 %v3576_v33, %v3567_v28  ;;  %v3593_v50 = vadd.s32 %v3591_v58, %v3585_v60  ;;  %vm3594_vm1 = vc.u32 %v3592_v15, %v3588_v61  ;;  %v12403_v58 = vld [vmem:[#allocation5_spill] sm:$0xff] }
 0x37a   :  { %v3346_v56 = vsel %vm3344_vm4, %v3331_v57, %v3345_v21  ;;  %v3349_v18 = vsel %vm3347_vm11, %v3348_v10, %v3339_v9  ;;  %v3595_v51 = vsel %vm3594_vm1, 1, %v12221_v6  ;;  %v2267_v5 = vand.u32 2147483647, %v12399_v54  ;;  %v12401_v57 = vld [vmem:[#allocation8_spill] sm:$0xff] }
 0x37b   :  { %v3350_v16 = vsel %vm3343_vm13, %v3346_v56, %v3349_v18  ;;  %v2854_v39 = vxor.u32 2147483648, %v2853_v27  ;;  %v3587_v59 = vshrl.u32 %v3583_v8, 16  ;;  %v3597_v32 = vadd.s32 %v3595_v51, %v3593_v50 }
 0x37c   :  { %v8948_v42 = vmul.u32 %v3868_v1, %v12400_v38  ;;  %v3351_v7 = vsel %vm3340_vm8, nan, %v3350_v16  ;;  %v8952_v47 = vadd.s32 %v3592_v15, %v3588_v61  ;;  %v2274_v40 = vand.u32 8388607, %v2267_v5 }
 0x37d   :  { %4046 = vmatpush.msrb.mxu3 %v3351_v7  ;;  %v2855_v36 = vsel %vm2734_vm7, %v2854_v39, %v2853_v27  ;;  %v3546_v8 = vsel %vm3540_vm15, %v8897_v62, %v3545_v14  ;;  %v3589_v37 = vshrl.u32 %v3584_v44, 16  ;;  %v3598_v52 = vadd.s32 %v3597_v32, %v3587_v59  ;;  %v12404_v27 = vld [vmem:[#allocation70_spill] sm:$0xff]  ;;  %v12405_v32 = vld [vmem:[#allocation16_spill] sm:$0xff]  ;;  %v12406_v7 = vld [vmem:[#allocation9_spill] sm:$0xff] }
 0x37e   :  { %v2858_v17 = vsel %vm8910_vm9, %v8112_v41, %v2855_v36  ;;  %v2876_v34 = vadd.s32 3, %v2859_v26  ;;  %vm3602_vm0 = vc.u32 %v8935_v3, %v8952_v47  ;;  %v2285_v30 = vshrl.u32 %v12339_v25, %v12401_v57 }
 0x37f   :  { %v2860_v13 = vmul.f32 %v2858_v17, %v2858_v17  ;;  %v3599_v48 = vadd.s32 %v3598_v52, %v3589_v37  ;;  %v2287_v28 = vshll.u32 %v12339_v25, %v12402_v45  ;;  %v2288_v29 = vshrl.u32 %v12340_v20, %v12401_v57  ;;  %v12407_v37 = vld [vmem:[#allocation11_spill] sm:$0xff] }
 0x380   :  { %v2275_v62 = vor.u32 8388608, %v2274_v40  ;;  %v2284_v55 = vshll.u32 %v12337_v35, %v12402_v45  ;;  %v2290_v44 = vshll.u32 %v12340_v20, %v12402_v45  ;;  %v2291_v33 = vshrl.u32 %v12320_v19, %v12401_v57 }
 0x381   :  { %v2861_v0 = vmul.f32 -0.001358992, %v2860_v13  ;;  %v2868_v9 = vmul.f32 -0.00019511016, %v2860_v13  ;;  %v3603_v10 = vadd.s32 1, %v3599_v48  ;;  %v8978_v24 = vor.u32 %v2288_v29, %v2287_v28 }
 0x382   :  { %v8983_v60 = vmul.u32 %v3869_v31, %v12400_v38  ;;  %v3600_v46 = vmul.u32 %v8853_v43, %v3546_v8  ;;  %v8986_v61 = vor.u32 %v2285_v30, %v2284_v55  ;;  %v8988_v15 = vor.u32 %v2291_v33, %v2290_v44 }
 0x383   :  { %v2862_v21 = vadd.f32 0.041655596, %v2861_v0  ;;  %v2869_v26 = vadd.f32 0.008332121, %v2868_v9  ;;  %v3604_v14 = vsel %vm3602_vm0, %v3603_v10, %v3599_v48  ;;  %vm2299_vm15 = vcmp.lt.s32.totalorder %v12403_v58, 1 }
 0x384   :  { %v8997_v50 = vmul.u32 %v3868_v1, %v12404_v27  ;;  %v3605_v56 = vadd.s32 %v3604_v14, %v3600_v46  ;;  %v2311_v43 = vsel %vm2299_vm15, %v8978_v24, %v8988_v15  ;;  %v9003_v18 = vshll.u32 %v2275_v62, 8 }
 0x385   :  { %v2863_v51 = vmul.f32 %v2862_v21, %v2860_v13  ;;  %v2870_v16 = vmul.f32 %v2869_v26, %v2860_v13  ;;  %v2877_v39 = vand.u32 3, %v2876_v34  ;;  %vm2301_vm7 = vcmp.lt.s32.totalorder %v12403_v58, 3 }
 0x386   :  { %v3606_v59 = vadd.s32 536870912, %v3605_v56  ;;  %vm2300_vm5 = vcmp.lt.s32.totalorder %v12403_v58, 2  ;;  %v2307_v1 = vsel %vm2299_vm15, %v8986_v61, %v8978_v24  ;;  %v2313_v40 = vsel %vm2301_vm7, %v12406_v7, %v12405_v32 }
 0x387   :  { %v2864_v36 = vadd.f32 -0.4999988, %v2863_v51  ;;  %v2871_v8 = vadd.f32 -0.16666654, %v2870_v16  ;;  %v2309_v52 = vsel %vm2301_vm7, %v8988_v15, %v12407_v37  ;;  %v2314_v34 = vsel %vm2300_vm5, %v2311_v43, %v2313_v40 }
 0x388   :  { %v9021_v30 = vshrl.u32 %v3606_v59, 30  ;;  %v2316_v48 = vand.u32 65535, %v9003_v18  ;;  %v2318_v45 = vand.u32 65535, %v2314_v34  ;;  %v2319_v28 = vshrl.u32 %v2314_v34, 16 }
 0x389   :  { %v9027_v29 = vmul.u32 %v3869_v31, %v12404_v27  ;;  %v2865_v62 = vmul.f32 %v2864_v36, %v2860_v13  ;;  %v2872_v55 = vmul.f32 %v2871_v8, %v2860_v13  ;;  %v2317_v44 = vshrl.u32 %v9003_v18, 16 }
 0x38a   :  { %v3874_v33 = vshll.u32 %v8983_v60, 16  ;;  %v9034_v0 = vmul.u32 %v3890_v23, %v12400_v38  ;;  %v3608_v9 = vshll.u32 %v9021_v30, 30  ;;  %v2321_v10 = vmul.u32 %v2319_v28, %v2316_v48 }
 0x38b   :  { %v2866_v46 = vadd.f32 1.0, %v2865_v62  ;;  %v2873_v21 = vadd.f32 1.0, %v2872_v55  ;;  %v2310_v63 = vsel %vm2300_vm5, %v2307_v1, %v2309_v52  ;;  %v9039_v31 = vmul.u32 %v2318_v45, %v2317_v44 }
 0x38c   :  { %vm2878_vm2 = vcmp.lt.s32.totalorder %v2877_v39, 2  ;;  %vm2879_vm9 = vcmp.eq.s32.totalorder %v2877_v39, 0  ;;  %v3609_v13 = vsub.s32 %v3605_v56, %v3608_v9  ;;  %v2324_v26 = vshll.u32 %v2321_v10, 16 }
 0x38d   :  { %v2874_v14 = vmul.f32 %v2873_v21, %v2858_v17  ;;  %vm2882_vm3 = vcmp.eq.s32.totalorder %v2877_v39, 2  ;;  %v2883_v43 = vxor.u32 2147483648, %v2866_v46  ;;  %v2320_v51 = vmul.u32 %v2318_v45, %v2316_v48 }
 0x38e   :  { %vm3610_vm4 = vcmp.lt.s32.totalorder %v3609_v13, 0  ;;  %v3611_v16 = vsub.s32 0, %v3609_v13  ;;  %v2323_v59 = vmul.u32 %v2319_v28, %v2317_v44  ;;  %v2341_v32 = vshrl.u32 %v2310_v63, 16 }
 0x38f   :  { %v2880_v7 = vxor.u32 2147483648, %v2874_v14  ;;  %v2326_v40 = vshll.u32 %v9039_v31, 16  ;;  %vm2328_vm11 = vc.u32 %v2320_v51, %v2324_v26  ;;  %v2330_v36 = vadd.s32 %v2324_v26, %v2320_v51 }
 0x390   :  { %v2884_v1 = vsel %vm2882_vm3, %v2883_v43, %v2874_v14  ;;  %v3612_v8 = vsel %vm3610_vm4, %v3611_v16, %v3609_v13  ;;  %v2329_v37 = vsel %vm2328_vm11, 1, %v12221_v6  ;;  %v2340_v52 = vand.u32 65535, %v2310_v63 }
 0x391   :  { %v2881_v56 = vsel %vm2879_vm9, %v2866_v46, %v2880_v7  ;;  %v3613_v17 = vclz %v3612_v8  ;;  %v2331_v34 = vadd.s32 %v2329_v37, %v2323_v59  ;;  %vm2332_vm13 = vc.u32 %v2330_v36, %v2326_v40  ;;  %v12408_v37 = vld [vmem:[#allocation2_spill] sm:$0xff] }
 0x392   :  { %vm2875_vm8 = vweird.f32 %v8112_v41  ;;  %v2885_v45 = vsel %vm2878_vm2, %v2881_v56, %v2884_v1  ;;  %v2283_v28 = vshrl.u32 %v12337_v35, %v12401_v57  ;;  %v2304_v62 = vsel %vm2302_vm14, %v8988_v15, 2102212464 }
 0x393   :  { %v2886_v55 = vsel %vm2875_vm8, nan, %v2885_v45  ;;  %v6165_v9 = vadd.s32 4294967294, %v3613_v17  ;;  %v2333_v21 = vsel %vm2332_vm13, 1, %v12221_v6  ;;  %v2343_v63 = vmul.u32 %v2341_v32, %v2316_v48 }
 0x394   :  { %4047 = vmatpush.msrb.mxu3 %v2886_v55  ;;  %v3601_v46 = vadd.s32 %v8952_v47, %v8935_v3  ;;  %v2303_v41 = vsel %vm2299_vm15, %v2283_v28, %v8986_v61  ;;  %v2335_v39 = vadd.s32 %v2333_v21, %v2331_v34  ;;  %v2344_v26 = vmul.u32 %v2340_v52, %v2317_v44  ;;  %v12411_v21 = vld [vmem:[#allocation48_spill] sm:$0xff] }
 0x395   :  { %vm6166_vm12 = vcmp.lt.s32.totalorder %v6165_v9, 0  ;;  %v2325_v57 = vshrl.u32 %v2321_v10, 16  ;;  %v2342_v14 = vmul.u32 %v2340_v52, %v2316_v48  ;;  %v2346_v43 = vshll.u32 %v2343_v63, 16 }
 0x396   :  { %v3616_v15 = vsel %vm6166_vm12, 0, %v6165_v9  ;;  %v3631_v51 = vsub.s32 4, %v9021_v30  ;;  %v2305_v16 = vsel %vm2301_vm7, %v8978_v24, %v2304_v62  ;;  %v2345_v59 = vmul.u32 %v2341_v32, %v2317_v44 }
 0x397   :  { %v3617_v7 = vsub.s32 32, %v3616_v15  ;;  %v3621_v3 = vsub.s32 4294967266, %v3616_v15  ;;  %v2336_v47 = vadd.s32 %v2335_v39, %v2325_v57  ;;  %vm2350_vm14 = vc.u32 %v2342_v14, %v2346_v43  ;;  %v12412_v39 = vld [vmem:[#allocation43_spill] sm:$0xff] }
 0x398   :  { %v3618_v40 = vshll.u32 %v3609_v13, %v3616_v15  ;;  %v2348_v61 = vshll.u32 %v2344_v26, 16  ;;  %v2351_v36 = vsel %vm2350_vm14, 1, %v12221_v6  ;;  %v2352_v1 = vadd.s32 %v2346_v43, %v2342_v14 }
 0x399   :  { %v3619_v10 = vshrl.u32 %v3601_v46, %v3617_v7  ;;  %v3622_v48 = vadd.s32 127, %v3621_v3  ;;  %v2353_v8 = vadd.s32 %v2351_v36, %v2345_v59  ;;  %v3042_v52 = vand.u32 2147483647, %v12408_v37  ;;  %v12414_v36 = vld [vmem:[#allocation61_spill] sm:$0xff] }
 0x39a   :  { %vm9065_vm1 = vcmp.le.f32.partialorder %v3507_v49, 0.7853982  ;;  %vm3509_vm0 = vcmp.lt.s32.totalorder %v8276_v22, 0  ;;  %v2306_v24 = vsel %vm2300_vm5, %v2303_v41, %v2305_v16  ;;  %v2327_v44 = vshrl.u32 %v9039_v31, 16 }
 0x39b   :  { %vm2354_vm15 = vc.u32 %v2352_v1, %v2348_v61  ;;  %v3620_v13 = vor.u32 %v3619_v10, %v3618_v40  ;;  %v3623_v32 = vshll.u32 %v3622_v48, 23  ;;  %v3632_v17 = vsel %vm3509_vm0, %v3631_v51, %v9021_v30 }
 0x39c   :  { %v2355_v34 = vsel %vm2354_vm15, 1, %v12221_v6  ;;  %v2337_v49 = vadd.s32 %v2336_v47, %v2327_v44  ;;  %v2347_v45 = vshrl.u32 %v2343_v63, 16  ;;  %v3049_v62 = vand.u32 8388607, %v3042_v52  ;;  %v12413_v47 = vld [vmem:[#allocation54_spill] sm:$0xff] }
 0x39d   :  { %v2357_v28 = vadd.s32 %v2355_v34, %v2353_v8  ;;  %v3624_v55 = vor.u32 4788187, %v3623_v32  ;;  %v2349_v58 = vshrl.u32 %v2344_v26, 16  ;;  %v2356_v9 = vadd.s32 %v2352_v1, %v2348_v61  ;;  %v12415_v1 = vld [vmem:[#allocation57_spill] sm:$0xff] }
 0x39e   :  { %v3060_v31 = vshrl.u32 %v12339_v25, %v12411_v21  ;;  %v3627_v46 = vcvt.s32.f32 %v3620_v13  ;;  %v3062_v57 = vshll.u32 %v12339_v25, %v12412_v39  ;;  %v3063_v30 = vshrl.u32 %v12340_v20, %v12411_v21 }
 0x39f   :  { %v2358_v41 = vadd.s32 %v2357_v28, %v2347_v45  ;;  %v3625_v14 = vand.u32 2147483647, %v3624_v55  ;;  %v3059_v63 = vshll.u32 %v12337_v35, %v12412_v39  ;;  %v3065_v43 = vshll.u32 %v12340_v20, %v12412_v39  ;;  %v12416_v45 = vld [vmem:[#allocation59_spill] sm:$0xff] }
 0x3a0   :  { %v3066_v26 = vshrl.u32 %v12320_v19, %v12411_v21  ;;  %vm2362_vm7 = vc.u32 %v2337_v49, %v2356_v9  ;;  %v3050_v51 = vor.u32 8388608, %v3049_v62  ;;  %v9091_v16 = vor.u32 %v3063_v30, %v3062_v57 }
 0x3a1   :  { %v2359_v15 = vadd.s32 %v2358_v41, %v2349_v58  ;;  %v3628_v59 = vmul.f32 %v3627_v46, %v3625_v14  ;;  %v9093_v7 = vor.u32 %v3060_v31, %v3059_v63  ;;  %vm3076_vm5 = vcmp.lt.s32.totalorder %v12413_v47, 3 }
 0x3a2   :  { %v9095_v3 = vor.u32 %v3066_v26, %v3065_v43  ;;  %v2360_v40 = vmul.u32 %v9003_v18, %v2306_v24  ;;  %vm3074_vm2 = vcmp.lt.s32.totalorder %v12413_v47, 1  ;;  %v3088_v10 = vsel %vm3076_vm5, %v12415_v1, %v12414_v36 }
 0x3a3   :  { %v2363_v61 = vadd.s32 1, %v2359_v15  ;;  %v3629_v48 = vxor.u32 2147483648, %v3628_v59  ;;  %v3634_v8 = vsel %vm9065_vm1, 0, %v3632_v17  ;;  %vm3075_vm9 = vcmp.lt.s32.totalorder %v12413_v47, 2 }
 0x3a4   :  { %v3086_v44 = vsel %vm3074_vm2, %v9091_v16, %v9095_v3  ;;  %vm3878_vm3 = vc.u32 %v8948_v42, %v3874_v33  ;;  %v9117_v13 = vshll.u32 %v3050_v51, 8  ;;  %v3082_v34 = vsel %vm3074_vm2, %v9093_v7, %v9091_v16 }
 0x3a5   :  { %v2364_v18 = vsel %vm2362_vm7, %v2363_v61, %v2359_v15  ;;  %v3089_v24 = vsel %vm3075_vm9, %v3086_v44, %v3088_v10  ;;  %v3630_v32 = vsel %vm3509_vm0, %v3629_v48, %v3628_v59  ;;  %v3084_v28 = vsel %vm3076_vm5, %v9095_v3, %v12416_v45 }
 0x3a6   :  { %v2365_v17 = vadd.s32 %v2364_v18, %v2360_v40  ;;  %v9132_v62 = vmul.u32 %v3891_v11, %v12400_v38  ;;  %v9137_v55 = vsel %vm9065_vm1, %v8276_v22, %v3630_v32  ;;  %v3651_v58 = vadd.s32 3, %v3634_v8 }
 0x3a7   :  { %v3094_v31 = vshrl.u32 %v3089_v24, 16  ;;  %v3879_v46 = vsel %vm3878_vm3, 1, %v12221_v6  ;;  %v9143_v41 = vmul.u32 %v3890_v23, %v12404_v27  ;;  %v3635_v39 = vmul.f32 %v9137_v55, %v9137_v55 }
 0x3a8   :  { %v2366_v57 = vadd.s32 536870912, %v2365_v17  ;;  %v3876_v38 = vshll.u32 %v8997_v50, 16  ;;  %v3895_v56 = vmul.u32 %v3891_v11, %v12404_v27  ;;  %v9153_v30 = vsel %vm3075_vm9, %v3082_v34, %v3084_v28 }
 0x3a9   :  { %v9156_v14 = vand.u32 65535, %v9117_v13  ;;  %v3636_v63 = vmul.f32 -0.001358992, %v3635_v39  ;;  %v3643_v23 = vmul.f32 -0.00019511016, %v3635_v39  ;;  %v3093_v26 = vand.u32 65535, %v3089_v24 }
 0x3aa   :  { %v9158_v43 = vshrl.u32 %v2366_v57, 30  ;;  %v3880_v15 = vadd.s32 %v3874_v33, %v8948_v42  ;;  %v3881_v51 = vadd.s32 %v3879_v46, %v9027_v29  ;;  %v9164_v4 = vand.u32 3, %v3651_v58 }
 0x3ab   :  { %v9167_v11 = vmul.u32 %v3094_v31, %v9156_v14  ;;  %v3637_v27 = vadd.f32 0.041655596, %v3636_v63  ;;  %v3644_v59 = vadd.f32 0.008332121, %v3643_v23  ;;  %v9169_v40 = vadd.s32 %v2356_v9, %v2337_v49 }
 0x3ac   :  { %v2368_v61 = vshll.u32 %v9158_v43, 30  ;;  %v3896_v36 = vshll.u32 %v9132_v62, 16  ;;  %v9174_v1 = vshrl.u32 %v9117_v13, 16  ;;  %v3115_v42 = vand.u32 65535, %v9153_v30 }
 0x3ad   :  { %v3116_v29 = vshrl.u32 %v9153_v30, 16  ;;  %v3638_v33 = vmul.f32 %v3637_v27, %v3635_v39  ;;  %v3645_v10 = vmul.f32 %v3644_v59, %v3635_v39  ;;  %v3095_v8 = vmul.u32 %v3093_v26, %v9156_v14 }
 0x3ae   :  { %v9178_v48 = vsub.s32 %v2365_v17, %v2368_v61  ;;  %vm3900_vm4 = vc.u32 %v9034_v0, %v3896_v36  ;;  %v9183_v49 = vmul.u32 %v3093_v26, %v9174_v1  ;;  %v3098_v9 = vmul.u32 %v3094_v31, %v9174_v1 }
 0x3af   :  { %v3099_v44 = vshll.u32 %v9167_v11, 16  ;;  %v3639_v18 = vadd.f32 -0.4999988, %v3638_v33  ;;  %v3646_v24 = vadd.f32 -0.16666654, %v3645_v10  ;;  %vm3657_vm11 = vcmp.eq.s32.totalorder %v9164_v4, 2 }
 0x3b0   :  { %vm2370_vm13 = vcmp.lt.s32.totalorder %v9178_v48, 0  ;;  %v2371_v32 = vsub.s32 0, %v9178_v48  ;;  %vm3654_vm8 = vcmp.eq.s32.totalorder %v9164_v4, 0  ;;  %vm3882_vm12 = vc.u32 %v3880_v15, %v3876_v38 }
 0x3b1   :  { %v3898_v17 = vshll.u32 %v9143_v41, 16  ;;  %v3901_v34 = vsel %vm3900_vm4, 1, %v12221_v6  ;;  %v3902_v45 = vadd.s32 %v3896_v36, %v9034_v0  ;;  %v3640_v28 = vmul.f32 %v3639_v18, %v3635_v39 }
 0x3b2   :  { %v3647_v58 = vmul.f32 %v3646_v24, %v3635_v39  ;;  %vm3653_vm14 = vcmp.lt.s32.totalorder %v9164_v4, 2  ;;  %v2372_v31 = vsel %vm2370_vm13, %v2371_v32, %v9178_v48  ;;  %v3883_v46 = vsel %vm3882_vm12, 1, %v12221_v6 }
 0x3b3   :  { %vm3650_vm1 = vweird.f32 %v8276_v22  ;;  %v2373_v57 = vclz %v2372_v31  ;;  %v3885_v63 = vadd.s32 %v3883_v46, %v3881_v51  ;;  %v3903_v23 = vadd.s32 %v3901_v34, %v3895_v56 }
 0x3b4   :  { %v3101_v38 = vshll.u32 %v9183_v49, 16  ;;  %v3641_v26 = vadd.f32 1.0, %v3640_v28  ;;  %v3648_v15 = vadd.f32 1.0, %v3647_v58  ;;  %v3875_v27 = vshrl.u32 %v8983_v60, 16 }
 0x3b5   :  { %vm3904_vm0 = vc.u32 %v3902_v45, %v3898_v17  ;;  %v6141_v0 = vadd.s32 4294967294, %v2373_v57  ;;  %v3877_v39 = vshrl.u32 %v8997_v50, 16  ;;  %v3897_v59 = vshrl.u32 %v9132_v62, 16 }
 0x3b6   :  { %v3899_v61 = vshrl.u32 %v9143_v41, 16  ;;  %v3649_v36 = vmul.f32 %v3648_v15, %v9137_v55  ;;  %v3658_v33 = vxor.u32 2147483648, %v3641_v26  ;;  %v3886_v10 = vadd.s32 %v3885_v63, %v3875_v27  ;;  %v12417_v63 = vld [vmem:[#allocation58_spill] sm:$0xff] }
 0x3b7   :  { %v3905_v56 = vsel %vm3904_vm0, 1, %v12221_v6  ;;  %vm6142_vm15 = vcmp.lt.s32.totalorder %v6141_v0, 0  ;;  %v9205_v51 = vadd.s32 %v3902_v45, %v3898_v17  ;;  %vm3103_vm7 = vc.u32 %v3095_v8, %v3099_v44 }
 0x3b8   :  { %v3907_v18 = vadd.s32 %v3905_v56, %v3903_v23  ;;  %v3655_v60 = vxor.u32 2147483648, %v3649_v36  ;;  %v2376_v24 = vsel %vm6142_vm15, 0, %v6141_v0  ;;  %v9207_v32 = vadd.s32 %v3886_v10, %v3877_v39 }
 0x3b9   :  { %v3105_v50 = vadd.s32 %v3099_v44, %v3095_v8  ;;  %v3659_v62 = vsel %vm3657_vm11, %v3658_v33, %v3649_v36  ;;  %v2377_v41 = vsub.s32 32, %v2376_v24  ;;  %v2381_v34 = vsub.s32 4294967266, %v2376_v24 }
 0x3ba   :  { %v3908_v55 = vadd.s32 %v3907_v18, %v3897_v59  ;;  %v3656_v28 = vsel %vm3654_vm8, %v3641_v26, %v3655_v60  ;;  %vm2269_vm3 = vcmp.lt.s32.totalorder %v12399_v54, 0  ;;  %v2378_v17 = vshll.u32 %v9178_v48, %v2376_v24 }
 0x3bb   :  { %vm3912_vm4 = vc.u32 %v9207_v32, %v9205_v51  ;;  %v3104_v45 = vsel %vm3103_vm7, 1, %v12221_v6  ;;  %v3660_v8 = vsel %vm3653_vm14, %v3656_v28, %v3659_v62  ;;  %v2379_v44 = vshrl.u32 %v9169_v40, %v2377_v41 }
 0x3bc   :  { %v2382_v58 = vadd.s32 127, %v2381_v34  ;;  %v3909_v31 = vadd.s32 %v3908_v55, %v3899_v61  ;;  %v3661_v46 = vsel %vm3650_vm1, nan, %v3660_v8  ;;  %v3106_v57 = vadd.s32 %v3104_v45, %v3098_v9  ;;  %v12421_v34 = vld [vmem:[#allocation65_spill] sm:$0xff]  ;;  %v12423_v45 = vld [vmem:[#allocation62_spill] sm:$0xff] }
 0x3bd   :  { %vm3107_vm11 = vc.u32 %v3105_v50, %v3101_v38  ;;  %v3118_v48 = vmul.u32 %v3116_v29, %v9156_v14  ;;  %vm3384_vm13 = vcmp.lt.s32.totalorder %v12417_v63, 1  ;;  %4016 = vmatpush.msrb.mxu2 %v3661_v46  ;;  %vm9229_vm8 = vcmp.le.f32.partialorder %v2267_v5, 0.7853982 }
 0x3be   :  { %v2380_v40 = vor.u32 %v2379_v44, %v2378_v17  ;;  %v2383_v23 = vshll.u32 %v2382_v58, 23  ;;  %v3913_v26 = vadd.s32 1, %v3909_v31  ;;  %v3108_v22 = vsel %vm3107_vm11, 1, %v12221_v6  ;;  %v12422_v17 = vld [vmem:[#allocation68_spill] sm:$0xff] }
 0x3bf   :  { %vm3386_vm12 = vcmp.lt.s32.totalorder %v12417_v63, 3  ;;  %v3058_v9 = vshrl.u32 %v12337_v35, %v12411_v21  ;;  %v3110_v38 = vadd.s32 %v3108_v22, %v3106_v57  ;;  %v3119_v15 = vmul.u32 %v3115_v42, %v9174_v1 }
 0x3c0   :  { %v3121_v27 = vshll.u32 %v3118_v48, 16  ;;  %v2384_v5 = vor.u32 4788187, %v2383_v23  ;;  %v2391_v0 = vsub.s32 4, %v9158_v43  ;;  %v3914_v39 = vsel %vm3912_vm4, %v3913_v26, %v3909_v31 }
 0x3c1   :  { %v3117_v59 = vmul.u32 %v3115_v42, %v9156_v14  ;;  %v2387_v61 = vcvt.s32.f32 %v2380_v40  ;;  %v3915_v21 = vadd.s32 %v3914_v39, %v3910_v2  ;;  %v3100_v36 = vshrl.u32 %v9167_v11, 16 }
 0x3c2   :  { %v3120_v33 = vmul.u32 %v3116_v29, %v9174_v1  ;;  %v2385_v10 = vand.u32 2147483647, %v2384_v5  ;;  %v3123_v56 = vshll.u32 %v3119_v15, 16  ;;  %v3079_v14 = vsel %vm3077_vm10, %v9095_v3, 2102212464 }
 0x3c3   :  { %vm3125_vm14 = vc.u32 %v3117_v59, %v3121_v27  ;;  %v3127_v18 = vadd.s32 %v3121_v27, %v3117_v59  ;;  %v3916_v60 = vadd.s32 536870912, %v3915_v21  ;;  %v3111_v42 = vadd.s32 %v3110_v38, %v3100_v36 }
 0x3c4   :  { %v3126_v24 = vsel %vm3125_vm14, 1, %v12221_v6  ;;  %v2388_v53 = vmul.f32 %v2387_v61, %v2385_v10  ;;  %v2392_v12 = vsel %vm2269_vm3, %v2391_v0, %v9158_v43  ;;  %v3078_v11 = vsel %vm3074_vm2, %v3058_v9, %v9093_v7  ;;  %v12420_v43 = vld [vmem:[#allocation66_spill] sm:$0xff]  ;;  %v12424_v9 = vld [vmem:[#allocation44_spill] sm:$0xff]  ;;  %v12425_v61 = vld [vmem:[#allocation45_spill] sm:$0xff] }
 0x3c5   :  { %v3128_v2 = vadd.s32 %v3126_v24, %v3120_v33  ;;  %vm3129_vm1 = vc.u32 %v3127_v18, %v3123_v56  ;;  %v9261_v30 = vshrl.u32 %v3916_v60, 30  ;;  %v3102_v1 = vshrl.u32 %v9183_v49, 16  ;;  %v12427_v60 = vld [vmem:[#allocation67_spill] sm:$0xff] }
 0x3c6   :  { %v3130_v3 = vsel %vm3129_vm1, 1, %v12221_v6  ;;  %v2389_v29 = vxor.u32 2147483648, %v2388_v53  ;;  %v3080_v50 = vsel %vm3076_vm5, %v9091_v16, %v3079_v14  ;;  %v3122_v62 = vshrl.u32 %v3118_v48, 16 }
 0x3c7   :  { %v3132_v41 = vadd.s32 %v3130_v3, %v3128_v2  ;;  %v3396_v55 = vsel %vm3384_vm13, %v12421_v34, %v12420_v43  ;;  %v2394_v28 = vsel %vm9229_vm8, 0, %v2392_v12  ;;  %v3918_v7 = vshll.u32 %v9261_v30, 30  ;;  %v12428_v3 = vld [vmem:[#allocation56_spill] sm:$0xff] }
 0x3c8   :  { %v3112_v49 = vadd.s32 %v3111_v42, %v3102_v1  ;;  %v3398_v8 = vsel %vm3386_vm12, %v12423_v45, %v12422_v17  ;;  %v2390_v16 = vsel %vm2269_vm3, %v2389_v29, %v2388_v53  ;;  %v3124_v44 = vshrl.u32 %v3119_v15, 16 }
 0x3c9   :  { %v3133_v58 = vadd.s32 %v3132_v41, %v3122_v62  ;;  %v9287_v31 = vsel %vm9229_vm8, %v12399_v54, %v2390_v16  ;;  %v9289_v46 = vsub.s32 %v3915_v21, %v3918_v7  ;;  %v3081_v57 = vsel %vm3075_vm9, %v3078_v11, %v3080_v50 }
 0x3ca   :  { %v3131_v48 = vadd.s32 %v3127_v18, %v3123_v56  ;;  %v2395_v40 = vmul.f32 %v9287_v31, %v9287_v31  ;;  %v2411_v23 = vadd.s32 3, %v2394_v28  ;;  %vm3385_vm10 = vcmp.lt.s32.totalorder %v12417_v63, 2  ;;  %v12426_v56 = vld [vmem:[#allocation64_spill] sm:$0xff] }
 0x3cb   :  { %v3134_v26 = vadd.s32 %v3133_v58, %v3124_v44  ;;  %vm3920_vm5 = vcmp.lt.s32.totalorder %v9289_v46, 0  ;;  %v3921_v22 = vsub.s32 0, %v9289_v46  ;;  %v9300_v4 = vsel %vm3385_vm10, %v3396_v55, %v3398_v8 }
 0x3cc   :  { %vm3137_vm2 = vc.u32 %v3112_v49, %v3131_v48  ;;  %v9303_v47 = vand.u32 65535, %v12424_v9  ;;  %v2396_v38 = vmul.f32 -0.001358992, %v2395_v40  ;;  %v2403_v15 = vmul.f32 -0.00019511016, %v2395_v40 }
 0x3cd   :  { %v3138_v27 = vadd.s32 1, %v3134_v26  ;;  %v9306_v5 = vshrl.u32 %v12424_v9, 16  ;;  %v3922_v0 = vsel %vm3920_vm5, %v3921_v22, %v9289_v46  ;;  %v3135_v39 = vmul.u32 %v9117_v13, %v3081_v57 }
 0x3ce   :  { %v3404_v59 = vshrl.u32 %v9300_v4, 16  ;;  %vm3819_vm9 = vcmp.lt.s32.totalorder %v12425_v61, 0  ;;  %v2397_v21 = vadd.f32 0.041655596, %v2396_v38  ;;  %v2404_v36 = vadd.f32 0.008332121, %v2403_v15 }
 0x3cf   :  { %v3923_v33 = vclz %v3922_v0  ;;  %v3139_v10 = vsel %vm3137_vm2, %v3138_v27, %v3134_v26  ;;  %v3392_v18 = vsel %vm3384_vm13, %v12426_v56, %v12421_v34  ;;  %v3394_v14 = vsel %vm3386_vm12, %v12420_v43, %v12427_v60 }
 0x3d0   :  { %v9320_v42 = vand.u32 3, %v2411_v23  ;;  %v3140_v13 = vadd.s32 %v3139_v10, %v3135_v39  ;;  %v2398_v24 = vmul.f32 %v2397_v21, %v2395_v40  ;;  %v2405_v53 = vmul.f32 %v2404_v36, %v2395_v40 }
 0x3d1   :  { %v3911_v12 = vadd.s32 %v9205_v51, %v9207_v32  ;;  %v6171_v2 = vadd.s32 4294967294, %v3923_v33  ;;  %v9324_v11 = vadd.s32 %v3131_v48, %v3112_v49  ;;  %v3368_v29 = vshrl.u32 %v12337_v35, %v12428_v3 }
 0x3d2   :  { %v3141_v1 = vadd.s32 536870912, %v3140_v13  ;;  %v9329_v50 = vmul.u32 %v3404_v59, %v9303_v47  ;;  %v2399_v62 = vadd.f32 -0.4999988, %v2398_v24  ;;  %v2406_v41 = vadd.f32 -0.16666654, %v2405_v53 }
 0x3d3   :  { %vm6172_vm0 = vcmp.lt.s32.totalorder %v6171_v2, 0  ;;  %v3403_v55 = vand.u32 65535, %v9300_v4  ;;  %vm2414_vm15 = vcmp.eq.s32.totalorder %v9320_v42, 0  ;;  %vm2417_vm7 = vcmp.eq.s32.totalorder %v9320_v42, 2 }
 0x3d4   :  { %v3926_v51 = vsel %vm6172_vm0, 0, %v6171_v2  ;;  %v3941_v32 = vsub.s32 4, %v9261_v30  ;;  %v9335_v28 = vshrl.u32 %v3141_v1, 30  ;;  %v9340_v7 = vsel %vm3384_vm13, %v3368_v29, %v12426_v56  ;;  %v9379_v1 = vpop.permute.xlu2 %3988 }
 0x3d5   :  { %v2400_v49 = vmul.f32 %v2399_v62, %v2395_v40  ;;  %v2407_v17 = vmul.f32 %v2406_v41, %v2395_v40  ;;  %vm2413_vm3 = vcmp.lt.s32.totalorder %v9320_v42, 2  ;;  %v12429_v45 = vand.u32 2147483647, %v12425_v61 }
 0x3d6   :  { %v3927_v16 = vsub.s32 32, %v3926_v51  ;;  %v3409_v44 = vshll.u32 %v9329_v50, 16  ;;  %vm2410_vm11 = vweird.f32 %v12399_v54  ;;  %v3931_v58 = vsub.s32 4294967266, %v3926_v51 }
 0x3d7   :  { %vm9345_vm4 = vcmp.le.f32.partialorder %v12429_v45, 0.7853982  ;;  %v3143_v57 = vshll.u32 %v9335_v28, 30  ;;  %v3389_v48 = vsel %vm3387_vm6, %v12420_v43, 2102212464  ;;  %v3395_v40 = vsel %vm3385_vm10, %v3392_v18, %v3394_v14 }
 0x3d8   :  { %v2401_v23 = vadd.f32 1.0, %v2400_v49  ;;  %v2408_v26 = vadd.f32 1.0, %v2407_v17  ;;  %v3929_v22 = vshrl.u32 %v3911_v12, %v3927_v16  ;;  %v3405_v4 = vmul.u32 %v3403_v55, %v9303_v47 }
 0x3d9   :  { %v3928_v38 = vshll.u32 %v9289_v46, %v3926_v51  ;;  %v3932_v15 = vadd.s32 127, %v3931_v58  ;;  %v3942_v27 = vsel %vm3819_vm9, %v3941_v32, %v9261_v30  ;;  %v9362_v0 = vsub.s32 %v3140_v13, %v3143_v57 }
 0x3da   :  { %v2409_v39 = vmul.f32 %v2408_v26, %v9287_v31  ;;  %v2418_v43 = vxor.u32 2147483648, %v2401_v23  ;;  %v9366_v21 = vmul.u32 %v3403_v55, %v9306_v5  ;;  %vm3413_vm6 = vc.u32 %v3405_v4, %v3409_v44 }
 0x3db   :  { %v3930_v36 = vor.u32 %v3929_v22, %v3928_v38  ;;  %v3933_v33 = vshll.u32 %v3932_v15, 23  ;;  %vm3145_vm13 = vcmp.lt.s32.totalorder %v9362_v0, 0  ;;  %v3146_v46 = vsub.s32 0, %v9362_v0 }
 0x3dc   :  { %v2415_v10 = vxor.u32 2147483648, %v2409_v39  ;;  %vm3044_vm8 = vcmp.lt.s32.totalorder %v12408_v37, 0  ;;  %v3408_v30 = vmul.u32 %v3404_v59, %v9306_v5  ;;  %v3425_v56 = vand.u32 65535, %v3395_v40 }
 0x3dd   :  { %v3426_v18 = vshrl.u32 %v3395_v40, 16  ;;  %v3934_v60 = vor.u32 4788187, %v3933_v33  ;;  %v3147_v31 = vsel %vm3145_vm13, %v3146_v46, %v9362_v0  ;;  %v3414_v14 = vsel %vm3413_vm6, 1, %v12221_v6 }
 0x3de   :  { %v3415_v13 = vadd.s32 %v3409_v44, %v3405_v4  ;;  %v2416_v24 = vsel %vm2414_vm15, %v2401_v23, %v2415_v10  ;;  %v2419_v53 = vsel %vm2417_vm7, %v2418_v43, %v2409_v39  ;;  %v3148_v12 = vclz %v3147_v31 }
 0x3df   :  { %v3411_v2 = vshll.u32 %v9366_v21, 16  ;;  %v2420_v59 = vsel %vm2413_vm3, %v2416_v24, %v2419_v53  ;;  %v3935_v3 = vand.u32 2147483647, %v3934_v60  ;;  %v3937_v29 = vcvt.s32.f32 %v3930_v36 }
 0x3e0   :  { %v3944_v62 = vsel %vm9345_vm4, 0, %v3942_v27  ;;  %v2421_v41 = vsel %vm2410_vm11, nan, %v2420_v59  ;;  %v6156_v55 = vadd.s32 4294967294, %v3148_v12  ;;  %v3416_v51 = vadd.s32 %v3414_v14, %v3408_v30  ;;  %v12435_v59 = vld [vmem:[#allocation13_spill] sm:$0xff] }
 0x3e1   :  { %vm3417_vm14 = vc.u32 %v3415_v13, %v3411_v2  ;;  %4048 = vmatpush.msrb.mxu3 %v2421_v41  ;;  %v3938_v32 = vmul.f32 %v3937_v29, %v3935_v3  ;;  %vm9389_vm1 = vcmp.le.f32.partialorder %v3042_v52, 0.7853982  ;;  %v3166_v42 = vsub.s32 4, %v9335_v28 }
 0x3e2   :  { %v3418_v17 = vsel %vm3417_vm14, 1, %v12221_v6  ;;  %v3428_v45 = vmul.u32 %v3426_v18, %v9303_v47  ;;  %v3961_v16 = vadd.s32 3, %v3944_v62  ;;  %vm12434_vm5 = vcmask 261120  }
 0x3e3   :  { %6177 = vmatmul.msk.f32.vlgmr.msrb.gmra.mxu3 %vm12434_vm5, %v9379_v1  ;;  %vm6157_vm2 = vcmp.lt.s32.totalorder %v6156_v55, 0  ;;  %v3390_v54 = vsel %vm3386_vm12, %v12421_v34, %v3389_v48  ;;  %v3427_v52 = vmul.u32 %v3425_v56, %v9303_v47  ;;  %v3939_v44 = vxor.u32 2147483648, %v3938_v32 }
 0x3e4   :  { %v3151_v58 = vsel %vm6157_vm2, 0, %v6156_v55  ;;  %v3429_v57 = vmul.u32 %v3425_v56, %v9306_v5  ;;  %v3431_v40 = vshll.u32 %v3428_v45, 16  ;;  %v3410_v22 = vshrl.u32 %v9329_v50, 16 }
 0x3e5   :  { %v3152_v23 = vsub.s32 32, %v3151_v58  ;;  %v3156_v26 = vsub.s32 4294967266, %v3151_v58  ;;  %v3420_v4 = vadd.s32 %v3418_v17, %v3416_v51  ;;  %v3940_v38 = vsel %vm3819_vm9, %v3939_v44, %v3938_v32  ;;  %v12436_v51 = vld [vmem:[#allocation51_spill] sm:$0xff]  ;;  %v12437_v32 = vld [vmem:[#allocation50_spill] sm:$0xff] }
 0x3e6   :  { %v3167_v15 = vsel %vm3044_vm8, %v3166_v42, %v9335_v28  ;;  %v3430_v34 = vmul.u32 %v3426_v18, %v9306_v5  ;;  %vm3435_vm12 = vc.u32 %v3427_v52, %v3431_v40  ;;  %v9413_v47 = vsel %vm9345_vm4, %v12425_v61, %v3940_v38  ;;  %v12438_v42 = vld [vmem:[#allocation40_spill] sm:$0xff] }
 0x3e7   :  { %v3153_v48 = vshll.u32 %v9362_v0, %v3151_v58  ;;  %v3154_v50 = vshrl.u32 %v9324_v11, %v3152_v23  ;;  %v3157_v27 = vadd.s32 127, %v3156_v26  ;;  %v3945_v39 = vmul.f32 %v9413_v47, %v9413_v47  ;;  %v12440_v26 = vld [vmem:[#allocation27_spill] sm:$0xff] }
 0x3e8   :  { %v3433_v43 = vshll.u32 %v3429_v57, 16  ;;  %v3436_v36 = vsel %vm3435_vm12, 1, %v12221_v6  ;;  %v3437_v28 = vadd.s32 %v3431_v40, %v3427_v52  ;;  %v3421_v46 = vadd.s32 %v3420_v4, %v3410_v22 }
 0x3e9   :  { %v3155_v33 = vor.u32 %v3154_v50, %v3153_v48  ;;  %v3158_v5 = vshll.u32 %v3157_v27, 23  ;;  %v3438_v10 = vadd.s32 %v3436_v36, %v3430_v34  ;;  %v3946_v30 = vmul.f32 -0.001358992, %v3945_v39  ;;  %v12441_v34 = vld [vmem:[#allocation3_spill] sm:$0xff] }
 0x3ea   :  { %v3953_v8 = vmul.f32 -0.00019511016, %v3945_v39  ;;  %v9420_v56 = vand.u32 3, %v3961_v16  ;;  %vm3439_vm9 = vc.u32 %v3437_v28, %v3433_v43  ;;  %v3169_v11 = vsel %vm9389_vm1, 0, %v3167_v15 }
 0x3eb   :  { %v3159_v0 = vor.u32 4788187, %v3158_v5  ;;  %v3412_v18 = vshrl.u32 %v9366_v21, 16  ;;  %v3440_v60 = vsel %vm3439_vm9, 1, %v12221_v6  ;;  %v3947_v31 = vadd.f32 0.041655596, %v3946_v30 }
 0x3ec   :  { %v3954_v14 = vadd.f32 0.008332121, %v3953_v8  ;;  %v3432_v13 = vshrl.u32 %v3428_v45, 16  ;;  %v3442_v24 = vadd.s32 %v3440_v60, %v3438_v10  ;;  %v3162_v12 = vcvt.s32.f32 %v3155_v33 }
 0x3ed   :  { %v3160_v53 = vand.u32 2147483647, %v3159_v0  ;;  %v9426_v2 = vadd.s32 %v3421_v46, %v3412_v18  ;;  %v2577_v3 = vand.u32 2147483647, %v12435_v59  ;;  %v3948_v29 = vmul.f32 %v3947_v31, %v3945_v39 }
 0x3ee   :  { %v3955_v62 = vmul.f32 %v3954_v14, %v3945_v39  ;;  %v3434_v41 = vshrl.u32 %v3429_v57, 16  ;;  %v3443_v55 = vadd.s32 %v3442_v24, %v3432_v13  ;;  %vm12439_vm0 = vcmp.lt.s32.totalorder %v12438_v42, 1  ;;  %v12442_v14 = vld [vmem:[#allocation10_spill] sm:$0xff] }
 0x3ef   :  { %v9433_v21 = vsel %vm12439_vm0, %v12437_v32, %v12436_v51  ;;  %v3163_v17 = vmul.f32 %v3162_v12, %v3160_v53  ;;  %v3391_v45 = vsel %vm3385_vm10, %v9340_v7, %v3390_v54  ;;  %v9438_v16 = vadd.s32 %v3437_v28, %v3433_v43 }
 0x3f0   :  { %v3949_v52 = vadd.f32 -0.4999988, %v3948_v29  ;;  %v3956_v44 = vadd.f32 -0.16666654, %v3955_v62  ;;  %v3186_v58 = vadd.s32 3, %v3169_v11  ;;  %v3444_v40 = vadd.s32 %v3443_v55, %v3434_v41  ;;  %v12443_v62 = vld [vmem:[#allocation33_spill] sm:$0xff] }
 0x3f1   :  { %vm3964_vm15 = vcmp.eq.s32.totalorder %v9420_v56, 0  ;;  %vm3967_vm7 = vcmp.eq.s32.totalorder %v9420_v56, 2  ;;  %v3164_v57 = vxor.u32 2147483648, %v3163_v17  ;;  %vm3447_vm3 = vc.u32 %v9426_v2, %v9438_v16  ;;  %v12444_v41 = vld [vmem:[#allocation29_spill] sm:$0xff] }
 0x3f2   :  { %v2584_v23 = vand.u32 8388607, %v2577_v3  ;;  %v2598_v63 = vshrl.u32 %v12340_v20, %v12440_v26  ;;  %v3950_v7 = vmul.f32 %v3949_v52, %v3945_v39  ;;  %v3957_v54 = vmul.f32 %v3956_v44, %v3945_v39 }
 0x3f3   :  { %vm3963_vm10 = vcmp.lt.s32.totalorder %v9420_v56, 2  ;;  %v3448_v22 = vadd.s32 1, %v3444_v40  ;;  %v2601_v4 = vshrl.u32 %v12320_v19, %v12440_v26  ;;  %vm3960_vm4 = vweird.f32 %v12425_v61 }
 0x3f4   :  { %v3165_v38 = vsel %vm3044_vm8, %v3164_v57, %v3163_v17  ;;  %v3445_v15 = vmul.u32 %v12424_v9, %v3391_v45  ;;  %v2597_v48 = vshll.u32 %v12339_v25, %v12441_v34  ;;  %v2600_v50 = vshll.u32 %v12340_v20, %v12441_v34 }
 0x3f5   :  { %v3951_v27 = vadd.f32 1.0, %v3950_v7  ;;  %v3958_v39 = vadd.f32 1.0, %v3957_v54  ;;  %v3168_v43 = vsel %vm9389_vm1, %v12408_v37, %v3165_v38  ;;  %v3449_v36 = vsel %vm3447_vm3, %v3448_v22, %v3444_v40  ;;  %v12445_v22 = vld [vmem:[#allocation47_spill] sm:$0xff] }
 0x3f6   :  { %v3170_v28 = vmul.f32 %v3168_v43, %v3168_v43  ;;  %v9465_v33 = vand.u32 3, %v3186_v58  ;;  %v3450_v9 = vadd.s32 %v3449_v36, %v3445_v15  ;;  %v2585_v5 = vor.u32 8388608, %v2584_v23 }
 0x3f7   :  { %v3959_v46 = vmul.f32 %v3958_v39, %v9413_v47  ;;  %v3968_v10 = vxor.u32 2147483648, %v3951_v27  ;;  %v9468_v30 = vor.u32 %v2598_v63, %v2597_v48  ;;  %v9470_v8 = vor.u32 %v2601_v4, %v2600_v50  ;;  %v12446_v4 = vld [vmem:[#allocation46_spill] sm:$0xff] }
 0x3f8   :  { %v3171_v0 = vmul.f32 -0.001358992, %v3170_v28  ;;  %v3178_v11 = vmul.f32 -0.00019511016, %v3170_v28  ;;  %v3451_v49 = vadd.s32 536870912, %v3450_v9  ;;  %v2594_v18 = vshll.u32 %v12337_v35, %v12441_v34 }
 0x3f9   :  { %v3965_v60 = vxor.u32 2147483648, %v3959_v46  ;;  %v2595_v31 = vshrl.u32 %v12339_v25, %v12440_v26  ;;  %vm2609_vm11 = vcmp.lt.s32.totalorder %v12442_v14, 1  ;;  %vm2610_vm6 = vcmp.lt.s32.totalorder %v12442_v14, 2 }
 0x3fa   :  { %v3172_v47 = vadd.f32 0.041655596, %v3171_v0  ;;  %v3179_v13 = vadd.f32 0.008332121, %v3178_v11  ;;  %v9478_v24 = vshrl.u32 %v3451_v49, 30  ;;  %vm2611_vm13 = vcmp.lt.s32.totalorder %v12442_v14, 3 }
 0x3fb   :  { %v3966_v53 = vsel %vm3964_vm15, %v3951_v27, %v3965_v60  ;;  %v3969_v12 = vsel %vm3967_vm7, %v3968_v10, %v3959_v46  ;;  %v2621_v29 = vsel %vm2609_vm11, %v9468_v30, %v9470_v8  ;;  %v2623_v55 = vsel %vm2611_vm13, %v12444_v41, %v12443_v62  ;;  %v12449_v11 = vld [vmem:[#allocation32_spill] sm:$0xff] }
 0x3fc   :  { %v3970_v17 = vsel %vm3963_vm10, %v3966_v53, %v3969_v12  ;;  %v3173_v45 = vmul.f32 %v3172_v47, %v3170_v28  ;;  %v3180_v52 = vmul.f32 %v3179_v13, %v3170_v28  ;;  %v3453_v44 = vshll.u32 %v9478_v24, 30  ;;  %v12450_v53 = vld [vmem:[#allocation14_spill] sm:$0xff] }
 0x3fd   :  { %v3971_v58 = vsel %vm3960_vm4, nan, %v3970_v17  ;;  %v9498_v40 = vor.u32 %v2595_v31, %v2594_v18  ;;  %v2624_v57 = vsel %vm2610_vm6, %v2621_v29, %v2623_v55  ;;  %v9502_v23 = vshll.u32 %v2585_v5, 8 }
 0x3fe   :  { %4074 = vmatpush.msra.mxu0 %v3971_v58  ;;  %v3174_v63 = vadd.f32 -0.4999988, %v3173_v45  ;;  %v3181_v7 = vadd.f32 -0.16666654, %v3180_v52  ;;  %v9504_v54 = vsub.s32 %v3450_v9, %v3453_v44  ;;  %v2628_v56 = vand.u32 65535, %v2624_v57 }
 0x3ff   :  { %v12447_v38 = vor.u32 %v12445_v22, %v12446_v4  ;;  %vm12448_vm8 = vcmp.lt.s32.totalorder %v12438_v42, 4  ;;  %v9514_v15 = vand.u32 65535, %v9502_v23  ;;  %v9517_v34 = vshrl.u32 %v9502_v23, 16 }
 0x400   :  { %v2629_v48 = vshrl.u32 %v2624_v57, 16  ;;  %v3175_v50 = vmul.f32 %v3174_v63, %v3170_v28  ;;  %v3182_v27 = vmul.f32 %v3181_v7, %v3170_v28  ;;  %vm3455_vm14 = vcmp.lt.s32.totalorder %v9504_v54, 0 }
 0x401   :  { %v9511_v61 = vsel %vm12448_vm8, %v12447_v38, 1326507024  ;;  %v3456_v39 = vsub.s32 0, %v9504_v54  ;;  %vm3185_vm1 = vweird.f32 %v12408_v37  ;;  %vm3188_vm5 = vcmp.lt.s32.totalorder %v9465_v33, 2 }
 0x402   :  { %vm3189_vm2 = vcmp.eq.s32.totalorder %v9465_v33, 0  ;;  %v2631_v36 = vmul.u32 %v2629_v48, %v9514_v15  ;;  %v9526_v9 = vmul.u32 %v2628_v56, %v9517_v34  ;;  %v3176_v5 = vadd.f32 1.0, %v3175_v50 }
 0x403   :  { %v3183_v46 = vadd.f32 1.0, %v3182_v27  ;;  %v3457_v10 = vsel %vm3455_vm14, %v3456_v39, %v9504_v54  ;;  %v2617_v28 = vsel %vm2609_vm11, %v9498_v40, %v9468_v30  ;;  %v2619_v49 = vsel %vm2611_vm13, %v9470_v8, %v12449_v11  ;;  %v12453_v11 = vld [vmem:[#allocation17_spill] sm:$0xff] }
 0x404   :  { %v3458_v0 = vclz %v3457_v10  ;;  %v2630_v18 = vmul.u32 %v2628_v56, %v9514_v15  ;;  %v2634_v60 = vshll.u32 %v2631_v36, 16  ;;  %vm2921_vm12 = vcmp.lt.s32.totalorder %v12438_v42, 3 }
 0x405   :  { %v3184_v31 = vmul.f32 %v3183_v46, %v3168_v43  ;;  %vm3192_vm9 = vcmp.eq.s32.totalorder %v9465_v33, 2  ;;  %v3193_v47 = vxor.u32 2147483648, %v3176_v5  ;;  %v3446_v13 = vadd.s32 %v9438_v16, %v9426_v2  ;;  %v12452_v46 = vld [vmem:[#allocation55_spill] sm:$0xff] }
 0x406   :  { %vm3354_vm0 = vcmp.lt.s32.totalorder %v12450_v53, 0  ;;  %v6162_v12 = vadd.s32 4294967294, %v3458_v0  ;;  %v2636_v29 = vshll.u32 %v9526_v9, 16  ;;  %vm2638_vm15 = vc.u32 %v2630_v18, %v2634_v60 }
 0x407   :  { %v2640_v62 = vadd.s32 %v2634_v60, %v2630_v18  ;;  %v3190_v41 = vxor.u32 2147483648, %v3184_v31  ;;  %v2593_v55 = vshrl.u32 %v12337_v35, %v12440_v26  ;;  %v2620_v43 = vsel %vm2610_vm6, %v2617_v28, %v2619_v49 }
 0x408   :  { %v2633_v17 = vmul.u32 %v2629_v48, %v9517_v34  ;;  %v3194_v45 = vsel %vm3192_vm9, %v3193_v47, %v3184_v31  ;;  %vm6163_vm7 = vcmp.lt.s32.totalorder %v6162_v12, 0  ;;  %v2639_v2 = vsel %vm2638_vm15, 1, %v12221_v6 }
 0x409   :  { %vm2642_vm3 = vc.u32 %v2640_v62, %v2636_v29  ;;  %v3191_v16 = vsel %vm3189_vm2, %v3176_v5, %v3190_v41  ;;  %v3461_v52 = vsel %vm6163_vm7, 0, %v6162_v12  ;;  %vm12451_vm10 = vcmp.lt.s32.totalorder %v12442_v14, 4 }
 0x40a   :  { %v2641_v44 = vadd.s32 %v2639_v2, %v2633_v17  ;;  %v2643_v58 = vsel %vm2642_vm3, 1, %v12221_v6  ;;  %v3195_v26 = vsel %vm3188_vm5, %v3191_v16, %v3194_v45  ;;  %v3462_v57 = vsub.s32 32, %v3461_v52 }
 0x40b   :  { %v3466_v63 = vsub.s32 4294967266, %v3461_v52  ;;  %v2614_v7 = vsel %vm12451_vm10, %v9470_v8, 2102212464  ;;  %v3196_v56 = vsel %vm3185_vm1, nan, %v3195_v26  ;;  %v3476_v22 = vsub.s32 4, %v9478_v24 }
 0x40c   :  { %v2650_v4 = vand.u32 65535, %v2620_v43  ;;  %v2651_v38 = vshrl.u32 %v2620_v43, 16  ;;  %4017 = vmatpush.msrb.mxu2 %v3196_v56  ;;  %v3463_v48 = vshll.u32 %v9504_v54, %v3461_v52  ;;  %v3464_v50 = vshrl.u32 %v3446_v13, %v3462_v57 }
 0x40d   :  { %v3467_v27 = vadd.s32 127, %v3466_v63  ;;  %v2645_v33 = vadd.s32 %v2643_v58, %v2641_v44  ;;  %v2613_v39 = vsel %vm2609_vm11, %v2593_v55, %v9498_v40  ;;  %v2615_v8 = vsel %vm2611_vm13, %v9468_v30, %v2614_v7  ;;  %v12454_v40 = vld [vmem:[#allocation52_spill] sm:$0xff] }
 0x40e   :  { %v2653_v37 = vmul.u32 %v2651_v38, %v9514_v15  ;;  %v2654_v5 = vmul.u32 %v2650_v4, %v9517_v34  ;;  %v2929_v54 = vsel %vm2921_vm12, %v12436_v51, %v12452_v46  ;;  %v3465_v10 = vor.u32 %v3464_v50, %v3463_v48  ;;  %v12460_v50 = vld [vmem:[#allocation36_spill] sm:$0xff] }
 0x40f   :  { %v3468_v28 = vshll.u32 %v3467_v27, 23  ;;  %v2635_v0 = vshrl.u32 %v2631_v36, 16  ;;  %vm2454_vm4 = vcmp.lt.s32.totalorder %v12453_v11, 1  ;;  %v2933_v49 = vsel %vm2921_vm12, %v12454_v40, %v9511_v61  ;;  %v12461_v27 = vld [vmem:[#allocation35_spill] sm:$0xff] }
 0x410   :  { %v3477_v30 = vsel %vm3354_vm0, %v3476_v22, %v9478_v24  ;;  %v2652_v18 = vmul.u32 %v2650_v4, %v9514_v15  ;;  %v2656_v60 = vshll.u32 %v2653_v37, 16  ;;  %v12455_v31 = vand.u32 2147483647, %v12450_v53  ;;  %v12459_v4 = vld [vmem:[#allocation42_spill] sm:$0xff] }
 0x411   :  { %v3469_v36 = vor.u32 4788187, %v3468_v28  ;;  %v2616_v13 = vsel %vm2610_vm6, %v2613_v39, %v2615_v8  ;;  %v2646_v12 = vadd.s32 %v2645_v33, %v2635_v0  ;;  %v2655_v61 = vmul.u32 %v2651_v38, %v9517_v34  ;;  %v12458_v34 = vld [vmem:[#allocation53_spill] sm:$0xff] }
 0x412   :  { %vm9585_vm11 = vcmp.le.f32.partialorder %v12455_v31, 0.7853982  ;;  %v2658_v29 = vshll.u32 %v2654_v5, 16  ;;  %vm2660_vm13 = vc.u32 %v2652_v18, %v2656_v60  ;;  %v2662_v62 = vadd.s32 %v2656_v60, %v2652_v18  ;;  %v12462_v8 = vld [vmem:[#allocation41_spill] sm:$0xff] }
 0x413   :  { %v3470_v24 = vand.u32 2147483647, %v3469_v36  ;;  %v3472_v41 = vcvt.s32.f32 %v3465_v10  ;;  %v3479_v15 = vsel %vm9585_vm11, 0, %v3477_v30  ;;  %v2661_v55 = vsel %vm2660_vm13, 1, %v12221_v6 }
 0x414   :  { %v2637_v43 = vshrl.u32 %v9526_v9, 16  ;;  %v2663_v17 = vadd.s32 %v2661_v55, %v2655_v61  ;;  %vm2664_vm8 = vc.u32 %v2662_v62, %v2658_v29  ;;  %vm2920_vm14 = vcmp.lt.s32.totalorder %v12438_v42, 2 }
 0x415   :  { %v3473_v14 = vmul.f32 %v3472_v41, %v3470_v24  ;;  %v2665_v45 = vsel %vm2664_vm8, 1, %v12221_v6  ;;  %v2930_v2 = vsel %vm2920_vm14, %v12458_v34, %v2929_v54  ;;  %v2934_v16 = vsel %vm2920_vm14, %v9433_v21, %v2933_v49 }
 0x416   :  { %v9604_v52 = vadd.s32 %v2646_v12, %v2637_v43  ;;  %v2657_v44 = vshrl.u32 %v2653_v37, 16  ;;  %v2667_v58 = vadd.s32 %v2665_v45, %v2663_v17  ;;  %v2938_v9 = vand.u32 65535, %v2934_v16 }
 0x417   :  { %v3474_v26 = vxor.u32 2147483648, %v3473_v14  ;;  %v2659_v57 = vshrl.u32 %v2654_v5, 16  ;;  %v2939_v63 = vshrl.u32 %v2934_v16, 16  ;;  %v2961_v7 = vshrl.u32 %v2930_v2, 16 }
 0x418   :  { %v9606_v56 = vadd.s32 %v2662_v62, %v2658_v29  ;;  %v2668_v22 = vadd.s32 %v2667_v58, %v2657_v44  ;;  %v9609_v38 = vmul.u32 %v2938_v9, %v12459_v4  ;;  %v2960_v48 = vand.u32 65535, %v2930_v2 }
 0x419   :  { %v9615_v21 = vsel %vm2454_vm4, %v12461_v27, %v12460_v50  ;;  %v3475_v33 = vsel %vm3354_vm0, %v3474_v26, %v3473_v14  ;;  %v3496_v39 = vadd.s32 3, %v3479_v15  ;;  %v2941_v37 = vmul.u32 %v2939_v63, %v12462_v8 }
 0x41a   :  { %v9623_v5 = vsel %vm9585_vm11, %v12450_v53, %v3475_v33  ;;  %v2669_v46 = vadd.s32 %v2668_v22, %v2659_v57  ;;  %v2670_v54 = vmul.u32 %v9502_v23, %v2616_v13  ;;  %vm2672_vm6 = vc.u32 %v9604_v52, %v9606_v56  ;;  %v12463_v57 = vld [vmem:[#allocation39_spill] sm:$0xff] }
 0x41b   :  { %v3480_v10 = vmul.f32 %v9623_v5, %v9623_v5  ;;  %v2940_v28 = vmul.u32 %v2938_v9, %v12462_v8  ;;  %v2944_v0 = vshll.u32 %v2941_v37, 16  ;;  %v9632_v40 = vmul.u32 %v2961_v7, %v12462_v8 }
 0x41c   :  { %v2673_v49 = vadd.s32 1, %v2669_v46  ;;  %v2943_v30 = vmul.u32 %v2939_v63, %v12459_v4  ;;  %v2946_v18 = vshll.u32 %v9609_v38, 16  ;;  %v2962_v60 = vmul.u32 %v2960_v48, %v12462_v8  ;;  %v12465_v8 = vld [vmem:[#allocation49_spill] sm:$0xff] }
 0x41d   :  { %v3481_v23 = vmul.f32 -0.001358992, %v3480_v10  ;;  %v3488_v31 = vmul.f32 -0.00019511016, %v3480_v10  ;;  %vm2948_vm1 = vc.u32 %v2940_v28, %v2944_v0  ;;  %v2950_v47 = vadd.s32 %v2944_v0, %v2940_v28 }
 0x41e   :  { %v2674_v36 = vsel %vm2672_vm6, %v2673_v49, %v2669_v46  ;;  %v2949_v13 = vsel %vm2948_vm1, 1, %v12221_v6  ;;  %v2964_v12 = vmul.u32 %v2960_v48, %v12459_v4  ;;  %v2966_v61 = vshll.u32 %v9632_v40, 16 }
 0x41f   :  { %v3482_v29 = vadd.f32 0.041655596, %v3481_v23  ;;  %v3489_v62 = vadd.f32 0.008332121, %v3488_v31  ;;  %v2675_v24 = vadd.s32 %v2674_v36, %v2670_v54  ;;  %v2951_v41 = vadd.s32 %v2949_v13, %v2943_v30 }
 0x420   :  { %v3497_v15 = vand.u32 3, %v3496_v39  ;;  %vm2952_vm5 = vc.u32 %v2950_v47, %v2946_v18  ;;  %v2965_v55 = vmul.u32 %v2961_v7, %v12459_v4  ;;  %vm2970_vm2 = vc.u32 %v2962_v60, %v2966_v61 }
 0x421   :  { %v3483_v43 = vmul.f32 %v3482_v29, %v3480_v10  ;;  %v3490_v17 = vmul.f32 %v3489_v62, %v3480_v10  ;;  %v2676_v14 = vadd.s32 536870912, %v2675_v24  ;;  %v2953_v45 = vsel %vm2952_vm5, 1, %v12221_v6 }
 0x422   :  { %v2955_v34 = vadd.s32 %v2953_v45, %v2951_v41  ;;  %v2968_v2 = vshll.u32 %v2964_v12, 16  ;;  %v2971_v16 = vsel %vm2970_vm2, 1, %v12221_v6  ;;  %v2972_v44 = vadd.s32 %v2966_v61, %v2962_v60  ;;  %v12467_v60 = vld [vmem:[#allocation26_spill] sm:$0xff]  ;;  %v12469_v45 = vld [vmem:[#allocation24_spill] sm:$0xff] }
 0x423   :  { %v3484_v58 = vadd.f32 -0.4999988, %v3483_v43  ;;  %v3491_v9 = vadd.f32 -0.16666654, %v3490_v17  ;;  %v2677_v26 = vshrl.u32 %v2676_v14, 30  ;;  %v2903_v63 = vshrl.u32 %v12337_v35, %v12463_v57  ;;  %v12468_v17 = vld [vmem:[#allocation34_spill] sm:$0xff] }
 0x424   :  { %vm12464_vm9 = vcmp.lt.s32.totalorder %v12438_v42, 4  ;;  %v2945_v22 = vshrl.u32 %v2941_v37, 16  ;;  %v2973_v4 = vadd.s32 %v2971_v16, %v2965_v55  ;;  %vm2974_vm0 = vc.u32 %v2972_v44, %v2968_v2 }
 0x425   :  { %v2924_v7 = vsel %vm12464_vm9, %v12436_v51, 2102212464  ;;  %v3485_v48 = vmul.f32 %v3484_v58, %v3480_v10  ;;  %v3492_v33 = vmul.f32 %v3491_v9, %v3480_v10  ;;  %vm3498_vm15 = vcmp.lt.s32.totalorder %v3497_v15, 2  ;;  %v12470_v9 = vld [vmem:[#allocation25_spill] sm:$0xff] }
 0x426   :  { %vm3499_vm7 = vcmp.eq.s32.totalorder %v3497_v15, 0  ;;  %v2678_v39 = vshll.u32 %v2677_v26, 30  ;;  %vm3495_vm3 = vweird.f32 %v12450_v53  ;;  %vm3502_vm10 = vcmp.eq.s32.totalorder %v3497_v15, 2 }
 0x427   :  { %vm2579_vm11 = vcmp.lt.s32.totalorder %v12435_v59, 0  ;;  %vm12466_vm13 = vcmp.lt.s32.totalorder %v12438_v42, 1  ;;  %v2956_v54 = vadd.s32 %v2955_v34, %v2945_v22  ;;  %v2975_v51 = vsel %vm2974_vm0, 1, %v12221_v6 }
 0x428   :  { %v2923_v46 = vsel %vm12466_vm13, %v2903_v63, %v12465_v8  ;;  %v3486_v37 = vadd.f32 1.0, %v3485_v48  ;;  %v3493_v28 = vadd.f32 1.0, %v3492_v33  ;;  %v2679_v0 = vsub.s32 %v2675_v24, %v2678_v39 }
 0x429   :  { %v2925_v10 = vsel %vm2921_vm12, %v12437_v32, %v2924_v7  ;;  %v2947_v49 = vshrl.u32 %v9609_v38, 16  ;;  %v2967_v30 = vshrl.u32 %v9632_v40, 16  ;;  %v2977_v18 = vadd.s32 %v2975_v51, %v2973_v4  ;;  %v12471_v51 = vld [vmem:[#allocation12_spill] sm:$0xff] }
 0x42a   :  { %v2112_v23 = vand.u32 2147483647, %v12467_v60  ;;  %v3494_v31 = vmul.f32 %v3493_v28, %v9623_v5  ;;  %v3503_v47 = vxor.u32 2147483648, %v3486_v37  ;;  %vm2680_vm8 = vcmp.lt.s32.totalorder %v2679_v0, 0 }
 0x42b   :  { %v2681_v36 = vsub.s32 0, %v2679_v0  ;;  %v2926_v13 = vsel %vm2920_vm14, %v2923_v46, %v2925_v10  ;;  %v9663_v61 = vadd.s32 %v2956_v54, %v2947_v49  ;;  %v2969_v29 = vshrl.u32 %v2964_v12, 16  ;;  %v12472_v49 = vld [vmem:[#allocation7_spill] sm:$0xff] }
 0x42c   :  { %v2978_v62 = vadd.s32 %v2977_v18, %v2967_v30  ;;  %v3500_v32 = vxor.u32 2147483648, %v3494_v31  ;;  %v2671_v38 = vadd.s32 %v9606_v56, %v9604_v52  ;;  %v2701_v24 = vsub.s32 4, %v2677_v26  ;;  %v12473_v30 = vld [vmem:[#allocation6_spill] sm:$0xff] }
 0x42d   :  { %v2682_v40 = vsel %vm2680_vm8, %v2681_v36, %v2679_v0  ;;  %vm2457_vm12 = vcmp.lt.s32.totalorder %v12453_v11, 4  ;;  %v9668_v5 = vadd.s32 %v2972_v44, %v2968_v2  ;;  %v2119_v42 = vand.u32 8388607, %v2112_v23 }
 0x42e   :  { %v2683_v41 = vclz %v2682_v40  ;;  %v2979_v55 = vadd.s32 %v2978_v62, %v2969_v29  ;;  %v3501_v43 = vsel %vm3499_vm7, %v3486_v37, %v3500_v32  ;;  %v3504_v12 = vsel %vm3502_vm10, %v3503_v47, %v3494_v31  ;;  %v12474_v31 = vld [vmem:[#allocation38_spill] sm:$0xff] }
 0x42f   :  { %v2980_v14 = vmul.u32 %v12468_v17, %v2926_v13  ;;  %v2133_v52 = vshrl.u32 %v12340_v20, %v12469_v45  ;;  %v3505_v56 = vsel %vm3498_vm15, %v3501_v43, %v3504_v12  ;;  %vm2982_vm14 = vc.u32 %v9663_v61, %v9668_v5  ;;  %v12478_v40 = vld [vmem:[#allocation30_spill] sm:$0xff] }
 0x430   :  { %v6147_v34 = vadd.s32 4294967294, %v2683_v41  ;;  %v2130_v2 = vshrl.u32 %v12339_v25, %v12469_v45  ;;  %v3506_v16 = vsel %vm3495_vm3, nan, %v3505_v56  ;;  %v2702_v44 = vsel %vm2579_vm11, %v2701_v24, %v2677_v26  ;;  %v12479_v24 = vld [vmem:[#allocation31_spill] sm:$0xff] }
 0x431   :  { %v2983_v58 = vadd.s32 1, %v2979_v55  ;;  %v2132_v57 = vshll.u32 %v12339_v25, %v12470_v9  ;;  %4075 = vmatpush.msra.mxu0 %v3506_v16  ;;  %v2120_v15 = vor.u32 8388608, %v2119_v42  ;;  %v2129_v63 = vshll.u32 %v12337_v35, %v12470_v9 }
 0x432   :  { %vm6148_vm6 = vcmp.lt.s32.totalorder %v6147_v34, 0  ;;  %v2136_v7 = vshrl.u32 %v12320_v19, %v12469_v45  ;;  %v2135_v26 = vshll.u32 %v12340_v20, %v12470_v9  ;;  %vm2456_vm1 = vcmp.lt.s32.totalorder %v12453_v11, 3 }
 0x433   :  { %v2686_v22 = vsel %vm6148_vm6, 0, %v6147_v34  ;;  %v2984_v4 = vsel %vm2982_vm14, %v2983_v58, %v2979_v55  ;;  %v9692_v53 = vor.u32 %v2133_v52, %v2132_v57  ;;  %v9697_v8 = vor.u32 %v2130_v2, %v2129_v63  ;;  %v12481_v52 = vld [vmem:[#allocation22_spill] sm:$0xff] }
 0x434   :  { %v2687_v48 = vsub.s32 32, %v2686_v22  ;;  %v2691_v33 = vsub.s32 4294967266, %v2686_v22  ;;  %v2985_v39 = vadd.s32 %v2984_v4, %v2980_v14  ;;  %v2688_v46 = vshll.u32 %v2679_v0, %v2686_v22 }
 0x435   :  { %v2137_v54 = vor.u32 %v2136_v7, %v2135_v26  ;;  %vm2144_vm5 = vcmp.lt.s32.totalorder %v12471_v51, 1  ;;  %vm2146_vm2 = vcmp.lt.s32.totalorder %v12471_v51, 3  ;;  %v2463_v47 = vsel %vm2457_vm12, %v12474_v31, 920167782 }
 0x436   :  { %v2689_v37 = vshrl.u32 %v2671_v38, %v2687_v48  ;;  %v2692_v28 = vadd.s32 127, %v2691_v33  ;;  %v2986_v10 = vadd.s32 536870912, %v2985_v39  ;;  %v2158_v18 = vsel %vm2146_vm2, %v12473_v30, %v12472_v49  ;;  %v12477_v38 = vld [vmem:[#allocation37_spill] sm:$0xff] }
 0x437   :  { %vm9710_vm9 = vcmp.le.f32.partialorder %v2577_v3, 0.7853982  ;;  %v2156_v36 = vsel %vm2144_vm5, %v9692_v53, %v2137_v54  ;;  %v9717_v13 = vshll.u32 %v2120_v15, 8  ;;  %vm2145_vm0 = vcmp.lt.s32.totalorder %v12471_v51, 2 }
 0x438   :  { %v2690_v29 = vor.u32 %v2689_v37, %v2688_v46  ;;  %v2693_v62 = vshll.u32 %v2692_v28, 23  ;;  %v9719_v32 = vshrl.u32 %v2986_v10, 30  ;;  %v9726_v3 = vsel %vm2454_vm4, %v12460_v50, %v12477_v38 }
 0x439   :  { %v12480_v41 = vor.u32 %v12478_v40, %v12479_v24  ;;  %v2704_v42 = vsel %vm9710_vm9, 0, %v2702_v44  ;;  %v2159_v43 = vsel %vm2145_vm0, %v2156_v36, %v2158_v18  ;;  %v2152_v14 = vsel %vm2144_vm5, %v9697_v8, %v9692_v53 }
 0x43a   :  { %v2694_v12 = vor.u32 4788187, %v2693_v62  ;;  %v2988_v17 = vshll.u32 %v9719_v32, 30  ;;  %v2154_v56 = vsel %vm2146_vm2, %v2137_v54, %v12481_v52  ;;  %v2161_v34 = vand.u32 65535, %v9717_v13 }
 0x43b   :  { %v2467_v55 = vsel %vm2457_vm12, %v12480_v41, 1326507024  ;;  %v2162_v2 = vshrl.u32 %v9717_v13, 16  ;;  %v2163_v16 = vand.u32 65535, %v2159_v43  ;;  %v2164_v44 = vshrl.u32 %v2159_v43, 16  ;;  %v12483_v41 = vld [vmem:[#allocation15_spill] sm:$0xff] }
 0x43c   :  { %v2695_v58 = vand.u32 2147483647, %v2694_v12  ;;  %v2697_v9 = vcvt.s32.f32 %v2690_v29  ;;  %v2721_v57 = vadd.s32 3, %v2704_v42  ;;  %v2989_v15 = vsub.s32 %v2985_v39, %v2988_v17 }
 0x43d   :  { %v9750_v63 = vsel %vm2456_vm1, %v12477_v38, %v2463_v47  ;;  %v2155_v7 = vsel %vm2145_vm0, %v2152_v14, %v2154_v56  ;;  %v9754_v22 = vmul.u32 %v2164_v44, %v2161_v34  ;;  %v9756_v4 = vmul.u32 %v2163_v16, %v2162_v2 }
 0x43e   :  { %v9761_v26 = vsel %vm2456_vm1, %v12474_v31, %v2467_v55  ;;  %v2698_v48 = vmul.f32 %v2697_v9, %v2695_v58  ;;  %vm2990_vm15 = vcmp.lt.s32.totalorder %v2989_v15, 0  ;;  %v2991_v33 = vsub.s32 0, %v2989_v15 }
 0x43f   :  { %v2981_v39 = vadd.s32 %v9668_v5, %v9663_v61  ;;  %v2128_v46 = vshrl.u32 %v12337_v35, %v12469_v45  ;;  %v2165_v37 = vmul.u32 %v2163_v16, %v2161_v34  ;;  %v2169_v28 = vshll.u32 %v9754_v22, 16 }
 0x440   :  { %v2699_v10 = vxor.u32 2147483648, %v2698_v48  ;;  %v9768_v49 = vand.u32 3, %v2721_v57  ;;  %v2992_v30 = vsel %vm2990_vm15, %v2991_v33, %v2989_v15  ;;  %v2186_v18 = vshrl.u32 %v2155_v7, 16 }
 0x441   :  { %v2993_v47 = vclz %v2992_v30  ;;  %v2171_v31 = vshll.u32 %v9756_v4, 16  ;;  %vm2173_vm7 = vc.u32 %v2165_v37, %v2169_v28  ;;  %v2175_v36 = vadd.s32 %v2169_v28, %v2165_v37 }
 0x442   :  { %v2700_v29 = vsel %vm2579_vm11, %v2699_v10, %v2698_v48  ;;  %vm12482_vm3 = vcmp.lt.s32.totalorder %v12471_v51, 4  ;;  %v2168_v5 = vmul.u32 %v2164_v44, %v2162_v2  ;;  %v2185_v45 = vand.u32 65535, %v2155_v7 }
 0x443   :  { %v2149_v61 = vsel %vm12482_vm3, %v2137_v54, 2102212464  ;;  %v9778_v62 = vsel %vm9710_vm9, %v12435_v59, %v2700_v29  ;;  %v6153_v40 = vadd.s32 4294967294, %v2993_v47  ;;  %v2174_v24 = vsel %vm2173_vm7, 1, %v12221_v6 }
 0x444   :  { %vm2177_vm10 = vc.u32 %v2175_v36, %v2171_v31  ;;  %vm2889_vm13 = vcmp.lt.s32.totalorder %v12483_v41, 0  ;;  %v2705_v55 = vmul.f32 %v9778_v62, %v9778_v62  ;;  %v2148_v54 = vsel %vm2144_vm5, %v2128_v46, %v9697_v8 }
 0x445   :  { %v2176_v42 = vadd.s32 %v2174_v24, %v2168_v5  ;;  %v2188_v43 = vmul.u32 %v2186_v18, %v2161_v34  ;;  %vm6154_vm11 = vcmp.lt.s32.totalorder %v6153_v40, 0  ;;  %v3011_v0 = vsub.s32 4, %v9719_v32 }
 0x446   :  { %v2150_v12 = vsel %vm2146_vm2, %v9692_v53, %v2149_v61  ;;  %v2178_v17 = vsel %vm2177_vm10, 1, %v12221_v6  ;;  %v2706_v14 = vmul.f32 -0.001358992, %v2705_v55  ;;  %v2713_v52 = vmul.f32 -0.00019511016, %v2705_v55 }
 0x447   :  { %v2996_v56 = vsel %vm6154_vm11, 0, %v6153_v40  ;;  %v2189_v16 = vmul.u32 %v2185_v45, %v2162_v2  ;;  %v12484_v44 = vand.u32 2147483647, %v12483_v41  ;;  %v2170_v57 = vshrl.u32 %v9754_v22, 16 }
 0x448   :  { %v2997_v8 = vsub.s32 32, %v2996_v56  ;;  %v3001_v9 = vsub.s32 4294967266, %v2996_v56  ;;  %v2191_v7 = vshll.u32 %v2188_v43, 16  ;;  %v2707_v48 = vadd.f32 0.041655596, %v2706_v14 }
 0x449   :  { %vm9794_vm8 = vcmp.le.f32.partialorder %v12484_v44, 0.7853982  ;;  %v2714_v33 = vadd.f32 0.008332121, %v2713_v52  ;;  %v2180_v53 = vadd.s32 %v2178_v17, %v2176_v42  ;;  %v2187_v46 = vmul.u32 %v2185_v45, %v2161_v34 }
 0x44a   :  { %v2998_v37 = vshll.u32 %v2989_v15, %v2996_v56  ;;  %v2999_v28 = vshrl.u32 %v2981_v39, %v2997_v8  ;;  %v3002_v10 = vadd.s32 127, %v3001_v9  ;;  %v2190_v30 = vmul.u32 %v2186_v18, %v2162_v2 }
 0x44b   :  { %v2708_v47 = vmul.f32 %v2707_v48, %v2705_v55  ;;  %v2715_v31 = vmul.f32 %v2714_v33, %v2705_v55  ;;  %v2193_v36 = vshll.u32 %v2189_v16, 16  ;;  %vm2195_vm14 = vc.u32 %v2187_v46, %v2191_v7 }
 0x44c   :  { %v3000_v29 = vor.u32 %v2999_v28, %v2998_v37  ;;  %v3003_v61 = vshll.u32 %v3002_v10, 23  ;;  %v2196_v5 = vsel %vm2195_vm14, 1, %v12221_v6  ;;  %v2197_v40 = vadd.s32 %v2191_v7, %v2187_v46 }
 0x44d   :  { %v2709_v24 = vadd.f32 -0.4999988, %v2708_v47  ;;  %v2716_v22 = vadd.f32 -0.16666654, %v2715_v31  ;;  %vm2727_vm6 = vcmp.eq.s32.totalorder %v9768_v49, 2  ;;  %v2181_v14 = vadd.s32 %v2180_v53, %v2170_v57  ;;  %v12487_v31 = vld [vmem:[#allocation23_spill] sm:$0xff] }
 0x44e   :  { %v2198_v42 = vadd.s32 %v2196_v5, %v2190_v30  ;;  %vm2724_vm5 = vcmp.eq.s32.totalorder %v9768_v49, 0  ;;  %v3004_v34 = vor.u32 4788187, %v3003_v61  ;;  %v3012_v2 = vsel %vm2889_vm13, %v3011_v0, %v9719_v32 }
 0x44f   :  { %v2151_v15 = vsel %vm2145_vm0, %v2148_v54, %v2150_v12  ;;  %vm2199_vm2 = vc.u32 %v2197_v40, %v2193_v36  ;;  %v2710_v39 = vmul.f32 %v2709_v24, %v2705_v55  ;;  %v2717_v18 = vmul.f32 %v2716_v22, %v2705_v55 }
 0x450   :  { %vm2723_vm9 = vcmp.lt.s32.totalorder %v9768_v49, 2  ;;  %v2172_v45 = vshrl.u32 %v9756_v4, 16  ;;  %v2200_v17 = vsel %vm2199_vm2, 1, %v12221_v6  ;;  %vm2720_vm15 = vweird.f32 %v12435_v59 }
 0x451   :  { %v3005_v52 = vand.u32 2147483647, %v3004_v34  ;;  %v3007_v56 = vcvt.s32.f32 %v3000_v29  ;;  %v2192_v44 = vshrl.u32 %v2188_v43, 16  ;;  %v2202_v8 = vadd.s32 %v2200_v17, %v2198_v42 }
 0x452   :  { %v2711_v9 = vadd.f32 1.0, %v2710_v39  ;;  %v2718_v32 = vadd.f32 1.0, %v2717_v18  ;;  %v3014_v51 = vsel %vm9794_vm8, 0, %v3012_v2  ;;  %v9813_v54 = vadd.s32 %v2181_v14, %v2172_v45 }
 0x453   :  { %v3008_v55 = vmul.f32 %v3007_v56, %v3005_v52  ;;  %v2194_v0 = vshrl.u32 %v2189_v16, 16  ;;  %v2203_v12 = vadd.s32 %v2202_v8, %v2192_v44  ;;  %vm2455_vm0 = vcmp.lt.s32.totalorder %v12453_v11, 2 }
 0x454   :  { %v2719_v4 = vmul.f32 %v2718_v32, %v9778_v62  ;;  %v2728_v57 = vxor.u32 2147483648, %v2711_v9  ;;  %v9817_v7 = vadd.s32 %v2197_v40, %v2193_v36  ;;  %v2469_v43 = vsel %vm2455_vm0, %v9726_v3, %v9761_v26 }
 0x455   :  { %v3009_v48 = vxor.u32 2147483648, %v3008_v55  ;;  %v3031_v33 = vadd.s32 3, %v3014_v51  ;;  %v2204_v53 = vadd.s32 %v2203_v12, %v2194_v0  ;;  %v2473_v46 = vand.u32 65535, %v2469_v43 }
 0x456   :  { %v2725_v37 = vxor.u32 2147483648, %v2719_v4  ;;  %vm2207_vm7 = vc.u32 %v9813_v54, %v9817_v7  ;;  %v2465_v62 = vsel %vm2455_vm0, %v9615_v21, %v9750_v63  ;;  %v2474_v16 = vshrl.u32 %v2469_v43, 16  ;;  %v12488_v21 = vld [vmem:[#allocation4_spill] sm:$0xff] }
 0x457   :  { %v2729_v28 = vsel %vm2727_vm6, %v2728_v57, %v2719_v4  ;;  %v3010_v3 = vsel %vm2889_vm13, %v3009_v48, %v3008_v55  ;;  %v2205_v26 = vmul.u32 %v9717_v13, %v2151_v15  ;;  %v2208_v10 = vadd.s32 1, %v2204_v53 }
 0x458   :  { %v2726_v30 = vsel %vm2724_vm5, %v2711_v9, %v2725_v37  ;;  %v3013_v47 = vsel %vm9794_vm8, %v12483_v41, %v3010_v3  ;;  %v2476_v36 = vmul.u32 %v2474_v16, %v12487_v31  ;;  %v9841_v63 = vmul.u32 %v2473_v46, %v12488_v21 }
 0x459   :  { %v2730_v29 = vsel %vm2723_vm9, %v2726_v30, %v2729_v28  ;;  %v3015_v61 = vmul.f32 %v3013_v47, %v3013_v47  ;;  %v2209_v5 = vsel %vm2207_vm7, %v2208_v10, %v2204_v53  ;;  %v2495_v40 = vand.u32 65535, %v2465_v62 }
 0x45a   :  { %v2731_v13 = vsel %vm2720_vm15, nan, %v2730_v29  ;;  %v2210_v24 = vadd.s32 %v2209_v5, %v2205_v26  ;;  %v2475_v22 = vmul.u32 %v2473_v46, %v12487_v31  ;;  %v2479_v14 = vshll.u32 %v2476_v36, 16 }
 0x45b   :  { %4018 = vmatpush.msrb.mxu2 %v2731_v13  ;;  %v3016_v58 = vmul.f32 -0.001358992, %v3015_v61  ;;  %v3023_v42 = vmul.f32 -0.00019511016, %v3015_v61  ;;  %v2478_v34 = vmul.u32 %v2474_v16, %v12488_v21  ;;  %v2496_v2 = vshrl.u32 %v2465_v62, 16 }
 0x45c   :  { %v2211_v15 = vadd.s32 536870912, %v2210_v24  ;;  %v2481_v49 = vshll.u32 %v9841_v63, 16  ;;  %vm2483_vm3 = vc.u32 %v2475_v22, %v2479_v14  ;;  %v2485_v39 = vadd.s32 %v2479_v14, %v2475_v22 }
 0x45d   :  { %v3017_v18 = vadd.f32 0.041655596, %v3016_v58  ;;  %v3024_v45 = vadd.f32 0.008332121, %v3023_v42  ;;  %v2484_v59 = vsel %vm2483_vm3, 1, %v12221_v6  ;;  %v2498_v17 = vmul.u32 %v2496_v2, %v12487_v31 }
 0x45e   :  { %v9852_v52 = vshrl.u32 %v2211_v15, 30  ;;  %v2486_v56 = vadd.s32 %v2484_v59, %v2478_v34  ;;  %vm2487_vm10 = vc.u32 %v2485_v39, %v2481_v49  ;;  %v3032_v9 = vand.u32 3, %v3031_v33 }
 0x45f   :  { %v3018_v44 = vmul.f32 %v3017_v18, %v3015_v61  ;;  %v3025_v8 = vmul.f32 %v3024_v45, %v3015_v61  ;;  %v2488_v32 = vsel %vm2487_vm10, 1, %v12221_v6  ;;  %v2499_v55 = vmul.u32 %v2495_v40, %v12488_v21 }
 0x460   :  { %v2213_v51 = vshll.u32 %v9852_v52, 30  ;;  %v2501_v0 = vshll.u32 %v2498_v17, 16  ;;  %v2497_v57 = vmul.u32 %v2495_v40, %v12487_v31  ;;  %v2490_v48 = vadd.s32 %v2488_v32, %v2486_v56 }
 0x461   :  { %v3019_v12 = vadd.f32 -0.4999988, %v3018_v44  ;;  %v3026_v4 = vadd.f32 -0.16666654, %v3025_v8  ;;  %vm3033_vm13 = vcmp.lt.s32.totalorder %v3032_v9, 2  ;;  %v2480_v37 = vshrl.u32 %v2476_v36, 16 }
 0x462   :  { %v2214_v43 = vsub.s32 %v2210_v24, %v2213_v51  ;;  %vm2505_vm11 = vc.u32 %v2497_v57, %v2501_v0  ;;  %vm3030_vm8 = vweird.f32 %v12483_v41  ;;  %v2500_v62 = vmul.u32 %v2496_v2, %v12488_v21  ;;  %v12489_v21 = vld [vmem:[#allocation20_spill] sm:$0xff] }
 0x463   :  { %v3020_v53 = vmul.f32 %v3019_v12, %v3015_v61  ;;  %v3027_v46 = vmul.f32 %v3026_v4, %v3015_v61  ;;  %v2503_v16 = vshll.u32 %v2499_v55, 16  ;;  %v2506_v26 = vsel %vm2505_vm11, 1, %v12221_v6 }
 0x464   :  { %vm2215_vm14 = vcmp.lt.s32.totalorder %v2214_v43, 0  ;;  %v2216_v33 = vsub.s32 0, %v2214_v43  ;;  %v2507_v10 = vadd.s32 %v2501_v0, %v2497_v57  ;;  %v2459_v31 = vsel %vm2457_vm12, %v12477_v38, 2102212464 }
 0x465   :  { %v3021_v28 = vadd.f32 1.0, %v3020_v53  ;;  %v3028_v3 = vadd.f32 1.0, %v3027_v46  ;;  %v2491_v29 = vadd.s32 %v2490_v48, %v2480_v37  ;;  %v2508_v36 = vadd.s32 %v2506_v26, %v2500_v62 }
 0x466   :  { %v2217_v30 = vsel %vm2215_vm14, %v2216_v33, %v2214_v43  ;;  %vm2509_vm6 = vc.u32 %v2507_v10, %v2503_v16  ;;  %vm3034_vm5 = vcmp.eq.s32.totalorder %v3032_v9, 0  ;;  %vm3037_vm2 = vcmp.eq.s32.totalorder %v3032_v9, 2 }
 0x467   :  { %v3029_v61 = vmul.f32 %v3028_v3, %v3013_v47  ;;  %v3038_v5 = vxor.u32 2147483648, %v3021_v28  ;;  %v2218_v40 = vclz %v2217_v30  ;;  %v2438_v13 = vshrl.u32 %v12337_v35, %v12489_v21 }
 0x468   :  { %v2510_v24 = vsel %vm2509_vm6, 1, %v12221_v6  ;;  %v2206_v14 = vadd.s32 %v9817_v7, %v9813_v54  ;;  %v2482_v38 = vshrl.u32 %v9841_v63, 16  ;;  %v2460_v42 = vsel %vm2456_vm1, %v12460_v50, %v2459_v31 }
 0x469   :  { %v3035_v22 = vxor.u32 2147483648, %v3029_v61  ;;  %v6138_v58 = vadd.s32 4294967294, %v2218_v40  ;;  %v2458_v47 = vsel %vm2454_vm4, %v2438_v13, %v12461_v27  ;;  %v2502_v34 = vshrl.u32 %v2498_v17, 16 }
 0x46a   :  { %v2512_v2 = vadd.s32 %v2510_v24, %v2508_v36  ;;  %v3039_v49 = vsel %vm3037_vm2, %v3038_v5, %v3029_v61  ;;  %v2492_v39 = vadd.s32 %v2491_v29, %v2482_v38  ;;  %v2504_v7 = vshrl.u32 %v2499_v55, 16  ;;  %v12490_v55 = vld [vmem:[#allocation19_spill] sm:$0xff] }
 0x46b   :  { %v3036_v15 = vsel %vm3034_vm5, %v3021_v28, %v3035_v22  ;;  %vm6139_vm12 = vcmp.lt.s32.totalorder %v6138_v58, 0  ;;  %v2511_v56 = vadd.s32 %v2507_v10, %v2503_v16  ;;  %v2461_v50 = vsel %vm2455_vm0, %v2458_v47, %v2460_v42 }
 0x46c   :  { %v3040_v18 = vsel %vm3033_vm13, %v3036_v15, %v3039_v49  ;;  %v2221_v54 = vsel %vm6139_vm12, 0, %v6138_v58  ;;  %v2513_v45 = vadd.s32 %v2512_v2, %v2502_v34  ;;  %v2515_v12 = vmul.u32 %v12490_v55, %v2461_v50 }
 0x46d   :  { %v3041_v63 = vsel %vm3030_vm8, nan, %v3040_v18  ;;  %v2222_v59 = vsub.s32 32, %v2221_v54  ;;  %v2226_v27 = vsub.s32 4294967266, %v2221_v54  ;;  %v2223_v44 = vshll.u32 %v2214_v43, %v2221_v54 }
 0x46e   :  { %4076 = vmatpush.msra.mxu0 %v3041_v63  ;;  %v2514_v17 = vadd.s32 %v2513_v45, %v2504_v7  ;;  %vm2517_vm4 = vc.u32 %v2492_v39, %v2511_v56  ;;  %vm2114_vm1 = vcmp.lt.s32.totalorder %v12467_v60, 0  ;;  %vm9888_vm9 = vcmp.le.f32.partialorder %v2112_v23, 0.7853982 }
 0x46f   :  { %v2224_v8 = vshrl.u32 %v2206_v14, %v2222_v59  ;;  %v2227_v32 = vadd.s32 127, %v2226_v27  ;;  %v2236_v3 = vsub.s32 4, %v9852_v52  ;;  %v2516_v42 = vadd.s32 %v2511_v56, %v2492_v39 }
 0x470   :  { %v2518_v9 = vadd.s32 1, %v2514_v17  ;;  %vm12493_vm7 = vcmask 261120   ;;  %vm2255_vm11 = vweird.f32 %v12467_v60 }
 0x471   :  { %v2225_v51 = vor.u32 %v2224_v8, %v2223_v44  ;;  %v2228_v0 = vshll.u32 %v2227_v32, 23  ;;  %v2237_v61 = vsel %vm2114_vm1, %v2236_v3, %v9852_v52  ;;  %v9899_v8 = vpop.permute.xlu2 %3990  ;;  %vm12495_vm14 = vmmov %vm12493_vm7 }
 0x472   :  { %v2519_v4 = vsel %vm2517_vm4, %v2518_v9, %v2514_v17  ;;  %v2239_v13 = vsel %vm9888_vm9, 0, %v2237_v61  ;;  %6178 = vmatmul.msk.f32.gmra.mxu3 %vm12493_vm7, %v9899_v8  ;;  %vm12499_vm5 = vmmov %vm12493_vm7 }
 0x473   :  { %v2229_v41 = vor.u32 4788187, %v2228_v0  ;;  %v2520_v57 = vadd.s32 %v2519_v4, %v2515_v12  ;;  %v2232_v53 = vcvt.s32.f32 %v2225_v51  ;;  %v2256_v47 = vadd.s32 3, %v2239_v13  ;;  %vm12500_vm2 = vmmov %vm12499_vm5  ;;  %v6253_v13 = vld [vmem:[%s11900_s3 + $0x10] sm:$0xff] }
 0x474   :  { %vm12501_vm12 = vmmov %vm12500_vm2 }
 0x475   :  { %v2230_v48 = vand.u32 2147483647, %v2229_v41  ;;  %v2521_v46 = vadd.s32 536870912, %v2520_v57  ;;  %v2257_v63 = vand.u32 3, %v2256_v47  ;;  %v12494_v41 = vld [vmem:[#allocation18_spill] sm:$0xff]  ;;  %vm12502_vm4 = vmmov %vm12500_vm2 }
 0x476   :  { %vm2424_vm8 = vcmp.lt.s32.totalorder %v12494_v41, 0  ;;  %vm12503_vm7 = vmmov %vm12500_vm2 }
 0x477   :  { %v2233_v37 = vmul.f32 %v2232_v53, %v2230_v48  ;;  %v9882_v33 = vshrl.u32 %v2521_v46, 30  ;;  %vm2259_vm3 = vcmp.eq.s32.totalorder %v2257_v63, 0  ;;  %vm2262_vm10 = vcmp.eq.s32.totalorder %v2257_v63, 2  ;;  %v3993_v46 = vpop.permute.xlu0 %3992 }
 0x478   :  { %vm2258_vm13 = vcmp.lt.s32.totalorder %v2257_v63, 2  ;;  %v6258_v63 = vld [vmem:[%s11901_s2 + $0x18] sm:$0xff] }
 0x479   :  { %v2234_v11 = vxor.u32 2147483648, %v2233_v37  ;;  %v2523_v43 = vshll.u32 %v9882_v33, 30 }
 0x47a   :  { %6179 = vmatmul.msk.f32.gmra.mxu3 %vm12499_vm5, %v3993_v46 }
 0x47b   :  { %v2235_v16 = vsel %vm2114_vm1, %v2234_v11, %v2233_v37  ;;  %v2524_v28 = vsub.s32 %v2520_v57, %v2523_v43  ;;  %v12496_v57 = vand.u32 2147483647, %v12494_v41 }
 0x47c   :  { %v2238_v26 = vsel %vm9888_vm9, %v12467_v60, %v2235_v16  ;;  %v2546_v60 = vsub.s32 4, %v9882_v33 }
 0x47d   :  { %v2240_v10 = vmul.f32 %v2238_v26, %v2238_v26  ;;  %vm2525_vm15 = vcmp.lt.s32.totalorder %v2524_v28, 0  ;;  %v2526_v30 = vsub.s32 0, %v2524_v28  ;;  %vm9909_vm6 = vcmp.le.f32.partialorder %v12496_v57, 0.7853982 }
 0x47e   :  { %v2547_v16 = vsel %vm2424_vm8, %v2546_v60, %v9882_v33  ;;  %v6251_v33 = vld [vmem:[%s11900_s3 + $0x8] sm:$0xff] }
 0x47f   :  { %v2241_v31 = vmul.f32 -0.001358992, %v2240_v10  ;;  %v2248_v29 = vmul.f32 -0.00019511016, %v2240_v10  ;;  %v2527_v36 = vsel %vm2525_vm15, %v2526_v30, %v2524_v28 }
 0x480   :  { %v2528_v23 = vclz %v2527_v36 }
 0x481   :  { %v2242_v5 = vadd.f32 0.041655596, %v2241_v31  ;;  %v2249_v40 = vadd.f32 0.008332121, %v2248_v29  ;;  %v3995_v31 = vpop.permute.xlu1 %3994  ;;  %v6268_v29 = vmov 1  }
 0x482   :  { %v6144_v21 = vadd.s32 4294967294, %v2528_v23  ;;  %6248 = vset.pattern.permute.xlu1 %v6268_v29  ;;  %6180 = vmatmul.msk.f32.gmra.mxu3 %vm12501_vm12, %v3995_v31 }
 0x483   :  { %v2243_v24 = vmul.f32 %v2242_v5, %v2240_v10  ;;  %v2250_v22 = vmul.f32 %v2249_v40, %v2240_v10  ;;  %3977 = vperm.xlu1 %6248, %v6251_v33   ;;  %6246 = vset.pattern.permute.xlu2 %v6268_v29  ;;  %v6252_v5 = vld [vmem:[%s11900_s3 + $0x18] sm:$0xff] }
 0x484   :  { %vm6145_vm0 = vcmp.lt.s32.totalorder %v6144_v21, 0  ;;  %6247 = vset.pattern.permute.xlu0 %v6268_v29  ;;  %3985 = vperm.xlu2 %6246, %v6252_v5  }
 0x485   :  { %v2244_v14 = vadd.f32 -0.4999988, %v2243_v24  ;;  %v2251_v58 = vadd.f32 -0.16666654, %v2250_v22  ;;  %v2531_v38 = vsel %vm6145_vm0, 0, %v6144_v21  ;;  %3981 = vperm.xlu0 %6247, %v6253_v13   ;;  %vm2565_vm0 = vweird.f32 %v12494_v41 }
 0x486   :  { %v2532_v34 = vsub.s32 32, %v2531_v38  ;;  %v2536_v2 = vsub.s32 4294967266, %v2531_v38  ;;  %v2533_v52 = vshll.u32 %v2524_v28, %v2531_v38 }
 0x487   :  { %v2245_v15 = vmul.f32 %v2244_v14, %v2240_v10  ;;  %v2252_v49 = vmul.f32 %v2251_v58, %v2240_v10 }
 0x488   :  { %v2534_v18 = vshrl.u32 %v2516_v42, %v2532_v34  ;;  %v2537_v54 = vadd.s32 127, %v2536_v2  ;;  %v6254_v42 = vld [vmem:[%s11900_s3] sm:$0xff] }
 0x489   :  { %v2246_v7 = vadd.f32 1.0, %v2245_v15  ;;  %v2253_v45 = vadd.f32 1.0, %v2252_v49 }
 0x48a   :  { %v2535_v59 = vor.u32 %v2534_v18, %v2533_v52  ;;  %v2538_v27 = vshll.u32 %v2537_v54, 23  ;;  %v6255_v18 = vld [vmem:[%s11901_s2] sm:$0xff]  ;;  %v6256_v54 = vld [vmem:[%s11901_s2 + $0x10] sm:$0xff] }
 0x48b   :  { %v2254_v50 = vmul.f32 %v2253_v45, %v2238_v26  ;;  %v2263_v17 = vxor.u32 2147483648, %v2246_v7  ;;  %v2549_v26 = vsel %vm9909_vm6, 0, %v2547_v16  ;;  %5964 = vrot.lane.b32.xlu1 %v6255_v18, %s6269_s27  ;;  %v4050_v45 = vpop.f32.mrf.mxu3 }
 0x48c   :  { %v2539_v44 = vor.u32 4788187, %v2538_v27  ;;  %v2542_v56 = vcvt.s32.f32 %v2535_v59  ;;  %v2566_v23 = vadd.s32 3, %v2549_v26  ;;  %3973 = vperm.xlu2 %6246, %v6254_v42   ;;  %v12514_v26 = vmov 920167782  }
 0x48d   :  { %v2260_v32 = vxor.u32 2147483648, %v2254_v50  ;;  %v2264_v51 = vsel %vm2262_vm10, %v2263_v17, %v2254_v50  ;;  %vm12505_vm10 = vmmov %vm12500_vm2  ;;  %5968 = vrot.lane.b32.xlu0 %v6256_v54, %s6269_s27 }
 0x48e   :  { %v2540_v39 = vand.u32 2147483647, %v2539_v44  ;;  %v2567_v14 = vand.u32 3, %v2566_v23 }
 0x48f   :  { %v2261_v9 = vsel %vm2259_vm3, %v2246_v7, %v2260_v32  ;;  %vm12504_vm3 = vmmov %vm12500_vm2 }
 0x490   :  { %v2265_v0 = vsel %vm2258_vm13, %v2261_v9, %v2264_v51  ;;  %v2543_v55 = vmul.f32 %v2542_v56, %v2540_v39  ;;  %vm2569_vm1 = vcmp.eq.s32.totalorder %v2567_v14, 0  ;;  %vm2572_vm9 = vcmp.eq.s32.totalorder %v2567_v14, 2  ;;  %vm12506_vm13 = vmmov %vm12500_vm2 }
 0x491   :  { %v2266_v12 = vsel %vm2255_vm11, nan, %v2265_v0  ;;  %vm2568_vm15 = vcmp.lt.s32.totalorder %v2567_v14, 2  ;;  %vm12507_vm11 = vmmov %vm12500_vm2 }
 0x492   :  { %4019 = vmatpush.msrb.mxu2 %v2266_v12  ;;  %v2544_v4 = vxor.u32 2147483648, %v2543_v55 }
 0x493   :  { %6173 = vmatmul.msk.f32.vlgmr.msrb.gmra.mxu2 %vm12495_vm14, %v9379_v1  ;;  %5970 = vrot.lane.b32.xlu1 %v6258_v63, %s6269_s27 }
 0x494   :  { %v2545_v53 = vsel %vm2424_vm8, %v2544_v4, %v2543_v55 }
 0x495   :  { %v2548_v37 = vsel %vm9909_vm6, %v12494_v41, %v2545_v53 }
 0x496   :  { %v2550_v11 = vmul.f32 %v2548_v37, %v2548_v37 }
 0x498   :  { %v2551_v43 = vmul.f32 -0.001358992, %v2550_v11  ;;  %v2558_v62 = vmul.f32 -0.00019511016, %v2550_v11 }
 0x49a   :  { %v2552_v28 = vadd.f32 0.041655596, %v2551_v43  ;;  %v2559_v3 = vadd.f32 0.008332121, %v2558_v62 }
 0x49b   :  { %6174 = vmatmul.msk.f32.gmra.mxu2 %vm12500_vm2, %v9899_v8 }
 0x49c   :  { %v2553_v10 = vmul.f32 %v2552_v28, %v2550_v11  ;;  %v2560_v30 = vmul.f32 %v2559_v3, %v2550_v11 }
 0x49e   :  { %v2554_v36 = vadd.f32 -0.4999988, %v2553_v10  ;;  %v2561_v61 = vadd.f32 -0.16666654, %v2560_v30 }
 0x4a0   :  { %v2555_v40 = vmul.f32 %v2554_v36, %v2550_v11  ;;  %v2562_v21 = vmul.f32 %v2561_v61, %v2550_v11  ;;  %v12515_v36 = vmov 1326507024  }
 0x4a2   :  { %v2556_v24 = vadd.f32 1.0, %v2555_v40  ;;  %v2563_v22 = vadd.f32 1.0, %v2562_v21 }
 0x4a3   :  { %6175 = vmatmul.msk.f32.gmra.mxu2 %vm12502_vm4, %v3993_v46 }
 0x4a4   :  { %v2564_v58 = vmul.f32 %v2563_v22, %v2548_v37  ;;  %v2573_v38 = vxor.u32 2147483648, %v2556_v24 }
 0x4a6   :  { %v2570_v47 = vxor.u32 2147483648, %v2564_v58  ;;  %v2574_v2 = vsel %vm2572_vm9, %v2573_v38, %v2564_v58 }
 0x4a8   :  { %v2571_v34 = vsel %vm2569_vm1, %v2556_v24, %v2570_v47 }
 0x4a9   :  { %v2575_v15 = vsel %vm2568_vm15, %v2571_v34, %v2574_v2 }
 0x4aa   :  { %v2576_v49 = vsel %vm2565_vm0, nan, %v2575_v15 }
 0x4ab   :  { %4077 = vmatpush.msra.mxu0 %v2576_v49  ;;  %6176 = vmatmul.msk.f32.gmra.mxu2 %vm12503_vm7, %v3995_v31 }
 0x4ac   :  { %6181 = vmatmul.msk.f32.vlgmr.msra.gmra.mxu0 %vm12504_vm3, %v9379_v1  ;;  %v6257_v1 = vld [vmem:[%s11901_s2 + $0x8] sm:$0xff] }
 0x4ad   :  { %5966 = vrot.lane.b32.xlu2 %v6257_v1, %s6269_s27 }
 0x4b4   :  { %6182 = vmatmul.msk.f32.gmra.mxu0 %vm12505_vm10, %v9899_v8 }
 0x4bc   :  { %6183 = vmatmul.msk.f32.gmra.mxu0 %vm12506_vm13, %v3993_v46 }
 0x4c4   :  { %6184 = vmatmul.msk.f32.gmra.mxu0 %vm12507_vm11, %v3995_v31 }
 0x4de   :  { %v9945_v52 = vpop.permute.xlu2 %3985 }
 0x4e6   :  { %v3974_v7 = vpop.permute.xlu2 %3973 }
 0x4e7   :  { %v9959_v59 = vadd.f32 %v4050_v45, %v3974_v7 }
 0x4e9   :  { %12508 = vst [vmem:[#allocation63_spill] sm:$0xff] %v9959_v59  ;;  %v4249_v27 = vand.u32 2139095040, %v9959_v59  ;;  %v12076_v4 = vand.u32 2147483647, %v9959_v59 }
 0x4eb   :  { %v4250_v50 = vshrl.u32 %v4249_v27, 23  ;;  %v4253_v46 = vand.u32 8388607, %v12076_v4 }
 0x4ed   :  { %v6188_v17 = vadd.s32 4294967169, %v4250_v50  ;;  %v4254_v28 = vor.u32 8388608, %v4253_v46 }
 0x4ef   :  { %v4256_v32 = vadd.s32 1, %v6188_v17  ;;  %v10004_v54 = vshll.u32 %v4254_v28, 8 }
 0x4f1   :  { %vm4257_vm8 = vcmp.gt.s32.totalorder %v4256_v32, 0  ;;  %12516 = vst [vmem:[#allocation8_spill] sm:$0xff] %v10004_v54 }
 0x4f2   :  { %v4258_v9 = vsel %vm4257_vm8, %v4256_v32, 0 }
 0x4f3   :  { %v4260_v57 = vand.u32 31, %v4258_v9  ;;  %v9981_v3 = vshrl.u32 %v4258_v9, 5  ;;  %v10030_v9 = vshrl.u32 %v10004_v54, 16 }
 0x4f5   :  { %v9967_v55 = vpop.permute.xlu1 %3977  ;;  %v4053_v12 = vpop.f32.mrf.mxu3  ;;  %v9976_v37 = vsub.s32 32, %v4260_v57  ;;  %12513 = vst [vmem:[#allocation69_spill] sm:$0xff] %v9981_v3  ;;  %v4263_v29 = vshll.u32 %v12337_v35, %v4260_v57  ;;  %v4266_v5 = vshll.u32 %v12339_v25, %v4260_v57  ;;  %v4272_v40 = vshll.u32 %v12320_v19, %v4260_v57 }
 0x4f6   :  { %v9972_v53 = vadd.f32 %v4053_v12, %v9967_v55  ;;  %v4275_v21 = vshll.u32 %v12514_v26, %v4260_v57  ;;  %v4269_v38 = vshll.u32 %v12340_v20, %v4260_v57  ;;  %vm12163_vm6 = vcmp.lt.s32.totalorder %v9981_v3, 4  ;;  %12524 = vst [vmem:[#allocation48_spill] sm:$0xff] %v10030_v9 }
 0x4f7   :  { %12512 = vst [vmem:[#allocation28_spill] sm:$0xff] %v9976_v37  ;;  %v4273_v10 = vshrl.u32 %v12514_v26, %v9976_v37  ;;  %v4276_v61 = vshrl.u32 %v12515_v36, %v9976_v37  ;;  %v4264_v24 = vshrl.u32 %v12339_v25, %v9976_v37  ;;  %v4267_v22 = vshrl.u32 %v12340_v20, %v9976_v37 }
 0x4f8   :  { %12511 = vst [vmem:[#allocation72_spill] sm:$0xff] %v9972_v53  ;;  %v12077_v62 = vand.u32 2147483647, %v9972_v53  ;;  %v4714_v16 = vand.u32 2139095040, %v9972_v53  ;;  %v4270_v14 = vshrl.u32 %v12320_v19, %v9976_v37  ;;  %vm12162_vm2 = vcmp.lt.s32.totalorder %v9981_v3, 1 }
 0x4f9   :  { %v4274_v47 = vor.u32 %v4273_v10, %v4272_v40  ;;  %v4277_v2 = vor.u32 %v4276_v61, %v4275_v21  ;;  %v10006_v1 = vor.u32 %v4264_v24, %v4263_v29  ;;  %vm12150_vm12 = vcmp.lt.s32.totalorder %v9981_v3, 3 }
 0x4fa   :  { %v4715_v33 = vshrl.u32 %v4714_v16, 23  ;;  %v4718_v23 = vand.u32 8388607, %v12077_v62  ;;  %v10010_v45 = vor.u32 %v4270_v14, %v4269_v38 }
 0x4fb   :  { %12517 = vst [vmem:[#allocation21_spill] sm:$0xff] %v10006_v1  ;;  %v4287_v27 = vsel %vm12163_vm6, %v4274_v47, 920167782  ;;  %v4291_v17 = vsel %vm12163_vm6, %v4277_v2, 1326507024 }
 0x4fc   :  { %v6197_v49 = vadd.s32 4294967169, %v4715_v33  ;;  %v4719_v18 = vor.u32 8388608, %v4718_v23  ;;  %12519 = vst [vmem:[#allocation70_spill] sm:$0xff] %v10010_v45  ;;  %v10051_v46 = vsel %vm12150_vm12, %v4274_v47, %v4291_v17 }
 0x4fd   :  { %12528 = vst [vmem:[#allocation57_spill] sm:$0xff] %v10051_v46 }
 0x4fe   :  { %v4721_v32 = vadd.s32 1, %v6197_v49 }
 0x500   :  { %vm4722_vm4 = vcmp.gt.s32.totalorder %v4721_v32, 0 }
 0x501   :  { %v4723_v38 = vsel %vm4722_vm4, %v4721_v32, 0 }
 0x516   :  { %v4021_v44 = vpop.f32.mrf.mxu2 }
 0x517   :  { %v9962_v8 = vadd.f32 %v4021_v44, %v3974_v7 }
 0x519   :  { %12509 = vst [vmem:[#allocation60_spill] sm:$0xff] %v9962_v8  ;;  %v4094_v39 = vand.u32 2139095040, %v9962_v8  ;;  %v12074_v43 = vand.u32 2147483647, %v9962_v8 }
 0x51b   :  { %v4095_v56 = vshrl.u32 %v4094_v39, 23  ;;  %v4098_v31 = vand.u32 8388607, %v12074_v43  ;;  %v10022_v39 = vshll.u32 %v4719_v18, 8 }
 0x51d   :  { %v6185_v41 = vadd.s32 4294967169, %v4095_v56  ;;  %v4099_v34 = vor.u32 8388608, %v4098_v31  ;;  %12522 = vst [vmem:[#allocation11_spill] sm:$0xff] %v10022_v39  ;;  %v10027_v56 = vand.u32 65535, %v10004_v54  ;;  %v10064_v31 = vand.u32 65535, %v10022_v39 }
 0x51e   :  { %v4024_v28 = vpop.f32.mrf.mxu2  ;;  %v10094_v2 = vshrl.u32 %v10022_v39, 16 }
 0x51f   :  { %v4101_v60 = vadd.s32 1, %v6185_v41  ;;  %v10016_v50 = vshll.u32 %v4099_v34, 8  ;;  %12523 = vst [vmem:[#allocation2_spill] sm:$0xff] %v10027_v56 }
 0x520   :  { %12532 = vst [vmem:[#allocation65_spill] sm:$0xff] %v10064_v31 }
 0x521   :  { %vm4102_vm14 = vcmp.gt.s32.totalorder %v4101_v60, 0  ;;  %12520 = vst [vmem:[#allocation16_spill] sm:$0xff] %v10016_v50 }
 0x522   :  { %v4103_v13 = vsel %vm4102_vm14, %v4101_v60, 0  ;;  %v10054_v60 = vand.u32 65535, %v10016_v50  ;;  %12539 = vst [vmem:[#allocation56_spill] sm:$0xff] %v10094_v2 }
 0x523   :  { %v4105_v15 = vand.u32 31, %v4103_v13  ;;  %v10059_v10 = vshrl.u32 %v4103_v13, 5  ;;  %v10079_v13 = vadd.f32 %v4024_v28, %v9967_v55 }
 0x524   :  { %12529 = vst [vmem:[#allocation59_spill] sm:$0xff] %v10054_v60 }
 0x525   :  { %v10020_v44 = vsub.s32 32, %v4105_v15  ;;  %12531 = vst [vmem:[#allocation66_spill] sm:$0xff] %v10059_v10  ;;  %v4117_v23 = vshll.u32 %v12320_v19, %v4105_v15  ;;  %v4108_v24 = vshll.u32 %v12337_v35, %v4105_v15  ;;  %v4114_v47 = vshll.u32 %v12340_v20, %v4105_v15 }
 0x526   :  { %12535 = vst [vmem:[#allocation44_spill] sm:$0xff] %v10079_v13  ;;  %v10091_v34 = vshll.u32 %v12514_v26, %v4105_v15  ;;  %vm12121_vm1 = vcmp.lt.s32.totalorder %v10059_v10, 4 }
 0x527   :  { %12521 = vst [vmem:[#allocation9_spill] sm:$0xff] %v10020_v44  ;;  %v4109_v61 = vshrl.u32 %v12339_v25, %v10020_v44  ;;  %v4112_v33 = vshrl.u32 %v12340_v20, %v10020_v44  ;;  %v4115_v40 = vshrl.u32 %v12320_v19, %v10020_v44  ;;  %v10085_v14 = vshrl.u32 %v12515_v36, %v10020_v44 }
 0x528   :  { %12538 = vst [vmem:[#allocation67_spill] sm:$0xff] %v10091_v34 }
 0x529   :  { %v4079_v51 = vpop.f32.mrf.mxu0  ;;  %12536 = vst [vmem:[#allocation45_spill] sm:$0xff] %v10085_v14  ;;  %v10098_v49 = vor.u32 %v4109_v61, %v4108_v24  ;;  %v10109_v32 = vor.u32 %v4115_v40, %v4114_v47  ;;  %v10125_v24 = vshrl.u32 %v4723_v38, 5 }
 0x52a   :  { %v9965_v0 = vadd.f32 %v4079_v51, %v3974_v7  ;;  %v10008_v7 = vor.u32 %v4267_v22, %v4266_v5  ;;  %v4111_v22 = vshll.u32 %v12339_v25, %v4105_v15  ;;  %v4559_v15 = vand.u32 2139095040, %v10079_v13 }
 0x52b   :  { %12541 = vst [vmem:[#allocation51_spill] sm:$0xff] %v10098_v49  ;;  %vm4746_vm10 = vcmp.lt.s32.totalorder %v10125_v24, 4  ;;  %vm4743_vm13 = vcmp.lt.s32.totalorder %v10125_v24, 1  ;;  %vm12180_vm11 = vcmp.lt.s32.totalorder %v10125_v24, 3 }
 0x52c   :  { %12510 = vst [vmem:[#allocation71_spill] sm:$0xff] %v9965_v0  ;;  %v4404_v48 = vand.u32 2139095040, %v9965_v0  ;;  %v12075_v58 = vand.u32 2147483647, %v9965_v0  ;;  %v10036_v51 = vsel %vm12162_vm2, %v10006_v1, %v10008_v7  ;;  %v10042_v12 = vsel %vm12162_vm2, %v10008_v7, %v10010_v45 }
 0x52d   :  { %12518 = vst [vmem:[#allocation5_spill] sm:$0xff] %v10008_v7  ;;  %v10100_v18 = vor.u32 %v4112_v33, %v4111_v22  ;;  %v4560_v43 = vshrl.u32 %v4559_v15, 23 }
 0x52e   :  { %v4405_v11 = vshrl.u32 %v4404_v48, 23  ;;  %v4408_v63 = vand.u32 8388607, %v12075_v58  ;;  %12525 = vst [vmem:[#allocation43_spill] sm:$0xff] %v10036_v51  ;;  %v10047_v48 = vsel %vm12150_vm12, %v10010_v45, %v4287_v27 }
 0x52f   :  { %12526 = vst [vmem:[#allocation54_spill] sm:$0xff] %v10042_v12 }
 0x530   :  { %v6191_v30 = vadd.s32 4294967169, %v4405_v11  ;;  %v4409_v41 = vor.u32 8388608, %v4408_v63  ;;  %12527 = vst [vmem:[#allocation61_spill] sm:$0xff] %v10047_v48  ;;  %v10057_v11 = vshrl.u32 %v10016_v50, 16 }
 0x531   :  { %v4082_v16 = vpop.f32.mrf.mxu0  ;;  %12542 = vst [vmem:[#allocation50_spill] sm:$0xff] %v10100_v18 }
 0x532   :  { %v4411_v42 = vadd.s32 1, %v6191_v30  ;;  %12530 = vst [vmem:[#allocation58_spill] sm:$0xff] %v10057_v11  ;;  %v4118_v30 = vshrl.u32 %v12514_v26, %v10020_v44  ;;  %v10071_v5 = vshll.u32 %v4409_v41, 8  ;;  %v10076_v21 = vadd.f32 %v4082_v16, %v9967_v55  ;;  %v10112_v41 = vpop.permute.xlu0 %3981  ;;  %v4056_v16 = vpop.f32.mrf.mxu3 }
 0x533   :  { %12545 = vst [vmem:[#allocation3_spill] sm:$0xff] %v10109_v32  ;;  %v10130_v28 = vadd.f32 %v4056_v16, %v10112_v41  ;;  %v6194_v11 = vadd.s32 4294967169, %v4560_v43 }
 0x534   :  { %vm4412_vm5 = vcmp.gt.s32.totalorder %v4411_v42, 0  ;;  %12533 = vst [vmem:[#allocation68_spill] sm:$0xff] %v10071_v5  ;;  %v4869_v63 = vand.u32 2139095040, %v10076_v21  ;;  %v10104_v27 = vand.u32 65535, %v10071_v5  ;;  %v10107_v17 = vshrl.u32 %v10071_v5, 16 }
 0x535   :  { %v4413_v57 = vsel %vm4412_vm5, %v4411_v42, 0  ;;  %12534 = vst [vmem:[#allocation62_spill] sm:$0xff] %v10076_v21  ;;  %v10088_v42 = vor.u32 %v4118_v30, %v4117_v23  ;;  %v4725_v30 = vand.u32 31, %v4723_v38  ;;  %v12089_v50 = vand.u32 2147483647, %v10076_v21 }
 0x536   :  { %v4415_v29 = vand.u32 31, %v4413_v57  ;;  %12543 = vst [vmem:[#allocation40_spill] sm:$0xff] %v10104_v27  ;;  %v4870_v61 = vshrl.u32 %v4869_v63, 23  ;;  %v10117_v33 = vshrl.u32 %v4413_v57, 5  ;;  %v5179_v60 = vand.u32 2139095040, %v10130_v28 }
 0x537   :  { %12537 = vst [vmem:[#allocation64_spill] sm:$0xff] %v10088_v42  ;;  %v10123_v40 = vsel %vm12121_vm1, %v10088_v42, 920167782  ;;  %v10142_v15 = vsub.s32 32, %v4725_v30  ;;  %v4728_v49 = vshll.u32 %v12337_v35, %v4725_v30  ;;  %v4734_v10 = vshll.u32 %v12340_v20, %v4725_v30 }
 0x538   :  { %v10096_v55 = vsub.s32 32, %v4415_v29  ;;  %12544 = vst [vmem:[#allocation27_spill] sm:$0xff] %v10107_v17  ;;  %v4418_v23 = vshll.u32 %v12337_v35, %v4415_v29  ;;  %v6200_v47 = vadd.s32 4294967169, %v4870_v61  ;;  %v4421_v57 = vshll.u32 %v12339_v25, %v4415_v29 }
 0x539   :  { %12546 = vst [vmem:[#allocation10_spill] sm:$0xff] %v10117_v33  ;;  %v4424_v4 = vshll.u32 %v12340_v20, %v4415_v29  ;;  %v4427_v62 = vshll.u32 %v12320_v19, %v4415_v29  ;;  %v4430_v8 = vshll.u32 %v12514_v26, %v4415_v29  ;;  %vm12146_vm9 = vcmp.lt.s32.totalorder %v10117_v33, 1 }
 0x53a   :  { %12540 = vst [vmem:[#allocation13_spill] sm:$0xff] %v10096_v55  ;;  %v4419_v22 = vshrl.u32 %v12339_v25, %v10096_v55  ;;  %v4422_v63 = vshrl.u32 %v12340_v20, %v10096_v55  ;;  %v4425_v58 = vshrl.u32 %v12320_v19, %v10096_v55  ;;  %v4428_v38 = vshrl.u32 %v12514_v26, %v10096_v55  ;;  %v4059_v56 = vpop.f32.mrf.mxu3 }
 0x53b   :  { %12547 = vst [vmem:[#allocation33_spill] sm:$0xff] %v10123_v40  ;;  %v4431_v61 = vshrl.u32 %v12515_v36, %v10096_v55  ;;  %v4876_v16 = vadd.s32 1, %v6200_v47  ;;  %vm12149_vm15 = vcmp.lt.s32.totalorder %v10117_v33, 4  ;;  %vm12141_vm0 = vcmp.lt.s32.totalorder %v10117_v33, 3 }
 0x53c   :  { %12548 = vst [vmem:[#allocation29_spill] sm:$0xff] %v10125_v24  ;;  %v10148_v44 = vor.u32 %v4419_v22, %v4418_v23  ;;  %v10152_v42 = vor.u32 %v4422_v63, %v4421_v57  ;;  %v10154_v40 = vor.u32 %v4425_v58, %v4424_v4  ;;  %v4429_v47 = vor.u32 %v4428_v38, %v4427_v62 }
 0x53d   :  { %12549 = vst [vmem:[#allocation47_spill] sm:$0xff] %v10130_v28  ;;  %v12093_v29 = vand.u32 2147483647, %v10079_v13  ;;  %v4432_v32 = vor.u32 %v4431_v61, %v4430_v8  ;;  %v4738_v23 = vshrl.u32 %v12514_v26, %v10142_v15  ;;  %vm4877_vm7 = vcmp.gt.s32.totalorder %v4876_v16, 0 }
 0x53e   :  { %12550 = vst [vmem:[#allocation46_spill] sm:$0xff] %v10142_v15  ;;  %v4729_v43 = vshrl.u32 %v12339_v25, %v10142_v15  ;;  %v4731_v22 = vshll.u32 %v12339_v25, %v4725_v30  ;;  %v4741_v4 = vshrl.u32 %v12515_v36, %v10142_v15  ;;  %v4873_v62 = vand.u32 8388607, %v12089_v50 }
 0x53f   :  { %12551 = vst [vmem:[#allocation32_spill] sm:$0xff] %v10148_v44  ;;  %v4732_v8 = vshrl.u32 %v12340_v20, %v10142_v15  ;;  %v4737_v58 = vshll.u32 %v12320_v19, %v4725_v30  ;;  %v4566_v57 = vadd.s32 1, %v6194_v11  ;;  %v5180_v63 = vshrl.u32 %v5179_v60, 23 }
 0x540   :  { %12552 = vst [vmem:[#allocation14_spill] sm:$0xff] %v10152_v42  ;;  %v4740_v38 = vshll.u32 %v12514_v26, %v4725_v30  ;;  %v4878_v61 = vsel %vm4877_vm7, %v4876_v16, 0  ;;  %v4563_v18 = vand.u32 8388607, %v12093_v29  ;;  %v10179_v50 = vsel %vm12146_vm9, %v10148_v44, %v10152_v42  ;;  %v4085_v44 = vpop.f32.mrf.mxu0 }
 0x541   :  { %12553 = vst [vmem:[#allocation55_spill] sm:$0xff] %v10154_v40  ;;  %v4442_v14 = vsel %vm12149_vm15, %v4429_v47, 920167782  ;;  %v4735_v60 = vshrl.u32 %v12320_v19, %v10142_v15  ;;  %v4739_v11 = vor.u32 %v4738_v23, %v4737_v58  ;;  %v4446_v16 = vsel %vm12149_vm15, %v4432_v32, 1326507024 }
 0x542   :  { %12554 = vst [vmem:[#allocation17_spill] sm:$0xff] %v10179_v50  ;;  %v10187_v13 = vor.u32 %v4729_v43, %v4728_v49  ;;  %v4742_v29 = vor.u32 %v4741_v4, %v4740_v38  ;;  %v4874_v34 = vor.u32 8388608, %v4873_v62  ;;  %v4880_v0 = vand.u32 31, %v4878_v61 }
 0x543   :  { %vm4567_vm3 = vcmp.gt.s32.totalorder %v4566_v57, 0  ;;  %v6206_v5 = vadd.s32 4294967169, %v5180_v63  ;;  %v10190_v59 = vor.u32 %v4732_v8, %v4731_v22  ;;  %v4564_v55 = vor.u32 8388608, %v4563_v18 }
 0x544   :  { %12555 = vst [vmem:[#allocation52_spill] sm:$0xff] %v10187_v13  ;;  %v12557_v23 = vand.u32 2147483647, %v10130_v28  ;;  %v10198_v49 = vsel %vm12141_vm0, %v10154_v40, %v4442_v14  ;;  %v10204_v32 = vsel %vm12146_vm9, %v10152_v42, %v10154_v40  ;;  %v10206_v30 = vor.u32 %v4735_v60, %v4734_v10 }
 0x545   :  { %12556 = vst [vmem:[#allocation53_spill] sm:$0xff] %v10190_v59  ;;  %v4752_v43 = vsel %vm4746_vm10, %v4739_v11, 920167782  ;;  %v4756_v18 = vsel %vm4746_vm10, %v4742_v29, 1326507024  ;;  %v10212_v22 = vshll.u32 %v4874_v34, 8  ;;  %v10215_v14 = vadd.f32 %v4085_v44, %v10112_v41 }
 0x546   :  { %v5183_v58 = vand.u32 8388607, %v12557_v23  ;;  %12558 = vst [vmem:[#allocation42_spill] sm:$0xff] %v10198_v49  ;;  %v4568_v4 = vsel %vm4567_vm3, %v4566_v57, 0  ;;  %v10219_v62 = vsel %vm12141_vm0, %v4429_v47, %v4446_v16  ;;  %v10222_v10 = vsub.s32 32, %v4880_v0 }
 0x547   :  { %12559 = vst [vmem:[#allocation36_spill] sm:$0xff] %v10204_v32  ;;  %v5186_v8 = vadd.s32 1, %v6206_v5  ;;  %v10229_v34 = vsel %vm4743_vm13, %v10187_v13, %v10190_v59  ;;  %v10231_v29 = vshll.u32 %v4564_v55, 8  ;;  %v10236_v47 = vsel %vm12180_vm11, %v10206_v30, %v4752_v43 }
 0x548   :  { %12560 = vst [vmem:[#allocation35_spill] sm:$0xff] %v10206_v30  ;;  %v5184_v44 = vor.u32 8388608, %v5183_v58  ;;  %v10242_v5 = vsel %vm4743_vm13, %v10190_v59, %v10206_v30  ;;  %v10246_v57 = vsel %vm12180_vm11, %v4739_v11, %v4756_v18  ;;  %v4570_v63 = vand.u32 31, %v4568_v4 }
 0x549   :  { %12561 = vst [vmem:[#allocation41_spill] sm:$0xff] %v10212_v22  ;;  %v10249_v55 = vand.u32 65535, %v10212_v22  ;;  %v10252_v38 = vshrl.u32 %v10212_v22, 16  ;;  %v5334_v16 = vand.u32 2139095040, %v10215_v14  ;;  %v4884_v23 = vshrl.u32 %v12339_v25, %v10222_v10 }
 0x54a   :  { %12562 = vst [vmem:[#allocation39_spill] sm:$0xff] %v10215_v14  ;;  %v4887_v58 = vshrl.u32 %v12340_v20, %v10222_v10  ;;  %v4893_v11 = vshrl.u32 %v12514_v26, %v10222_v10  ;;  %vm5187_vm8 = vcmp.gt.s32.totalorder %v5186_v8, 0  ;;  %v4883_v43 = vshll.u32 %v12337_v35, %v4880_v0 }
 0x54b   :  { %12563 = vst [vmem:[#allocation49_spill] sm:$0xff] %v10219_v62  ;;  %v4896_v18 = vshrl.u32 %v12515_v36, %v10222_v10  ;;  %v10266_v42 = vand.u32 65535, %v10231_v29  ;;  %v10268_v60 = vshll.u32 %v5184_v44, 8  ;;  %v4886_v17 = vshll.u32 %v12339_v25, %v4880_v0 }
 0x54c   :  { %12564 = vst [vmem:[#allocation26_spill] sm:$0xff] %v10222_v10  ;;  %v4890_v40 = vshrl.u32 %v12320_v19, %v10222_v10  ;;  %v4892_v50 = vshll.u32 %v12320_v19, %v4880_v0  ;;  %v10274_v49 = vsub.s32 32, %v4570_v63  ;;  %v10276_v27 = vshrl.u32 %v4878_v61, 5 }
 0x54d   :  { %12565 = vst [vmem:[#allocation34_spill] sm:$0xff] %v10229_v34  ;;  %v4895_v54 = vshll.u32 %v12514_v26, %v4880_v0  ;;  %v5188_v32 = vsel %vm5187_vm8, %v5186_v8, 0  ;;  %v5335_v62 = vshrl.u32 %v5334_v16, 23  ;;  %v10279_v33 = vor.u32 %v4884_v23, %v4883_v43 }
 0x54e   :  { %12566 = vst [vmem:[#allocation24_spill] sm:$0xff] %v10231_v29  ;;  %v4889_v44 = vshll.u32 %v12340_v20, %v4880_v0  ;;  %v4894_v7 = vor.u32 %v4893_v11, %v4892_v50  ;;  %v10284_v21 = vshrl.u32 %v4568_v4, 5  ;;  %v10287_v9 = vshrl.u32 %v10231_v29, 16  ;;  %v4027_v0 = vpop.f32.mrf.mxu2 }
 0x54f   :  { %12567 = vst [vmem:[#allocation25_spill] sm:$0xff] %v10236_v47  ;;  %v4897_v1 = vor.u32 %v4896_v18, %v4895_v54  ;;  %v10290_v61 = vand.u32 65535, %v10268_v60  ;;  %v4574_v8 = vshrl.u32 %v12339_v25, %v10274_v49  ;;  %v5190_v16 = vand.u32 31, %v5188_v32 }
 0x550   :  { %12568 = vst [vmem:[#allocation12_spill] sm:$0xff] %v10242_v5  ;;  %v10292_v45 = vor.u32 %v4890_v40, %v4889_v44  ;;  %vm12178_vm14 = vcmp.lt.s32.totalorder %v10276_v27, 1  ;;  %vm12177_vm5 = vcmp.lt.s32.totalorder %v10276_v27, 3  ;;  %vm12179_vm4 = vcmp.lt.s32.totalorder %v10276_v27, 4 }
 0x551   :  { %12569 = vst [vmem:[#allocation7_spill] sm:$0xff] %v10246_v57  ;;  %v6209_v54 = vadd.s32 4294967169, %v5335_v62  ;;  %v4907_v40 = vsel %vm12179_vm4, %v4894_v7, 920167782  ;;  %v4573_v4 = vshll.u32 %v12337_v35, %v4570_v63  ;;  %v4576_v23 = vshll.u32 %v12339_v25, %v4570_v63 }
 0x552   :  { %12570 = vst [vmem:[#allocation6_spill] sm:$0xff] %v10249_v55  ;;  %v4580_v11 = vshrl.u32 %v12320_v19, %v10274_v49  ;;  %v4583_v62 = vshrl.u32 %v12514_v26, %v10274_v49  ;;  %v10318_v43 = vadd.f32 %v4027_v0, %v10112_v41  ;;  %v4582_v37 = vshll.u32 %v12320_v19, %v4570_v63 }
 0x553   :  { %12571 = vst [vmem:[#allocation38_spill] sm:$0xff] %v10252_v38  ;;  %v10326_v44 = vor.u32 %v4574_v8, %v4573_v4  ;;  %v4586_v41 = vshrl.u32 %v12515_v36, %v10274_v49  ;;  %v5341_v0 = vadd.s32 1, %v6209_v54  ;;  %v10339_v12 = vsel %vm12177_vm5, %v10292_v45, %v4907_v40 }
 0x554   :  { %12572 = vst [vmem:[#allocation37_spill] sm:$0xff] %v10266_v42  ;;  %v10281_v42 = vor.u32 %v4887_v58, %v4886_v17  ;;  %v4577_v17 = vshrl.u32 %v12340_v20, %v10274_v49  ;;  %v4911_v58 = vsel %vm12179_vm4, %v4897_v1, 1326507024  ;;  %v10330_v1 = vsub.s32 32, %v5190_v16 }
 0x555   :  { %12573 = vst [vmem:[#allocation30_spill] sm:$0xff] %v10268_v60  ;;  %v10343_v8 = vsel %vm12177_vm5, %v4894_v7, %v4911_v58  ;;  %vm12134_vm7 = vcmp.lt.s32.totalorder %v10284_v21, 1  ;;  %vm12133_vm3 = vcmp.lt.s32.totalorder %v10284_v21, 4  ;;  %v5024_v54 = vand.u32 2139095040, %v10318_v43 }
 0x556   :  { %12574 = vst [vmem:[#allocation31_spill] sm:$0xff] %v10274_v49  ;;  %v10305_v50 = vsel %vm12178_vm14, %v10279_v33, %v10281_v42  ;;  %v10324_v18 = vsel %vm12178_vm14, %v10281_v42, %v10292_v45  ;;  %v10328_v29 = vor.u32 %v4577_v17, %v4576_v23  ;;  %v4585_v17 = vshll.u32 %v12514_v26, %v4570_v63 }
 0x557   :  { %12575 = vst [vmem:[#allocation22_spill] sm:$0xff] %v10276_v27  ;;  %v4584_v23 = vor.u32 %v4583_v62, %v4582_v37  ;;  %v5203_v7 = vshrl.u32 %v12514_v26, %v10330_v1  ;;  %vm12140_vm8 = vcmp.lt.s32.totalorder %v10284_v21, 3  ;;  %v5206_v62 = vshrl.u32 %v12515_v36, %v10330_v1 }
 0x558   :  { %12576 = vst [vmem:[#allocation15_spill] sm:$0xff] %v10279_v33  ;;  %v10355_v40 = vsel %vm12134_vm7, %v10326_v44, %v10328_v29  ;;  %v4587_v37 = vor.u32 %v4586_v41, %v4585_v17  ;;  %vm5342_vm1 = vcmp.gt.s32.totalorder %v5341_v0, 0  ;;  %v5194_v49 = vshrl.u32 %v12339_v25, %v10330_v1 }
 0x559   :  { %12577 = vst [vmem:[#allocation23_spill] sm:$0xff] %v10281_v42  ;;  %v5196_v41 = vshll.u32 %v12339_v25, %v5190_v16  ;;  %v5205_v17 = vshll.u32 %v12514_v26, %v5190_v16  ;;  %v5343_v48 = vsel %vm5342_vm1, %v5341_v0, 0  ;;  %v5199_v22 = vshll.u32 %v12340_v20, %v5190_v16  ;;  %v4088_v0 = vpop.f32.mrf.mxu0 }
 0x55a   :  { %12578 = vst [vmem:[#allocation4_spill] sm:$0xff] %v10284_v21  ;;  %v10382_v33 = vshrl.u32 %v10268_v60, 16  ;;  %v12135_v53 = vand.u32 2147483647, %v10318_v43  ;;  %v4601_v10 = vsel %vm12133_vm3, %v4587_v37, 1326507024 }
 0x55b   :  { %12579 = vst [vmem:[#allocation20_spill] sm:$0xff] %v10287_v9  ;;  %v4579_v9 = vshll.u32 %v12340_v20, %v4570_v63  ;;  %v12590_v63 = vand.u32 2147483647, %v10215_v14  ;;  %v5207_v42 = vor.u32 %v5206_v62, %v5205_v17 }
 0x55c   :  { %12580 = vst [vmem:[#allocation19_spill] sm:$0xff] %v10292_v45  ;;  %v4597_v45 = vsel %vm12133_vm3, %v4584_v23, 920167782 }
 0x55d   :  { %12581 = vst [vmem:[#allocation18_spill] sm:$0xff] %v10305_v50  ;;  %v10347_v4 = vor.u32 %v4580_v11, %v4579_v9  ;;  %v5338_v58 = vand.u32 8388607, %v12590_v63  ;;  %v10362_v9 = vadd.f32 %v4059_v56, %v9945_v52  ;;  %v10365_v11 = vshrl.u32 %v5188_v32, 5 }
 0x55e   :  { %12582 = vst [vmem:[#allocation73_spill] sm:$0xff] %v10318_v43  ;;  %v5197_v63 = vshrl.u32 %v12340_v20, %v10330_v1  ;;  %v5202_v56 = vshll.u32 %v12320_v19, %v5190_v16  ;;  %v5200_v32 = vshrl.u32 %v12320_v19, %v10330_v1 }
 0x55f   :  { %12583 = vst [vmem:[#allocation74_spill] sm:$0xff] %v10324_v18  ;;  %v5339_v51 = vor.u32 8388608, %v5338_v58  ;;  %v5644_v3 = vand.u32 2139095040, %v10362_v9  ;;  %vm5211_vm1 = vcmp.lt.s32.totalorder %v10365_v11, 4  ;;  %vm5208_vm3 = vcmp.lt.s32.totalorder %v10365_v11, 1 }
 0x560   :  { %12584 = vst [vmem:[#allocation75_spill] sm:$0xff] %v10326_v44  ;;  %v5193_v44 = vshll.u32 %v12337_v35, %v5190_v16  ;;  %v5204_v46 = vor.u32 %v5203_v7, %v5202_v56  ;;  %v10391_v7 = vor.u32 %v5197_v63, %v5196_v41  ;;  %v10393_v58 = vor.u32 %v5200_v32, %v5199_v22 }
 0x561   :  { %12585 = vst [vmem:[#allocation76_spill] sm:$0xff] %v10328_v29  ;;  %v5345_v16 = vand.u32 31, %v5343_v48  ;;  %v10400_v56 = vsel %vm12134_vm7, %v10328_v29, %v10347_v4  ;;  %v5221_v22 = vsel %vm5211_vm1, %v5207_v42, 1326507024  ;;  %v10412_v63 = vadd.f32 %v4088_v0, %v9945_v52 }
 0x562   :  { %12586 = vst [vmem:[#allocation77_spill] sm:$0xff] %v10339_v12  ;;  %v5217_v37 = vsel %vm5211_vm1, %v5204_v46, 920167782  ;;  %v10417_v41 = vsel %vm12140_vm8, %v10347_v4, %v4597_v45  ;;  %vm5210_vm7 = vcmp.lt.s32.totalorder %v10365_v11, 3  ;;  %v10439_v45 = vsel %vm5208_vm3, %v10391_v7, %v10393_v58 }
 0x563   :  { %12587 = vst [vmem:[#allocation78_spill] sm:$0xff] %v10343_v8  ;;  %v10433_v42 = vsel %vm5210_vm7, %v10393_v58, %v5217_v37  ;;  %v10445_v32 = vsel %vm5210_vm7, %v5204_v46, %v5221_v22  ;;  %v5799_v22 = vand.u32 2139095040, %v10412_v63  ;;  %v5357_v29 = vshll.u32 %v12320_v19, %v5345_v16 }
 0x564   :  { %12588 = vst [vmem:[#allocation79_spill] sm:$0xff] %v10347_v4  ;;  %v5360_v55 = vshll.u32 %v12514_v26, %v5345_v16 }
 0x565   :  { %12589 = vst [vmem:[#allocation80_spill] sm:$0xff] %v10355_v40  ;;  %v5025_v40 = vshrl.u32 %v5024_v54, 23  ;;  %v10389_v54 = vor.u32 %v5194_v49, %v5193_v44  ;;  %v10404_v49 = vshll.u32 %v5339_v51, 8  ;;  %v5645_v44 = vshrl.u32 %v5644_v3, 23 }
 0x566   :  { %12591 = vst [vmem:[#allocation81_spill] sm:$0xff] %v10400_v56  ;;  %v10421_v51 = vsel %vm12140_vm8, %v4584_v23, %v4601_v10  ;;  %v10441_v10 = vsub.s32 32, %v5345_v16  ;;  %v5351_v56 = vshll.u32 %v12339_v25, %v5345_v16  ;;  %v5800_v38 = vshrl.u32 %v5799_v22, 23 }
 0x567   :  { %v6203_v62 = vadd.s32 4294967169, %v5025_v40  ;;  %12592 = vst [vmem:[#allocation82_spill] sm:$0xff] %v10404_v49  ;;  %v5028_v40 = vand.u32 8388607, %v12135_v53  ;;  %v10428_v3 = vsel %vm5208_vm3, %v10389_v54, %v10391_v7  ;;  %v10448_v17 = vand.u32 65535, %v10404_v49 }
 0x568   :  { %12593 = vst [vmem:[#allocation83_spill] sm:$0xff] %v10417_v41  ;;  %v10451_v0 = vshrl.u32 %v10404_v49, 16  ;;  %v6215_v37 = vadd.s32 4294967169, %v5645_v44  ;;  %v10453_v53 = vshrl.u32 %v5343_v48, 5  ;;  %v5352_v44 = vshrl.u32 %v12340_v20, %v10441_v10 }
 0x569   :  { %12594 = vst [vmem:[#allocation84_spill] sm:$0xff] %v10421_v51  ;;  %v5031_v23 = vadd.s32 1, %v6203_v62  ;;  %v5029_v43 = vor.u32 8388608, %v5028_v40  ;;  %v5348_v62 = vshll.u32 %v12337_v35, %v5345_v16  ;;  %v5349_v51 = vshrl.u32 %v12339_v25, %v10441_v10 }
 0x56a   :  { %12595 = vst [vmem:[#allocation85_spill] sm:$0xff] %v10441_v10  ;;  %v5651_v46 = vadd.s32 1, %v6215_v37  ;;  %v5355_v48 = vshrl.u32 %v12320_v19, %v10441_v10  ;;  %v5354_v40 = vshll.u32 %v12340_v20, %v5345_v16  ;;  %v5358_v4 = vshrl.u32 %v12514_v26, %v10441_v10 }
 0x56b   :  { %12596 = vst [vmem:[#allocation86_spill] sm:$0xff] %v10448_v17  ;;  %vm5032_vm8 = vcmp.gt.s32.totalorder %v5031_v23, 0  ;;  %v5361_v37 = vshrl.u32 %v12515_v36, %v10441_v10  ;;  %v10472_v41 = vshll.u32 %v5029_v43, 8  ;;  %vm5363_vm9 = vcmp.lt.s32.totalorder %v10453_v53, 1 }
 0x56c   :  { %12597 = vst [vmem:[#allocation87_spill] sm:$0xff] %v10451_v0  ;;  %vm5652_vm0 = vcmp.gt.s32.totalorder %v5651_v46, 0  ;;  %v5033_v18 = vsel %vm5032_vm8, %v5031_v23, 0  ;;  %v10476_v50 = vor.u32 %v5349_v51, %v5348_v62  ;;  %v10478_v12 = vor.u32 %v5352_v44, %v5351_v56 }
 0x56d   :  { %12598 = vst [vmem:[#allocation88_spill] sm:$0xff] %v10472_v41  ;;  %v5653_v21 = vsel %vm5652_vm0, %v5651_v46, 0  ;;  %v10480_v27 = vor.u32 %v5355_v48, %v5354_v40  ;;  %vm5365_vm15 = vcmp.lt.s32.totalorder %v10453_v53, 3  ;;  %vm5366_vm12 = vcmp.lt.s32.totalorder %v10453_v53, 4 }
 0x56e   :  { %v5655_v8 = vand.u32 31, %v5653_v21  ;;  %12599 = vst [vmem:[#allocation89_spill] sm:$0xff] %v10476_v50  ;;  %v5359_v43 = vor.u32 %v5358_v4, %v5357_v29  ;;  %v5362_v39 = vor.u32 %v5361_v37, %v5360_v55  ;;  %v6218_v22 = vadd.s32 4294967169, %v5800_v38 }
 0x56f   :  { %12600 = vst [vmem:[#allocation90_spill] sm:$0xff] %v10478_v12  ;;  %v5035_v16 = vand.u32 31, %v5033_v18  ;;  %v10487_v59 = vand.u32 65535, %v10472_v41  ;;  %v12603_v51 = vand.u32 2147483647, %v10362_v9  ;;  %v10491_v56 = vshrl.u32 %v5653_v21, 5 }
 0x570   :  { %12601 = vst [vmem:[#allocation91_spill] sm:$0xff] %v10480_v27  ;;  %v10484_v46 = vsub.s32 32, %v5655_v8  ;;  %v5661_v62 = vshll.u32 %v12339_v25, %v5655_v8  ;;  %v5664_v29 = vshll.u32 %v12340_v20, %v5655_v8  ;;  %v5667_v38 = vshll.u32 %v12320_v19, %v5655_v8 }
 0x571   :  { %12602 = vst [vmem:[#allocation92_spill] sm:$0xff] %v10487_v59  ;;  %v5648_v23 = vand.u32 8388607, %v12603_v51  ;;  %v5670_v48 = vshll.u32 %v12514_v26, %v5655_v8  ;;  %v10509_v40 = vsel %vm5363_vm9, %v10476_v50, %v10478_v12  ;;  %v5372_v37 = vsel %vm5366_vm12, %v5359_v43, 920167782 }
 0x572   :  { %v5662_v44 = vshrl.u32 %v12340_v20, %v10484_v46  ;;  %v5665_v55 = vshrl.u32 %v12320_v19, %v10484_v46  ;;  %v5668_v4 = vshrl.u32 %v12514_v26, %v10484_v46  ;;  %v5671_v21 = vshrl.u32 %v12515_v36, %v10484_v46  ;;  %12604 = vst [vmem:[#allocation93_spill] sm:$0xff] %v10509_v40 }
 0x573   :  { %v10514_v51 = vshrl.u32 %v10472_v41, 16  ;;  %v5806_v59 = vadd.s32 1, %v6218_v22  ;;  %v10524_v2 = vsel %vm5363_vm9, %v10478_v12, %v10480_v27  ;;  %v5376_v31 = vsel %vm5366_vm12, %v5362_v39, 1326507024 }
 0x574   :  { %v10516_v13 = vor.u32 %v5662_v44, %v5661_v62  ;;  %v10518_v15 = vor.u32 %v5665_v55, %v5664_v29  ;;  %v5669_v14 = vor.u32 %v5668_v4, %v5667_v38  ;;  %v5672_v30 = vor.u32 %v5671_v21, %v5670_v48 }
 0x575   :  { %12605 = vst [vmem:[#allocation94_spill] sm:$0xff] %v10514_v51  ;;  %v10528_v49 = vsub.s32 32, %v5035_v16  ;;  %vm5676_vm0 = vcmp.lt.s32.totalorder %v10491_v56, 4  ;;  %v5649_v22 = vor.u32 8388608, %v5648_v23  ;;  %v5659_v62 = vshrl.u32 %v12339_v25, %v10484_v46 }
 0x576   :  { %v5686_v44 = vsel %vm5676_vm0, %v5672_v30, 1326507024  ;;  %vm5807_vm8 = vcmp.gt.s32.totalorder %v5806_v59, 0  ;;  %v10538_v29 = vsel %vm5365_vm15, %v10480_v27, %v5372_v37  ;;  %vm5673_vm2 = vcmp.lt.s32.totalorder %v10491_v56, 1 }
 0x577   :  { %12606 = vst [vmem:[#allocation95_spill] sm:$0xff] %v10528_v49  ;;  %vm5675_vm6 = vcmp.lt.s32.totalorder %v10491_v56, 3  ;;  %v5808_v39 = vsel %vm5807_vm8, %v5806_v59, 0  ;;  %v10542_v55 = vshrl.u32 %v5033_v18, 5  ;;  %v5658_v23 = vshll.u32 %v12337_v35, %v5655_v8 }
 0x578   :  { %12607 = vst [vmem:[#allocation96_spill] sm:$0xff] %v10538_v29  ;;  %v5685_v30 = vsel %vm5673_vm2, %v10516_v13, %v10518_v15  ;;  %v5687_v38 = vsel %vm5675_vm6, %v5669_v14, %v5686_v44  ;;  %v10553_v4 = vsel %vm5365_vm15, %v5359_v43, %v5376_v31  ;;  %v5038_v48 = vshll.u32 %v12337_v35, %v5035_v16 }
 0x579   :  { %12608 = vst [vmem:[#allocation97_spill] sm:$0xff] %v10542_v55  ;;  %v5039_v59 = vshrl.u32 %v12339_v25, %v10528_v49  ;;  %v10559_v18 = vshll.u32 %v12339_v25, %v5035_v16  ;;  %v5660_v8 = vor.u32 %v5659_v62, %v5658_v23  ;;  %vm5674_vm8 = vcmp.lt.s32.totalorder %v10491_v56, 2 }
 0x57a   :  { %v10562_v21 = vshll.u32 %v5649_v22, 8  ;;  %v5810_v37 = vand.u32 31, %v5808_v39  ;;  %v10565_v44 = vshll.u32 %v12340_v20, %v5035_v16  ;;  %v10568_v31 = vshll.u32 %v12320_v19, %v5035_v16 }
 0x57b   :  { %v5682_v43 = vsel %vm5676_vm0, %v5669_v14, 920167782  ;;  %v10574_v41 = vsel %vm5674_vm8, %v5685_v30, %v5687_v38  ;;  %v10578_v62 = vshrl.u32 %v12340_v20, %v10528_v49  ;;  %v10582_v22 = vshrl.u32 %v12320_v19, %v10528_v49 }
 0x57c   :  { %12609 = vst [vmem:[#allocation98_spill] sm:$0xff] %v10565_v44  ;;  %v10586_v23 = vshrl.u32 %v12514_v26, %v10528_v49  ;;  %v10589_v51 = vshll.u32 %v12514_v26, %v5035_v16  ;;  %v10591_v14 = vor.u32 %v5039_v59, %v5038_v48  ;;  %v10595_v30 = vshrl.u32 %v12515_v36, %v10528_v49  ;;  %v4030_v59 = vpop.f32.mrf.mxu2 }
 0x57d   :  { %12610 = vst [vmem:[#allocation99_spill] sm:$0xff] %v10568_v31  ;;  %v12616_v38 = vand.u32 2147483647, %v10412_v63  ;;  %v5811_v44 = vsub.s32 32, %v5810_v37  ;;  %v10606_v16 = vand.u32 65535, %v10562_v21  ;;  %v5693_v48 = vshrl.u32 %v10574_v41, 16 }
 0x57e   :  { %12611 = vst [vmem:[#allocation100_spill] sm:$0xff] %v10582_v22  ;;  %v5681_v22 = vsel %vm5673_vm2, %v5660_v8, %v10516_v13  ;;  %v10610_v49 = vshrl.u32 %v10562_v21, 16  ;;  %v5825_v34 = vshll.u32 %v12514_v26, %v5810_v37  ;;  %v10627_v47 = vadd.f32 %v4030_v59, %v9945_v52 }
 0x57f   :  { %12612 = vst [vmem:[#allocation101_spill] sm:$0xff] %v10586_v23  ;;  %v5803_v31 = vand.u32 8388607, %v12616_v38  ;;  %v5683_v23 = vsel %vm5675_vm6, %v10518_v15, %v5682_v43  ;;  %v5816_v38 = vshll.u32 %v12339_v25, %v5810_v37  ;;  %v5820_v55 = vshrl.u32 %v12320_v19, %v5811_v44 }
 0x580   :  { %12613 = vst [vmem:[#allocation102_spill] sm:$0xff] %v10589_v51  ;;  %v5817_v51 = vshrl.u32 %v12340_v20, %v5811_v44  ;;  %v5822_v43 = vshll.u32 %v12320_v19, %v5810_v37  ;;  %v5823_v5 = vshrl.u32 %v12514_v26, %v5811_v44  ;;  %v10622_v57 = vsel %vm5674_vm8, %v5681_v22, %v5683_v23 }
 0x581   :  { %12614 = vst [vmem:[#allocation103_spill] sm:$0xff] %v10591_v14  ;;  %v10612_v14 = vshrl.u32 %v5808_v39, 5  ;;  %v5826_v39 = vshrl.u32 %v12515_v36, %v5811_v44  ;;  %v10630_v24 = vmul.u32 %v5693_v48, %v10606_v16  ;;  %v5692_v27 = vand.u32 65535, %v10574_v41 }
 0x582   :  { %12615 = vst [vmem:[#allocation104_spill] sm:$0xff] %v10595_v30  ;;  %v5819_v30 = vshll.u32 %v12340_v20, %v5810_v37  ;;  %v5818_v28 = vor.u32 %v5817_v51, %v5816_v38  ;;  %v5824_v50 = vor.u32 %v5823_v5, %v5822_v43  ;;  %v5804_v10 = vor.u32 8388608, %v5803_v31 }
 0x583   :  { %12617 = vst [vmem:[#allocation105_spill] sm:$0xff] %v10627_v47  ;;  %v5827_v40 = vor.u32 %v5826_v39, %v5825_v34  ;;  %vm5828_vm5 = vcmp.lt.s32.totalorder %v10612_v14, 1  ;;  %v12181_v22 = vshrl.u32 %v10622_v57, 16  ;;  %v5814_v23 = vshrl.u32 %v12339_v25, %v5811_v44 }
 0x584   :  { %v5821_v12 = vor.u32 %v5820_v55, %v5819_v30  ;;  %vm5831_vm14 = vcmp.lt.s32.totalorder %v10612_v14, 4  ;;  %v5657_v51 = vshrl.u32 %v12337_v35, %v10484_v46  ;;  %vm5830_vm4 = vcmp.lt.s32.totalorder %v10612_v14, 3 }
 0x585   :  { %v5841_v5 = vsel %vm5831_vm14, %v5827_v40, 1326507024  ;;  %v5489_v34 = vand.u32 2139095040, %v10627_v47  ;;  %v5698_v41 = vshll.u32 %v10630_v24, 16  ;;  %v5813_v55 = vshll.u32 %v12337_v35, %v5810_v37 }
 0x586   :  { %v5840_v52 = vsel %vm5828_vm5, %v5818_v28, %v5821_v12  ;;  %vm5829_vm11 = vcmp.lt.s32.totalorder %v10612_v14, 2  ;;  %v5842_v31 = vsel %vm5830_vm4, %v5824_v50, %v5841_v5  ;;  %v5678_v46 = vsel %vm5676_vm0, %v10518_v15, 2102212464 }
 0x587   :  { %v10654_v30 = vmul.u32 %v5692_v27, %v10610_v49  ;;  %v10658_v40 = vsel %vm5829_vm11, %v5840_v52, %v5842_v31  ;;  %v10660_v59 = vshll.u32 %v5804_v10, 8  ;;  %v5694_v37 = vmul.u32 %v5692_v27, %v10606_v16 }
 0x588   :  { %v10666_v38 = vmul.u32 %v12181_v22, %v10606_v16  ;;  %v5815_v43 = vor.u32 %v5814_v23, %v5813_v55  ;;  %v5490_v39 = vshrl.u32 %v5489_v34, 23  ;;  %v5677_v15 = vsel %vm5673_vm2, %v5657_v51, %v5660_v8 }
 0x589   :  { %v5837_v5 = vsel %vm5831_vm14, %v5824_v50, 920167782  ;;  %v5848_v52 = vshrl.u32 %v10658_v40, 16  ;;  %v5679_v27 = vsel %vm5675_vm6, %v10516_v13, %v5678_v46  ;;  %vm5702_vm0 = vc.u32 %v5694_v37, %v5698_v41 }
 0x58a   :  { %v5704_v31 = vadd.s32 %v5698_v41, %v5694_v37  ;;  %v5714_v22 = vand.u32 65535, %v10622_v57  ;;  %v5700_v23 = vshll.u32 %v10654_v30, 16  ;;  %v5812_v34 = vshrl.u32 %v12337_v35, %v5811_v44 }
 0x58b   :  { %v5845_v8 = vand.u32 65535, %v10660_v59  ;;  %v6212_v51 = vadd.s32 4294967169, %v5490_v39  ;;  %v5833_v50 = vsel %vm5831_vm14, %v5821_v12, 2102212464  ;;  %v5836_v55 = vsel %vm5828_vm5, %v5815_v43, %v5818_v28 }
 0x58c   :  { %v5838_v13 = vsel %vm5830_vm4, %v5821_v12, %v5837_v5  ;;  %v5720_v41 = vshll.u32 %v10666_v38, 16  ;;  %v5697_v46 = vmul.u32 %v5693_v48, %v10610_v49  ;;  %v5703_v37 = vsel %vm5702_vm0, 1, %v12221_v6 }
 0x58d   :  { %v10690_v10 = vmul.u32 %v5848_v52, %v5845_v8  ;;  %v5496_v44 = vadd.s32 1, %v6212_v51  ;;  %v5716_v39 = vmul.u32 %v5714_v22, %v10606_v16  ;;  %v5832_v29 = vsel %vm5828_vm5, %v5812_v34, %v5815_v43 }
 0x58e   :  { %v12618_v0 = vand.u32 2147483647, %v10627_v47  ;;  %vm5706_vm6 = vc.u32 %v5704_v31, %v5700_v23  ;;  %v5834_v12 = vsel %vm5830_vm4, %v5818_v28, %v5833_v50  ;;  %v5839_v48 = vsel %vm5829_vm11, %v5836_v55, %v5838_v13 }
 0x58f   :  { %v5847_v5 = vand.u32 65535, %v10658_v40  ;;  %vm5497_vm2 = vcmp.gt.s32.totalorder %v5496_v44, 0  ;;  %v10704_v51 = vsel %vm5674_vm8, %v5677_v15, %v5679_v27  ;;  %v5705_v16 = vadd.s32 %v5703_v37, %v5697_v46 }
 0x590   :  { %v5493_v17 = vand.u32 8388607, %v12618_v0  ;;  %v5498_v60 = vsel %vm5497_vm2, %v5496_v44, 0  ;;  %vm5724_vm14 = vc.u32 %v5716_v39, %v5720_v41  ;;  %v5718_v43 = vmul.u32 %v5714_v22, %v10610_v49 }
 0x591   :  { %v5853_v0 = vshll.u32 %v10690_v10, 16  ;;  %v5500_v31 = vand.u32 31, %v5498_v60  ;;  %v5707_v28 = vsel %vm5706_vm6, 1, %v12221_v6  ;;  %v10711_v23 = vsel %vm5829_vm11, %v5832_v29, %v5834_v12 }
 0x592   :  { %v5846_v40 = vshrl.u32 %v10660_v59, 16  ;;  %v5869_v34 = vand.u32 65535, %v5839_v48  ;;  %v5494_v56 = vor.u32 8388608, %v5493_v17  ;;  %v5849_v15 = vmul.u32 %v5847_v5, %v5845_v8 }
 0x593   :  { %v5870_v27 = vshrl.u32 %v5839_v48, 16  ;;  %v5725_v50 = vsel %vm5724_vm14, 1, %v12221_v6  ;;  %v5726_v55 = vadd.s32 %v5720_v41, %v5716_v39  ;;  %v10717_v22 = vor.u32 %v10578_v62, %v10559_v18 }
 0x594   :  { %v12620_v13 = vshrl.u32 %v10622_v57, 16  ;;  %v5709_v14 = vadd.s32 %v5707_v28, %v5705_v16  ;;  %v10724_v37 = vmul.u32 %v5847_v5, %v5846_v40  ;;  %vm5857_vm11 = vc.u32 %v5849_v15, %v5853_v0 }
 0x595   :  { %12619 = vst [vmem:[#allocation106_spill] sm:$0xff] %v10717_v22  ;;  %v5501_v17 = vsub.s32 32, %v5500_v31  ;;  %v5722_v44 = vshll.u32 %v5718_v43, 16  ;;  %v10728_v39 = vshll.u32 %v5494_v56, 8  ;;  %v5699_v18 = vshrl.u32 %v10630_v24, 16 }
 0x596   :  { %v5719_v46 = vmul.u32 %v12620_v13, %v10610_v49  ;;  %v5871_v12 = vmul.u32 %v5869_v34, %v5845_v8  ;;  %v10731_v57 = vmul.u32 %v5870_v27, %v5845_v8  ;;  %v10733_v49 = vmul.u32 %v5869_v34, %v5846_v40 }
 0x597   :  { %vm5728_vm5 = vc.u32 %v5726_v55, %v5722_v44  ;;  %v5858_v48 = vsel %vm5857_vm11, 1, %v12221_v6  ;;  %v5874_v5 = vmul.u32 %v5870_v27, %v5846_v40  ;;  %v5710_v16 = vadd.s32 %v5709_v14, %v5699_v18 }
 0x598   :  { %v5727_v62 = vadd.s32 %v5725_v50, %v5719_v46  ;;  %v5729_v28 = vsel %vm5728_vm5, 1, %v12221_v6  ;;  %v5852_v13 = vmul.u32 %v5848_v52, %v5846_v40  ;;  %v5855_v41 = vshll.u32 %v10724_v37, 16 }
 0x599   :  { %v5510_v56 = vshrl.u32 %v12320_v19, %v5501_v17  ;;  %v5701_v24 = vshrl.u32 %v10654_v30, 16  ;;  %v5859_v50 = vadd.s32 %v5853_v0, %v5849_v15  ;;  %v10741_v8 = vand.u32 65535, %v10728_v39 }
 0x59a   :  { %v5721_v34 = vshrl.u32 %v10666_v38, 16  ;;  %v5731_v46 = vadd.s32 %v5729_v28, %v5727_v62  ;;  %v5860_v29 = vadd.s32 %v5858_v48, %v5852_v13  ;;  %v10744_v47 = vshrl.u32 %v5498_v60, 5 }
 0x59b   :  { %v5509_v27 = vshll.u32 %v12340_v20, %v5500_v31  ;;  %v5723_v14 = vshrl.u32 %v5718_v43, 16  ;;  %v5504_v52 = vshrl.u32 %v12339_v25, %v5501_v17  ;;  %v5507_v40 = vshrl.u32 %v12340_v20, %v5501_v17 }
 0x59c   :  { %v5711_v18 = vadd.s32 %v5710_v16, %v5701_v24  ;;  %v5732_v22 = vadd.s32 %v5731_v46, %v5721_v34  ;;  %v5503_v30 = vshll.u32 %v12337_v35, %v5500_v31  ;;  %v5506_v0 = vshll.u32 %v12339_v25, %v5500_v31 }
 0x59d   :  { %v5511_v15 = vor.u32 %v5510_v56, %v5509_v27  ;;  %v5513_v38 = vshrl.u32 %v12514_v26, %v5501_v17  ;;  %v5516_v62 = vshrl.u32 %v12515_v36, %v5501_v17  ;;  %v5730_v60 = vadd.s32 %v5726_v55, %v5722_v44 }
 0x59e   :  { %v5733_v48 = vadd.s32 %v5732_v22, %v5723_v14  ;;  %vm5861_vm4 = vc.u32 %v5859_v50, %v5855_v41  ;;  %v5512_v43 = vshll.u32 %v12320_v19, %v5500_v31  ;;  %v5515_v28 = vshll.u32 %v12514_v26, %v5500_v31 }
 0x59f   :  { %v10756_v20 = vshrl.u32 %v10728_v39, 16  ;;  %v5875_v16 = vshll.u32 %v10731_v57, 16  ;;  %v5505_v13 = vor.u32 %v5504_v52, %v5503_v30  ;;  %v5508_v24 = vor.u32 %v5507_v40, %v5506_v0 }
 0x5a0   :  { %vm5521_vm8 = vcmp.lt.s32.totalorder %v10744_v47, 4  ;;  %vm5736_vm0 = vc.u32 %v5711_v18, %v5730_v60  ;;  %v5514_v25 = vor.u32 %v5513_v38, %v5512_v43  ;;  %v5737_v55 = vadd.s32 1, %v5733_v48 }
 0x5a1   :  { %v5523_v36 = vsel %vm5521_vm8, %v5511_v15, 2102212464  ;;  %v5862_v22 = vsel %vm5861_vm4, 1, %v12221_v6  ;;  %v5502_v19 = vshrl.u32 %v12337_v35, %v5501_v17  ;;  %v5517_v26 = vor.u32 %v5516_v62, %v5515_v28 }
 0x5a2   :  { %v5854_v31 = vshrl.u32 %v10690_v10, 16  ;;  %v5864_v44 = vadd.s32 %v5862_v22, %v5860_v29  ;;  %vm5518_vm6 = vcmp.lt.s32.totalorder %v10744_v47, 1  ;;  %vm5520_vm2 = vcmp.lt.s32.totalorder %v10744_v47, 3 }
 0x5a3   :  { %v5738_v41 = vsel %vm5736_vm0, %v5737_v55, %v5733_v48  ;;  %vm5879_vm14 = vc.u32 %v5871_v12, %v5875_v16  ;;  %v5522_v56 = vsel %vm5518_vm6, %v5502_v19, %v5505_v13  ;;  %v5524_v50 = vsel %vm5520_vm2, %v5508_v24, %v5523_v36 }
 0x5a4   :  { %v12621_v34 = vmul.u32 %v10562_v21, %v10704_v51  ;;  %v5880_v46 = vsel %vm5879_vm14, 1, %v12221_v6  ;;  %v5527_v10 = vsel %vm5521_vm8, %v5514_v25, 920167782  ;;  %v5877_v29 = vshll.u32 %v10733_v49, 16 }
 0x5a5   :  { %v5881_v27 = vadd.s32 %v5875_v16, %v5871_v12  ;;  %v5882_v14 = vadd.s32 %v5880_v46, %v5874_v5  ;;  %v5531_v52 = vsel %vm5521_vm8, %v5517_v26, 1326507024  ;;  %v5856_v30 = vshrl.u32 %v10724_v37, 16 }
 0x5a6   :  { %v5739_v17 = vadd.s32 %v5738_v41, %v12621_v34  ;;  %v5865_v0 = vadd.s32 %v5864_v44, %v5854_v31  ;;  %vm5519_vm11 = vcmp.lt.s32.totalorder %v10744_v47, 2  ;;  %v5526_v21 = vsel %vm5518_vm6, %v5505_v13, %v5508_v24 }
 0x5a7   :  { %v5530_v51 = vsel %vm5518_vm6, %v5508_v24, %v5511_v15  ;;  %vm5883_vm5 = vc.u32 %v5881_v27, %v5877_v29  ;;  %v10788_v12 = vsel %vm5519_vm11, %v5522_v56, %v5524_v50  ;;  %v5528_v5 = vsel %vm5520_vm2, %v5511_v15, %v5527_v10 }
 0x5a8   :  { %v5740_v40 = vadd.s32 536870912, %v5739_v17  ;;  %v5884_v37 = vsel %vm5883_vm5, 1, %v12221_v6  ;;  %v5532_v62 = vsel %vm5520_vm2, %v5514_v25, %v5531_v52  ;;  %v5876_v48 = vshrl.u32 %v10731_v57, 16 }
 0x5a9   :  { %v5886_v43 = vadd.s32 %v5884_v37, %v5882_v14  ;;  %vm5209_vm4 = vcmp.lt.s32.totalorder %v10365_v11, 2  ;;  %v10799_v28 = vadd.s32 %v5730_v60, %v5711_v18  ;;  %v10802_v13 = vadd.s32 %v5865_v0, %v5856_v30 }
 0x5aa   :  { %v10792_v38 = vshrl.u32 %v5740_v40, 30  ;;  %v5223_v15 = vsel %vm5209_vm4, %v10439_v45, %v10445_v32  ;;  %v5878_v24 = vshrl.u32 %v10733_v49, 16  ;;  %v10811_v57 = vsel %vm5519_vm11, %v5526_v21, %v5528_v5 }
 0x5ab   :  { %v5887_v36 = vadd.s32 %v5886_v43, %v5876_v48  ;;  %v5227_v25 = vand.u32 65535, %v5223_v15  ;;  %v5228_v55 = vshrl.u32 %v5223_v15, 16  ;;  %v10815_v18 = vsel %vm5519_vm11, %v5530_v51, %v5532_v62 }
 0x5ac   :  { %v5742_v16 = vshll.u32 %v10792_v38, 30  ;;  %v10819_v22 = vadd.s32 %v5881_v27, %v5877_v29  ;;  %v5579_v45 = vmul.u32 %v10728_v39, %v10788_v12  ;;  %v5219_v49 = vsel %vm5209_vm4, %v10428_v3, %v10433_v42 }
 0x5ad   :  { %v5888_v32 = vadd.s32 %v5887_v36, %v5878_v24  ;;  %v10828_v19 = vmul.u32 %v5228_v55, %v10290_v61  ;;  %v10835_v26 = vmul.u32 %v5227_v25, %v10382_v33  ;;  %v5537_v31 = vand.u32 65535, %v10815_v18  ;;  %v12629_v24 = vld [vmem:[#allocation30_spill] sm:$0xff] }
 0x5ae   :  { %v10817_v60 = vsub.s32 %v5739_v17, %v5742_v16  ;;  %vm5891_vm0 = vc.u32 %v10802_v13, %v10819_v22  ;;  %v5229_v41 = vmul.u32 %v5227_v25, %v10290_v61  ;;  %v5538_v42 = vshrl.u32 %v10815_v18, 16 }
 0x5af   :  { %v5892_v44 = vadd.s32 1, %v5888_v32  ;;  %v5233_v3 = vshll.u32 %v10828_v19, 16  ;;  %v5235_v50 = vshll.u32 %v10835_v26, 16  ;;  %v5250_v34 = vshrl.u32 %v5219_v49, 16 }
 0x5b0   :  { %vm5744_vm8 = vcmp.lt.s32.totalorder %v10817_v60, 0  ;;  %v5745_v47 = vsub.s32 0, %v10817_v60  ;;  %v12622_v29 = vmul.u32 %v10660_v59, %v10711_v23  ;;  %v5192_v14 = vshrl.u32 %v12337_v35, %v10330_v1 }
 0x5b1   :  { %v5893_v46 = vsel %vm5891_vm0, %v5892_v44, %v5888_v32  ;;  %vm5237_vm6 = vc.u32 %v5229_v41, %v5233_v3  ;;  %v5239_v10 = vadd.s32 %v5233_v3, %v5229_v41  ;;  %v5213_v52 = vsel %vm5211_vm1, %v10393_v58, 2102212464 }
 0x5b2   :  { %v5746_v56 = vsel %vm5744_vm8, %v5745_v47, %v10817_v60  ;;  %v5894_v27 = vadd.s32 %v5893_v46, %v12622_v29  ;;  %v5232_v40 = vmul.u32 %v5228_v55, %v10382_v33  ;;  %v5238_v0 = vsel %vm5237_vm6, 1, %v12221_v6 }
 0x5b3   :  { %v5747_v17 = vclz %v5746_v56  ;;  %vm5241_vm2 = vc.u32 %v5239_v10, %v5235_v50  ;;  %v5249_v21 = vand.u32 65535, %v5219_v49  ;;  %vm5643_vm14 = vcmp.lt.s32.totalorder %v10362_v9, 0 }
 0x5b4   :  { %v5559_v51 = vand.u32 65535, %v10811_v57  ;;  %v5895_v59 = vadd.s32 536870912, %v5894_v27  ;;  %v5240_v23 = vadd.s32 %v5238_v0, %v5232_v40  ;;  %v5252_v5 = vmul.u32 %v5250_v34, %v10290_v61 }
 0x5b5   :  { %v6216_v30 = vadd.s32 4294967294, %v5747_v17  ;;  %vm5798_vm11 = vcmp.lt.s32.totalorder %v10412_v63, 0  ;;  %v5560_v1 = vshrl.u32 %v10811_v57, 16  ;;  %v5212_v58 = vsel %vm5208_vm3, %v5192_v14, %v10389_v54 }
 0x5b6   :  { %v5242_v37 = vsel %vm5241_vm2, 1, %v12221_v6  ;;  %v5896_v48 = vshrl.u32 %v5895_v59, 30  ;;  %v5214_v43 = vsel %vm5210_vm7, %v10391_v7, %v5213_v52  ;;  %v5255_v16 = vshll.u32 %v5252_v5, 16 }
 0x5b7   :  { %vm6217_vm1 = vcmp.lt.s32.totalorder %v6216_v30, 0  ;;  %v12623_v15 = vand.u32 2147483647, %v10362_v9  ;;  %v5251_v55 = vmul.u32 %v5249_v21, %v10290_v61  ;;  %v5253_v54 = vmul.u32 %v5249_v21, %v10382_v33 }
 0x5b8   :  { %v5750_v62 = vsel %vm6217_vm1, 0, %v6216_v30  ;;  %v5765_v32 = vsub.s32 4, %v10792_v38  ;;  %v12626_v49 = vand.u32 2147483647, %v10412_v63  ;;  %v5897_v7 = vshll.u32 %v5896_v48, 30 }
 0x5b9   :  { %vm10867_vm5 = vcmp.le.f32.partialorder %v12623_v15, 0.7853982  ;;  %v5751_v36 = vsub.s32 32, %v5750_v62  ;;  %v5755_v25 = vsub.s32 4294967266, %v5750_v62  ;;  %v5234_v44 = vshrl.u32 %v10828_v19, 16 }
 0x5ba   :  { %vm10876_vm3 = vcmp.le.f32.partialorder %v12626_v49, 0.7853982  ;;  %v5244_v41 = vadd.s32 %v5242_v37, %v5240_v23  ;;  %v5752_v3 = vshll.u32 %v10817_v60, %v5750_v62  ;;  %vm5259_vm7 = vc.u32 %v5251_v55, %v5255_v16 }
 0x5bb   :  { %v5753_v56 = vshrl.u32 %v10799_v28, %v5751_v36  ;;  %v5756_v50 = vadd.s32 127, %v5755_v25  ;;  %v10883_v61 = vsub.s32 %v5894_v27, %v5897_v7  ;;  %v5920_v17 = vsub.s32 4, %v5896_v48 }
 0x5bc   :  { %v5254_v46 = vmul.u32 %v5250_v34, %v10382_v33  ;;  %v5260_v10 = vsel %vm5259_vm7, 1, %v12221_v6  ;;  %v5257_v52 = vshll.u32 %v5253_v54, 16  ;;  %v5261_v40 = vadd.s32 %v5255_v16, %v5251_v55 }
 0x5bd   :  { %v5754_v29 = vor.u32 %v5753_v56, %v5752_v3  ;;  %v5757_v14 = vshll.u32 %v5756_v50, 23  ;;  %vm5899_vm8 = vcmp.lt.s32.totalorder %v10883_v61, 0  ;;  %v5900_v19 = vsub.s32 0, %v10883_v61 }
 0x5be   :  { %v5245_v60 = vadd.s32 %v5244_v41, %v5234_v44  ;;  %v5262_v30 = vadd.s32 %v5260_v10, %v5254_v46  ;;  %v5766_v27 = vsel %vm5643_vm14, %v5765_v32, %v10792_v38  ;;  %v5236_v0 = vshrl.u32 %v10835_v26, 16 }
 0x5bf   :  { %v5758_v28 = vor.u32 4788187, %v5757_v14  ;;  %vm5263_vm0 = vc.u32 %v5261_v40, %v5257_v52  ;;  %v5901_v33 = vsel %vm5899_vm8, %v5900_v19, %v10883_v61  ;;  %v5921_v34 = vsel %vm5798_vm11, %v5920_v17, %v5896_v48 }
 0x5c0   :  { %v5256_v21 = vshrl.u32 %v5252_v5, 16  ;;  %v5264_v59 = vsel %vm5263_vm0, 1, %v12221_v6  ;;  %v5761_v37 = vcvt.s32.f32 %v5754_v29  ;;  %v5902_v62 = vclz %v5901_v33 }
 0x5c1   :  { %v5759_v23 = vand.u32 2147483647, %v5758_v28  ;;  %v5266_v16 = vadd.s32 %v5264_v59, %v5262_v30  ;;  %v10900_v15 = vmul.u32 %v5537_v31, %v10741_v8  ;;  %v5768_v38 = vsel %vm10867_vm5, 0, %v5766_v27  ;;  %v12631_v59 = vld [vmem:[#allocation87_spill] sm:$0xff] }
 0x5c2   :  { %v10904_v26 = vadd.s32 %v5245_v60, %v5236_v0  ;;  %v5258_v36 = vshrl.u32 %v5253_v54, 16  ;;  %v6219_v48 = vadd.s32 4294967294, %v5902_v62  ;;  %v5923_v5 = vsel %vm10876_vm3, 0, %v5921_v34  ;;  %v12630_v34 = vld [vmem:[#allocation86_spill] sm:$0xff] }
 0x5c3   :  { %v5762_v25 = vmul.f32 %v5761_v37, %v5759_v23  ;;  %v5267_v55 = vadd.s32 %v5266_v16, %v5256_v21  ;;  %v10911_v32 = vmul.u32 %v5538_v42, %v10741_v8  ;;  %v5890_v49 = vadd.s32 %v10819_v22, %v10802_v13 }
 0x5c4   :  { %v5215_v7 = vsel %vm5209_vm4, %v5212_v58, %v5214_v43  ;;  %v5265_v44 = vadd.s32 %v5261_v40, %v5257_v52  ;;  %vm6220_vm6 = vcmp.lt.s32.totalorder %v6219_v48, 0  ;;  %vm5364_vm2 = vcmp.lt.s32.totalorder %v10453_v53, 2  ;;  %v12646_v53 = vld [vmem:[#allocation12_spill] sm:$0xff] }
 0x5c5   :  { %v5763_v41 = vxor.u32 2147483648, %v5762_v25  ;;  %v5268_v54 = vadd.s32 %v5267_v55, %v5258_v36  ;;  %v5785_v3 = vadd.s32 3, %v5768_v38  ;;  %v5905_v56 = vsel %vm6220_vm6, 0, %v6219_v48  ;;  %v12632_v36 = vld [vmem:[#allocation96_spill] sm:$0xff] }
 0x5c6   :  { %v5940_v50 = vadd.s32 3, %v5923_v5  ;;  %v5378_v17 = vsel %vm5364_vm2, %v10524_v2, %v10553_v4  ;;  %v5906_v22 = vsub.s32 32, %v5905_v56  ;;  %v5910_v11 = vsub.s32 4294967266, %v5905_v56 }
 0x5c7   :  { %v5764_v13 = vsel %vm5643_vm14, %v5763_v41, %v5762_v25  ;;  %vm5271_vm4 = vc.u32 %v10904_v26, %v5265_v44  ;;  %v5907_v43 = vshll.u32 %v10883_v61, %v5905_v56  ;;  %v5272_v46 = vadd.s32 1, %v5268_v54  ;;  %v12633_v25 = vld [vmem:[#allocation93_spill] sm:$0xff] }
 0x5c8   :  { %v10928_v58 = vsel %vm10867_vm5, %v10362_v9, %v5764_v13  ;;  %v5382_v10 = vand.u32 65535, %v5378_v17  ;;  %v5908_v2 = vshrl.u32 %v5890_v49, %v5906_v22  ;;  %v5911_v4 = vadd.s32 127, %v5910_v11 }
 0x5c9   :  { %v5769_v29 = vmul.f32 %v10928_v58, %v10928_v58  ;;  %v5383_v14 = vshrl.u32 %v5378_v17, 16  ;;  %v10936_v52 = vmul.u32 %v5537_v31, %v10756_v20  ;;  %v10938_v40 = vand.u32 3, %v5785_v3 }
 0x5ca   :  { %v5269_v19 = vmul.u32 %v12629_v24, %v5215_v7  ;;  %v5273_v60 = vsel %vm5271_vm4, %v5272_v46, %v5268_v54  ;;  %v5909_v28 = vor.u32 %v5908_v2, %v5907_v43  ;;  %v5912_v27 = vshll.u32 %v5911_v4, 23  ;;  %v12634_v4 = vld [vmem:[#allocation85_spill] sm:$0xff] }
 0x5cb   :  { %v5770_v30 = vmul.f32 -0.001358992, %v5769_v29  ;;  %v5777_v61 = vmul.f32 -0.00019511016, %v5769_v29  ;;  %v10941_v0 = vand.u32 3, %v5940_v50  ;;  %v10944_v21 = vmul.u32 %v5383_v14, %v12630_v34 }
 0x5cc   :  { %v5274_v33 = vadd.s32 %v5273_v60, %v5269_v19  ;;  %v10947_v23 = vmul.u32 %v5382_v10, %v12631_v59  ;;  %v10952_v31 = vmul.u32 %v5538_v42, %v10756_v20  ;;  %v5913_v16 = vor.u32 4788187, %v5912_v27  ;;  %v12635_v60 = vld [vmem:[#allocation91_spill] sm:$0xff] }
 0x5cd   :  { %v5771_v37 = vadd.f32 0.041655596, %v5770_v30  ;;  %v5778_v62 = vadd.f32 0.008332121, %v5777_v61  ;;  %v10958_v48 = vsel %vm5364_vm2, %v12633_v25, %v12632_v36  ;;  %v5384_v5 = vmul.u32 %v5382_v10, %v12630_v34  ;;  %v12636_v36 = vld [vmem:[#allocation89_spill] sm:$0xff] }
 0x5ce   :  { %v5275_v38 = vadd.s32 536870912, %v5274_v33  ;;  %v5388_v55 = vshll.u32 %v10944_v21, 16  ;;  %v5914_v41 = vand.u32 2147483647, %v5913_v16  ;;  %v5916_v18 = vcvt.s32.f32 %v5909_v28 }
 0x5cf   :  { %v5772_v49 = vmul.f32 %v5771_v37, %v5769_v29  ;;  %v5779_v7 = vmul.f32 %v5778_v62, %v5769_v29  ;;  %v5390_v54 = vshll.u32 %v10947_v23, 16  ;;  %vm5788_vm1 = vcmp.eq.s32.totalorder %v10938_v40, 0 }
 0x5d0   :  { %v10962_v42 = vshrl.u32 %v5275_v38, 30  ;;  %vm5392_vm14 = vc.u32 %v5384_v5, %v5388_v55  ;;  %v5394_v3 = vadd.s32 %v5388_v55, %v5384_v5  ;;  %v5917_v17 = vmul.f32 %v5916_v18, %v5914_v41  ;;  %v12637_v5 = vld [vmem:[#allocation90_spill] sm:$0xff] }
 0x5d1   :  { %v5773_v56 = vadd.f32 -0.4999988, %v5772_v49  ;;  %v5780_v50 = vadd.f32 -0.16666654, %v5779_v7  ;;  %v5393_v13 = vsel %vm5392_vm14, 1, %v12221_v6  ;;  %vm5791_vm5 = vcmp.eq.s32.totalorder %v10938_v40, 2 }
 0x5d2   :  { %v10969_v22 = vadd.s32 %v5265_v44, %v10904_v26  ;;  %v5277_v11 = vshll.u32 %v10962_v42, 30  ;;  %v5387_v43 = vmul.u32 %v5383_v14, %v12631_v59  ;;  %vm5396_vm7 = vc.u32 %v5394_v3, %v5390_v54 }
 0x5d3   :  { %v5774_v46 = vmul.f32 %v5773_v56, %v5769_v29  ;;  %v5781_v10 = vmul.f32 %v5780_v50, %v5769_v29  ;;  %vm5787_vm8 = vcmp.lt.s32.totalorder %v10938_v40, 2  ;;  %v5918_v2 = vxor.u32 2147483648, %v5917_v17 }
 0x5d4   :  { %v5347_v24 = vshrl.u32 %v12337_v35, %v12634_v4  ;;  %vm5784_vm0 = vweird.f32 %v10362_v9  ;;  %v10977_v19 = vsub.s32 %v5274_v33, %v5277_v11  ;;  %v5368_v26 = vsel %vm5366_vm12, %v12635_v60, 2102212464  ;;  %v12638_v4 = vld [vmem:[#allocation47_spill] sm:$0xff] }
 0x5d5   :  { %v5395_v44 = vadd.s32 %v5393_v13, %v5387_v43  ;;  %v5405_v14 = vshrl.u32 %v10958_v48, 16  ;;  %v5775_v30 = vadd.f32 1.0, %v5774_v46  ;;  %v5782_v61 = vadd.f32 1.0, %v5781_v10 }
 0x5d6   :  { %v5919_v29 = vsel %vm5798_vm11, %v5918_v2, %v5917_v17  ;;  %v5397_v28 = vsel %vm5396_vm7, 1, %v12221_v6  ;;  %vm5279_vm6 = vcmp.lt.s32.totalorder %v10977_v19, 0  ;;  %v5280_v33 = vsub.s32 0, %v10977_v19 }
 0x5d7   :  { %v10989_v27 = vsel %vm10876_vm3, %v10412_v63, %v5919_v29  ;;  %v5404_v37 = vand.u32 65535, %v10958_v48  ;;  %v5783_v62 = vmul.f32 %v5782_v61, %v10928_v58  ;;  %v5792_v16 = vxor.u32 2147483648, %v5775_v30 }
 0x5d8   :  { %v5924_v38 = vmul.f32 %v10989_v27, %v10989_v27  ;;  %v11000_v25 = vsel %vm5363_vm9, %v5347_v24, %v12636_v36  ;;  %v5281_v47 = vsel %vm5279_vm6, %v5280_v33, %v10977_v19  ;;  %v11006_v55 = vsel %vm5365_vm15, %v12637_v5, %v5368_v26 }
 0x5d9   :  { %v5399_v49 = vadd.s32 %v5397_v28, %v5395_v44  ;;  %v5407_v48 = vmul.u32 %v5405_v14, %v12630_v34  ;;  %v5789_v58 = vxor.u32 2147483648, %v5783_v62  ;;  %v5389_v18 = vshrl.u32 %v10944_v21, 16 }
 0x5da   :  { %v5925_v7 = vmul.f32 -0.001358992, %v5924_v38  ;;  %v5932_v41 = vmul.f32 -0.00019511016, %v5924_v38  ;;  %v5282_v54 = vclz %v5281_v47  ;;  %v5391_v3 = vshrl.u32 %v10947_v23, 16 }
 0x5db   :  { %v5406_v56 = vmul.u32 %v5404_v37, %v12630_v34  ;;  %v5408_v50 = vmul.u32 %v5404_v37, %v12631_v59  ;;  %v5790_v17 = vsel %vm5788_vm1, %v5775_v30, %v5789_v58  ;;  %v5793_v13 = vsel %vm5791_vm5, %v5792_v16, %v5783_v62 }
 0x5dc   :  { %v5926_v11 = vadd.f32 0.041655596, %v5925_v7  ;;  %v5933_v43 = vadd.f32 0.008332121, %v5932_v41  ;;  %v5794_v46 = vsel %vm5787_vm8, %v5790_v17, %v5793_v13  ;;  %v6207_v10 = vadd.s32 4294967294, %v5282_v54 }
 0x5dd   :  { %v5400_v21 = vadd.s32 %v5399_v49, %v5389_v18  ;;  %v5410_v2 = vshll.u32 %v5407_v48, 16  ;;  %vm5178_vm12 = vcmp.lt.s32.totalorder %v12638_v4, 0  ;;  %v5795_v34 = vsel %vm5784_vm0, nan, %v5794_v46 }
 0x5de   :  { %v5927_v23 = vmul.f32 %v5926_v11, %v5924_v38  ;;  %v5934_v24 = vmul.f32 %v5933_v43, %v5924_v38  ;;  %v5409_v60 = vmul.u32 %v5405_v14, %v12631_v59  ;;  %6018 = vmatpush.msra.mxu2 %v5795_v34  ;;  %vm6208_vm9 = vcmp.lt.s32.totalorder %v6207_v10, 0  ;;  %v12643_v34 = vld [vmem:[#allocation25_spill] sm:$0xff] }
 0x5df   :  { %v5412_v26 = vshll.u32 %v5408_v50, 16  ;;  %vm5414_vm15 = vc.u32 %v5406_v56, %v5410_v2  ;;  %v5416_v44 = vadd.s32 %v5410_v2, %v5406_v56  ;;  %v5285_v61 = vsel %vm6208_vm9, 0, %v6207_v10 }
 0x5e0   :  { %v5928_v30 = vadd.f32 -0.4999988, %v5927_v23  ;;  %v5935_v40 = vadd.f32 -0.16666654, %v5934_v24  ;;  %v5415_v29 = vsel %vm5414_vm15, 1, %v12221_v6  ;;  %vm5943_vm11 = vcmp.eq.s32.totalorder %v10941_v0, 0 }
 0x5e1   :  { %v5286_v28 = vsub.s32 32, %v5285_v61  ;;  %v5290_v33 = vsub.s32 4294967266, %v5285_v61  ;;  %v5300_v9 = vsub.s32 4, %v10962_v42  ;;  %v5417_v37 = vadd.s32 %v5415_v29, %v5409_v60  ;;  %v12644_v23 = vld [vmem:[#allocation34_spill] sm:$0xff]  ;;  %v12645_v24 = vld [vmem:[#allocation7_spill] sm:$0xff] }
 0x5e2   :  { %v5929_v62 = vmul.f32 %v5928_v30, %v5924_v38  ;;  %v5936_v16 = vmul.f32 %v5935_v40, %v5924_v38  ;;  %vm5942_vm3 = vcmp.lt.s32.totalorder %v10941_v0, 2  ;;  %v11027_v59 = vadd.s32 %v5400_v21, %v5391_v3 }
 0x5e3   :  { %vm5418_vm4 = vc.u32 %v5416_v44, %v5412_v26  ;;  %vm5939_vm14 = vweird.f32 %v10412_v63  ;;  %v12639_v14 = vand.u32 2147483647, %v12638_v4  ;;  %v5287_v47 = vshll.u32 %v10977_v19, %v5285_v61  ;;  %v12647_v61 = vld [vmem:[#allocation82_spill] sm:$0xff] }
 0x5e4   :  { %v5288_v5 = vshrl.u32 %v10969_v22, %v5286_v28  ;;  %v5291_v49 = vadd.s32 127, %v5290_v33  ;;  %v5419_v38 = vsel %vm5418_vm4, 1, %v12221_v6  ;;  %v5930_v58 = vadd.f32 1.0, %v5929_v62  ;;  %v12648_v62 = vld [vmem:[#allocation65_spill] sm:$0xff] }
 0x5e5   :  { %vm11032_vm1 = vcmp.le.f32.partialorder %v12639_v14, 0.7853982  ;;  %v5937_v7 = vadd.f32 1.0, %v5936_v16  ;;  %v5411_v41 = vshrl.u32 %v5407_v48, 16  ;;  %v5421_v18 = vadd.s32 %v5419_v38, %v5417_v37 }
 0x5e6   :  { %vm5946_vm5 = vcmp.eq.s32.totalorder %v10941_v0, 2  ;;  %v5289_v54 = vor.u32 %v5288_v5, %v5287_v47  ;;  %v5292_v3 = vshll.u32 %v5291_v49, 23  ;;  %v11040_v56 = vadd.s32 %v5416_v44, %v5412_v26  ;;  %v12649_v47 = vld [vmem:[#allocation56_spill] sm:$0xff] }
 0x5e7   :  { %v5938_v17 = vmul.f32 %v5937_v7, %v10989_v27  ;;  %v5947_v13 = vxor.u32 2147483648, %v5930_v58  ;;  %v5413_v11 = vshrl.u32 %v5408_v50, 16  ;;  %v5422_v19 = vadd.s32 %v5421_v18, %v5411_v41  ;;  %v12642_v27 = vld [vmem:[#allocation29_spill] sm:$0xff] }
 0x5e8   :  { %v5293_v43 = vor.u32 4788187, %v5292_v3  ;;  %v5301_v22 = vsel %vm5178_vm12, %v5300_v9, %v10962_v42  ;;  %v5370_v48 = vsel %vm5364_vm2, %v11000_v25, %v11006_v55  ;;  %vm5426_vm7 = vc.u32 %v11027_v59, %v11040_v56 }
 0x5e9   :  { %v5944_v46 = vxor.u32 2147483648, %v5938_v17  ;;  %v5296_v10 = vcvt.s32.f32 %v5289_v54  ;;  %v5423_v21 = vadd.s32 %v5422_v19, %v5413_v11  ;;  %vm4744_vm8 = vcmp.lt.s32.totalorder %v12642_v27, 2 }
 0x5ea   :  { %v5948_v50 = vsel %vm5946_vm5, %v5947_v13, %v5938_v17  ;;  %v5294_v2 = vand.u32 2147483647, %v5293_v43  ;;  %v4754_v42 = vsel %vm4744_vm8, %v12644_v23, %v12643_v34  ;;  %v4758_v25 = vsel %vm4744_vm8, %v12646_v53, %v12645_v24  ;;  %v12650_v23 = vld [vmem:[#allocation35_spill] sm:$0xff] }
 0x5eb   :  { %v5945_v55 = vsel %vm5943_vm11, %v5930_v58, %v5944_v46  ;;  %v5427_v60 = vadd.s32 1, %v5423_v21  ;;  %v4762_v26 = vand.u32 65535, %v4758_v25  ;;  %v4763_v44 = vshrl.u32 %v4758_v25, 16 }
 0x5ec   :  { %v5949_v30 = vsel %vm5942_vm3, %v5945_v55, %v5948_v50  ;;  %v5297_v40 = vmul.f32 %v5296_v10, %v5294_v2  ;;  %v5424_v29 = vmul.u32 %v12647_v61, %v5370_v48  ;;  %v4785_v28 = vshrl.u32 %v4754_v42, 16 }
 0x5ed   :  { %v5950_v33 = vsel %vm5939_vm14, nan, %v5949_v30  ;;  %v5303_v9 = vsel %vm11032_vm1, 0, %v5301_v22  ;;  %v5428_v37 = vsel %vm5426_vm7, %v5427_v60, %v5423_v21  ;;  %v4765_v16 = vmul.u32 %v4763_v44, %v12648_v62 }
 0x5ee   :  { %6044 = vmatpush.msra.mxu3 %v5950_v33  ;;  %v5298_v14 = vxor.u32 2147483648, %v5297_v40  ;;  %v5429_v0 = vadd.s32 %v5428_v37, %v5424_v29  ;;  %v11077_v5 = vmul.u32 %v4762_v26, %v12649_v47  ;;  %v4784_v49 = vand.u32 65535, %v4754_v42  ;;  %v12651_v37 = vld [vmem:[#allocation39_spill] sm:$0xff] }
 0x5ef   :  { %v11082_v63 = vmul.u32 %v5559_v51, %v10741_v8  ;;  %v4764_v38 = vmul.u32 %v4762_v26, %v12648_v62  ;;  %v4768_v58 = vshll.u32 %v4765_v16, 16  ;;  %v11086_v7 = vmul.u32 %v4785_v28, %v12648_v62 }
 0x5f0   :  { %v5299_v41 = vsel %vm5178_vm12, %v5298_v14, %v5297_v40  ;;  %v5320_v18 = vadd.s32 3, %v5303_v9  ;;  %v5430_v54 = vadd.s32 536870912, %v5429_v0  ;;  %v4767_v3 = vmul.u32 %v4763_v44, %v12649_v47 }
 0x5f1   :  { %v11094_v17 = vsel %vm11032_vm1, %v12638_v4, %v5299_v41  ;;  %v4770_v13 = vshll.u32 %v11077_v5, 16  ;;  %vm4772_vm2 = vc.u32 %v4764_v38, %v4768_v58  ;;  %v4774_v11 = vadd.s32 %v4768_v58, %v4764_v38  ;;  %v12653_v41 = vld [vmem:[#allocation52_spill] sm:$0xff] }
 0x5f2   :  { %v5304_v19 = vmul.f32 %v11094_v17, %v11094_v17  ;;  %v11099_v43 = vshrl.u32 %v5430_v54, 30  ;;  %v4773_v22 = vsel %vm4772_vm2, 1, %v12221_v6  ;;  %v4786_v48 = vmul.u32 %v4784_v49, %v12648_v62  ;;  %v12652_v62 = vld [vmem:[#allocation46_spill] sm:$0xff]  ;;  %v12654_v54 = vld [vmem:[#allocation53_spill] sm:$0xff] }
 0x5f3   :  { %v4775_v46 = vadd.s32 %v4773_v22, %v4767_v3  ;;  %vm4776_vm0 = vc.u32 %v4774_v11, %v4770_v13  ;;  %v4788_v10 = vmul.u32 %v4784_v49, %v12649_v47  ;;  %v4790_v36 = vshll.u32 %v11086_v7, 16 }
 0x5f4   :  { %v5305_v21 = vmul.f32 -0.001358992, %v5304_v19  ;;  %v5312_v50 = vmul.f32 -0.00019511016, %v5304_v19  ;;  %v11105_v2 = vand.u32 3, %v5320_v18  ;;  %v5432_v34 = vshll.u32 %v11099_v43, 30 }
 0x5f5   :  { %v4748_v42 = vsel %vm4746_vm10, %v12650_v23, 2102212464  ;;  %v4769_v24 = vshrl.u32 %v4765_v16, 16  ;;  %v4777_v53 = vsel %vm4776_vm0, 1, %v12221_v6  ;;  %vm4794_vm6 = vc.u32 %v4786_v48, %v4790_v36 }
 0x5f6   :  { %v5306_v25 = vadd.f32 0.041655596, %v5305_v21  ;;  %v5313_v55 = vadd.f32 0.008332121, %v5312_v50  ;;  %v11112_v60 = vsub.s32 %v5429_v0, %v5432_v34  ;;  %v4789_v26 = vmul.u32 %v4785_v28, %v12649_v47 }
 0x5f7   :  { %v4779_v44 = vadd.s32 %v4777_v53, %v4775_v46  ;;  %v4792_v30 = vshll.u32 %v4788_v10, 16  ;;  %v4795_v40 = vsel %vm4794_vm6, 1, %v12221_v6  ;;  %v4796_v61 = vadd.s32 %v4790_v36, %v4786_v48 }
 0x5f8   :  { %v5307_v29 = vmul.f32 %v5306_v25, %v5304_v19  ;;  %v5314_v33 = vmul.f32 %v5313_v55, %v5304_v19  ;;  %vm5434_vm12 = vcmp.lt.s32.totalorder %v11112_v60, 0  ;;  %v5435_v9 = vsub.s32 0, %v11112_v60 }
 0x5f9   :  { %vm5333_vm10 = vcmp.lt.s32.totalorder %v12651_v37, 0  ;;  %v4727_v16 = vshrl.u32 %v12337_v35, %v12652_v62  ;;  %v4780_v14 = vadd.s32 %v4779_v44, %v4769_v24  ;;  %v4797_v0 = vadd.s32 %v4795_v40, %v4789_v26  ;;  %v12657_v62 = vld [vmem:[#allocation22_spill] sm:$0xff] }
 0x5fa   :  { %vm4798_vm9 = vc.u32 %v4796_v61, %v4792_v30  ;;  %v5308_v28 = vadd.f32 -0.4999988, %v5307_v29  ;;  %v5315_v47 = vadd.f32 -0.16666654, %v5314_v33  ;;  %v5436_v49 = vsel %vm5434_vm12, %v5435_v9, %v11112_v60 }
 0x5fb   :  { %v4799_v38 = vsel %vm4798_vm9, 1, %v12221_v6  ;;  %v5437_v58 = vclz %v5436_v49  ;;  %v4747_v18 = vsel %vm4743_vm13, %v4727_v16, %v12653_v41  ;;  %vm12655_vm15 = vcmp.lt.s32.totalorder %v12642_v27, 3 }
 0x5fc   :  { %v4749_v3 = vsel %vm12655_vm15, %v12654_v54, %v4748_v42  ;;  %v4771_v13 = vshrl.u32 %v11077_v5, 16  ;;  %v5309_v11 = vmul.f32 %v5308_v28, %v5304_v19  ;;  %v5316_v22 = vmul.f32 %v5315_v47, %v5304_v19  ;;  %v12661_v54 = vld [vmem:[#allocation74_spill] sm:$0xff] }
 0x5fd   :  { %vm5322_vm11 = vcmp.lt.s32.totalorder %v11105_v2, 2  ;;  %v4791_v48 = vshrl.u32 %v11086_v7, 16  ;;  %v4801_v46 = vadd.s32 %v4799_v38, %v4797_v0  ;;  %vm5319_vm3 = vweird.f32 %v12638_v4  ;;  %v12659_v0 = vld [vmem:[#allocation18_spill] sm:$0xff] }
 0x5fe   :  { %vm5323_vm4 = vcmp.eq.s32.totalorder %v11105_v2, 0  ;;  %v6210_v36 = vadd.s32 4294967294, %v5437_v58  ;;  %v5455_v21 = vsub.s32 4, %v11099_v43  ;;  %v11135_v50 = vadd.s32 %v4780_v14, %v4771_v13  ;;  %v12658_v14 = vld [vmem:[#allocation77_spill] sm:$0xff] }
 0x5ff   :  { %v5310_v34 = vadd.f32 1.0, %v5309_v11  ;;  %v5317_v23 = vadd.f32 1.0, %v5316_v22  ;;  %v4793_v42 = vshrl.u32 %v4788_v10, 16  ;;  %v4802_v5 = vadd.s32 %v4801_v46, %v4791_v48 }
 0x600   :  { %vm5326_vm13 = vcmp.eq.s32.totalorder %v11105_v2, 2  ;;  %vm6211_vm14 = vcmp.lt.s32.totalorder %v6210_v36, 0  ;;  %v4750_v7 = vsel %vm4744_vm8, %v4747_v18, %v4749_v3  ;;  %v11140_v19 = vadd.s32 %v4796_v61, %v4792_v30  ;;  %v12656_v30 = vld [vmem:[#allocation11_spill] sm:$0xff]  ;;  %v12660_v18 = vld [vmem:[#allocation78_spill] sm:$0xff] }
 0x601   :  { %v5318_v24 = vmul.f32 %v5317_v23, %v11094_v17  ;;  %v5327_v53 = vxor.u32 2147483648, %v5310_v34  ;;  %v5440_v25 = vsel %vm6211_vm14, 0, %v6210_v36  ;;  %v4803_v55 = vadd.s32 %v4802_v5, %v4793_v42  ;;  %v12665_v5 = vld [vmem:[#allocation6_spill] sm:$0xff] }
 0x602   :  { %v5425_v26 = vadd.s32 %v11040_v56, %v11027_v59  ;;  %v5441_v44 = vsub.s32 32, %v5440_v25  ;;  %v5445_v40 = vsub.s32 4294967266, %v5440_v25  ;;  %vm4806_vm1 = vc.u32 %v11135_v50, %v11140_v19 }
 0x603   :  { %v5324_v10 = vxor.u32 2147483648, %v5318_v24  ;;  %v5456_v27 = vsel %vm5333_vm10, %v5455_v21, %v11099_v43  ;;  %v4804_v61 = vmul.u32 %v12656_v30, %v4750_v7  ;;  %v4807_v29 = vadd.s32 1, %v4803_v55 }
 0x604   :  { %v5442_v17 = vshll.u32 %v11112_v60, %v5440_v25  ;;  %v5443_v33 = vshrl.u32 %v5425_v26, %v5441_v44  ;;  %v5446_v9 = vadd.s32 127, %v5445_v40  ;;  %vm4899_vm5 = vcmp.lt.s32.totalorder %v12657_v62, 2  ;;  %v12668_v44 = vld [vmem:[#allocation19_spill] sm:$0xff] }
 0x605   :  { %v5325_v59 = vsel %vm5323_vm4, %v5310_v34, %v5324_v10  ;;  %v5328_v56 = vsel %vm5326_vm13, %v5327_v53, %v5318_v24  ;;  %v4808_v16 = vsel %vm4806_vm1, %v4807_v29, %v4803_v55  ;;  %v4909_v43 = vsel %vm4899_vm5, %v12659_v0, %v12658_v14  ;;  %v12666_v24 = vld [vmem:[#allocation38_spill] sm:$0xff] }
 0x606   :  { %v5329_v28 = vsel %vm5322_vm11, %v5325_v59, %v5328_v56  ;;  %v5444_v60 = vor.u32 %v5443_v33, %v5442_v17  ;;  %v5447_v47 = vshll.u32 %v5446_v9, 23  ;;  %v4809_v49 = vadd.s32 %v4808_v16, %v4804_v61 }
 0x607   :  { %v11166_v38 = vmul.u32 %v5560_v1, %v10741_v8  ;;  %v11171_v58 = vmul.u32 %v5559_v51, %v10756_v20  ;;  %v5330_v41 = vsel %vm5319_vm3, nan, %v5329_v28  ;;  %v4913_v2 = vsel %vm4899_vm5, %v12661_v54, %v12660_v18 }
 0x608   :  { %6019 = vmatpush.msra.mxu2 %v5330_v41  ;;  %v12662_v3 = vand.u32 2147483647, %v12651_v37  ;;  %v5448_v8 = vor.u32 4788187, %v5447_v47  ;;  %v4810_v11 = vadd.s32 536870912, %v4809_v49  ;;  %v4917_v22 = vand.u32 65535, %v4913_v2 }
 0x609   :  { %v4918_v4 = vshrl.u32 %v4913_v2, 16  ;;  %v4939_v48 = vand.u32 65535, %v4909_v43  ;;  %v4940_v46 = vshrl.u32 %v4909_v43, 16  ;;  %v11190_v36 = vmul.u32 %v5560_v1, %v10756_v20  ;;  %v12667_v20 = vld [vmem:[#allocation26_spill] sm:$0xff] }
 0x60a   :  { %vm11181_vm7 = vcmp.le.f32.partialorder %v12662_v3, 0.7853982  ;;  %v5449_v21 = vand.u32 2147483647, %v5448_v8  ;;  %v5451_v34 = vcvt.s32.f32 %v5444_v60  ;;  %v11192_v23 = vshrl.u32 %v4810_v11, 30 }
 0x60b   :  { %v5458_v51 = vsel %vm11181_vm7, 0, %v5456_v27  ;;  %v5543_v42 = vshll.u32 %v10911_v32, 16  ;;  %v4920_v7 = vmul.u32 %v4918_v4, %v12665_v5  ;;  %v4921_v53 = vmul.u32 %v4917_v22, %v12666_v24 }
 0x60c   :  { %v11198_v25 = vmul.u32 %v4940_v46, %v12665_v5  ;;  %v5452_v55 = vmul.f32 %v5451_v34, %v5449_v21  ;;  %v11200_v26 = vadd.s32 3, %v5458_v51  ;;  %v4812_v57 = vshll.u32 %v11192_v23, 30 }
 0x60d   :  { %v4882_v1 = vshrl.u32 %v12337_v35, %v12667_v20  ;;  %vm12669_vm8 = vcmp.lt.s32.totalorder %v12657_v62, 4  ;;  %v4919_v10 = vmul.u32 %v4917_v22, %v12665_v5  ;;  %v4923_v27 = vshll.u32 %v4920_v7, 16 }
 0x60e   :  { %v4903_v40 = vsel %vm12669_vm8, %v12668_v44, 2102212464  ;;  %v4941_v30 = vmul.u32 %v4939_v48, %v12665_v5  ;;  %v5453_v61 = vxor.u32 2147483648, %v5452_v55  ;;  %v4813_v29 = vsub.s32 %v4809_v49, %v4812_v57  ;;  %v12671_v5 = vld [vmem:[#allocation15_spill] sm:$0xff] }
 0x60f   :  { %v4922_v17 = vmul.u32 %v4918_v4, %v12666_v24  ;;  %v4943_v33 = vmul.u32 %v4939_v48, %v12666_v24  ;;  %v4925_v9 = vshll.u32 %v4921_v53, 16  ;;  %vm4927_vm2 = vc.u32 %v4919_v10, %v4923_v27  ;;  %v12673_v57 = vld [vmem:[#allocation23_spill] sm:$0xff] }
 0x610   :  { %v4929_v59 = vadd.s32 %v4923_v27, %v4919_v10  ;;  %v4945_v56 = vshll.u32 %v11198_v25, 16  ;;  %v5454_v16 = vsel %vm5333_vm10, %v5453_v61, %v5452_v55  ;;  %vm4814_vm0 = vcmp.lt.s32.totalorder %v4813_v29, 0 }
 0x611   :  { %v4815_v14 = vsub.s32 0, %v4813_v29  ;;  %v4928_v0 = vsel %vm4927_vm2, 1, %v12221_v6  ;;  %v5457_v43 = vsel %vm11181_vm7, %v12651_v37, %v5454_v16  ;;  %v4944_v60 = vmul.u32 %v4940_v46, %v12666_v24  ;;  %v12670_v46 = vld [vmem:[#allocation72_spill] sm:$0xff] }
 0x612   :  { %v4930_v28 = vadd.s32 %v4928_v0, %v4922_v17  ;;  %vm4931_vm6 = vc.u32 %v4929_v59, %v4925_v9  ;;  %v5459_v47 = vmul.f32 %v5457_v43, %v5457_v43  ;;  %v4947_v18 = vshll.u32 %v4943_v33, 16 }
 0x613   :  { %v4816_v49 = vsel %vm4814_vm0, %v4815_v14, %v4813_v29  ;;  %v4932_v41 = vsel %vm4931_vm6, 1, %v12221_v6  ;;  %vm4949_vm12 = vc.u32 %v4941_v30, %v4945_v56  ;;  %v4951_v3 = vadd.s32 %v4945_v56, %v4941_v30 }
 0x614   :  { %v4817_v54 = vclz %v4816_v49  ;;  %v4934_v2 = vadd.s32 %v4932_v41, %v4930_v28  ;;  %v5460_v8 = vmul.f32 -0.001358992, %v5459_v47  ;;  %v5467_v11 = vmul.f32 -0.00019511016, %v5459_v47 }
 0x615   :  { %v4924_v22 = vshrl.u32 %v4920_v7, 16  ;;  %v4950_v51 = vsel %vm4949_vm12, 1, %v12221_v6  ;;  %v4805_v13 = vadd.s32 %v11140_v19, %v11135_v50  ;;  %vm4953_vm10 = vc.u32 %v4951_v3, %v4947_v18 }
 0x616   :  { %v6198_v4 = vadd.s32 4294967294, %v4817_v54  ;;  %v4952_v48 = vadd.s32 %v4950_v51, %v4944_v60  ;;  %vm4713_vm9 = vcmp.lt.s32.totalorder %v12670_v46, 0  ;;  %v5461_v21 = vadd.f32 0.041655596, %v5460_v8 }
 0x617   :  { %v5468_v34 = vadd.f32 0.008332121, %v5467_v11  ;;  %vm12672_vm15 = vcmp.lt.s32.totalorder %v12657_v62, 1  ;;  %v4935_v55 = vadd.s32 %v4934_v2, %v4924_v22  ;;  %v4835_v7 = vsub.s32 4, %v11192_v23 }
 0x618   :  { %v4902_v24 = vsel %vm12672_vm15, %v4882_v1, %v12671_v5  ;;  %vm6199_vm11 = vcmp.lt.s32.totalorder %v6198_v4, 0  ;;  %vm12674_vm3 = vcmp.lt.s32.totalorder %v12657_v62, 3  ;;  %v4954_v50 = vsel %vm4953_vm10, 1, %v12221_v6 }
 0x619   :  { %v4904_v20 = vsel %vm12674_vm3, %v12673_v57, %v4903_v40  ;;  %v5462_v19 = vmul.f32 %v5461_v21, %v5459_v47  ;;  %v5469_v44 = vmul.f32 %v5468_v34, %v5459_v47  ;;  %v4820_v10 = vsel %vm6199_vm11, 0, %v6198_v4  ;;  %v12681_v57 = vld [vmem:[#allocation69_spill] sm:$0xff] }
 0x61a   :  { %v4926_v27 = vshrl.u32 %v4921_v53, 16  ;;  %v4821_v30 = vsub.s32 32, %v4820_v10  ;;  %v4825_v61 = vsub.s32 4294967266, %v4820_v10  ;;  %v4946_v17 = vshrl.u32 %v11198_v25, 16 }
 0x61b   :  { %v4956_v9 = vadd.s32 %v4954_v50, %v4952_v48  ;;  %v5463_v1 = vadd.f32 -0.4999988, %v5462_v19  ;;  %v5470_v59 = vadd.f32 -0.16666654, %v5469_v44  ;;  %v4948_v16 = vshrl.u32 %v4943_v33, 16  ;;  %v12684_v50 = vld [vmem:[#allocation57_spill] sm:$0xff] }
 0x61c   :  { %v4936_v56 = vadd.s32 %v4935_v55, %v4926_v27  ;;  %v4822_v14 = vshll.u32 %v4813_v29, %v4820_v10  ;;  %v4823_v0 = vshrl.u32 %v4805_v13, %v4821_v30  ;;  %v4826_v28 = vadd.s32 127, %v4825_v61  ;;  %v12680_v13 = vld [vmem:[#allocation41_spill] sm:$0xff]  ;;  %v12685_v19 = vld [vmem:[#allocation54_spill] sm:$0xff] }
 0x61d   :  { %v4957_v60 = vadd.s32 %v4956_v9, %v4946_v17  ;;  %v5464_v40 = vmul.f32 %v5463_v1, %v5459_v47  ;;  %v5471_v49 = vmul.f32 %v5470_v59, %v5459_v47  ;;  %v5476_v41 = vand.u32 3, %v11200_v26  ;;  %v12688_v26 = vld [vmem:[#allocation70_spill] sm:$0xff] }
 0x61e   :  { %v4955_v54 = vadd.s32 %v4951_v3, %v4947_v18  ;;  %v4824_v2 = vor.u32 %v4823_v0, %v4822_v14  ;;  %v4827_v53 = vshll.u32 %v4826_v28, 23  ;;  %v4905_v8 = vsel %vm4899_vm5, %v4902_v24, %v4904_v20 }
 0x61f   :  { %v4958_v25 = vadd.s32 %v4957_v60, %v4948_v16  ;;  %vm11240_vm4 = vc.u32 %v10900_v15, %v5543_v42  ;;  %v5465_v29 = vadd.f32 1.0, %v5464_v40  ;;  %v5472_v11 = vadd.f32 1.0, %v5471_v49 }
 0x620   :  { %vm4961_vm13 = vc.u32 %v4936_v56, %v4955_v54  ;;  %v12677_v47 = vand.u32 2147483647, %v12670_v46  ;;  %v4828_v18 = vor.u32 4788187, %v4827_v53  ;;  %v4836_v62 = vsel %vm4713_vm9, %v4835_v7, %v11192_v23  ;;  %v12682_v23 = vld [vmem:[#allocation61_spill] sm:$0xff]  ;;  %v12683_v7 = vld [vmem:[#allocation43_spill] sm:$0xff] }
 0x621   :  { %v4962_v3 = vadd.s32 1, %v4958_v25  ;;  %v5473_v22 = vmul.f32 %v5472_v11, %v5457_v43  ;;  %vm5477_vm1 = vcmp.lt.s32.totalorder %v5476_v41, 2  ;;  %v5482_v51 = vxor.u32 2147483648, %v5465_v29  ;;  %v12686_v53 = vld [vmem:[#allocation2_spill] sm:$0xff] }
 0x622   :  { %vm11246_vm14 = vcmp.le.f32.partialorder %v12677_v47, 0.7853982  ;;  %v4959_v4 = vmul.u32 %v12680_v13, %v4905_v8  ;;  %vm5478_vm5 = vcmp.eq.s32.totalorder %v5476_v41, 0  ;;  %v4829_v48 = vand.u32 2147483647, %v4828_v18 }
 0x623   :  { %v4831_v21 = vcvt.s32.f32 %v4824_v2  ;;  %v4963_v34 = vsel %vm4961_vm13, %v4962_v3, %v4958_v25  ;;  %v5479_v5 = vxor.u32 2147483648, %v5473_v22  ;;  %v4838_v24 = vsel %vm11246_vm14, 0, %v4836_v62  ;;  %v12690_v62 = vld [vmem:[#allocation48_spill] sm:$0xff] }
 0x624   :  { %v4964_v55 = vadd.s32 %v4963_v34, %v4959_v4  ;;  %vm4279_vm7 = vcmp.lt.s32.totalorder %v12681_v57, 2  ;;  %vm5481_vm8 = vcmp.eq.s32.totalorder %v5476_v41, 2  ;;  %vm5474_vm2 = vweird.f32 %v12651_v37 }
 0x625   :  { %v4832_v20 = vmul.f32 %v4831_v21, %v4829_v48  ;;  %v11261_v43 = vsel %vm4279_vm7, %v12683_v7, %v12682_v23  ;;  %v4293_v44 = vsel %vm4279_vm7, %v12685_v19, %v12684_v50  ;;  %v5480_v10 = vsel %vm5478_vm5, %v5465_v29, %v5479_v5 }
 0x626   :  { %v5483_v27 = vsel %vm5481_vm8, %v5482_v51, %v5473_v22  ;;  %v4965_v30 = vadd.s32 536870912, %v4964_v55  ;;  %v4298_v61 = vshrl.u32 %v4293_v44, 16  ;;  %v4855_v1 = vadd.s32 3, %v4838_v24 }
 0x627   :  { %v5484_v17 = vsel %vm5477_vm1, %v5480_v10, %v5483_v27  ;;  %v4833_v9 = vxor.u32 2147483648, %v4832_v20  ;;  %v5548_v59 = vsel %vm11240_vm4, 1, %v12221_v6  ;;  %v4297_v0 = vand.u32 65535, %v4293_v44 }
 0x628   :  { %v5485_v16 = vsel %vm5474_vm2, nan, %v5484_v17  ;;  %v11272_v14 = vshrl.u32 %v4965_v30, 30  ;;  %v5545_v28 = vshll.u32 %v10936_v52, 16  ;;  %v4319_v37 = vand.u32 65535, %v11261_v43 }
 0x629   :  { %6045 = vmatpush.msra.mxu3 %v5485_v16  ;;  %v4834_v60 = vsel %vm4713_vm9, %v4833_v9, %v4832_v20  ;;  %v4320_v40 = vshrl.u32 %v11261_v43, 16  ;;  %v5549_v49 = vadd.s32 %v5543_v42, %v10900_v15  ;;  %v11289_v8 = vmul.u32 %v4298_v61, %v12686_v53  ;;  %v12687_v15 = vld [vmem:[#allocation28_spill] sm:$0xff] }
 0x62a   :  { %v11285_v41 = vsel %vm11246_vm14, %v12670_v46, %v4834_v60  ;;  %v4967_v2 = vshll.u32 %v11272_v14, 30  ;;  %v5550_v25 = vadd.s32 %v5548_v59, %v10952_v31  ;;  %v11294_v29 = vand.u32 3, %v4855_v1 }
 0x62b   :  { %v4839_v33 = vmul.f32 %v11285_v41, %v11285_v41  ;;  %v4960_v11 = vadd.s32 %v4955_v54, %v4936_v56  ;;  %v11300_v42 = vshrl.u32 %v12337_v35, %v12687_v15  ;;  %vm12689_vm0 = vcmp.lt.s32.totalorder %v12681_v57, 4 }
 0x62c   :  { %v11296_v47 = vsub.s32 %v4964_v55, %v4967_v2  ;;  %v11305_v18 = vsel %vm12689_vm0, %v12688_v26, 2102212464  ;;  %v11308_v3 = vmul.u32 %v4297_v0, %v12690_v62  ;;  %v11311_v51 = vmul.u32 %v4319_v37, %v12686_v53 }
 0x62d   :  { %v4840_v31 = vmul.f32 -0.001358992, %v4839_v33  ;;  %v4847_v22 = vmul.f32 -0.00019511016, %v4839_v33  ;;  %v11316_v56 = vmul.u32 %v4320_v40, %v12686_v53  ;;  %v5565_v13 = vshll.u32 %v11166_v38, 16 }
 0x62e   :  { %vm4969_vm6 = vcmp.lt.s32.totalorder %v11296_v47, 0  ;;  %v4970_v54 = vsub.s32 0, %v11296_v47  ;;  %v4303_v4 = vshll.u32 %v11289_v8, 16  ;;  %v4299_v34 = vmul.u32 %v4297_v0, %v12686_v53 }
 0x62f   :  { %v4841_v48 = vadd.f32 0.041655596, %v4840_v31  ;;  %v4848_v21 = vadd.f32 0.008332121, %v4847_v22  ;;  %v4302_v5 = vmul.u32 %v4298_v61, %v12690_v62  ;;  %vm5569_vm12 = vc.u32 %v11082_v63, %v5565_v13 }
 0x630   :  { %v4971_v24 = vsel %vm4969_vm6, %v4970_v54, %v11296_v47  ;;  %v4305_v55 = vshll.u32 %v11308_v3, 16  ;;  %v11328_v20 = vmul.u32 %v4319_v37, %v12690_v62  ;;  %vm5551_vm10 = vc.u32 %v5549_v49, %v5545_v28 }
 0x631   :  { %v4842_v23 = vmul.f32 %v4841_v48, %v4839_v33  ;;  %v4849_v7 = vmul.f32 %v4848_v21, %v4839_v33  ;;  %v4972_v50 = vclz %v4971_v24  ;;  %v5552_v19 = vsel %vm5551_vm10, 1, %v12221_v6 }
 0x632   :  { %v5570_v44 = vsel %vm5569_vm12, 1, %v12221_v6  ;;  %v5571_v10 = vadd.s32 %v5565_v13, %v11082_v63  ;;  %vm11333_vm9 = vc.u32 %v4299_v34, %v4303_v4  ;;  %v5554_v9 = vadd.s32 %v5552_v19, %v5550_v25 }
 0x633   :  { %v4843_v30 = vadd.f32 -0.4999988, %v4842_v23  ;;  %v4850_v61 = vadd.f32 -0.16666654, %v4849_v7  ;;  %v6201_v17 = vadd.s32 4294967294, %v4972_v50  ;;  %vm4858_vm15 = vcmp.eq.s32.totalorder %v11294_v29, 0 }
 0x634   :  { %vm4861_vm11 = vcmp.eq.s32.totalorder %v11294_v29, 2  ;;  %v5544_v1 = vshrl.u32 %v10911_v32, 16  ;;  %v5546_v59 = vshrl.u32 %v10936_v52, 16  ;;  %v5567_v16 = vshll.u32 %v11171_v58, 16 }
 0x635   :  { %v4309_v0 = vadd.s32 %v4303_v4, %v4299_v34  ;;  %v4844_v63 = vmul.f32 %v4843_v30, %v4839_v33  ;;  %v4851_v28 = vmul.f32 %v4850_v61, %v4839_v33  ;;  %vm4857_vm3 = vcmp.lt.s32.totalorder %v11294_v29, 2  ;;  %v12693_v33 = vld [vmem:[#allocation62_spill] sm:$0xff] }
 0x636   :  { %vm6202_vm4 = vcmp.lt.s32.totalorder %v6201_v17, 0  ;;  %v5572_v60 = vadd.s32 %v5570_v44, %v11190_v36  ;;  %vm4854_vm13 = vweird.f32 %v12670_v46  ;;  %v5555_v49 = vadd.s32 %v5554_v9, %v5544_v1 }
 0x637   :  { %v4975_v37 = vsel %vm6202_vm4, 0, %v6201_v17  ;;  %vm5573_vm14 = vc.u32 %v5571_v10, %v5567_v16  ;;  %v4308_v32 = vsel %vm11333_vm9, 1, %v12221_v6  ;;  %v4845_v52 = vadd.f32 1.0, %v4844_v63 }
 0x638   :  { %v4852_v2 = vadd.f32 1.0, %v4851_v28  ;;  %v4976_v53 = vsub.s32 32, %v4975_v37  ;;  %v5566_v25 = vshrl.u32 %v11166_v38, 16  ;;  %vm4868_vm1 = vcmp.lt.s32.totalorder %v12693_v33, 0 }
 0x639   :  { %v4977_v15 = vshll.u32 %v11296_v47, %v4975_v37  ;;  %v4980_v26 = vsub.s32 4294967266, %v4975_v37  ;;  %v5574_v36 = vsel %vm5573_vm14, 1, %v12221_v6  ;;  %v4310_v31 = vadd.s32 %v4308_v32, %v4302_v5  ;;  %v12698_v37 = vld [vmem:[#allocation21_spill] sm:$0xff] }
 0x63a   :  { %v4853_v22 = vmul.f32 %v4852_v2, %v11285_v41  ;;  %v4862_v54 = vxor.u32 2147483648, %v4845_v52  ;;  %v4978_v13 = vshrl.u32 %v4960_v11, %v4976_v53  ;;  %v5576_v4 = vadd.s32 %v5574_v36, %v5572_v60  ;;  %v12710_v5 = vld [vmem:[#allocation101_spill] sm:$0xff] }
 0x63b   :  { %v4981_v48 = vadd.s32 127, %v4980_v26  ;;  %v4990_v21 = vsub.s32 4, %v11272_v14  ;;  %v11354_v34 = vadd.s32 %v5555_v49, %v5546_v59  ;;  %vm4311_vm5 = vc.u32 %v4309_v0, %v4305_v55 }
 0x63c   :  { %v4859_v38 = vxor.u32 2147483648, %v4853_v22  ;;  %v4979_v24 = vor.u32 %v4978_v13, %v4977_v15  ;;  %v5568_v23 = vshrl.u32 %v11171_v58, 16  ;;  %v5577_v47 = vadd.s32 %v5576_v4, %v5566_v25  ;;  %v12703_v25 = vld [vmem:[#allocation100_spill] sm:$0xff] }
 0x63d   :  { %v12694_v7 = vand.u32 2147483647, %v12693_v33  ;;  %v4982_v41 = vshll.u32 %v4981_v48, 23  ;;  %v11363_v11 = vadd.s32 %v5571_v10, %v5567_v16  ;;  %v4312_v50 = vsel %vm4311_vm5, 1, %v12221_v6  ;;  %v12697_v16 = vld [vmem:[#allocation97_spill] sm:$0xff] }
 0x63e   :  { %v4325_v19 = vshll.u32 %v11316_v56, 16  ;;  %v4860_v55 = vsel %vm4858_vm15, %v4845_v52, %v4859_v38  ;;  %v4863_v58 = vsel %vm4861_vm11, %v4862_v54, %v4853_v22  ;;  %v5578_v44 = vadd.s32 %v5577_v47, %v5568_v23  ;;  %v12705_v22 = vld [vmem:[#allocation102_spill] sm:$0xff]  ;;  %v12706_v54 = vld [vmem:[#allocation104_spill] sm:$0xff]  ;;  %v12707_v48 = vld [vmem:[#allocation49_spill] sm:$0xff] }
 0x63f   :  { %vm11359_vm8 = vcmp.le.f32.partialorder %v12694_v7, 0.7853982  ;;  %v4314_v27 = vadd.s32 %v4312_v50, %v4310_v31  ;;  %v4864_v30 = vsel %vm4857_vm3, %v4860_v55, %v4863_v58  ;;  %v4983_v61 = vor.u32 4788187, %v4982_v41  ;;  %v12704_v31 = vld [vmem:[#allocation10_spill] sm:$0xff]  ;;  %v12709_v41 = vld [vmem:[#allocation99_spill] sm:$0xff] }
 0x640   :  { %vm5581_vm2 = vc.u32 %v11354_v34, %v11363_v11  ;;  %v4304_v10 = vshrl.u32 %v11289_v8, 16  ;;  %v4865_v17 = vsel %vm4854_vm13, nan, %v4864_v30  ;;  %v4986_v9 = vcvt.s32.f32 %v4979_v24  ;;  %v12712_v55 = vld [vmem:[#allocation103_spill] sm:$0xff] }
 0x641   :  { %v5582_v1 = vadd.s32 1, %v5578_v44  ;;  %v4324_v59 = vmul.u32 %v4320_v40, %v12690_v62  ;;  %vm5053_vm0 = vcmp.lt.s32.totalorder %v12697_v16, 1  ;;  %6020 = vmatpush.msra.mxu2 %v4865_v17  ;;  %v4984_v29 = vand.u32 2147483647, %v4983_v61  ;;  %v12713_v17 = vld [vmem:[#allocation8_spill] sm:$0xff] }
 0x642   :  { %v4327_v0 = vshll.u32 %v11328_v20, 16  ;;  %vm4329_vm6 = vc.u32 %v11311_v51, %v4325_v19  ;;  %v4331_v63 = vadd.s32 %v4325_v19, %v11311_v51  ;;  %v4991_v46 = vsel %vm4868_vm1, %v4990_v21, %v11272_v14  ;;  %v12700_v14 = vld [vmem:[#allocation5_spill] sm:$0xff]  ;;  %v12708_v21 = vld [vmem:[#allocation36_spill] sm:$0xff]  ;;  %v12711_v19 = vld [vmem:[#allocation106_spill] sm:$0xff] }
 0x643   :  { %v5583_v8 = vsel %vm5581_vm2, %v5582_v1, %v5578_v44  ;;  %v4315_v28 = vadd.s32 %v4314_v27, %v4304_v10  ;;  %v4330_v60 = vsel %vm4329_vm6, 1, %v12221_v6  ;;  %vm5056_vm12 = vcmp.lt.s32.totalorder %v12697_v16, 4 }
 0x644   :  { %v4987_v43 = vmul.f32 %v4986_v9, %v4984_v29  ;;  %v5584_v40 = vadd.s32 %v5583_v8, %v5579_v45  ;;  %v4332_v62 = vadd.s32 %v4330_v60, %v4324_v59  ;;  %vm4333_vm10 = vc.u32 %v4331_v63, %v4327_v0  ;;  %v12702_v45 = vld [vmem:[#allocation98_spill] sm:$0xff]  ;;  %v12714_v59 = vld [vmem:[#allocation40_spill] sm:$0xff] }
 0x645   :  { %vm12699_vm9 = vcmp.lt.s32.totalorder %v12681_v57, 1  ;;  %vm12701_vm15 = vcmp.lt.s32.totalorder %v12681_v57, 3  ;;  %v4306_v32 = vshrl.u32 %v11308_v3, 16  ;;  %v4334_v52 = vsel %vm4333_vm10, 1, %v12221_v6 }
 0x646   :  { %v4282_v51 = vsel %vm12699_vm9, %v11300_v42, %v12698_v37  ;;  %v4284_v49 = vsel %vm12701_vm15, %v12700_v14, %v11305_v18  ;;  %v4988_v2 = vxor.u32 2147483648, %v4987_v43  ;;  %v5585_v53 = vadd.s32 536870912, %v5584_v40 }
 0x647   :  { %v4326_v39 = vshrl.u32 %v11316_v56, 16  ;;  %v4336_v12 = vadd.s32 %v4334_v52, %v4332_v62  ;;  %v11406_v15 = vor.u32 %v12703_v25, %v12702_v45  ;;  %v4993_v42 = vsel %vm11359_vm8, 0, %v4991_v46  ;;  %v12716_v45 = vld [vmem:[#allocation17_spill] sm:$0xff] }
 0x648   :  { %v11410_v26 = vadd.s32 %v4315_v28, %v4306_v32  ;;  %v4328_v18 = vshrl.u32 %v11328_v20, 16  ;;  %vm5055_vm11 = vcmp.lt.s32.totalorder %v12697_v16, 3  ;;  %v4989_v3 = vsel %vm4868_vm1, %v4988_v2, %v4987_v43 }
 0x649   :  { %v11416_v36 = vshrl.u32 %v5585_v53, 30  ;;  %v4337_v56 = vadd.s32 %v4336_v12, %v4326_v39  ;;  %vm4434_vm3 = vcmp.lt.s32.totalorder %v12704_v31, 2  ;;  %v5052_v13 = vor.u32 %v12706_v54, %v12705_v22  ;;  %v12715_v12 = vld [vmem:[#allocation42_spill] sm:$0xff]  ;;  %v12719_v54 = vld [vmem:[#allocation105_spill] sm:$0xff] }
 0x64a   :  { %v11424_v4 = vsel %vm11359_vm8, %v12693_v33, %v4989_v3  ;;  %v4285_v20 = vsel %vm4279_vm7, %v4282_v51, %v4284_v49  ;;  %v4448_v38 = vsel %vm4434_vm3, %v12708_v21, %v12707_v48  ;;  %v11435_v47 = vadd.s32 %v4331_v63, %v4327_v0  ;;  %v12717_v3 = vld [vmem:[#allocation55_spill] sm:$0xff] }
 0x64b   :  { %v4994_v24 = vmul.f32 %v11424_v4, %v11424_v4  ;;  %v5587_v23 = vshll.u32 %v11416_v36, 30  ;;  %v4338_v7 = vadd.s32 %v4337_v56, %v4328_v18  ;;  %v5049_v50 = vor.u32 %v12710_v5, %v12709_v41 }
 0x64c   :  { %v11443_v57 = vsel %vm5053_vm0, %v12712_v55, %v12711_v19  ;;  %v5010_v58 = vadd.s32 3, %v4993_v42  ;;  %v4453_v44 = vshrl.u32 %v4448_v38, 16  ;;  %vm4341_vm7 = vc.u32 %v11410_v26, %v11435_v47 }
 0x64d   :  { %v4995_v27 = vmul.f32 -0.001358992, %v4994_v24  ;;  %v5002_v30 = vmul.f32 -0.00019511016, %v4994_v24  ;;  %v11445_v61 = vsub.s32 %v5584_v40, %v5587_v23  ;;  %v5066_v10 = vsel %vm5056_vm12, %v5052_v13, 1326507024 }
 0x64e   :  { %v4339_v9 = vmul.u32 %v12713_v17, %v4285_v20  ;;  %v4342_v1 = vadd.s32 1, %v4338_v7  ;;  %v11453_v29 = vmul.u32 %v4453_v44, %v12714_v59  ;;  %v11459_v8 = vsel %vm5056_vm12, %v5049_v50, 920167782 }
 0x64f   :  { %v4996_v0 = vadd.f32 0.041655596, %v4995_v27  ;;  %v5003_v63 = vadd.f32 0.008332121, %v5002_v30  ;;  %vm5589_vm4 = vcmp.lt.s32.totalorder %v11445_v61, 0  ;;  %v5590_v46 = vsub.s32 0, %v11445_v61 }
 0x650   :  { %v11461_v28 = vand.u32 3, %v5010_v58  ;;  %v4343_v60 = vsel %vm4341_vm7, %v4342_v1, %v4338_v7  ;;  %v4452_v43 = vand.u32 65535, %v4448_v38  ;;  %v11468_v14 = vsel %vm5053_vm0, %v12711_v19, %v11406_v15 }
 0x651   :  { %v4997_v40 = vmul.f32 %v4996_v0, %v4994_v24  ;;  %v5004_v62 = vmul.f32 %v5003_v63, %v4994_v24  ;;  %v5591_v37 = vsel %vm5589_vm4, %v5590_v46, %v11445_v61  ;;  %v4344_v51 = vadd.s32 %v4343_v60, %v4339_v9 }
 0x652   :  { %v11472_v49 = vsel %vm5055_vm11, %v5049_v50, %v5066_v10  ;;  %v5592_v32 = vclz %v5591_v37  ;;  %v4458_v52 = vshll.u32 %v11453_v29, 16  ;;  %v11479_v25 = vsel %vm4434_vm3, %v12716_v45, %v12715_v12 }
 0x653   :  { %v4998_v2 = vadd.f32 -0.4999988, %v4997_v40  ;;  %v5005_v53 = vadd.f32 -0.16666654, %v5004_v62  ;;  %v4345_v39 = vadd.s32 536870912, %v4344_v51  ;;  %vm5013_vm13 = vcmp.eq.s32.totalorder %v11461_v28, 0 }
 0x654   :  { %vm5016_vm14 = vcmp.eq.s32.totalorder %v11461_v28, 2  ;;  %v5580_v42 = vadd.s32 %v11363_v11, %v11354_v34  ;;  %v6213_v18 = vadd.s32 4294967294, %v5592_v32  ;;  %vm12718_vm1 = vcmp.lt.s32.totalorder %v12704_v31, 4  ;;  %v12720_v34 = vld [vmem:[#allocation27_spill] sm:$0xff] }
 0x655   :  { %v4438_v56 = vsel %vm12718_vm1, %v12717_v3, 2102212464  ;;  %v4454_v22 = vmul.u32 %v4452_v43, %v12714_v59  ;;  %vm5488_vm5 = vcmp.lt.s32.totalorder %v12719_v54, 0  ;;  %v4999_v13 = vmul.f32 %v4998_v2, %v4994_v24 }
 0x656   :  { %v5006_v20 = vmul.f32 %v5005_v53, %v4994_v24  ;;  %vm5012_vm8 = vcmp.lt.s32.totalorder %v11461_v28, 2  ;;  %v5610_v48 = vsub.s32 4, %v11416_v36  ;;  %v11492_v21 = vshrl.u32 %v4345_v39, 30 }
 0x657   :  { %vm5009_vm2 = vweird.f32 %v12693_v33  ;;  %vm6214_vm6 = vcmp.lt.s32.totalorder %v6213_v18, 0  ;;  %v11496_v11 = vmul.u32 %v4452_v43, %v12720_v34  ;;  %vm4462_vm10 = vc.u32 %v4454_v22, %v4458_v52  ;;  %v12726_v33 = vld [vmem:[#allocation32_spill] sm:$0xff] }
 0x658   :  { %v4474_v38 = vand.u32 65535, %v11479_v25  ;;  %v5000_v23 = vadd.f32 1.0, %v4999_v13  ;;  %v5007_v7 = vadd.f32 1.0, %v5006_v20  ;;  %v5595_v41 = vsel %vm6214_vm6, 0, %v6213_v18  ;;  %v12724_v18 = vld [vmem:[#allocation13_spill] sm:$0xff] }
 0x659   :  { %v4347_v24 = vshll.u32 %v11492_v21, 30  ;;  %v12721_v5 = vand.u32 2147483647, %v12719_v54  ;;  %v5596_v58 = vsub.s32 32, %v5595_v41  ;;  %v5600_v27 = vsub.s32 4294967266, %v5595_v41 }
 0x65a   :  { %v4457_v30 = vmul.u32 %v4453_v44, %v12720_v34  ;;  %v4464_v10 = vadd.s32 %v4458_v52, %v4454_v22  ;;  %v5008_v17 = vmul.f32 %v5007_v7, %v11424_v4  ;;  %v5017_v9 = vxor.u32 2147483648, %v5000_v23  ;;  %v12725_v7 = vld [vmem:[#allocation63_spill] sm:$0xff] }
 0x65b   :  { %vm11502_vm9 = vcmp.le.f32.partialorder %v12721_v5, 0.7853982  ;;  %v11508_v1 = vsub.s32 %v4344_v51, %v4347_v24  ;;  %v4463_v0 = vsel %vm4462_vm10, 1, %v12221_v6  ;;  %v5597_v63 = vshll.u32 %v11445_v61, %v5595_v41 }
 0x65c   :  { %v5598_v46 = vshrl.u32 %v5580_v42, %v5596_v58  ;;  %v5601_v60 = vadd.s32 127, %v5600_v27  ;;  %v4460_v43 = vshll.u32 %v11496_v11, 16  ;;  %v5014_v40 = vxor.u32 2147483648, %v5008_v17 }
 0x65d   :  { %vm4349_vm15 = vcmp.lt.s32.totalorder %v11508_v1, 0  ;;  %v4350_v62 = vsub.s32 0, %v11508_v1  ;;  %v4475_v44 = vshrl.u32 %v11479_v25, 16  ;;  %v4465_v32 = vadd.s32 %v4463_v0, %v4457_v30 }
 0x65e   :  { %v5599_v37 = vor.u32 %v5598_v46, %v5597_v63  ;;  %v5602_v4 = vshll.u32 %v5601_v60, 23  ;;  %vm4466_vm7 = vc.u32 %v4464_v10, %v4460_v43  ;;  %v5015_v51 = vsel %vm5013_vm13, %v5000_v23, %v5014_v40 }
 0x65f   :  { %v5018_v61 = vsel %vm5016_vm14, %v5017_v9, %v5008_v17  ;;  %v4351_v52 = vsel %vm4349_vm15, %v4350_v62, %v11508_v1  ;;  %v4467_v2 = vsel %vm4466_vm7, 1, %v12221_v6  ;;  %v5611_v12 = vsel %vm5488_vm5, %v5610_v48, %v11416_v36 }
 0x660   :  { %v5019_v53 = vsel %vm5012_vm8, %v5015_v51, %v5018_v61  ;;  %v5603_v39 = vor.u32 4788187, %v5602_v4  ;;  %v4352_v45 = vclz %v4351_v52  ;;  %v4340_v42 = vadd.s32 %v11435_v47, %v11410_v26  ;;  %v12728_v26 = vld [vmem:[#allocation14_spill] sm:$0xff] }
 0x661   :  { %v5020_v25 = vsel %vm5009_vm2, nan, %v5019_v53  ;;  %v4417_v3 = vshrl.u32 %v12337_v35, %v12724_v18  ;;  %v4477_v22 = vmul.u32 %v4475_v44, %v12714_v59  ;;  %v5606_v13 = vcvt.s32.f32 %v5599_v37 }
 0x662   :  { %6046 = vmatpush.msra.mxu3 %v5020_v25  ;;  %v5604_v28 = vand.u32 2147483647, %v5603_v39  ;;  %v6189_v20 = vadd.s32 4294967294, %v4352_v45  ;;  %v4469_v23 = vadd.s32 %v4467_v2, %v4465_v32  ;;  %vm4248_vm4 = vcmp.lt.s32.totalorder %v12725_v7, 0 }
 0x663   :  { %v5613_v36 = vsel %vm11502_vm9, 0, %v5611_v12  ;;  %vm12727_vm13 = vcmp.lt.s32.totalorder %v12704_v31, 1  ;;  %vm12729_vm14 = vcmp.lt.s32.totalorder %v12704_v31, 3  ;;  %v4478_v41 = vmul.u32 %v4474_v38, %v12720_v34 }
 0x664   :  { %v4437_v48 = vsel %vm12727_vm13, %v4417_v3, %v12726_v33  ;;  %v4439_v47 = vsel %vm12729_vm14, %v12728_v26, %v4438_v56  ;;  %v5607_v24 = vmul.f32 %v5606_v13, %v5604_v28  ;;  %vm6190_vm1 = vcmp.lt.s32.totalorder %v6189_v20, 0 }
 0x665   :  { %v4459_v5 = vshrl.u32 %v11453_v29, 16  ;;  %v4480_v58 = vshll.u32 %v4477_v22, 16  ;;  %v4355_v27 = vsel %vm6190_vm1, 0, %v6189_v20  ;;  %v4370_v30 = vsub.s32 4, %v11492_v21 }
 0x666   :  { %v4476_v10 = vmul.u32 %v4474_v38, %v12714_v59  ;;  %v4479_v17 = vmul.u32 %v4475_v44, %v12720_v34  ;;  %v5608_v9 = vxor.u32 2147483648, %v5607_v24  ;;  %v12730_v0 = vand.u32 2147483647, %v12725_v7 }
 0x667   :  { %v4356_v56 = vsub.s32 32, %v4355_v27  ;;  %v4360_v46 = vsub.s32 4294967266, %v4355_v27  ;;  %v4470_v60 = vadd.s32 %v4469_v23, %v4459_v5  ;;  %v4357_v29 = vshll.u32 %v11508_v1, %v4355_v27 }
 0x668   :  { %vm11550_vm8 = vcmp.le.f32.partialorder %v12730_v0, 0.7853982  ;;  %v4482_v43 = vshll.u32 %v4478_v41, 16  ;;  %vm4484_vm2 = vc.u32 %v4476_v10, %v4480_v58  ;;  %v4486_v40 = vadd.s32 %v4480_v58, %v4476_v10 }
 0x669   :  { %v5609_v59 = vsel %vm5488_vm5, %v5608_v9, %v5607_v24  ;;  %v4358_v38 = vshrl.u32 %v4340_v42, %v4356_v56  ;;  %v4361_v34 = vadd.s32 127, %v4360_v46  ;;  %v4485_v62 = vsel %vm4484_vm2, 1, %v12221_v6 }
 0x66a   :  { %v5612_v44 = vsel %vm11502_vm9, %v12719_v54, %v5609_v59  ;;  %v4461_v37 = vshrl.u32 %v11496_v11, 16  ;;  %v4487_v4 = vadd.s32 %v4485_v62, %v4479_v17  ;;  %vm4488_vm6 = vc.u32 %v4486_v40, %v4482_v43 }
 0x66b   :  { %v5614_v32 = vmul.f32 %v5612_v44, %v5612_v44  ;;  %v4359_v1 = vor.u32 %v4358_v38, %v4357_v29  ;;  %v4362_v51 = vshll.u32 %v4361_v34, 23  ;;  %v4489_v61 = vsel %vm4488_vm6, 1, %v12221_v6 }
 0x66c   :  { %v5630_v52 = vadd.s32 3, %v5613_v36  ;;  %v11563_v2 = vadd.s32 %v4470_v60, %v4461_v37  ;;  %v4481_v53 = vshrl.u32 %v4477_v22, 16  ;;  %v4491_v39 = vadd.s32 %v4489_v61, %v4487_v4 }
 0x66d   :  { %v5615_v12 = vmul.f32 -0.001358992, %v5614_v32  ;;  %v5622_v45 = vmul.f32 -0.00019511016, %v5614_v32  ;;  %v4363_v25 = vor.u32 4788187, %v4362_v51  ;;  %v4371_v50 = vsel %vm4248_vm4, %v4370_v30, %v11492_v21 }
 0x66e   :  { %v4440_v11 = vsel %vm4434_vm3, %v4437_v48, %v4439_v47  ;;  %v4483_v42 = vshrl.u32 %v4478_v41, 16  ;;  %v11570_v18 = vadd.s32 %v4486_v40, %v4482_v43  ;;  %v4492_v3 = vadd.s32 %v4491_v39, %v4481_v53  ;;  %v12733_v47 = vld [vmem:[#allocation68_spill] sm:$0xff]  ;;  %v12735_v43 = vld [vmem:[#allocation94_spill] sm:$0xff] }
 0x66f   :  { %v5616_v28 = vadd.f32 0.041655596, %v5615_v12  ;;  %v5623_v13 = vadd.f32 0.008332121, %v5622_v45  ;;  %v4364_v20 = vand.u32 2147483647, %v4363_v25  ;;  %v4366_v23 = vcvt.s32.f32 %v4359_v1 }
 0x670   :  { %v5631_v22 = vand.u32 3, %v5630_v52  ;;  %v4373_v36 = vsel %vm11550_vm8, 0, %v4371_v50  ;;  %v4493_v33 = vadd.s32 %v4492_v3, %v4483_v42  ;;  %vm4496_vm5 = vc.u32 %v11563_v2, %v11570_v18 }
 0x671   :  { %v5617_v21 = vmul.f32 %v5616_v28, %v5614_v32  ;;  %v5624_v26 = vmul.f32 %v5623_v13, %v5614_v32  ;;  %v4367_v31 = vmul.f32 %v4366_v23, %v4364_v20  ;;  %vm5054_vm3 = vcmp.lt.s32.totalorder %v12697_v16, 2 }
 0x672   :  { %v5063_v48 = vsel %vm5055_vm11, %v11406_v15, %v11459_v8  ;;  %v4494_v41 = vmul.u32 %v12733_v47, %v4440_v11  ;;  %v4497_v24 = vadd.s32 1, %v4493_v33  ;;  %v5068_v5 = vsel %vm5054_vm3, %v11468_v14, %v11472_v49  ;;  %v12734_v49 = vld [vmem:[#allocation92_spill] sm:$0xff] }
 0x673   :  { %v5618_v58 = vadd.f32 -0.4999988, %v5617_v21  ;;  %v5625_v27 = vadd.f32 -0.16666654, %v5624_v26  ;;  %v4368_v30 = vxor.u32 2147483648, %v4367_v31  ;;  %v5072_v10 = vand.u32 65535, %v5068_v5 }
 0x674   :  { %vm5633_vm10 = vcmp.eq.s32.totalorder %v5631_v22, 0  ;;  %v4390_v17 = vadd.s32 3, %v4373_v36  ;;  %v4498_v9 = vsel %vm4496_vm5, %v4497_v24, %v4493_v33  ;;  %v5073_v0 = vshrl.u32 %v5068_v5, 16 }
 0x675   :  { %v5619_v56 = vmul.f32 %v5618_v58, %v5614_v32  ;;  %v5626_v46 = vmul.f32 %v5625_v27, %v5614_v32  ;;  %vm5632_vm9 = vcmp.lt.s32.totalorder %v5631_v22, 2  ;;  %v4369_v8 = vsel %vm4248_vm4, %v4368_v30, %v4367_v31 }
 0x676   :  { %v4499_v60 = vadd.s32 %v4498_v9, %v4494_v41  ;;  %vm5636_vm15 = vcmp.eq.s32.totalorder %v5631_v22, 2  ;;  %v11591_v14 = vsel %vm11550_vm8, %v12725_v7, %v4369_v8  ;;  %v11594_v29 = vmul.u32 %v5073_v0, %v12734_v49 }
 0x677   :  { %v11597_v40 = vmul.u32 %v5072_v10, %v12735_v43  ;;  %v5620_v59 = vadd.f32 1.0, %v5619_v56  ;;  %v5627_v38 = vadd.f32 1.0, %v5626_v46  ;;  %v4374_v34 = vmul.f32 %v11591_v14, %v11591_v14 }
 0x678   :  { %v4500_v62 = vadd.s32 536870912, %v4499_v60  ;;  %v11601_v37 = vand.u32 3, %v4390_v17  ;;  %v11606_v63 = vsel %vm5054_vm3, %v11443_v57, %v5063_v48  ;;  %v5074_v4 = vmul.u32 %v5072_v10, %v12734_v49  ;;  %v12737_v10 = vld [vmem:[#allocation95_spill] sm:$0xff] }
 0x679   :  { %v5078_v32 = vshll.u32 %v11594_v29, 16  ;;  %v5628_v1 = vmul.f32 %v5627_v38, %v5612_v44  ;;  %v5637_v51 = vxor.u32 2147483648, %v5620_v59  ;;  %v4375_v61 = vmul.f32 -0.001358992, %v4374_v34  ;;  %v12736_v44 = vld [vmem:[#allocation71_spill] sm:$0xff] }
 0x67a   :  { %v4382_v52 = vmul.f32 -0.00019511016, %v4374_v34  ;;  %v4501_v53 = vshrl.u32 %v4500_v62, 30  ;;  %v5080_v39 = vshll.u32 %v11597_v40, 16  ;;  %v5095_v11 = vshrl.u32 %v11606_v63, 16 }
 0x67b   :  { %vm5082_vm7 = vc.u32 %v5074_v4, %v5078_v32  ;;  %v5084_v12 = vadd.s32 %v5078_v32, %v5074_v4  ;;  %v5634_v45 = vxor.u32 2147483648, %v5628_v1  ;;  %v4376_v25 = vadd.f32 0.041655596, %v4375_v61 }
 0x67c   :  { %v4383_v50 = vadd.f32 0.008332121, %v4382_v52  ;;  %v4502_v57 = vshll.u32 %v4501_v53, 30  ;;  %v5077_v42 = vmul.u32 %v5073_v0, %v12735_v43  ;;  %v5083_v3 = vsel %vm5082_vm7, 1, %v12221_v6 }
 0x67d   :  { %vm5086_vm4 = vc.u32 %v5084_v12, %v5080_v39  ;;  %vm4403_vm13 = vcmp.lt.s32.totalorder %v12736_v44, 0  ;;  %v5635_v28 = vsel %vm5633_vm10, %v5620_v59, %v5634_v45  ;;  %v5638_v13 = vsel %vm5636_vm15, %v5637_v51, %v5628_v1 }
 0x67e   :  { %v4377_v20 = vmul.f32 %v4376_v25, %v4374_v34  ;;  %v4384_v23 = vmul.f32 %v4383_v50, %v4374_v34  ;;  %vm5629_vm14 = vweird.f32 %v12719_v54  ;;  %v5639_v36 = vsel %vm5632_vm9, %v5635_v28, %v5638_v13 }
 0x67f   :  { %v11619_v33 = vsub.s32 %v4499_v60, %v4502_v57  ;;  %v5085_v21 = vadd.s32 %v5083_v3, %v5077_v42  ;;  %v5640_v26 = vsel %vm5629_vm14, nan, %v5639_v36  ;;  %v5087_v47 = vsel %vm5086_vm4, 1, %v12221_v6 }
 0x680   :  { %v4378_v31 = vadd.f32 -0.4999988, %v4377_v20  ;;  %v4385_v48 = vadd.f32 -0.16666654, %v4384_v23  ;;  %5992 = vmatpush.msra.mxu1 %v5640_v26  ;;  %vm4393_vm1 = vcmp.eq.s32.totalorder %v11601_v37, 0  ;;  %vm4396_vm8 = vcmp.eq.s32.totalorder %v11601_v37, 2 }
 0x681   :  { %vm4504_vm2 = vcmp.lt.s32.totalorder %v11619_v33, 0  ;;  %v4505_v41 = vsub.s32 0, %v11619_v33  ;;  %v5094_v54 = vand.u32 65535, %v11606_v63  ;;  %vm4392_vm6 = vcmp.lt.s32.totalorder %v11601_v37, 2  ;;  %v12741_v20 = vld [vmem:[#allocation4_spill] sm:$0xff] }
 0x682   :  { %v4379_v22 = vmul.f32 %v4378_v31, %v4374_v34  ;;  %v4386_v24 = vmul.f32 %v4385_v48, %v4374_v34  ;;  %v4495_v5 = vadd.s32 %v11570_v18, %v11563_v2  ;;  %v5097_v58 = vmul.u32 %v5095_v11, %v12734_v49  ;;  %v12744_v48 = vld [vmem:[#allocation84_spill] sm:$0xff] }
 0x683   :  { %vm4389_vm5 = vweird.f32 %v12725_v7  ;;  %v4506_v27 = vsel %vm4504_vm2, %v4505_v41, %v11619_v33  ;;  %v4525_v30 = vsub.s32 4, %v4501_v53  ;;  %v5037_v17 = vshrl.u32 %v12337_v35, %v12737_v10 }
 0x684   :  { %v5089_v9 = vadd.s32 %v5087_v47, %v5085_v21  ;;  %v4380_v0 = vadd.f32 1.0, %v4379_v22  ;;  %v4387_v56 = vadd.f32 1.0, %v4386_v24  ;;  %v12738_v46 = vand.u32 2147483647, %v12736_v44  ;;  %v12743_v21 = vld [vmem:[#allocation80_spill] sm:$0xff]  ;;  %v12745_v47 = vld [vmem:[#allocation81_spill] sm:$0xff] }
 0x685   :  { %v4507_v2 = vclz %v4506_v27  ;;  %v5058_v18 = vsel %vm5056_vm12, %v11406_v15, 2102212464  ;;  %v5057_v60 = vsel %vm5053_vm0, %v5037_v17, %v12712_v55  ;;  %v5079_v59 = vshrl.u32 %v11594_v29, 16 }
 0x686   :  { %vm11637_vm10 = vcmp.le.f32.partialorder %v12738_v46, 0.7853982  ;;  %v5096_v38 = vmul.u32 %v5094_v54, %v12734_v49  ;;  %v5098_v34 = vmul.u32 %v5094_v54, %v12735_v43  ;;  %v4388_v62 = vmul.f32 %v4387_v56, %v11591_v14  ;;  %v12746_v56 = vld [vmem:[#allocation20_spill] sm:$0xff] }
 0x687   :  { %v4397_v63 = vxor.u32 2147483648, %v4380_v0  ;;  %v6192_v4 = vadd.s32 4294967294, %v4507_v2  ;;  %v5100_v32 = vshll.u32 %v5097_v58, 16  ;;  %v4526_v1 = vsel %vm4403_vm13, %v4525_v30, %v4501_v53  ;;  %v12747_v2 = vld [vmem:[#allocation66_spill] sm:$0xff] }
 0x688   :  { %v5059_v15 = vsel %vm5055_vm11, %v12711_v19, %v5058_v18  ;;  %v5081_v55 = vshrl.u32 %v11597_v40, 16  ;;  %v5090_v51 = vadd.s32 %v5089_v9, %v5079_v59  ;;  %v4394_v29 = vxor.u32 2147483648, %v4388_v62  ;;  %v12748_v59 = vld [vmem:[#allocation37_spill] sm:$0xff] }
 0x689   :  { %vm6193_vm0 = vcmp.lt.s32.totalorder %v6192_v4, 0  ;;  %v5099_v49 = vmul.u32 %v5095_v11, %v12735_v43  ;;  %vm5104_vm12 = vc.u32 %v5096_v38, %v5100_v32  ;;  %v5102_v14 = vshll.u32 %v5098_v34, 16 }
 0x68a   :  { %v4510_v61 = vsel %vm6193_vm0, 0, %v6192_v4  ;;  %v5105_v52 = vsel %vm5104_vm12, 1, %v12221_v6  ;;  %v5106_v39 = vadd.s32 %v5100_v32, %v5096_v38  ;;  %v4395_v53 = vsel %vm4393_vm1, %v4380_v0, %v4394_v29 }
 0x68b   :  { %v4398_v12 = vsel %vm4396_vm8, %v4397_v63, %v4388_v62  ;;  %v4511_v19 = vsub.s32 32, %v4510_v61  ;;  %v4515_v45 = vsub.s32 4294967266, %v4510_v61  ;;  %v4512_v25 = vshll.u32 %v11619_v33, %v4510_v61  ;;  %v12742_v33 = vld [vmem:[#allocation83_spill] sm:$0xff]  ;;  %v12749_v62 = vld [vmem:[#allocation88_spill] sm:$0xff] }
 0x68c   :  { %v4399_v40 = vsel %vm4392_vm6, %v4395_v53, %v4398_v12  ;;  %v5107_v43 = vadd.s32 %v5105_v52, %v5099_v49  ;;  %vm5108_vm11 = vc.u32 %v5106_v39, %v5102_v14  ;;  %v4528_v3 = vsel %vm11637_vm10, 0, %v4526_v1 }
 0x68d   :  { %v4400_v50 = vsel %vm4389_vm5, nan, %v4399_v40  ;;  %v4513_v11 = vshrl.u32 %v4495_v5, %v4511_v19  ;;  %v4516_v57 = vadd.s32 127, %v4515_v45  ;;  %v5109_v42 = vsel %vm5108_vm11, 1, %v12221_v6 }
 0x68e   :  { %6021 = vmatpush.msra.mxu2 %v4400_v50  ;;  %v5101_v28 = vshrl.u32 %v5097_v58, 16  ;;  %v5111_v13 = vadd.s32 %v5109_v42, %v5107_v43  ;;  %vm4589_vm9 = vcmp.lt.s32.totalorder %v12741_v20, 2  ;;  %v11672_v36 = vadd.s32 %v5090_v51, %v5081_v55  ;;  %v12750_v50 = vld [vmem:[#allocation45_spill] sm:$0xff] }
 0x68f   :  { %v4514_v37 = vor.u32 %v4513_v11, %v4512_v25  ;;  %v4517_v23 = vshll.u32 %v4516_v57, 23  ;;  %v4599_v7 = vsel %vm4589_vm9, %v12743_v21, %v12742_v33  ;;  %v5103_v26 = vshrl.u32 %v5098_v34, 16  ;;  %v12751_v11 = vld [vmem:[#allocation67_spill] sm:$0xff]  ;;  %v12754_v33 = vld [vmem:[#allocation50_spill] sm:$0xff] }
 0x690   :  { %v5112_v31 = vadd.s32 %v5111_v13, %v5101_v28  ;;  %v4603_v41 = vsel %vm4589_vm9, %v12745_v47, %v12744_v48  ;;  %v4629_v54 = vand.u32 65535, %v4599_v7  ;;  %v5060_v24 = vsel %vm5054_vm3, %v5057_v60, %v5059_v15  ;;  %v12755_v21 = vld [vmem:[#allocation51_spill] sm:$0xff] }
 0x691   :  { %v4518_v22 = vor.u32 4788187, %v4517_v23  ;;  %v11684_v5 = vadd.s32 %v5106_v39, %v5102_v14  ;;  %v4607_v58 = vand.u32 65535, %v4603_v41  ;;  %v4545_v27 = vadd.s32 3, %v4528_v3 }
 0x692   :  { %v5113_v30 = vadd.s32 %v5112_v31, %v5103_v26  ;;  %v4608_v10 = vshrl.u32 %v4603_v41, 16  ;;  %v4630_v17 = vshrl.u32 %v4599_v7, 16  ;;  %v4521_v0 = vcvt.s32.f32 %v4514_v37  ;;  %v12756_v41 = vld [vmem:[#allocation31_spill] sm:$0xff] }
 0x693   :  { %v4519_v9 = vand.u32 2147483647, %v4518_v22  ;;  %vm5116_vm15 = vc.u32 %v11672_v36, %v11684_v5  ;;  %v4611_v46 = vmul.u32 %v4607_v58, %v12746_v56  ;;  %vm4123_vm7 = vcmp.lt.s32.totalorder %v12747_v2, 1 }
 0x694   :  { %v5117_v18 = vadd.s32 1, %v5113_v30  ;;  %v4610_v16 = vmul.u32 %v4608_v10, %v12748_v59  ;;  %v4632_v60 = vmul.u32 %v4630_v17, %v12748_v59  ;;  %v11693_v38 = vmul.u32 %v4629_v54, %v12746_v56 }
 0x695   :  { %v4522_v34 = vmul.f32 %v4521_v0, %v4519_v9  ;;  %v5114_v63 = vmul.u32 %v12749_v62, %v5060_v24  ;;  %v4609_v4 = vmul.u32 %v4607_v58, %v12748_v59  ;;  %v4631_v32 = vmul.u32 %v4629_v54, %v12748_v59  ;;  %v12759_v0 = vld [vmem:[#allocation75_spill] sm:$0xff] }
 0x696   :  { %v5118_v1 = vsel %vm5116_vm15, %v5117_v18, %v5113_v30  ;;  %v4612_v15 = vmul.u32 %v4608_v10, %v12746_v56  ;;  %v4613_v55 = vshll.u32 %v4610_v16, 16  ;;  %v4635_v51 = vshll.u32 %v4632_v60, 16 }
 0x697   :  { %v4523_v29 = vxor.u32 2147483648, %v4522_v34  ;;  %v5119_v49 = vadd.s32 %v5118_v1, %v5114_v63  ;;  %v4615_v61 = vshll.u32 %v4611_v46, 16  ;;  %v4634_v14 = vmul.u32 %v4630_v17, %v12746_v56  ;;  %v12757_v17 = vld [vmem:[#allocation79_spill] sm:$0xff]  ;;  %v12761_v63 = vld [vmem:[#allocation76_spill] sm:$0xff] }
 0x698   :  { %vm4617_vm3 = vc.u32 %v4609_v4, %v4613_v55  ;;  %v4619_v52 = vadd.s32 %v4613_v55, %v4609_v4  ;;  %v4637_v39 = vshll.u32 %v11693_v38, 16  ;;  %vm4639_vm4 = vc.u32 %v4631_v32, %v4635_v51  ;;  %v12763_v55 = vld [vmem:[#allocation3_spill] sm:$0xff] }
 0x699   :  { %v4524_v53 = vsel %vm4403_vm13, %v4523_v29, %v4522_v34  ;;  %v5120_v12 = vadd.s32 536870912, %v5119_v49  ;;  %v4618_v19 = vsel %vm4617_vm3, 1, %v12221_v6  ;;  %v4640_v45 = vsel %vm4639_vm4, 1, %v12221_v6 }
 0x69a   :  { %v11708_v40 = vsel %vm11637_vm10, %v12736_v44, %v4524_v53  ;;  %v4620_v25 = vadd.s32 %v4618_v19, %v4612_v15  ;;  %vm4621_vm14 = vc.u32 %v4619_v52, %v4615_v61  ;;  %v4641_v43 = vadd.s32 %v4635_v51, %v4631_v32 }
 0x69b   :  { %vm4125_vm1 = vcmp.lt.s32.totalorder %v12747_v2, 3  ;;  %v12752_v57 = vor.u32 %v12750_v50, %v12751_v11  ;;  %vm12753_vm13 = vcmp.lt.s32.totalorder %v12747_v2, 4  ;;  %v4529_v3 = vmul.f32 %v11708_v40, %v11708_v40 }
 0x69c   :  { %v11718_v28 = vshrl.u32 %v5120_v12, 30  ;;  %v4622_v8 = vsel %vm4621_vm14, 1, %v12221_v6  ;;  %v4614_v13 = vshrl.u32 %v4610_v16, 16  ;;  %v4642_v23 = vadd.s32 %v4640_v45, %v4634_v14  ;;  %v12765_v12 = vld [vmem:[#allocation64_spill] sm:$0xff] }
 0x69d   :  { %v4136_v42 = vsel %vm12753_vm13, %v12752_v57, 1326507024  ;;  %v4624_v37 = vadd.s32 %v4622_v8, %v4620_v25  ;;  %vm4643_vm8 = vc.u32 %v4641_v43, %v4637_v39  ;;  %v4131_v7 = vsel %vm4123_vm7, %v12755_v21, %v12754_v33 }
 0x69e   :  { %v4530_v26 = vmul.f32 -0.001358992, %v4529_v3  ;;  %v4537_v31 = vmul.f32 -0.00019511016, %v4529_v3  ;;  %v5122_v48 = vshll.u32 %v11718_v28, 30  ;;  %v11726_v47 = vand.u32 3, %v4545_v27 }
 0x69f   :  { %v4572_v54 = vshrl.u32 %v12337_v35, %v12756_v41  ;;  %v4625_v22 = vadd.s32 %v4624_v37, %v4614_v13  ;;  %v4644_v24 = vsel %vm4643_vm8, 1, %v12221_v6  ;;  %vm12758_vm2 = vcmp.lt.s32.totalorder %v12741_v20, 4 }
 0x6a0   :  { %v4531_v58 = vadd.f32 0.041655596, %v4530_v26  ;;  %v4538_v30 = vadd.f32 0.008332121, %v4537_v31  ;;  %v5123_v10 = vsub.s32 %v5119_v49, %v5122_v48  ;;  %v4593_v9 = vsel %vm12758_vm2, %v12757_v17, 2102212464 }
 0x6a1   :  { %vm12760_vm6 = vcmp.lt.s32.totalorder %v12741_v20, 1  ;;  %v4616_v18 = vshrl.u32 %v4611_v46, 16  ;;  %v4636_v27 = vshrl.u32 %v4632_v60, 16  ;;  %v4646_v59 = vadd.s32 %v4644_v24, %v4642_v23  ;;  %v12764_v49 = vld [vmem:[#allocation33_spill] sm:$0xff] }
 0x6a2   :  { %v4592_v56 = vsel %vm12760_vm6, %v4572_v54, %v12759_v0  ;;  %v4532_v16 = vmul.f32 %v4531_v58, %v4529_v3  ;;  %v4539_v34 = vmul.f32 %v4538_v30, %v4529_v3  ;;  %vm5124_vm5 = vcmp.lt.s32.totalorder %v5123_v10, 0 }
 0x6a3   :  { %v5125_v62 = vsub.s32 0, %v5123_v10  ;;  %vm12762_vm10 = vcmp.lt.s32.totalorder %v12741_v20, 3  ;;  %v11740_v32 = vadd.s32 %v4625_v22, %v4616_v18  ;;  %v4638_v1 = vshrl.u32 %v11693_v38, 16  ;;  %v12766_v20 = vld [vmem:[#allocation24_spill] sm:$0xff] }
 0x6a4   :  { %v4594_v4 = vsel %vm12762_vm10, %v12761_v63, %v4593_v9  ;;  %v4647_v15 = vadd.s32 %v4646_v59, %v4636_v27  ;;  %v4135_v46 = vsel %vm4123_vm7, %v12754_v33, %v12763_v55  ;;  %v4533_v60 = vadd.f32 -0.4999988, %v4532_v16 }
 0x6a5   :  { %v4540_v51 = vadd.f32 -0.16666654, %v4539_v34  ;;  %v5126_v29 = vsel %vm5124_vm5, %v5125_v62, %v5123_v10  ;;  %v4133_v61 = vsel %vm4125_vm1, %v12763_v55, %v12764_v49  ;;  %v11751_v52 = vadd.s32 %v4641_v43, %v4637_v39 }
 0x6a6   :  { %v5127_v14 = vclz %v5126_v29  ;;  %v4648_v53 = vadd.s32 %v4647_v15, %v4638_v1  ;;  %v4137_v38 = vsel %vm4125_vm1, %v12765_v12, %v4136_v42  ;;  %v4534_v19 = vmul.f32 %v4533_v60, %v4529_v3 }
 0x6a7   :  { %v4541_v45 = vmul.f32 %v4540_v51, %v4529_v3  ;;  %v4595_v25 = vsel %vm4589_vm9, %v4592_v56, %v4594_v4  ;;  %vm4544_vm0 = vweird.f32 %v12736_v44  ;;  %vm4547_vm12 = vcmp.lt.s32.totalorder %v11726_v47, 2  ;;  %v12768_v56 = vld [vmem:[#allocation58_spill] sm:$0xff]  ;;  %v12769_v4 = vld [vmem:[#allocation73_spill] sm:$0xff] }
 0x6a8   :  { %vm4548_vm11 = vcmp.eq.s32.totalorder %v11726_v47, 0  ;;  %v6204_v50 = vadd.s32 4294967294, %v5127_v14  ;;  %vm4651_vm15 = vc.u32 %v11740_v32, %v11751_v52  ;;  %v4535_v39 = vadd.f32 1.0, %v4534_v19 }
 0x6a9   :  { %v4542_v43 = vadd.f32 1.0, %v4541_v45  ;;  %v4652_v11 = vadd.s32 1, %v4648_v53  ;;  %vm4124_vm3 = vcmp.lt.s32.totalorder %v12747_v2, 2  ;;  %vm4551_vm4 = vcmp.eq.s32.totalorder %v11726_v47, 2 }
 0x6aa   :  { %vm6205_vm14 = vcmp.lt.s32.totalorder %v6204_v50, 0  ;;  %v4649_v57 = vmul.u32 %v12766_v20, %v4595_v25  ;;  %v4138_v42 = vsel %vm4124_vm3, %v4135_v46, %v4137_v38  ;;  %v4552_v8 = vxor.u32 2147483648, %v4535_v39  ;;  %v12773_v20 = vld [vmem:[#allocation9_spill] sm:$0xff] }
 0x6ab   :  { %v4543_v3 = vmul.f32 %v4542_v43, %v11708_v40  ;;  %v5130_v13 = vsel %vm6205_vm14, 0, %v6204_v50  ;;  %v4653_v37 = vsel %vm4651_vm15, %v4652_v11, %v4648_v53  ;;  %v5115_v23 = vadd.s32 %v11684_v5, %v11672_v36  ;;  %v12767_v36 = vld [vmem:[#allocation59_spill] sm:$0xff] }
 0x6ac   :  { %v5131_v26 = vsub.s32 32, %v5130_v13  ;;  %v5135_v31 = vsub.s32 4294967266, %v5130_v13  ;;  %v4654_v48 = vadd.s32 %v4653_v37, %v4649_v57  ;;  %v4134_v54 = vsel %vm4124_vm3, %v4131_v7, %v4133_v61 }
 0x6ad   :  { %v4549_v41 = vxor.u32 2147483648, %v4543_v3  ;;  %v4142_v22 = vand.u32 65535, %v4138_v42  ;;  %v4143_v24 = vshrl.u32 %v4138_v42, 16  ;;  %v5132_v58 = vshll.u32 %v5123_v10, %v5130_v13 }
 0x6ae   :  { %v5133_v30 = vshrl.u32 %v5115_v23, %v5131_v26  ;;  %v5136_v17 = vadd.s32 127, %v5135_v31  ;;  %v4655_v9 = vadd.s32 536870912, %v4654_v48  ;;  %v4553_v0 = vsel %vm4551_vm4, %v4552_v8, %v4543_v3 }
 0x6af   :  { %v4550_v40 = vsel %vm4548_vm11, %v4535_v39, %v4549_v41  ;;  %v4145_v5 = vmul.u32 %v4143_v24, %v12767_v36  ;;  %v11779_v18 = vmul.u32 %v4142_v22, %v12768_v56  ;;  %v5145_v34 = vsub.s32 4, %v11718_v28 }
 0x6b0   :  { %v4554_v7 = vsel %vm4547_vm12, %v4550_v40, %v4553_v0  ;;  %v5134_v27 = vor.u32 %v5133_v30, %v5132_v58  ;;  %v5137_v59 = vshll.u32 %v5136_v17, 23  ;;  %v11783_v10 = vshrl.u32 %v4655_v9, 30 }
 0x6b1   :  { %v4555_v16 = vsel %vm4544_vm0, nan, %v4554_v7  ;;  %v4144_v62 = vmul.u32 %v4142_v22, %v12767_v36  ;;  %v4148_v63 = vshll.u32 %v4145_v5, 16  ;;  %vm5023_vm9 = vcmp.lt.s32.totalorder %v12769_v4, 0 }
 0x6b2   :  { %6047 = vmatpush.msra.mxu3 %v4555_v16  ;;  %v5138_v1 = vor.u32 4788187, %v5137_v59  ;;  %v4657_v15 = vshll.u32 %v11783_v10, 30  ;;  %v4165_v47 = vshrl.u32 %v4134_v54, 16  ;;  %v4147_v46 = vmul.u32 %v4143_v24, %v12768_v56 }
 0x6b3   :  { %v4150_v60 = vshll.u32 %v11779_v18, 16  ;;  %vm4152_vm13 = vc.u32 %v4144_v62, %v4148_v63  ;;  %v4154_v51 = vadd.s32 %v4148_v63, %v4144_v62  ;;  %v5141_v29 = vcvt.s32.f32 %v5134_v27 }
 0x6b4   :  { %v5139_v44 = vand.u32 2147483647, %v5138_v1  ;;  %v4658_v49 = vsub.s32 %v4654_v48, %v4657_v15  ;;  %v4153_v61 = vsel %vm4152_vm13, 1, %v12221_v6  ;;  %v5146_v14 = vsel %vm5023_vm9, %v5145_v34, %v11718_v28 }
 0x6b5   :  { %v4155_v53 = vadd.s32 %v4153_v61, %v4147_v46  ;;  %vm4156_vm8 = vc.u32 %v4154_v51, %v4150_v60  ;;  %v4164_v12 = vand.u32 65535, %v4134_v54  ;;  %v12770_v45 = vand.u32 2147483647, %v12769_v4 }
 0x6b6   :  { %v5142_v38 = vmul.f32 %v5141_v29, %v5139_v44  ;;  %vm4659_vm2 = vcmp.lt.s32.totalorder %v4658_v49, 0  ;;  %v4660_v19 = vsub.s32 0, %v4658_v49  ;;  %v4157_v50 = vsel %vm4156_vm8, 1, %v12221_v6 }
 0x6b7   :  { %vm11799_vm6 = vcmp.le.f32.partialorder %v12770_v45, 0.7853982  ;;  %v4167_v39 = vmul.u32 %v4165_v47, %v12767_v36  ;;  %v4107_v57 = vshrl.u32 %v12337_v35, %v12773_v20  ;;  %v4159_v3 = vadd.s32 %v4157_v50, %v4155_v53 }
 0x6b8   :  { %v5143_v43 = vxor.u32 2147483648, %v5142_v38  ;;  %v5148_v28 = vsel %vm11799_vm6, 0, %v5146_v14  ;;  %v4661_v11 = vsel %vm4659_vm2, %v4660_v19, %v4658_v49  ;;  %v4168_v8 = vmul.u32 %v4164_v12, %v12768_v56 }
 0x6b9   :  { %v4662_v42 = vclz %v4661_v11  ;;  %v4170_v13 = vshll.u32 %v4167_v39, 16  ;;  %v4650_v23 = vadd.s32 %v11751_v52, %v11740_v32  ;;  %v4127_v26 = vsel %vm4123_vm7, %v4107_v57, %v12755_v21 }
 0x6ba   :  { %v5144_v37 = vsel %vm5023_vm9, %v5143_v43, %v5142_v38  ;;  %v4166_v31 = vmul.u32 %v4164_v12, %v12767_v36  ;;  %vm12774_vm5 = vcmp.lt.s32.totalorder %v12747_v2, 4  ;;  %v4149_v54 = vshrl.u32 %v4145_v5, 16  ;;  %v12775_v43 = vld [vmem:[#allocation16_spill] sm:$0xff] }
 0x6bb   :  { %v5147_v35 = vsel %vm11799_vm6, %v12769_v4, %v5144_v37  ;;  %v6195_v48 = vadd.s32 4294967294, %v4662_v42  ;;  %v4128_v41 = vsel %vm12774_vm5, %v12763_v55, 2102212464  ;;  %v4169_v24 = vmul.u32 %v4165_v47, %v12768_v56 }
 0x6bc   :  { %v5149_v22 = vmul.f32 %v5147_v35, %v5147_v35  ;;  %vm4174_vm10 = vc.u32 %v4166_v31, %v4170_v13  ;;  %v4176_v32 = vadd.s32 %v4170_v13, %v4166_v31  ;;  %v4160_v52 = vadd.s32 %v4159_v3, %v4149_v54  ;;  %v12776_v3 = vld [vmem:[#allocation44_spill] sm:$0xff] }
 0x6bd   :  { %vm6196_vm0 = vcmp.lt.s32.totalorder %v6195_v48, 0  ;;  %v4172_v21 = vshll.u32 %v4168_v8, 16  ;;  %v4175_v58 = vsel %vm4174_vm10, 1, %v12221_v6  ;;  %v4151_v7 = vshrl.u32 %v11779_v18, 16 }
 0x6be   :  { %v5150_v30 = vmul.f32 -0.001358992, %v5149_v22  ;;  %v5157_v17 = vmul.f32 -0.00019511016, %v5149_v22  ;;  %v4665_v9 = vsel %vm6196_vm0, 0, %v6195_v48  ;;  %v4177_v40 = vadd.s32 %v4175_v58, %v4169_v24 }
 0x6bf   :  { %v4666_v0 = vsub.s32 32, %v4665_v9  ;;  %v4670_v36 = vsub.s32 4294967266, %v4665_v9  ;;  %vm4178_vm7 = vc.u32 %v4176_v32, %v4172_v21  ;;  %v4171_v27 = vshrl.u32 %v4167_v39, 16 }
 0x6c0   :  { %v5151_v55 = vadd.f32 0.041655596, %v5150_v30  ;;  %v5158_v5 = vadd.f32 0.008332121, %v5157_v17  ;;  %v4179_v56 = vsel %vm4178_vm7, 1, %v12221_v6  ;;  %v4667_v59 = vshll.u32 %v4658_v49, %v4665_v9 }
 0x6c1   :  { %v4668_v16 = vshrl.u32 %v4650_v23, %v4666_v0  ;;  %v4671_v34 = vadd.s32 127, %v4670_v36  ;;  %v4181_v62 = vadd.s32 %v4179_v56, %v4177_v40  ;;  %v4129_v15 = vsel %vm4125_vm1, %v12754_v33, %v4128_v41 }
 0x6c2   :  { %v5152_v63 = vmul.f32 %v5151_v55, %v5149_v22  ;;  %v5159_v1 = vmul.f32 %v5158_v5, %v5149_v22  ;;  %v11831_v47 = vadd.s32 %v4160_v52, %v4151_v7  ;;  %v4173_v60 = vshrl.u32 %v4168_v8, 16 }
 0x6c3   :  { %v4669_v46 = vor.u32 %v4668_v16, %v4667_v59  ;;  %v4672_v18 = vshll.u32 %v4671_v34, 23  ;;  %v4182_v51 = vadd.s32 %v4181_v62, %v4171_v27  ;;  %v5165_v61 = vadd.s32 3, %v5148_v28 }
 0x6c4   :  { %v5153_v44 = vadd.f32 -0.4999988, %v5152_v63  ;;  %v5160_v29 = vadd.f32 -0.16666654, %v5159_v1  ;;  %v11833_v6 = vadd.s32 %v4176_v32, %v4172_v21  ;;  %v4130_v14 = vsel %vm4124_vm3, %v4127_v26, %v4129_v15 }
 0x6c5   :  { %v4673_v49 = vor.u32 4788187, %v4672_v18  ;;  %v4183_v53 = vadd.s32 %v4182_v51, %v4173_v60  ;;  %v4676_v19 = vcvt.s32.f32 %v4669_v46  ;;  %v5166_v39 = vand.u32 3, %v5165_v61 }
 0x6c6   :  { %v5154_v12 = vmul.f32 %v5153_v44, %v5149_v22  ;;  %v5161_v38 = vmul.f32 %v5160_v29, %v5149_v22  ;;  %vm4186_vm1 = vc.u32 %v11831_v47, %v11833_v6  ;;  %v4184_v28 = vmul.u32 %v12775_v43, %v4130_v14 }
 0x6c7   :  { %v4674_v33 = vand.u32 2147483647, %v4673_v49  ;;  %v4187_v45 = vadd.s32 1, %v4183_v53  ;;  %vm4558_vm12 = vcmp.lt.s32.totalorder %v12776_v3, 0  ;;  %vm5167_vm11 = vcmp.lt.s32.totalorder %v5166_v39, 2 }
 0x6c8   :  { %v5155_v25 = vadd.f32 1.0, %v5154_v12  ;;  %v5162_v50 = vadd.f32 1.0, %v5161_v38  ;;  %v12777_v37 = vand.u32 2147483647, %v12776_v3  ;;  %vm5168_vm3 = vcmp.eq.s32.totalorder %v5166_v39, 0 }
 0x6c9   :  { %v4677_v11 = vmul.f32 %v4676_v19, %v4674_v33  ;;  %v4188_v20 = vsel %vm4186_vm1, %v4187_v45, %v4183_v53  ;;  %vm5171_vm4 = vcmp.eq.s32.totalorder %v5166_v39, 2  ;;  %vm5164_vm14 = vweird.f32 %v12769_v4 }
 0x6ca   :  { %v5163_v57 = vmul.f32 %v5162_v50, %v5147_v35  ;;  %v5172_v42 = vxor.u32 2147483648, %v5155_v25  ;;  %v4189_v2 = vadd.s32 %v4188_v20, %v4184_v28  ;;  %vm11843_vm15 = vcmp.le.f32.partialorder %v12777_v37, 0.7853982  ;;  %v5965_v50 = vpop.permute.xlu1 %5964  ;;  %v5967_v28 = vpop.permute.xlu2 %5966  ;;  %v12782_v20 = vld [vmem:[#allocation60_spill] sm:$0xff] }
 0x6cb   :  { %v4678_v8 = vxor.u32 2147483648, %v4677_v11  ;;  %v4680_v35 = vsub.s32 4, %v11783_v10  ;;  %v4185_v51 = vadd.s32 %v11833_v6, %v11831_v47  ;;  %vm4699_vm5 = vweird.f32 %v12776_v3 }
 0x6cc   :  { %v5169_v13 = vxor.u32 2147483648, %v5163_v57  ;;  %v4190_v26 = vadd.s32 536870912, %v4189_v2  ;;  %v5173_v41 = vsel %vm5171_vm4, %v5172_v42, %v5163_v57  ;;  %vm12780_vm10 = vcmask 261120  }
 0x6cd   :  { %v4679_v31 = vsel %vm4558_vm12, %v4678_v8, %v4677_v11  ;;  %v4681_v17 = vsel %vm4558_vm12, %v4680_v35, %v11783_v10  ;;  %6225 = vmatmul.msk.f32.vlgmr.msra.gmra.mxu2 %vm12780_vm10, %v5965_v50  ;;  %vm12781_vm0 = vmmov %vm12780_vm10  ;;  %vm4093_vm7 = vcmp.lt.s32.totalorder %v12782_v20, 0  ;;  %v12783_v57 = vand.u32 2147483647, %v12782_v20 }
 0x6ce   :  { %v5170_v48 = vsel %vm5168_vm3, %v5155_v25, %v5169_v13  ;;  %v4682_v54 = vsel %vm11843_vm15, %v12776_v3, %v4679_v31  ;;  %v11853_v22 = vshrl.u32 %v4190_v26, 30  ;;  %v4683_v4 = vsel %vm11843_vm15, 0, %v4681_v17  ;;  %6229 = vmatmul.msk.f32.vlgmr.msra.gmra.mxu3 %vm12781_vm0, %v5965_v50  ;;  %vm12786_vm12 = vmmov %vm12781_vm0  ;;  %v5969_v31 = vpop.permute.xlu0 %5968 }
 0x6cf   :  { %v5174_v24 = vsel %vm5167_vm11, %v5170_v48, %v5173_v41  ;;  %v4684_v32 = vmul.f32 %v4682_v54, %v4682_v54  ;;  %v4700_v16 = vadd.s32 3, %v4683_v4  ;;  %vm11870_vm1 = vcmp.le.f32.partialorder %v12783_v57, 0.7853982  ;;  %vm12787_vm11 = vmmov %vm12781_vm0 }
 0x6d0   :  { %v5175_v52 = vsel %vm5164_vm14, nan, %v5174_v24  ;;  %v4192_v21 = vshll.u32 %v11853_v22, 30  ;;  %v4215_v3 = vsub.s32 4, %v11853_v22  ;;  %vm12788_vm15 = vmmov %vm12781_vm0  ;;  %v6270_v4 = vmov 2  }
 0x6d1   :  { %5993 = vmatpush.msra.mxu1 %v5175_v52  ;;  %v4685_v58 = vmul.f32 -0.001358992, %v4684_v32  ;;  %v4692_v30 = vmul.f32 -0.00019511016, %v4684_v32  ;;  %v4701_v15 = vand.u32 3, %v4700_v16  ;;  %vm12789_vm3 = vmmov %vm12781_vm0  ;;  %6249 = vset.pattern.permute.xlu2 %v6270_v4 }
 0x6d2   :  { %v4193_v9 = vsub.s32 %v4189_v2, %v4192_v21  ;;  %v4216_v26 = vsel %vm4093_vm7, %v4215_v3, %v11853_v22  ;;  %v5971_v17 = vpop.permute.xlu1 %5970  ;;  %vm12790_vm4 = vmmov %vm12781_vm0  ;;  %6250 = vset.pattern.permute.xlu0 %v6270_v4 }
 0x6d3   :  { %v4686_v40 = vadd.f32 0.041655596, %v4685_v58  ;;  %v4693_v0 = vadd.f32 0.008332121, %v4692_v30  ;;  %vm4703_vm8 = vcmp.eq.s32.totalorder %v4701_v15, 0  ;;  %vm4706_vm2 = vcmp.eq.s32.totalorder %v4701_v15, 2  ;;  %vm12791_vm14 = vmmov %vm12781_vm0 }
 0x6d4   :  { %vm4194_vm9 = vcmp.lt.s32.totalorder %v4193_v9, 0  ;;  %v4195_v36 = vsub.s32 0, %v4193_v9  ;;  %vm4702_vm6 = vcmp.lt.s32.totalorder %v4701_v15, 2  ;;  %v4218_v41 = vsel %vm11870_vm1, 0, %v4216_v26  ;;  %vm12794_vm10 = vmmov %vm12781_vm0 }
 0x6d5   :  { %v4687_v7 = vmul.f32 %v4686_v40, %v4684_v32  ;;  %v4694_v55 = vmul.f32 %v4693_v0, %v4684_v32  ;;  %6226 = vmatmul.msk.f32.gmra.mxu2 %vm12786_vm12, %v5967_v28  ;;  %v4235_v21 = vadd.s32 3, %v4218_v41 }
 0x6d6   :  { %v4196_v5 = vsel %vm4194_vm9, %v4195_v36, %v4193_v9  ;;  %6230 = vmatmul.msk.f32.gmra.mxu3 %vm12787_vm11, %v5967_v28 }
 0x6d7   :  { %v4688_v27 = vadd.f32 -0.4999988, %v4687_v7  ;;  %v4695_v56 = vadd.f32 -0.16666654, %v4694_v55  ;;  %v4197_v59 = vclz %v4196_v5  ;;  %v4236_v40 = vand.u32 3, %v4235_v21  ;;  %v6259_v55 = vld [vmem:[%s11900_s3] sm:$0xff] }
 0x6d8   :  { %5952 = vperm.xlu2 %6249, %v6259_v55  }
 0x6d9   :  { %v4689_v34 = vmul.f32 %v4688_v27, %v4684_v32  ;;  %v4696_v62 = vmul.f32 %v4695_v56, %v4684_v32  ;;  %v6186_v63 = vadd.s32 4294967294, %v4197_v59  ;;  %vm4238_vm9 = vcmp.eq.s32.totalorder %v4236_v40, 0 }
 0x6db   :  { %v4690_v1 = vadd.f32 1.0, %v4689_v34  ;;  %v4697_v10 = vadd.f32 1.0, %v4696_v62  ;;  %vm6187_vm13 = vcmp.lt.s32.totalorder %v6186_v63, 0 }
 0x6dc   :  { %v4200_v46 = vsel %vm6187_vm13, 0, %v6186_v63  ;;  %vm4241_vm13 = vcmp.eq.s32.totalorder %v4236_v40, 2 }
 0x6dd   :  { %v4698_v18 = vmul.f32 %v4697_v10, %v4682_v54  ;;  %v4707_v60 = vxor.u32 2147483648, %v4690_v1  ;;  %v4201_v44 = vsub.s32 32, %v4200_v46  ;;  %v4205_v29 = vsub.s32 4294967266, %v4200_v46  ;;  %6227 = vmatmul.msk.f32.gmra.mxu2 %vm12788_vm15, %v5969_v31 }
 0x6de   :  { %v4202_v14 = vshll.u32 %v4193_v9, %v4200_v46  ;;  %6231 = vmatmul.msk.f32.gmra.mxu3 %vm12789_vm3, %v5969_v31 }
 0x6df   :  { %v4704_v61 = vxor.u32 2147483648, %v4698_v18  ;;  %v4203_v49 = vshrl.u32 %v4185_v51, %v4201_v44  ;;  %v4206_v53 = vadd.s32 127, %v4205_v29  ;;  %v4708_v38 = vsel %vm4706_vm2, %v4707_v60, %v4698_v18 }
 0x6e0   :  { %vm4234_vm2 = vweird.f32 %v12782_v20  ;;  %v6068_v60 = vlaneseq }
 0x6e1   :  { %v4705_v12 = vsel %vm4703_vm8, %v4690_v1, %v4704_v61  ;;  %v4204_v19 = vor.u32 %v4203_v49, %v4202_v14  ;;  %v4207_v45 = vshll.u32 %v4206_v53, 23  ;;  %vm4237_vm8 = vcmp.lt.s32.totalorder %v4236_v40, 2 }
 0x6e2   :  { %v4709_v33 = vsel %vm4702_vm6, %v4705_v12, %v4708_v38  ;;  %vm12792_vm6 = vmmov %vm12781_vm0  ;;  %vm6070_vm12 = vcmp.lt.s32.totalorder %v6068_v60, 384 }
 0x6e3   :  { %v4710_v25 = vsel %vm4699_vm5, nan, %v4709_v33  ;;  %v4208_v47 = vor.u32 4788187, %v4207_v45  ;;  %v4211_v39 = vcvt.s32.f32 %v4204_v19  ;;  %vm12793_vm5 = vmmov %vm12781_vm0 }
 0x6e4   :  { %5994 = vmatpush.msra.mxu1 %v4710_v25 }
 0x6e5   :  { %v4209_v6 = vand.u32 2147483647, %v4208_v47  ;;  %6228 = vmatmul.msk.f32.gmra.mxu2 %vm12790_vm4, %v5971_v17 }
 0x6e6   :  { %6232 = vmatmul.msk.f32.gmra.mxu3 %vm12791_vm14, %v5971_v17 }
 0x6e7   :  { %v4212_v43 = vmul.f32 %v4211_v39, %v4209_v6 }
 0x6e9   :  { %v4213_v11 = vxor.u32 2147483648, %v4212_v43 }
 0x6eb   :  { %v4214_v2 = vsel %vm4093_vm7, %v4213_v11, %v4212_v43  ;;  %vm6063_vm7 = vcmask 1040384  }
 0x6ec   :  { %v4217_v8 = vsel %vm11870_vm1, %v12782_v20, %v4214_v2  ;;  %vm6065_vm1 = vcmask 1041408  }
 0x6ed   :  { %v4219_v13 = vmul.f32 %v4217_v8, %v4217_v8 }
 0x6ef   :  { %v4220_v37 = vmul.f32 -0.001358992, %v4219_v13  ;;  %v4227_v23 = vmul.f32 -0.00019511016, %v4219_v13 }
 0x6f1   :  { %v4221_v35 = vadd.f32 0.041655596, %v4220_v37  ;;  %v4228_v48 = vadd.f32 0.008332121, %v4227_v23 }
 0x6f3   :  { %v4222_v54 = vmul.f32 %v4221_v35, %v4219_v13  ;;  %v4229_v24 = vmul.f32 %v4228_v48, %v4219_v13 }
 0x6f5   :  { %v4223_v32 = vadd.f32 -0.4999988, %v4222_v54  ;;  %v4230_v52 = vadd.f32 -0.16666654, %v4229_v24 }
 0x6f7   :  { %v4224_v58 = vmul.f32 %v4223_v32, %v4219_v13  ;;  %v4231_v30 = vmul.f32 %v4230_v52, %v4219_v13 }
 0x6f9   :  { %v4225_v9 = vadd.f32 1.0, %v4224_v58  ;;  %v4232_v22 = vadd.f32 1.0, %v4231_v30 }
 0x6fb   :  { %v4233_v0 = vmul.f32 %v4232_v22, %v4217_v8  ;;  %v4242_v36 = vxor.u32 2147483648, %v4225_v9 }
 0x6fd   :  { %v4239_v7 = vxor.u32 2147483648, %v4233_v0  ;;  %v4243_v27 = vsel %vm4241_vm13, %v4242_v36, %v4233_v0 }
 0x6ff   :  { %v4240_v5 = vsel %vm4238_vm9, %v4225_v9, %v4239_v7 }
 0x700   :  { %v4244_v56 = vsel %vm4237_vm8, %v4240_v5, %v4243_v27 }
 0x701   :  { %v4245_v59 = vsel %vm4234_vm2, nan, %v4244_v56 }
 0x702   :  { %5995 = vmatpush.msra.mxu1 %v4245_v59 }
 0x703   :  { %6221 = vmatmul.msk.f32.vlgmr.msra.gmra.mxu1 %vm12792_vm6, %v5965_v50 }
 0x70b   :  { %6222 = vmatmul.msk.f32.gmra.mxu1 %vm12793_vm5, %v5967_v28 }
 0x713   :  { %6223 = vmatmul.msk.f32.gmra.mxu1 %vm12794_vm10, %v5969_v31 }
 0x71b   :  { %6224 = vmatmul.msk.f32.gmra.mxu1 %vm12781_vm0, %v5971_v17 }
 0x732   :  { %v5953_v15 = vpop.permute.xlu2 %5952 }
 0x750   :  { %v6023_v16 = vpop.f32.mrf.mxu2 }
 0x751   :  { %v6049_v34 = vpop.f32.mrf.mxu3  ;;  %v6024_v46 = vadd.f32 %v6023_v16, %v5953_v15 }
 0x752   :  { %v6050_v18 = vadd.f32 %v6049_v34, %v5953_v15 }
 0x753   :  { %v6061_v44 = vrot.slane %v6024_v46, 7 }
 0x754   :  { %v6062_v61 = vrot.slane %v6050_v18, 6 }
 0x758   :  { %v6026_v62 = vpop.f32.mrf.mxu2 }
 0x759   :  { %v6052_v63 = vpop.f32.mrf.mxu3 }
 0x760   :  { %v6028_v1 = vpop.f32.mrf.mxu2 }
 0x761   :  { %v6054_v10 = vpop.f32.mrf.mxu3 }
 0x768   :  { %v6030_v51 = vpop.f32.mrf.mxu2 }
 0x769   :  { %v6056_v29 = vpop.f32.mrf.mxu3 }
 0x780   :  { %v5997_v49 = vpop.f32.mrf.mxu1 }
 0x781   :  { %v5998_v14 = vadd.f32 %v5997_v49, %v5953_v15 }
 0x783   :  { %v6064_v53 = vsel %vm6063_vm7, %v5998_v14, %v6061_v44 }
 0x784   :  { %v6066_v12 = vsel %vm6065_vm1, %v6064_v53, %v6062_v61 }
 0x785   :  { %6072 = vst.msk [vmem:[%s11902_s4] sm:$0x7] %vm6070_vm12, %v6066_v12 }
 0x788   :  { %v6000_v38 = vpop.f32.mrf.mxu1 }
 0x790   :  { %v6002_v33 = vpop.f32.mrf.mxu1 }
 0x798   :  { %v6004_v19 = vpop.f32.mrf.mxu1 }

</bundles_post_ra>
